<compile_context>
chip_gen: v7x
topology: tpu7x:2x2x1
jax: 0.10.0
libtpu: 0.0.40
codegen_flags: <defaults>
</compile_context>

<pallas_src>
import jax
import jax.numpy as jnp
from jax.experimental import pallas as pl
from jax.experimental.pallas import tpu as pltpu


# ----------------------------------------------------------------------------
# Fully fused ResNet kernel (one grid step == one image, everything in VMEM)
# ----------------------------------------------------------------------------
def _make_resnet_kernel(H, W, stem_cin, block_cfgs, num_classes):
    """Build the fused forward kernel.

    block_cfgs: list of dicts {"stride", "cin", "planes"} (static config).
    """
    nb = len(block_cfgs)

    def kernel(*refs):
        it = iter(refs)
        x_ref = next(it)
        w0_ref, sb0_ref = next(it), next(it)
        blk_refs = [(next(it), next(it), next(it), next(it)) for _ in range(nb)]
        fcw_ref, fcb_ref = next(it), next(it)
        o_ref = next(it)
        pad0_ref = next(it)
        pad_refs = [(next(it), next(it)) for _ in range(nb)]

        def conv3x3(pad_ref, h, w, s, cin_, w_ref, sb_ref, relu):
            """3x3 conv (stride s) from a zero-padded (h+2, w+2, cin_) VMEM ref.

            im2col -> ONE bf16 MXU matmul with K = 9*cin_, f32 accumulation,
            folded-BN affine (+ optional ReLU) in f32. Returns (h//s * w//s, cout)."""
            ho, wo = h // s, w // s
            parts = []
            for ky in range(3):
                for kx in range(3):
                    if s == 1:
                        p = pad_ref[ky:ky + h, kx:kx + w, :]
                    else:
                        # column stride: strided load; row stride: split the
                        # major dim (cheap reshape) and keep index 0.
                        p = pad_ref[ky:ky + h, pl.ds(kx, wo, s), :]
                        p = p.reshape(ho, s, wo, cin_)[:, 0]
                    parts.append(p.reshape(ho * wo, cin_))
            patches = jnp.concatenate(parts, axis=-1).astype(jnp.bfloat16)
            acc = jnp.dot(patches, w_ref[...],
                          preferred_element_type=jnp.float32)
            out = acc * sb_ref[0:1, :] + sb_ref[1:2, :]          # folded BN, f32 epilogue
            if relu:
                out = jnp.maximum(out, 0.0)
            return out

        # ---- stem: relu(bn1(conv1(img))) ----
        x = x_ref[0].astype(jnp.float32)                         # (H, W, stem_cin)
        pad0_ref[...] = jnp.zeros_like(pad0_ref)
        pad0_ref[1:H + 1, 1:W + 1, :] = x
        c0 = block_cfgs[0]["cin"]                                # = 16
        feat = conv3x3(pad0_ref, H, W, 1, stem_cin, w0_ref, sb0_ref, True)
        feat = feat.reshape(H, W, c0)
        h, w = H, W

        # ---- BasicBlocks, all intermediates stay in VMEM / vregs ----
        for bi, cfg in enumerate(block_cfgs):
            stride, cin_b, planes = cfg["stride"], cfg["cin"], cfg["planes"]
            ho, wo = h // stride, w // stride
            w1_ref, sb1_ref, w2_ref, sb2_ref = blk_refs[bi]
            pad1_ref, pad2_ref = pad_refs[bi]

            pad1_ref[...] = jnp.zeros_like(pad1_ref)
            pad1_ref[1:h + 1, 1:w + 1, :] = feat

            # conv1 (stride applied in-kernel) + bn + relu
            h1 = conv3x3(pad1_ref, h, w, stride, cin_b, w1_ref, sb1_ref, True)
            pad2_ref[...] = jnp.zeros_like(pad2_ref)
            pad2_ref[1:ho + 1, 1:wo + 1, :] = h1.reshape(ho, wo, planes)

            # conv2 + bn
            out = conv3x3(pad2_ref, ho, wo, 1, planes, w2_ref, sb2_ref, False)

            # shortcut: identity, or option-A subsample + zero channel pad
            if stride == 1 and cin_b == planes:
                sc = feat.reshape(ho * wo, planes)
            else:
                sc = pad1_ref[1:h + 1, pl.ds(1, wo, stride), :]
                sc = sc.reshape(ho, stride, wo, cin_b)[:, 0].reshape(ho * wo, cin_b)
                pad_lo = (planes - cin_b) // 2
                pad_hi = planes - cin_b - pad_lo
                sc = jnp.concatenate(
                    [jnp.zeros((ho * wo, pad_lo), jnp.float32), sc,
                     jnp.zeros((ho * wo, pad_hi), jnp.float32)], axis=-1)

            out = jnp.maximum(out + sc, 0.0)                     # (ho*wo, planes) f32
            feat = out.reshape(ho, wo, planes)
            h, w = ho, wo

        # ---- head: global avg pool + FC, logits written once per image ----
        planes = block_cfgs[-1]["planes"]
        pooled = jnp.mean(feat.reshape(h * w, planes), axis=0, keepdims=True)
        logits = jnp.dot(pooled, fcw_ref[...],
                         preferred_element_type=jnp.float32) + fcb_ref[...]
        o_ref[0] = logits                                        # (1, num_classes)

    return kernel


def _rep_spec(a):
    """Replicated (grid-invariant) BlockSpec for a whole weight array."""
    zeros = (0,) * a.ndim
    return pl.BlockSpec(a.shape, lambda n, _z=zeros: _z)


# ----------------------------------------------------------------------------
# Model glue (plain JAX): only layout plumbing around the single pallas_call
# ----------------------------------------------------------------------------
def resnet_forward(x_nchw, params):
    x = jnp.transpose(x_nchw, (0, 2, 3, 1))                      # NCHW -> NHWC
    N, H, W, C = x.shape
    stem_cin = params["stem_cin_pad"]
    x = jnp.pad(x, ((0, 0), (0, 0), (0, 0), (0, stem_cin - C)))  # 3 -> 8 channel zero-pad

    blocks = params["blocks"]
    num_classes = params["fc_w"].shape[-1]

    args = [x, params["w0"], params["sb0"]]
    in_specs = [pl.BlockSpec((1, H, W, stem_cin), lambda n: (n, 0, 0, 0)),
                _rep_spec(params["w0"]), _rep_spec(params["sb0"])]
    for bp in blocks:
        for name in ("w1", "sb1", "w2", "sb2"):
            args.append(bp[name])
            in_specs.append(_rep_spec(bp[name]))
    args += [params["fc_w"], params["fc_b"]]
    in_specs += [_rep_spec(params["fc_w"]), _rep_spec(params["fc_b"])]

    out_shape = jax.ShapeDtypeStruct((N, 1, num_classes), jnp.float32)
    out_spec = pl.BlockSpec((1, 1, num_classes), lambda n: (n, 0, 0))

    # VMEM scratch: one padded buffer per conv input (sizes are tiny; total << 1 MiB).
    scratch = [pltpu.VMEM((H + 2, W + 2, stem_cin), jnp.float32)]
    block_cfgs = []
    h, w = H, W
    for bp in blocks:
        s, cin, planes = bp["stride"], bp["cin"], bp["planes"]
        ho, wo = h // s, w // s
        scratch += [pltpu.VMEM((h + 2, w + 2, cin), jnp.float32),     # padded block input
                    pltpu.VMEM((ho + 2, wo + 2, planes), jnp.float32)]  # padded conv1 output
        block_cfgs.append({"stride": s, "cin": cin, "planes": planes})
        h, w = ho, wo

    kernel = _make_resnet_kernel(H, W, stem_cin, block_cfgs, num_classes)
    logits = pl.pallas_call(
        kernel,
        out_shape=out_shape,
        grid=(N,),
        in_specs=in_specs,
        out_specs=out_spec,
        scratch_shapes=scratch,
        compiler_params=pltpu.CompilerParams(dimension_semantics=("parallel",)),
    )(*args)
    return logits.reshape(N, num_classes)                        # (N, num_classes)


# ----------------------------------------------------------------------------
# Deterministic parameter init (kaiming_normal conv/linear, default eval-mode BN)
# ----------------------------------------------------------------------------
def init_params(key, num_blocks=(1, 1, 1), num_classes=10):
    keys = jax.random.split(key, 32)
    kit = iter(keys)

    def conv_w(cin, cout):
        fan_in = cin * 9
        return (jax.random.normal(next(kit), (3, 3, cin, cout), jnp.float32)
                * jnp.sqrt(2.0 / fan_in))

    def bn_fold(c, eps=1e-5):
        gamma = jnp.ones((c,), jnp.float32)
        beta = jnp.zeros((c,), jnp.float32)
        running_mean = jnp.zeros((c,), jnp.float32)
        running_var = jnp.ones((c,), jnp.float32)
        scale = gamma / jnp.sqrt(running_var + eps)
        bias = beta - running_mean * scale
        return jnp.stack([scale, bias], axis=0)                  # (2, c)

    STEM_CIN_PAD = 8                                             # pad Cin 3 -> 8 (K = 72)
    w0 = conv_w(3, 16)
    w0 = jnp.pad(w0, ((0, 0), (0, 0), (0, STEM_CIN_PAD - 3), (0, 0)))
    params = {
        "stem_cin_pad": STEM_CIN_PAD,
        "w0": w0.reshape(9 * STEM_CIN_PAD, 16).astype(jnp.bfloat16),
        "sb0": bn_fold(16),
    }

    blocks = []
    in_planes = 16
    for planes, nb, lstride in zip((16, 32, 64), num_blocks, (1, 2, 2)):
        for bi in range(nb):
            stride = lstride if bi == 0 else 1
            blocks.append({
                "stride": stride, "cin": in_planes, "planes": planes,
                "w1": conv_w(in_planes, planes).reshape(9 * in_planes, planes).astype(jnp.bfloat16),
                "sb1": bn_fold(planes),
                "w2": conv_w(planes, planes).reshape(9 * planes, planes).astype(jnp.bfloat16),
                "sb2": bn_fold(planes),
            })
            in_planes = planes
    params["blocks"] = blocks

    fan_in = 64
    params["fc_w"] = (jax.random.normal(next(kit), (64, num_classes), jnp.float32)
                      * jnp.sqrt(2.0 / fan_in))
    bound = 1.0 / jnp.sqrt(float(fan_in))
    params["fc_b"] = jax.random.uniform(next(kit), (1, num_classes), jnp.float32,
                                        -bound, bound)
    return params


if __name__ == "__main__":
    key = jax.random.PRNGKey(0)
    pkey, xkey = jax.random.split(key)
    params = init_params(pkey, num_blocks=(1, 1, 1), num_classes=10)

    # Small CIFAR-like input: NCHW, batch=2, 3 channels, 16x16 spatial.
    x = jax.random.normal(xkey, (2, 3, 16, 16), jnp.float32)

    logits = resnet_forward(x, params)
    logits = jax.block_until_ready(logits)
    assert logits.shape == (2, 10) and logits.dtype == jnp.float32
    assert bool(jnp.all(jnp.isfinite(logits)))
    print("KERNEL_OK")
</pallas_src>

<mosaic_0001>
module attributes {stable_mosaic.version = 11 : i64} {
  func.func @kernel(%arg0: i32, %arg1: memref<1x16x16x8xf32, #tpu.memory_space<vmem>>, %arg2: memref<72x16xbf16, #tpu.memory_space<vmem>>, %arg3: memref<2x16xf32, #tpu.memory_space<vmem>>, %arg4: memref<144x16xbf16, #tpu.memory_space<vmem>>, %arg5: memref<2x16xf32, #tpu.memory_space<vmem>>, %arg6: memref<144x16xbf16, #tpu.memory_space<vmem>>, %arg7: memref<2x16xf32, #tpu.memory_space<vmem>>, %arg8: memref<144x32xbf16, #tpu.memory_space<vmem>>, %arg9: memref<2x32xf32, #tpu.memory_space<vmem>>, %arg10: memref<288x32xbf16, #tpu.memory_space<vmem>>, %arg11: memref<2x32xf32, #tpu.memory_space<vmem>>, %arg12: memref<288x64xbf16, #tpu.memory_space<vmem>>, %arg13: memref<2x64xf32, #tpu.memory_space<vmem>>, %arg14: memref<576x64xbf16, #tpu.memory_space<vmem>>, %arg15: memref<2x64xf32, #tpu.memory_space<vmem>>, %arg16: memref<64x10xf32, #tpu.memory_space<vmem>>, %arg17: memref<1x10xf32, #tpu.memory_space<vmem>>, %arg18: memref<1x1x10xf32, #tpu.memory_space<vmem>>, %arg19: memref<18x18x8xf32, #tpu.memory_space<vmem>>, %arg20: memref<18x18x16xf32, #tpu.memory_space<vmem>>, %arg21: memref<18x18x16xf32, #tpu.memory_space<vmem>>, %arg22: memref<18x18x16xf32, #tpu.memory_space<vmem>>, %arg23: memref<10x10x32xf32, #tpu.memory_space<vmem>>, %arg24: memref<10x10x32xf32, #tpu.memory_space<vmem>>, %arg25: memref<6x6x64xf32, #tpu.memory_space<vmem>>) attributes {dimension_semantics = [#tpu.dimension_semantics<parallel>], iteration_bounds = array<i64: 2>, scalar_prefetch = 0 : i64, scratch_operands = 7 : i64, tpu.core_type = #tpu.core_type<tc>, window_params = [{transform_indices = @transform_0, window_bounds = array<i64: 1, 16, 16, 8>}, {pipeline_mode = #tpu.pipeline_mode<synchronous>, transform_indices = @transform_1, window_bounds = array<i64: 72, 16>}, {pipeline_mode = #tpu.pipeline_mode<synchronous>, transform_indices = @transform_2, window_bounds = array<i64: 2, 16>}, {pipeline_mode = #tpu.pipeline_mode<synchronous>, transform_indices = @transform_3, window_bounds = array<i64: 144, 16>}, {pipeline_mode = #tpu.pipeline_mode<synchronous>, transform_indices = @transform_4, window_bounds = array<i64: 2, 16>}, {pipeline_mode = #tpu.pipeline_mode<synchronous>, transform_indices = @transform_5, window_bounds = array<i64: 144, 16>}, {pipeline_mode = #tpu.pipeline_mode<synchronous>, transform_indices = @transform_6, window_bounds = array<i64: 2, 16>}, {pipeline_mode = #tpu.pipeline_mode<synchronous>, transform_indices = @transform_7, window_bounds = array<i64: 144, 32>}, {pipeline_mode = #tpu.pipeline_mode<synchronous>, transform_indices = @transform_8, window_bounds = array<i64: 2, 32>}, {pipeline_mode = #tpu.pipeline_mode<synchronous>, transform_indices = @transform_9, window_bounds = array<i64: 288, 32>}, {pipeline_mode = #tpu.pipeline_mode<synchronous>, transform_indices = @transform_10, window_bounds = array<i64: 2, 32>}, {pipeline_mode = #tpu.pipeline_mode<synchronous>, transform_indices = @transform_11, window_bounds = array<i64: 288, 64>}, {pipeline_mode = #tpu.pipeline_mode<synchronous>, transform_indices = @transform_12, window_bounds = array<i64: 2, 64>}, {pipeline_mode = #tpu.pipeline_mode<synchronous>, transform_indices = @transform_13, window_bounds = array<i64: 576, 64>}, {pipeline_mode = #tpu.pipeline_mode<synchronous>, transform_indices = @transform_14, window_bounds = array<i64: 2, 64>}, {pipeline_mode = #tpu.pipeline_mode<synchronous>, transform_indices = @transform_15, window_bounds = array<i64: 64, 10>}, {pipeline_mode = #tpu.pipeline_mode<synchronous>, transform_indices = @transform_16, window_bounds = array<i64: 1, 10>}, {transform_indices = @transform_17, window_bounds = array<i64: 1, 1, 10>}]} {
    %c0 = arith.constant 0 : index
    %c0_0 = arith.constant 0 : index
    %c0_1 = arith.constant 0 : index
    %c0_2 = arith.constant 0 : index
    %0 = vector.load %arg1[%c0, %c0_0, %c0_1, %c0_2] : memref<1x16x16x8xf32, #tpu.memory_space<vmem>>, vector<1x16x16x8xf32>
    %1 = vector.shape_cast %0 : vector<1x16x16x8xf32> to vector<16x16x8xf32>
    %cst = arith.constant 0.000000e+00 : f32
    %2 = vector.broadcast %cst : f32 to vector<18x18x8xf32>
    %c0_3 = arith.constant 0 : index
    %c0_4 = arith.constant 0 : index
    %c0_5 = arith.constant 0 : index
    %3 = vector.load %arg19[%c0_3, %c0_4, %c0_5] : memref<18x18x8xf32, #tpu.memory_space<vmem>>, vector<18x18x8xf32>
    tpu.vector_store %arg19[%c0_3, %c0_4, %c0_5], %2 {strides = array<i32>} : memref<18x18x8xf32, #tpu.memory_space<vmem>>, vector<18x18x8xf32>,
    %c1 = arith.constant 1 : index
    %c1_6 = arith.constant 1 : index
    %c0_7 = arith.constant 0 : index
    %4 = vector.load %arg19[%c1, %c1_6, %c0_7] : memref<18x18x8xf32, #tpu.memory_space<vmem>>, vector<16x16x8xf32>
    tpu.vector_store %arg19[%c1, %c1_6, %c0_7], %1 {strides = array<i32>} : memref<18x18x8xf32, #tpu.memory_space<vmem>>, vector<16x16x8xf32>,
    %c0_8 = arith.constant 0 : index
    %c0_9 = arith.constant 0 : index
    %c0_10 = arith.constant 0 : index
    %5 = vector.load %arg19[%c0_8, %c0_9, %c0_10] : memref<18x18x8xf32, #tpu.memory_space<vmem>>, vector<16x16x8xf32>
    %6 = vector.shape_cast %5 : vector<16x16x8xf32> to vector<256x8xf32>
    %c0_11 = arith.constant 0 : index
    %c1_12 = arith.constant 1 : index
    %c0_13 = arith.constant 0 : index
    %7 = vector.load %arg19[%c0_11, %c1_12, %c0_13] : memref<18x18x8xf32, #tpu.memory_space<vmem>>, vector<16x16x8xf32>
    %8 = vector.shape_cast %7 : vector<16x16x8xf32> to vector<256x8xf32>
    %c0_14 = arith.constant 0 : index
    %c2 = arith.constant 2 : index
    %c0_15 = arith.constant 0 : index
    %9 = vector.load %arg19[%c0_14, %c2, %c0_15] : memref<18x18x8xf32, #tpu.memory_space<vmem>>, vector<16x16x8xf32>
    %10 = vector.shape_cast %9 : vector<16x16x8xf32> to vector<256x8xf32>
    %c1_16 = arith.constant 1 : index
    %c0_17 = arith.constant 0 : index
    %c0_18 = arith.constant 0 : index
    %11 = vector.load %arg19[%c1_16, %c0_17, %c0_18] : memref<18x18x8xf32, #tpu.memory_space<vmem>>, vector<16x16x8xf32>
    %12 = vector.shape_cast %11 : vector<16x16x8xf32> to vector<256x8xf32>
    %c1_19 = arith.constant 1 : index
    %c1_20 = arith.constant 1 : index
    %c0_21 = arith.constant 0 : index
    %13 = vector.load %arg19[%c1_19, %c1_20, %c0_21] : memref<18x18x8xf32, #tpu.memory_space<vmem>>, vector<16x16x8xf32>
    %14 = vector.shape_cast %13 : vector<16x16x8xf32> to vector<256x8xf32>
    %c1_22 = arith.constant 1 : index
    %c2_23 = arith.constant 2 : index
    %c0_24 = arith.constant 0 : index
    %15 = vector.load %arg19[%c1_22, %c2_23, %c0_24] : memref<18x18x8xf32, #tpu.memory_space<vmem>>, vector<16x16x8xf32>
    %16 = vector.shape_cast %15 : vector<16x16x8xf32> to vector<256x8xf32>
    %c2_25 = arith.constant 2 : index
    %c0_26 = arith.constant 0 : index
    %c0_27 = arith.constant 0 : index
    %17 = vector.load %arg19[%c2_25, %c0_26, %c0_27] : memref<18x18x8xf32, #tpu.memory_space<vmem>>, vector<16x16x8xf32>
    %18 = vector.shape_cast %17 : vector<16x16x8xf32> to vector<256x8xf32>
    %c2_28 = arith.constant 2 : index
    %c1_29 = arith.constant 1 : index
    %c0_30 = arith.constant 0 : index
    %19 = vector.load %arg19[%c2_28, %c1_29, %c0_30] : memref<18x18x8xf32, #tpu.memory_space<vmem>>, vector<16x16x8xf32>
    %20 = vector.shape_cast %19 : vector<16x16x8xf32> to vector<256x8xf32>
    %c2_31 = arith.constant 2 : index
    %c2_32 = arith.constant 2 : index
    %c0_33 = arith.constant 0 : index
    %21 = vector.load %arg19[%c2_31, %c2_32, %c0_33] : memref<18x18x8xf32, #tpu.memory_space<vmem>>, vector<16x16x8xf32>
    %22 = vector.shape_cast %21 : vector<16x16x8xf32> to vector<256x8xf32>
    %23 = tpu.concatenate %6, %8, %10, %12, %14, %16, %18, %20, %22 in 1 : vector<256x8xf32>, vector<256x8xf32>, vector<256x8xf32>, vector<256x8xf32>, vector<256x8xf32>, vector<256x8xf32>, vector<256x8xf32>, vector<256x8xf32>, vector<256x8xf32> -> vector<256x72xf32>
    %24 = arith.truncf %23 : vector<256x72xf32> to vector<256x72xbf16>
    %c0_34 = arith.constant 0 : index
    %c0_35 = arith.constant 0 : index
    %25 = vector.load %arg2[%c0_34, %c0_35] : memref<72x16xbf16, #tpu.memory_space<vmem>>, vector<72x16xbf16>
    %cst_36 = arith.constant dense<0.000000e+00> : vector<256x16xf32>
    %26 = tpu.matmul %24, %25, %cst_36 {dimension_numbers = #tpu.dot_dimension_numbers<[1], [0], [0], [1], [0, 0, 1, 1], [], []>} : vector<256x72xbf16>, vector<72x16xbf16>, vector<256x16xf32> -> vector<256x16xf32>
    %c0_37 = arith.constant 0 : index
    %c0_38 = arith.constant 0 : index
    %27 = vector.load %arg3[%c0_37, %c0_38] : memref<2x16xf32, #tpu.memory_space<vmem>>, vector<1x16xf32>
    %28 = vector.broadcast %27 : vector<1x16xf32> to vector<256x16xf32>
    %29 = arith.mulf %26, %28 : vector<256x16xf32>
    %c1_39 = arith.constant 1 : index
    %c0_40 = arith.constant 0 : index
    %30 = vector.load %arg3[%c1_39, %c0_40] : memref<2x16xf32, #tpu.memory_space<vmem>>, vector<1x16xf32>
    %31 = vector.broadcast %30 : vector<1x16xf32> to vector<256x16xf32>
    %32 = arith.addf %29, %31 : vector<256x16xf32>
    %cst_41 = arith.constant 0.000000e+00 : f32
    %33 = vector.broadcast %cst_41 : f32 to vector<256x16xf32>
    %34 = arith.maximumf %32, %33 : vector<256x16xf32>
    %35 = vector.shape_cast %34 : vector<256x16xf32> to vector<16x16x16xf32>
    %cst_42 = arith.constant 0.000000e+00 : f32
    %36 = vector.broadcast %cst_42 : f32 to vector<18x18x16xf32>
    %c0_43 = arith.constant 0 : index
    %c0_44 = arith.constant 0 : index
    %c0_45 = arith.constant 0 : index
    %37 = vector.load %arg20[%c0_43, %c0_44, %c0_45] : memref<18x18x16xf32, #tpu.memory_space<vmem>>, vector<18x18x16xf32>
    tpu.vector_store %arg20[%c0_43, %c0_44, %c0_45], %36 {strides = array<i32>} : memref<18x18x16xf32, #tpu.memory_space<vmem>>, vector<18x18x16xf32>,
    %c1_46 = arith.constant 1 : index
    %c1_47 = arith.constant 1 : index
    %c0_48 = arith.constant 0 : index
    %38 = vector.load %arg20[%c1_46, %c1_47, %c0_48] : memref<18x18x16xf32, #tpu.memory_space<vmem>>, vector<16x16x16xf32>
    tpu.vector_store %arg20[%c1_46, %c1_47, %c0_48], %35 {strides = array<i32>} : memref<18x18x16xf32, #tpu.memory_space<vmem>>, vector<16x16x16xf32>,
    %c0_49 = arith.constant 0 : index
    %c0_50 = arith.constant 0 : index
    %c0_51 = arith.constant 0 : index
    %39 = vector.load %arg20[%c0_49, %c0_50, %c0_51] : memref<18x18x16xf32, #tpu.memory_space<vmem>>, vector<16x16x16xf32>
    %40 = vector.shape_cast %39 : vector<16x16x16xf32> to vector<256x16xf32>
    %c0_52 = arith.constant 0 : index
    %c1_53 = arith.constant 1 : index
    %c0_54 = arith.constant 0 : index
    %41 = vector.load %arg20[%c0_52, %c1_53, %c0_54] : memref<18x18x16xf32, #tpu.memory_space<vmem>>, vector<16x16x16xf32>
    %42 = vector.shape_cast %41 : vector<16x16x16xf32> to vector<256x16xf32>
    %c0_55 = arith.constant 0 : index
    %c2_56 = arith.constant 2 : index
    %c0_57 = arith.constant 0 : index
    %43 = vector.load %arg20[%c0_55, %c2_56, %c0_57] : memref<18x18x16xf32, #tpu.memory_space<vmem>>, vector<16x16x16xf32>
    %44 = vector.shape_cast %43 : vector<16x16x16xf32> to vector<256x16xf32>
    %c1_58 = arith.constant 1 : index
    %c0_59 = arith.constant 0 : index
    %c0_60 = arith.constant 0 : index
    %45 = vector.load %arg20[%c1_58, %c0_59, %c0_60] : memref<18x18x16xf32, #tpu.memory_space<vmem>>, vector<16x16x16xf32>
    %46 = vector.shape_cast %45 : vector<16x16x16xf32> to vector<256x16xf32>
    %c1_61 = arith.constant 1 : index
    %c1_62 = arith.constant 1 : index
    %c0_63 = arith.constant 0 : index
    %47 = vector.load %arg20[%c1_61, %c1_62, %c0_63] : memref<18x18x16xf32, #tpu.memory_space<vmem>>, vector<16x16x16xf32>
    %48 = vector.shape_cast %47 : vector<16x16x16xf32> to vector<256x16xf32>
    %c1_64 = arith.constant 1 : index
    %c2_65 = arith.constant 2 : index
    %c0_66 = arith.constant 0 : index
    %49 = vector.load %arg20[%c1_64, %c2_65, %c0_66] : memref<18x18x16xf32, #tpu.memory_space<vmem>>, vector<16x16x16xf32>
    %50 = vector.shape_cast %49 : vector<16x16x16xf32> to vector<256x16xf32>
    %c2_67 = arith.constant 2 : index
    %c0_68 = arith.constant 0 : index
    %c0_69 = arith.constant 0 : index
    %51 = vector.load %arg20[%c2_67, %c0_68, %c0_69] : memref<18x18x16xf32, #tpu.memory_space<vmem>>, vector<16x16x16xf32>
    %52 = vector.shape_cast %51 : vector<16x16x16xf32> to vector<256x16xf32>
    %c2_70 = arith.constant 2 : index
    %c1_71 = arith.constant 1 : index
    %c0_72 = arith.constant 0 : index
    %53 = vector.load %arg20[%c2_70, %c1_71, %c0_72] : memref<18x18x16xf32, #tpu.memory_space<vmem>>, vector<16x16x16xf32>
    %54 = vector.shape_cast %53 : vector<16x16x16xf32> to vector<256x16xf32>
    %c2_73 = arith.constant 2 : index
    %c2_74 = arith.constant 2 : index
    %c0_75 = arith.constant 0 : index
    %55 = vector.load %arg20[%c2_73, %c2_74, %c0_75] : memref<18x18x16xf32, #tpu.memory_space<vmem>>, vector<16x16x16xf32>
    %56 = vector.shape_cast %55 : vector<16x16x16xf32> to vector<256x16xf32>
    %57 = tpu.concatenate %40, %42, %44, %46, %48, %50, %52, %54, %56 in 1 : vector<256x16xf32>, vector<256x16xf32>, vector<256x16xf32>, vector<256x16xf32>, vector<256x16xf32>, vector<256x16xf32>, vector<256x16xf32>, vector<256x16xf32>, vector<256x16xf32> -> vector<256x144xf32>
    %58 = arith.truncf %57 : vector<256x144xf32> to vector<256x144xbf16>
    %c0_76 = arith.constant 0 : index
    %c0_77 = arith.constant 0 : index
    %59 = vector.load %arg4[%c0_76, %c0_77] : memref<144x16xbf16, #tpu.memory_space<vmem>>, vector<144x16xbf16>
    %cst_78 = arith.constant dense<0.000000e+00> : vector<256x16xf32>
    %60 = tpu.matmul %58, %59, %cst_78 {dimension_numbers = #tpu.dot_dimension_numbers<[1], [0], [0], [1], [0, 0, 1, 1], [], []>} : vector<256x144xbf16>, vector<144x16xbf16>, vector<256x16xf32> -> vector<256x16xf32>
    %c0_79 = arith.constant 0 : index
    %c0_80 = arith.constant 0 : index
    %61 = vector.load %arg5[%c0_79, %c0_80] : memref<2x16xf32, #tpu.memory_space<vmem>>, vector<1x16xf32>
    %62 = vector.broadcast %61 : vector<1x16xf32> to vector<256x16xf32>
    %63 = arith.mulf %60, %62 : vector<256x16xf32>
    %c1_81 = arith.constant 1 : index
    %c0_82 = arith.constant 0 : index
    %64 = vector.load %arg5[%c1_81, %c0_82] : memref<2x16xf32, #tpu.memory_space<vmem>>, vector<1x16xf32>
    %65 = vector.broadcast %64 : vector<1x16xf32> to vector<256x16xf32>
    %66 = arith.addf %63, %65 : vector<256x16xf32>
    %cst_83 = arith.constant 0.000000e+00 : f32
    %67 = vector.broadcast %cst_83 : f32 to vector<256x16xf32>
    %68 = arith.maximumf %66, %67 : vector<256x16xf32>
    %cst_84 = arith.constant 0.000000e+00 : f32
    %69 = vector.broadcast %cst_84 : f32 to vector<18x18x16xf32>
    %c0_85 = arith.constant 0 : index
    %c0_86 = arith.constant 0 : index
    %c0_87 = arith.constant 0 : index
    %70 = vector.load %arg21[%c0_85, %c0_86, %c0_87] : memref<18x18x16xf32, #tpu.memory_space<vmem>>, vector<18x18x16xf32>
    tpu.vector_store %arg21[%c0_85, %c0_86, %c0_87], %69 {strides = array<i32>} : memref<18x18x16xf32, #tpu.memory_space<vmem>>, vector<18x18x16xf32>,
    %71 = vector.shape_cast %68 : vector<256x16xf32> to vector<16x16x16xf32>
    %c1_88 = arith.constant 1 : index
    %c1_89 = arith.constant 1 : index
    %c0_90 = arith.constant 0 : index
    %72 = vector.load %arg21[%c1_88, %c1_89, %c0_90] : memref<18x18x16xf32, #tpu.memory_space<vmem>>, vector<16x16x16xf32>
    tpu.vector_store %arg21[%c1_88, %c1_89, %c0_90], %71 {strides = array<i32>} : memref<18x18x16xf32, #tpu.memory_space<vmem>>, vector<16x16x16xf32>,
    %c0_91 = arith.constant 0 : index
    %c0_92 = arith.constant 0 : index
    %c0_93 = arith.constant 0 : index
    %73 = vector.load %arg21[%c0_91, %c0_92, %c0_93] : memref<18x18x16xf32, #tpu.memory_space<vmem>>, vector<16x16x16xf32>
    %74 = vector.shape_cast %73 : vector<16x16x16xf32> to vector<256x16xf32>
    %c0_94 = arith.constant 0 : index
    %c1_95 = arith.constant 1 : index
    %c0_96 = arith.constant 0 : index
    %75 = vector.load %arg21[%c0_94, %c1_95, %c0_96] : memref<18x18x16xf32, #tpu.memory_space<vmem>>, vector<16x16x16xf32>
    %76 = vector.shape_cast %75 : vector<16x16x16xf32> to vector<256x16xf32>
    %c0_97 = arith.constant 0 : index
    %c2_98 = arith.constant 2 : index
    %c0_99 = arith.constant 0 : index
    %77 = vector.load %arg21[%c0_97, %c2_98, %c0_99] : memref<18x18x16xf32, #tpu.memory_space<vmem>>, vector<16x16x16xf32>
    %78 = vector.shape_cast %77 : vector<16x16x16xf32> to vector<256x16xf32>
    %c1_100 = arith.constant 1 : index
    %c0_101 = arith.constant 0 : index
    %c0_102 = arith.constant 0 : index
    %79 = vector.load %arg21[%c1_100, %c0_101, %c0_102] : memref<18x18x16xf32, #tpu.memory_space<vmem>>, vector<16x16x16xf32>
    %80 = vector.shape_cast %79 : vector<16x16x16xf32> to vector<256x16xf32>
    %c1_103 = arith.constant 1 : index
    %c1_104 = arith.constant 1 : index
    %c0_105 = arith.constant 0 : index
    %81 = vector.load %arg21[%c1_103, %c1_104, %c0_105] : memref<18x18x16xf32, #tpu.memory_space<vmem>>, vector<16x16x16xf32>
    %82 = vector.shape_cast %81 : vector<16x16x16xf32> to vector<256x16xf32>
    %c1_106 = arith.constant 1 : index
    %c2_107 = arith.constant 2 : index
    %c0_108 = arith.constant 0 : index
    %83 = vector.load %arg21[%c1_106, %c2_107, %c0_108] : memref<18x18x16xf32, #tpu.memory_space<vmem>>, vector<16x16x16xf32>
    %84 = vector.shape_cast %83 : vector<16x16x16xf32> to vector<256x16xf32>
    %c2_109 = arith.constant 2 : index
    %c0_110 = arith.constant 0 : index
    %c0_111 = arith.constant 0 : index
    %85 = vector.load %arg21[%c2_109, %c0_110, %c0_111] : memref<18x18x16xf32, #tpu.memory_space<vmem>>, vector<16x16x16xf32>
    %86 = vector.shape_cast %85 : vector<16x16x16xf32> to vector<256x16xf32>
    %c2_112 = arith.constant 2 : index
    %c1_113 = arith.constant 1 : index
    %c0_114 = arith.constant 0 : index
    %87 = vector.load %arg21[%c2_112, %c1_113, %c0_114] : memref<18x18x16xf32, #tpu.memory_space<vmem>>, vector<16x16x16xf32>
    %88 = vector.shape_cast %87 : vector<16x16x16xf32> to vector<256x16xf32>
    %c2_115 = arith.constant 2 : index
    %c2_116 = arith.constant 2 : index
    %c0_117 = arith.constant 0 : index
    %89 = vector.load %arg21[%c2_115, %c2_116, %c0_117] : memref<18x18x16xf32, #tpu.memory_space<vmem>>, vector<16x16x16xf32>
    %90 = vector.shape_cast %89 : vector<16x16x16xf32> to vector<256x16xf32>
    %91 = tpu.concatenate %74, %76, %78, %80, %82, %84, %86, %88, %90 in 1 : vector<256x16xf32>, vector<256x16xf32>, vector<256x16xf32>, vector<256x16xf32>, vector<256x16xf32>, vector<256x16xf32>, vector<256x16xf32>, vector<256x16xf32>, vector<256x16xf32> -> vector<256x144xf32>
    %92 = arith.truncf %91 : vector<256x144xf32> to vector<256x144xbf16>
    %c0_118 = arith.constant 0 : index
    %c0_119 = arith.constant 0 : index
    %93 = vector.load %arg6[%c0_118, %c0_119] : memref<144x16xbf16, #tpu.memory_space<vmem>>, vector<144x16xbf16>
    %cst_120 = arith.constant dense<0.000000e+00> : vector<256x16xf32>
    %94 = tpu.matmul %92, %93, %cst_120 {dimension_numbers = #tpu.dot_dimension_numbers<[1], [0], [0], [1], [0, 0, 1, 1], [], []>} : vector<256x144xbf16>, vector<144x16xbf16>, vector<256x16xf32> -> vector<256x16xf32>
    %c0_121 = arith.constant 0 : index
    %c0_122 = arith.constant 0 : index
    %95 = vector.load %arg7[%c0_121, %c0_122] : memref<2x16xf32, #tpu.memory_space<vmem>>, vector<1x16xf32>
    %96 = vector.broadcast %95 : vector<1x16xf32> to vector<256x16xf32>
    %97 = arith.mulf %94, %96 : vector<256x16xf32>
    %c1_123 = arith.constant 1 : index
    %c0_124 = arith.constant 0 : index
    %98 = vector.load %arg7[%c1_123, %c0_124] : memref<2x16xf32, #tpu.memory_space<vmem>>, vector<1x16xf32>
    %99 = vector.broadcast %98 : vector<1x16xf32> to vector<256x16xf32>
    %100 = arith.addf %97, %99 : vector<256x16xf32>
    %101 = vector.shape_cast %35 : vector<16x16x16xf32> to vector<256x16xf32>
    %102 = arith.addf %100, %101 : vector<256x16xf32>
    %cst_125 = arith.constant 0.000000e+00 : f32
    %103 = vector.broadcast %cst_125 : f32 to vector<256x16xf32>
    %104 = arith.maximumf %102, %103 : vector<256x16xf32>
    %105 = vector.shape_cast %104 : vector<256x16xf32> to vector<16x16x16xf32>
    %cst_126 = arith.constant 0.000000e+00 : f32
    %106 = vector.broadcast %cst_126 : f32 to vector<18x18x16xf32>
    %c0_127 = arith.constant 0 : index
    %c0_128 = arith.constant 0 : index
    %c0_129 = arith.constant 0 : index
    %107 = vector.load %arg22[%c0_127, %c0_128, %c0_129] : memref<18x18x16xf32, #tpu.memory_space<vmem>>, vector<18x18x16xf32>
    tpu.vector_store %arg22[%c0_127, %c0_128, %c0_129], %106 {strides = array<i32>} : memref<18x18x16xf32, #tpu.memory_space<vmem>>, vector<18x18x16xf32>,
    %c1_130 = arith.constant 1 : index
    %c1_131 = arith.constant 1 : index
    %c0_132 = arith.constant 0 : index
    %108 = vector.load %arg22[%c1_130, %c1_131, %c0_132] : memref<18x18x16xf32, #tpu.memory_space<vmem>>, vector<16x16x16xf32>
    tpu.vector_store %arg22[%c1_130, %c1_131, %c0_132], %105 {strides = array<i32>} : memref<18x18x16xf32, #tpu.memory_space<vmem>>, vector<16x16x16xf32>,
    %c0_133 = arith.constant 0 : index
    %c0_134 = arith.constant 0 : index
    %c0_135 = arith.constant 0 : index
    %109 = tpu.strided_load %arg22[%c0_133, %c0_134, %c0_135] {strides = array<i32: 1, 2, 1>} : memref<18x18x16xf32, #tpu.memory_space<vmem>>, vector<16x8x16xf32>
    %110 = vector.shape_cast %109 : vector<16x8x16xf32> to vector<8x2x8x16xf32>
    %111 = vector.extract_strided_slice %110 {offsets = [0, 0, 0, 0], sizes = [8, 1, 8, 16], strides = [1, 1, 1, 1]} : vector<8x2x8x16xf32> to vector<8x1x8x16xf32>
    %112 = vector.shape_cast %111 : vector<8x1x8x16xf32> to vector<8x8x16xf32>
    %113 = vector.shape_cast %112 : vector<8x8x16xf32> to vector<64x16xf32>
    %c0_136 = arith.constant 0 : index
    %c1_137 = arith.constant 1 : index
    %c0_138 = arith.constant 0 : index
    %114 = tpu.strided_load %arg22[%c0_136, %c1_137, %c0_138] {strides = array<i32: 1, 2, 1>} : memref<18x18x16xf32, #tpu.memory_space<vmem>>, vector<16x8x16xf32>
    %115 = vector.shape_cast %114 : vector<16x8x16xf32> to vector<8x2x8x16xf32>
    %116 = vector.extract_strided_slice %115 {offsets = [0, 0, 0, 0], sizes = [8, 1, 8, 16], strides = [1, 1, 1, 1]} : vector<8x2x8x16xf32> to vector<8x1x8x16xf32>
    %117 = vector.shape_cast %116 : vector<8x1x8x16xf32> to vector<8x8x16xf32>
    %118 = vector.shape_cast %117 : vector<8x8x16xf32> to vector<64x16xf32>
    %c0_139 = arith.constant 0 : index
    %c2_140 = arith.constant 2 : index
    %c0_141 = arith.constant 0 : index
    %119 = tpu.strided_load %arg22[%c0_139, %c2_140, %c0_141] {strides = array<i32: 1, 2, 1>} : memref<18x18x16xf32, #tpu.memory_space<vmem>>, vector<16x8x16xf32>
    %120 = vector.shape_cast %119 : vector<16x8x16xf32> to vector<8x2x8x16xf32>
    %121 = vector.extract_strided_slice %120 {offsets = [0, 0, 0, 0], sizes = [8, 1, 8, 16], strides = [1, 1, 1, 1]} : vector<8x2x8x16xf32> to vector<8x1x8x16xf32>
    %122 = vector.shape_cast %121 : vector<8x1x8x16xf32> to vector<8x8x16xf32>
    %123 = vector.shape_cast %122 : vector<8x8x16xf32> to vector<64x16xf32>
    %c1_142 = arith.constant 1 : index
    %c0_143 = arith.constant 0 : index
    %c0_144 = arith.constant 0 : index
    %124 = tpu.strided_load %arg22[%c1_142, %c0_143, %c0_144] {strides = array<i32: 1, 2, 1>} : memref<18x18x16xf32, #tpu.memory_space<vmem>>, vector<16x8x16xf32>
    %125 = vector.shape_cast %124 : vector<16x8x16xf32> to vector<8x2x8x16xf32>
    %126 = vector.extract_strided_slice %125 {offsets = [0, 0, 0, 0], sizes = [8, 1, 8, 16], strides = [1, 1, 1, 1]} : vector<8x2x8x16xf32> to vector<8x1x8x16xf32>
    %127 = vector.shape_cast %126 : vector<8x1x8x16xf32> to vector<8x8x16xf32>
    %128 = vector.shape_cast %127 : vector<8x8x16xf32> to vector<64x16xf32>
    %c1_145 = arith.constant 1 : index
    %c1_146 = arith.constant 1 : index
    %c0_147 = arith.constant 0 : index
    %129 = tpu.strided_load %arg22[%c1_145, %c1_146, %c0_147] {strides = array<i32: 1, 2, 1>} : memref<18x18x16xf32, #tpu.memory_space<vmem>>, vector<16x8x16xf32>
    %130 = vector.shape_cast %129 : vector<16x8x16xf32> to vector<8x2x8x16xf32>
    %131 = vector.extract_strided_slice %130 {offsets = [0, 0, 0, 0], sizes = [8, 1, 8, 16], strides = [1, 1, 1, 1]} : vector<8x2x8x16xf32> to vector<8x1x8x16xf32>
    %132 = vector.shape_cast %131 : vector<8x1x8x16xf32> to vector<8x8x16xf32>
    %133 = vector.shape_cast %132 : vector<8x8x16xf32> to vector<64x16xf32>
    %c1_148 = arith.constant 1 : index
    %c2_149 = arith.constant 2 : index
    %c0_150 = arith.constant 0 : index
    %134 = tpu.strided_load %arg22[%c1_148, %c2_149, %c0_150] {strides = array<i32: 1, 2, 1>} : memref<18x18x16xf32, #tpu.memory_space<vmem>>, vector<16x8x16xf32>
    %135 = vector.shape_cast %134 : vector<16x8x16xf32> to vector<8x2x8x16xf32>
    %136 = vector.extract_strided_slice %135 {offsets = [0, 0, 0, 0], sizes = [8, 1, 8, 16], strides = [1, 1, 1, 1]} : vector<8x2x8x16xf32> to vector<8x1x8x16xf32>
    %137 = vector.shape_cast %136 : vector<8x1x8x16xf32> to vector<8x8x16xf32>
    %138 = vector.shape_cast %137 : vector<8x8x16xf32> to vector<64x16xf32>
    %c2_151 = arith.constant 2 : index
    %c0_152 = arith.constant 0 : index
    %c0_153 = arith.constant 0 : index
    %139 = tpu.strided_load %arg22[%c2_151, %c0_152, %c0_153] {strides = array<i32: 1, 2, 1>} : memref<18x18x16xf32, #tpu.memory_space<vmem>>, vector<16x8x16xf32>
    %140 = vector.shape_cast %139 : vector<16x8x16xf32> to vector<8x2x8x16xf32>
    %141 = vector.extract_strided_slice %140 {offsets = [0, 0, 0, 0], sizes = [8, 1, 8, 16], strides = [1, 1, 1, 1]} : vector<8x2x8x16xf32> to vector<8x1x8x16xf32>
    %142 = vector.shape_cast %141 : vector<8x1x8x16xf32> to vector<8x8x16xf32>
    %143 = vector.shape_cast %142 : vector<8x8x16xf32> to vector<64x16xf32>
    %c2_154 = arith.constant 2 : index
    %c1_155 = arith.constant 1 : index
    %c0_156 = arith.constant 0 : index
    %144 = tpu.strided_load %arg22[%c2_154, %c1_155, %c0_156] {strides = array<i32: 1, 2, 1>} : memref<18x18x16xf32, #tpu.memory_space<vmem>>, vector<16x8x16xf32>
    %145 = vector.shape_cast %144 : vector<16x8x16xf32> to vector<8x2x8x16xf32>
    %146 = vector.extract_strided_slice %145 {offsets = [0, 0, 0, 0], sizes = [8, 1, 8, 16], strides = [1, 1, 1, 1]} : vector<8x2x8x16xf32> to vector<8x1x8x16xf32>
    %147 = vector.shape_cast %146 : vector<8x1x8x16xf32> to vector<8x8x16xf32>
    %148 = vector.shape_cast %147 : vector<8x8x16xf32> to vector<64x16xf32>
    %c2_157 = arith.constant 2 : index
    %c2_158 = arith.constant 2 : index
    %c0_159 = arith.constant 0 : index
    %149 = tpu.strided_load %arg22[%c2_157, %c2_158, %c0_159] {strides = array<i32: 1, 2, 1>} : memref<18x18x16xf32, #tpu.memory_space<vmem>>, vector<16x8x16xf32>
    %150 = vector.shape_cast %149 : vector<16x8x16xf32> to vector<8x2x8x16xf32>
    %151 = vector.extract_strided_slice %150 {offsets = [0, 0, 0, 0], sizes = [8, 1, 8, 16], strides = [1, 1, 1, 1]} : vector<8x2x8x16xf32> to vector<8x1x8x16xf32>
    %152 = vector.shape_cast %151 : vector<8x1x8x16xf32> to vector<8x8x16xf32>
    %153 = vector.shape_cast %152 : vector<8x8x16xf32> to vector<64x16xf32>
    %154 = tpu.concatenate %113, %118, %123, %128, %133, %138, %143, %148, %153 in 1 : vector<64x16xf32>, vector<64x16xf32>, vector<64x16xf32>, vector<64x16xf32>, vector<64x16xf32>, vector<64x16xf32>, vector<64x16xf32>, vector<64x16xf32>, vector<64x16xf32> -> vector<64x144xf32>
    %155 = arith.truncf %154 : vector<64x144xf32> to vector<64x144xbf16>
    %c0_160 = arith.constant 0 : index
    %c0_161 = arith.constant 0 : index
    %156 = vector.load %arg8[%c0_160, %c0_161] : memref<144x32xbf16, #tpu.memory_space<vmem>>, vector<144x32xbf16>
    %cst_162 = arith.constant dense<0.000000e+00> : vector<64x32xf32>
    %157 = tpu.matmul %155, %156, %cst_162 {dimension_numbers = #tpu.dot_dimension_numbers<[1], [0], [0], [1], [0, 0, 1, 1], [], []>} : vector<64x144xbf16>, vector<144x32xbf16>, vector<64x32xf32> -> vector<64x32xf32>
    %c0_163 = arith.constant 0 : index
    %c0_164 = arith.constant 0 : index
    %158 = vector.load %arg9[%c0_163, %c0_164] : memref<2x32xf32, #tpu.memory_space<vmem>>, vector<1x32xf32>
    %159 = vector.broadcast %158 : vector<1x32xf32> to vector<64x32xf32>
    %160 = arith.mulf %157, %159 : vector<64x32xf32>
    %c1_165 = arith.constant 1 : index
    %c0_166 = arith.constant 0 : index
    %161 = vector.load %arg9[%c1_165, %c0_166] : memref<2x32xf32, #tpu.memory_space<vmem>>, vector<1x32xf32>
    %162 = vector.broadcast %161 : vector<1x32xf32> to vector<64x32xf32>
    %163 = arith.addf %160, %162 : vector<64x32xf32>
    %cst_167 = arith.constant 0.000000e+00 : f32
    %164 = vector.broadcast %cst_167 : f32 to vector<64x32xf32>
    %165 = arith.maximumf %163, %164 : vector<64x32xf32>
    %cst_168 = arith.constant 0.000000e+00 : f32
    %166 = vector.broadcast %cst_168 : f32 to vector<10x10x32xf32>
    %c0_169 = arith.constant 0 : index
    %c0_170 = arith.constant 0 : index
    %c0_171 = arith.constant 0 : index
    %167 = vector.load %arg23[%c0_169, %c0_170, %c0_171] : memref<10x10x32xf32, #tpu.memory_space<vmem>>, vector<10x10x32xf32>
    tpu.vector_store %arg23[%c0_169, %c0_170, %c0_171], %166 {strides = array<i32>} : memref<10x10x32xf32, #tpu.memory_space<vmem>>, vector<10x10x32xf32>,
    %168 = vector.shape_cast %165 : vector<64x32xf32> to vector<8x8x32xf32>
    %c1_172 = arith.constant 1 : index
    %c1_173 = arith.constant 1 : index
    %c0_174 = arith.constant 0 : index
    %169 = vector.load %arg23[%c1_172, %c1_173, %c0_174] : memref<10x10x32xf32, #tpu.memory_space<vmem>>, vector<8x8x32xf32>
    tpu.vector_store %arg23[%c1_172, %c1_173, %c0_174], %168 {strides = array<i32>} : memref<10x10x32xf32, #tpu.memory_space<vmem>>, vector<8x8x32xf32>,
    %c0_175 = arith.constant 0 : index
    %c0_176 = arith.constant 0 : index
    %c0_177 = arith.constant 0 : index
    %170 = vector.load %arg23[%c0_175, %c0_176, %c0_177] : memref<10x10x32xf32, #tpu.memory_space<vmem>>, vector<8x8x32xf32>
    %171 = vector.shape_cast %170 : vector<8x8x32xf32> to vector<64x32xf32>
    %c0_178 = arith.constant 0 : index
    %c1_179 = arith.constant 1 : index
    %c0_180 = arith.constant 0 : index
    %172 = vector.load %arg23[%c0_178, %c1_179, %c0_180] : memref<10x10x32xf32, #tpu.memory_space<vmem>>, vector<8x8x32xf32>
    %173 = vector.shape_cast %172 : vector<8x8x32xf32> to vector<64x32xf32>
    %c0_181 = arith.constant 0 : index
    %c2_182 = arith.constant 2 : index
    %c0_183 = arith.constant 0 : index
    %174 = vector.load %arg23[%c0_181, %c2_182, %c0_183] : memref<10x10x32xf32, #tpu.memory_space<vmem>>, vector<8x8x32xf32>
    %175 = vector.shape_cast %174 : vector<8x8x32xf32> to vector<64x32xf32>
    %c1_184 = arith.constant 1 : index
    %c0_185 = arith.constant 0 : index
    %c0_186 = arith.constant 0 : index
    %176 = vector.load %arg23[%c1_184, %c0_185, %c0_186] : memref<10x10x32xf32, #tpu.memory_space<vmem>>, vector<8x8x32xf32>
    %177 = vector.shape_cast %176 : vector<8x8x32xf32> to vector<64x32xf32>
    %c1_187 = arith.constant 1 : index
    %c1_188 = arith.constant 1 : index
    %c0_189 = arith.constant 0 : index
    %178 = vector.load %arg23[%c1_187, %c1_188, %c0_189] : memref<10x10x32xf32, #tpu.memory_space<vmem>>, vector<8x8x32xf32>
    %179 = vector.shape_cast %178 : vector<8x8x32xf32> to vector<64x32xf32>
    %c1_190 = arith.constant 1 : index
    %c2_191 = arith.constant 2 : index
    %c0_192 = arith.constant 0 : index
    %180 = vector.load %arg23[%c1_190, %c2_191, %c0_192] : memref<10x10x32xf32, #tpu.memory_space<vmem>>, vector<8x8x32xf32>
    %181 = vector.shape_cast %180 : vector<8x8x32xf32> to vector<64x32xf32>
    %c2_193 = arith.constant 2 : index
    %c0_194 = arith.constant 0 : index
    %c0_195 = arith.constant 0 : index
    %182 = vector.load %arg23[%c2_193, %c0_194, %c0_195] : memref<10x10x32xf32, #tpu.memory_space<vmem>>, vector<8x8x32xf32>
    %183 = vector.shape_cast %182 : vector<8x8x32xf32> to vector<64x32xf32>
    %c2_196 = arith.constant 2 : index
    %c1_197 = arith.constant 1 : index
    %c0_198 = arith.constant 0 : index
    %184 = vector.load %arg23[%c2_196, %c1_197, %c0_198] : memref<10x10x32xf32, #tpu.memory_space<vmem>>, vector<8x8x32xf32>
    %185 = vector.shape_cast %184 : vector<8x8x32xf32> to vector<64x32xf32>
    %c2_199 = arith.constant 2 : index
    %c2_200 = arith.constant 2 : index
    %c0_201 = arith.constant 0 : index
    %186 = vector.load %arg23[%c2_199, %c2_200, %c0_201] : memref<10x10x32xf32, #tpu.memory_space<vmem>>, vector<8x8x32xf32>
    %187 = vector.shape_cast %186 : vector<8x8x32xf32> to vector<64x32xf32>
    %188 = tpu.concatenate %171, %173, %175, %177, %179, %181, %183, %185, %187 in 1 : vector<64x32xf32>, vector<64x32xf32>, vector<64x32xf32>, vector<64x32xf32>, vector<64x32xf32>, vector<64x32xf32>, vector<64x32xf32>, vector<64x32xf32>, vector<64x32xf32> -> vector<64x288xf32>
    %189 = arith.truncf %188 : vector<64x288xf32> to vector<64x288xbf16>
    %c0_202 = arith.constant 0 : index
    %c0_203 = arith.constant 0 : index
    %190 = vector.load %arg10[%c0_202, %c0_203] : memref<288x32xbf16, #tpu.memory_space<vmem>>, vector<288x32xbf16>
    %cst_204 = arith.constant dense<0.000000e+00> : vector<64x32xf32>
    %191 = tpu.matmul %189, %190, %cst_204 {dimension_numbers = #tpu.dot_dimension_numbers<[1], [0], [0], [1], [0, 0, 1, 1], [], []>} : vector<64x288xbf16>, vector<288x32xbf16>, vector<64x32xf32> -> vector<64x32xf32>
    %c0_205 = arith.constant 0 : index
    %c0_206 = arith.constant 0 : index
    %192 = vector.load %arg11[%c0_205, %c0_206] : memref<2x32xf32, #tpu.memory_space<vmem>>, vector<1x32xf32>
    %193 = vector.broadcast %192 : vector<1x32xf32> to vector<64x32xf32>
    %194 = arith.mulf %191, %193 : vector<64x32xf32>
    %c1_207 = arith.constant 1 : index
    %c0_208 = arith.constant 0 : index
    %195 = vector.load %arg11[%c1_207, %c0_208] : memref<2x32xf32, #tpu.memory_space<vmem>>, vector<1x32xf32>
    %196 = vector.broadcast %195 : vector<1x32xf32> to vector<64x32xf32>
    %197 = arith.addf %194, %196 : vector<64x32xf32>
    %c1_209 = arith.constant 1 : index
    %c1_210 = arith.constant 1 : index
    %c0_211 = arith.constant 0 : index
    %198 = tpu.strided_load %arg22[%c1_209, %c1_210, %c0_211] {strides = array<i32: 1, 2, 1>} : memref<18x18x16xf32, #tpu.memory_space<vmem>>, vector<16x8x16xf32>
    %199 = vector.shape_cast %198 : vector<16x8x16xf32> to vector<8x2x8x16xf32>
    %200 = vector.extract_strided_slice %199 {offsets = [0, 0, 0, 0], sizes = [8, 1, 8, 16], strides = [1, 1, 1, 1]} : vector<8x2x8x16xf32> to vector<8x1x8x16xf32>
    %201 = vector.shape_cast %200 : vector<8x1x8x16xf32> to vector<8x8x16xf32>
    %202 = vector.shape_cast %201 : vector<8x8x16xf32> to vector<64x16xf32>
    %cst_212 = arith.constant 0.000000e+00 : f32
    %203 = vector.broadcast %cst_212 : f32 to vector<64x8xf32>
    %cst_213 = arith.constant 0.000000e+00 : f32
    %204 = vector.broadcast %cst_213 : f32 to vector<64x8xf32>
    %205 = tpu.concatenate %203, %202, %204 in 1 : vector<64x8xf32>, vector<64x16xf32>, vector<64x8xf32> -> vector<64x32xf32>
    %206 = arith.addf %197, %205 : vector<64x32xf32>
    %cst_214 = arith.constant 0.000000e+00 : f32
    %207 = vector.broadcast %cst_214 : f32 to vector<64x32xf32>
    %208 = arith.maximumf %206, %207 : vector<64x32xf32>
    %209 = vector.shape_cast %208 : vector<64x32xf32> to vector<8x8x32xf32>
    %cst_215 = arith.constant 0.000000e+00 : f32
    %210 = vector.broadcast %cst_215 : f32 to vector<10x10x32xf32>
    %c0_216 = arith.constant 0 : index
    %c0_217 = arith.constant 0 : index
    %c0_218 = arith.constant 0 : index
    %211 = vector.load %arg24[%c0_216, %c0_217, %c0_218] : memref<10x10x32xf32, #tpu.memory_space<vmem>>, vector<10x10x32xf32>
    tpu.vector_store %arg24[%c0_216, %c0_217, %c0_218], %210 {strides = array<i32>} : memref<10x10x32xf32, #tpu.memory_space<vmem>>, vector<10x10x32xf32>,
    %c1_219 = arith.constant 1 : index
    %c1_220 = arith.constant 1 : index
    %c0_221 = arith.constant 0 : index
    %212 = vector.load %arg24[%c1_219, %c1_220, %c0_221] : memref<10x10x32xf32, #tpu.memory_space<vmem>>, vector<8x8x32xf32>
    tpu.vector_store %arg24[%c1_219, %c1_220, %c0_221], %209 {strides = array<i32>} : memref<10x10x32xf32, #tpu.memory_space<vmem>>, vector<8x8x32xf32>,
    %c0_222 = arith.constant 0 : index
    %c0_223 = arith.constant 0 : index
    %c0_224 = arith.constant 0 : index
    %213 = tpu.strided_load %arg24[%c0_222, %c0_223, %c0_224] {strides = array<i32: 1, 2, 1>} : memref<10x10x32xf32, #tpu.memory_space<vmem>>, vector<8x4x32xf32>
    %214 = vector.shape_cast %213 : vector<8x4x32xf32> to vector<4x2x4x32xf32>
    %215 = vector.extract_strided_slice %214 {offsets = [0, 0, 0, 0], sizes = [4, 1, 4, 32], strides = [1, 1, 1, 1]} : vector<4x2x4x32xf32> to vector<4x1x4x32xf32>
    %216 = vector.shape_cast %215 : vector<4x1x4x32xf32> to vector<4x4x32xf32>
    %217 = vector.shape_cast %216 : vector<4x4x32xf32> to vector<16x32xf32>
    %c0_225 = arith.constant 0 : index
    %c1_226 = arith.constant 1 : index
    %c0_227 = arith.constant 0 : index
    %218 = tpu.strided_load %arg24[%c0_225, %c1_226, %c0_227] {strides = array<i32: 1, 2, 1>} : memref<10x10x32xf32, #tpu.memory_space<vmem>>, vector<8x4x32xf32>
    %219 = vector.shape_cast %218 : vector<8x4x32xf32> to vector<4x2x4x32xf32>
    %220 = vector.extract_strided_slice %219 {offsets = [0, 0, 0, 0], sizes = [4, 1, 4, 32], strides = [1, 1, 1, 1]} : vector<4x2x4x32xf32> to vector<4x1x4x32xf32>
    %221 = vector.shape_cast %220 : vector<4x1x4x32xf32> to vector<4x4x32xf32>
    %222 = vector.shape_cast %221 : vector<4x4x32xf32> to vector<16x32xf32>
    %c0_228 = arith.constant 0 : index
    %c2_229 = arith.constant 2 : index
    %c0_230 = arith.constant 0 : index
    %223 = tpu.strided_load %arg24[%c0_228, %c2_229, %c0_230] {strides = array<i32: 1, 2, 1>} : memref<10x10x32xf32, #tpu.memory_space<vmem>>, vector<8x4x32xf32>
    %224 = vector.shape_cast %223 : vector<8x4x32xf32> to vector<4x2x4x32xf32>
    %225 = vector.extract_strided_slice %224 {offsets = [0, 0, 0, 0], sizes = [4, 1, 4, 32], strides = [1, 1, 1, 1]} : vector<4x2x4x32xf32> to vector<4x1x4x32xf32>
    %226 = vector.shape_cast %225 : vector<4x1x4x32xf32> to vector<4x4x32xf32>
    %227 = vector.shape_cast %226 : vector<4x4x32xf32> to vector<16x32xf32>
    %c1_231 = arith.constant 1 : index
    %c0_232 = arith.constant 0 : index
    %c0_233 = arith.constant 0 : index
    %228 = tpu.strided_load %arg24[%c1_231, %c0_232, %c0_233] {strides = array<i32: 1, 2, 1>} : memref<10x10x32xf32, #tpu.memory_space<vmem>>, vector<8x4x32xf32>
    %229 = vector.shape_cast %228 : vector<8x4x32xf32> to vector<4x2x4x32xf32>
    %230 = vector.extract_strided_slice %229 {offsets = [0, 0, 0, 0], sizes = [4, 1, 4, 32], strides = [1, 1, 1, 1]} : vector<4x2x4x32xf32> to vector<4x1x4x32xf32>
    %231 = vector.shape_cast %230 : vector<4x1x4x32xf32> to vector<4x4x32xf32>
    %232 = vector.shape_cast %231 : vector<4x4x32xf32> to vector<16x32xf32>
    %c1_234 = arith.constant 1 : index
    %c1_235 = arith.constant 1 : index
    %c0_236 = arith.constant 0 : index
    %233 = tpu.strided_load %arg24[%c1_234, %c1_235, %c0_236] {strides = array<i32: 1, 2, 1>} : memref<10x10x32xf32, #tpu.memory_space<vmem>>, vector<8x4x32xf32>
    %234 = vector.shape_cast %233 : vector<8x4x32xf32> to vector<4x2x4x32xf32>
    %235 = vector.extract_strided_slice %234 {offsets = [0, 0, 0, 0], sizes = [4, 1, 4, 32], strides = [1, 1, 1, 1]} : vector<4x2x4x32xf32> to vector<4x1x4x32xf32>
    %236 = vector.shape_cast %235 : vector<4x1x4x32xf32> to vector<4x4x32xf32>
    %237 = vector.shape_cast %236 : vector<4x4x32xf32> to vector<16x32xf32>
    %c1_237 = arith.constant 1 : index
    %c2_238 = arith.constant 2 : index
    %c0_239 = arith.constant 0 : index
    %238 = tpu.strided_load %arg24[%c1_237, %c2_238, %c0_239] {strides = array<i32: 1, 2, 1>} : memref<10x10x32xf32, #tpu.memory_space<vmem>>, vector<8x4x32xf32>
    %239 = vector.shape_cast %238 : vector<8x4x32xf32> to vector<4x2x4x32xf32>
    %240 = vector.extract_strided_slice %239 {offsets = [0, 0, 0, 0], sizes = [4, 1, 4, 32], strides = [1, 1, 1, 1]} : vector<4x2x4x32xf32> to vector<4x1x4x32xf32>
    %241 = vector.shape_cast %240 : vector<4x1x4x32xf32> to vector<4x4x32xf32>
    %242 = vector.shape_cast %241 : vector<4x4x32xf32> to vector<16x32xf32>
    %c2_240 = arith.constant 2 : index
    %c0_241 = arith.constant 0 : index
    %c0_242 = arith.constant 0 : index
    %243 = tpu.strided_load %arg24[%c2_240, %c0_241, %c0_242] {strides = array<i32: 1, 2, 1>} : memref<10x10x32xf32, #tpu.memory_space<vmem>>, vector<8x4x32xf32>
    %244 = vector.shape_cast %243 : vector<8x4x32xf32> to vector<4x2x4x32xf32>
    %245 = vector.extract_strided_slice %244 {offsets = [0, 0, 0, 0], sizes = [4, 1, 4, 32], strides = [1, 1, 1, 1]} : vector<4x2x4x32xf32> to vector<4x1x4x32xf32>
    %246 = vector.shape_cast %245 : vector<4x1x4x32xf32> to vector<4x4x32xf32>
    %247 = vector.shape_cast %246 : vector<4x4x32xf32> to vector<16x32xf32>
    %c2_243 = arith.constant 2 : index
    %c1_244 = arith.constant 1 : index
    %c0_245 = arith.constant 0 : index
    %248 = tpu.strided_load %arg24[%c2_243, %c1_244, %c0_245] {strides = array<i32: 1, 2, 1>} : memref<10x10x32xf32, #tpu.memory_space<vmem>>, vector<8x4x32xf32>
    %249 = vector.shape_cast %248 : vector<8x4x32xf32> to vector<4x2x4x32xf32>
    %250 = vector.extract_strided_slice %249 {offsets = [0, 0, 0, 0], sizes = [4, 1, 4, 32], strides = [1, 1, 1, 1]} : vector<4x2x4x32xf32> to vector<4x1x4x32xf32>
    %251 = vector.shape_cast %250 : vector<4x1x4x32xf32> to vector<4x4x32xf32>
    %252 = vector.shape_cast %251 : vector<4x4x32xf32> to vector<16x32xf32>
    %c2_246 = arith.constant 2 : index
    %c2_247 = arith.constant 2 : index
    %c0_248 = arith.constant 0 : index
    %253 = tpu.strided_load %arg24[%c2_246, %c2_247, %c0_248] {strides = array<i32: 1, 2, 1>} : memref<10x10x32xf32, #tpu.memory_space<vmem>>, vector<8x4x32xf32>
    %254 = vector.shape_cast %253 : vector<8x4x32xf32> to vector<4x2x4x32xf32>
    %255 = vector.extract_strided_slice %254 {offsets = [0, 0, 0, 0], sizes = [4, 1, 4, 32], strides = [1, 1, 1, 1]} : vector<4x2x4x32xf32> to vector<4x1x4x32xf32>
    %256 = vector.shape_cast %255 : vector<4x1x4x32xf32> to vector<4x4x32xf32>
    %257 = vector.shape_cast %256 : vector<4x4x32xf32> to vector<16x32xf32>
    %258 = tpu.concatenate %217, %222, %227, %232, %237, %242, %247, %252, %257 in 1 : vector<16x32xf32>, vector<16x32xf32>, vector<16x32xf32>, vector<16x32xf32>, vector<16x32xf32>, vector<16x32xf32>, vector<16x32xf32>, vector<16x32xf32>, vector<16x32xf32> -> vector<16x288xf32>
    %259 = arith.truncf %258 : vector<16x288xf32> to vector<16x288xbf16>
    %c0_249 = arith.constant 0 : index
    %c0_250 = arith.constant 0 : index
    %260 = vector.load %arg12[%c0_249, %c0_250] : memref<288x64xbf16, #tpu.memory_space<vmem>>, vector<288x64xbf16>
    %cst_251 = arith.constant dense<0.000000e+00> : vector<16x64xf32>
    %261 = tpu.matmul %259, %260, %cst_251 {dimension_numbers = #tpu.dot_dimension_numbers<[1], [0], [0], [1], [0, 0, 1, 1], [], []>} : vector<16x288xbf16>, vector<288x64xbf16>, vector<16x64xf32> -> vector<16x64xf32>
    %c0_252 = arith.constant 0 : index
    %c0_253 = arith.constant 0 : index
    %262 = vector.load %arg13[%c0_252, %c0_253] : memref<2x64xf32, #tpu.memory_space<vmem>>, vector<1x64xf32>
    %263 = vector.broadcast %262 : vector<1x64xf32> to vector<16x64xf32>
    %264 = arith.mulf %261, %263 : vector<16x64xf32>
    %c1_254 = arith.constant 1 : index
    %c0_255 = arith.constant 0 : index
    %265 = vector.load %arg13[%c1_254, %c0_255] : memref<2x64xf32, #tpu.memory_space<vmem>>, vector<1x64xf32>
    %266 = vector.broadcast %265 : vector<1x64xf32> to vector<16x64xf32>
    %267 = arith.addf %264, %266 : vector<16x64xf32>
    %cst_256 = arith.constant 0.000000e+00 : f32
    %268 = vector.broadcast %cst_256 : f32 to vector<16x64xf32>
    %269 = arith.maximumf %267, %268 : vector<16x64xf32>
    %cst_257 = arith.constant 0.000000e+00 : f32
    %270 = vector.broadcast %cst_257 : f32 to vector<6x6x64xf32>
    %c0_258 = arith.constant 0 : index
    %c0_259 = arith.constant 0 : index
    %c0_260 = arith.constant 0 : index
    %271 = vector.load %arg25[%c0_258, %c0_259, %c0_260] : memref<6x6x64xf32, #tpu.memory_space<vmem>>, vector<6x6x64xf32>
    tpu.vector_store %arg25[%c0_258, %c0_259, %c0_260], %270 {strides = array<i32>} : memref<6x6x64xf32, #tpu.memory_space<vmem>>, vector<6x6x64xf32>,
    %272 = vector.shape_cast %269 : vector<16x64xf32> to vector<4x4x64xf32>
    %c1_261 = arith.constant 1 : index
    %c1_262 = arith.constant 1 : index
    %c0_263 = arith.constant 0 : index
    %273 = vector.load %arg25[%c1_261, %c1_262, %c0_263] : memref<6x6x64xf32, #tpu.memory_space<vmem>>, vector<4x4x64xf32>
    tpu.vector_store %arg25[%c1_261, %c1_262, %c0_263], %272 {strides = array<i32>} : memref<6x6x64xf32, #tpu.memory_space<vmem>>, vector<4x4x64xf32>,
    %c0_264 = arith.constant 0 : index
    %c0_265 = arith.constant 0 : index
    %c0_266 = arith.constant 0 : index
    %274 = vector.load %arg25[%c0_264, %c0_265, %c0_266] : memref<6x6x64xf32, #tpu.memory_space<vmem>>, vector<4x4x64xf32>
    %275 = vector.shape_cast %274 : vector<4x4x64xf32> to vector<16x64xf32>
    %c0_267 = arith.constant 0 : index
    %c1_268 = arith.constant 1 : index
    %c0_269 = arith.constant 0 : index
    %276 = vector.load %arg25[%c0_267, %c1_268, %c0_269] : memref<6x6x64xf32, #tpu.memory_space<vmem>>, vector<4x4x64xf32>
    %277 = vector.shape_cast %276 : vector<4x4x64xf32> to vector<16x64xf32>
    %c0_270 = arith.constant 0 : index
    %c2_271 = arith.constant 2 : index
    %c0_272 = arith.constant 0 : index
    %278 = vector.load %arg25[%c0_270, %c2_271, %c0_272] : memref<6x6x64xf32, #tpu.memory_space<vmem>>, vector<4x4x64xf32>
    %279 = vector.shape_cast %278 : vector<4x4x64xf32> to vector<16x64xf32>
    %c1_273 = arith.constant 1 : index
    %c0_274 = arith.constant 0 : index
    %c0_275 = arith.constant 0 : index
    %280 = vector.load %arg25[%c1_273, %c0_274, %c0_275] : memref<6x6x64xf32, #tpu.memory_space<vmem>>, vector<4x4x64xf32>
    %281 = vector.shape_cast %280 : vector<4x4x64xf32> to vector<16x64xf32>
    %c1_276 = arith.constant 1 : index
    %c1_277 = arith.constant 1 : index
    %c0_278 = arith.constant 0 : index
    %282 = vector.load %arg25[%c1_276, %c1_277, %c0_278] : memref<6x6x64xf32, #tpu.memory_space<vmem>>, vector<4x4x64xf32>
    %283 = vector.shape_cast %282 : vector<4x4x64xf32> to vector<16x64xf32>
    %c1_279 = arith.constant 1 : index
    %c2_280 = arith.constant 2 : index
    %c0_281 = arith.constant 0 : index
    %284 = vector.load %arg25[%c1_279, %c2_280, %c0_281] : memref<6x6x64xf32, #tpu.memory_space<vmem>>, vector<4x4x64xf32>
    %285 = vector.shape_cast %284 : vector<4x4x64xf32> to vector<16x64xf32>
    %c2_282 = arith.constant 2 : index
    %c0_283 = arith.constant 0 : index
    %c0_284 = arith.constant 0 : index
    %286 = vector.load %arg25[%c2_282, %c0_283, %c0_284] : memref<6x6x64xf32, #tpu.memory_space<vmem>>, vector<4x4x64xf32>
    %287 = vector.shape_cast %286 : vector<4x4x64xf32> to vector<16x64xf32>
    %c2_285 = arith.constant 2 : index
    %c1_286 = arith.constant 1 : index
    %c0_287 = arith.constant 0 : index
    %288 = vector.load %arg25[%c2_285, %c1_286, %c0_287] : memref<6x6x64xf32, #tpu.memory_space<vmem>>, vector<4x4x64xf32>
    %289 = vector.shape_cast %288 : vector<4x4x64xf32> to vector<16x64xf32>
    %c2_288 = arith.constant 2 : index
    %c2_289 = arith.constant 2 : index
    %c0_290 = arith.constant 0 : index
    %290 = vector.load %arg25[%c2_288, %c2_289, %c0_290] : memref<6x6x64xf32, #tpu.memory_space<vmem>>, vector<4x4x64xf32>
    %291 = vector.shape_cast %290 : vector<4x4x64xf32> to vector<16x64xf32>
    %292 = tpu.concatenate %275, %277, %279, %281, %283, %285, %287, %289, %291 in 1 : vector<16x64xf32>, vector<16x64xf32>, vector<16x64xf32>, vector<16x64xf32>, vector<16x64xf32>, vector<16x64xf32>, vector<16x64xf32>, vector<16x64xf32>, vector<16x64xf32> -> vector<16x576xf32>
    %293 = arith.truncf %292 : vector<16x576xf32> to vector<16x576xbf16>
    %c0_291 = arith.constant 0 : index
    %c0_292 = arith.constant 0 : index
    %294 = vector.load %arg14[%c0_291, %c0_292] : memref<576x64xbf16, #tpu.memory_space<vmem>>, vector<576x64xbf16>
    %cst_293 = arith.constant dense<0.000000e+00> : vector<16x64xf32>
    %295 = tpu.matmul %293, %294, %cst_293 {dimension_numbers = #tpu.dot_dimension_numbers<[1], [0], [0], [1], [0, 0, 1, 1], [], []>} : vector<16x576xbf16>, vector<576x64xbf16>, vector<16x64xf32> -> vector<16x64xf32>
    %c0_294 = arith.constant 0 : index
    %c0_295 = arith.constant 0 : index
    %296 = vector.load %arg15[%c0_294, %c0_295] : memref<2x64xf32, #tpu.memory_space<vmem>>, vector<1x64xf32>
    %297 = vector.broadcast %296 : vector<1x64xf32> to vector<16x64xf32>
    %298 = arith.mulf %295, %297 : vector<16x64xf32>
    %c1_296 = arith.constant 1 : index
    %c0_297 = arith.constant 0 : index
    %299 = vector.load %arg15[%c1_296, %c0_297] : memref<2x64xf32, #tpu.memory_space<vmem>>, vector<1x64xf32>
    %300 = vector.broadcast %299 : vector<1x64xf32> to vector<16x64xf32>
    %301 = arith.addf %298, %300 : vector<16x64xf32>
    %c1_298 = arith.constant 1 : index
    %c1_299 = arith.constant 1 : index
    %c0_300 = arith.constant 0 : index
    %302 = tpu.strided_load %arg24[%c1_298, %c1_299, %c0_300] {strides = array<i32: 1, 2, 1>} : memref<10x10x32xf32, #tpu.memory_space<vmem>>, vector<8x4x32xf32>
    %303 = vector.shape_cast %302 : vector<8x4x32xf32> to vector<4x2x4x32xf32>
    %304 = vector.extract_strided_slice %303 {offsets = [0, 0, 0, 0], sizes = [4, 1, 4, 32], strides = [1, 1, 1, 1]} : vector<4x2x4x32xf32> to vector<4x1x4x32xf32>
    %305 = vector.shape_cast %304 : vector<4x1x4x32xf32> to vector<4x4x32xf32>
    %306 = vector.shape_cast %305 : vector<4x4x32xf32> to vector<16x32xf32>
    %cst_301 = arith.constant 0.000000e+00 : f32
    %307 = vector.broadcast %cst_301 : f32 to vector<16x16xf32>
    %cst_302 = arith.constant 0.000000e+00 : f32
    %308 = vector.broadcast %cst_302 : f32 to vector<16x16xf32>
    %309 = tpu.concatenate %307, %306, %308 in 1 : vector<16x16xf32>, vector<16x32xf32>, vector<16x16xf32> -> vector<16x64xf32>
    %310 = arith.addf %301, %309 : vector<16x64xf32>
    %cst_303 = arith.constant 0.000000e+00 : f32
    %311 = vector.broadcast %cst_303 : f32 to vector<16x64xf32>
    %312 = arith.maximumf %310, %311 : vector<16x64xf32>
    %313 = vector.shape_cast %312 : vector<16x64xf32> to vector<4x4x64xf32>
    %314 = vector.shape_cast %313 : vector<4x4x64xf32> to vector<16x64xf32>
    %cst_304 = arith.constant dense<0.000000e+00> : vector<64xf32>
    %315 = vector.multi_reduction <add>, %314, %cst_304 [0] : vector<16x64xf32> to vector<64xf32>
    %316 = vector.shape_cast %315 : vector<64xf32> to vector<1x64xf32>
    %cst_305 = arith.constant 1.600000e+01 : f32
    %317 = vector.broadcast %cst_305 : f32 to vector<1x64xf32>
    %318 = arith.divf %316, %317 : vector<1x64xf32>
    %c0_306 = arith.constant 0 : index
    %c0_307 = arith.constant 0 : index
    %319 = vector.load %arg16[%c0_306, %c0_307] : memref<64x10xf32, #tpu.memory_space<vmem>>, vector<64x10xf32>
    %cst_308 = arith.constant dense<0.000000e+00> : vector<1x10xf32>
    %320 = tpu.matmul %318, %319, %cst_308 {dimension_numbers = #tpu.dot_dimension_numbers<[1], [0], [0], [1], [0, 0, 1, 1], [], []>} : vector<1x64xf32>, vector<64x10xf32>, vector<1x10xf32> -> vector<1x10xf32>
    %c0_309 = arith.constant 0 : index
    %c0_310 = arith.constant 0 : index
    %321 = vector.load %arg17[%c0_309, %c0_310] : memref<1x10xf32, #tpu.memory_space<vmem>>, vector<1x10xf32>
    %322 = arith.addf %320, %321 : vector<1x10xf32>
    %c0_311 = arith.constant 0 : index
    %c0_312 = arith.constant 0 : index
    %c0_313 = arith.constant 0 : index
    %323 = vector.load %arg18[%c0_311, %c0_312, %c0_313] : memref<1x1x10xf32, #tpu.memory_space<vmem>>, vector<1x1x10xf32>
    %324 = vector.shape_cast %323 : vector<1x1x10xf32> to vector<1x10xf32>
    %325 = vector.shape_cast %322 : vector<1x10xf32> to vector<1x1x10xf32>
    tpu.vector_store %arg18[%c0_311, %c0_312, %c0_313], %325 {strides = array<i32>} : memref<1x1x10xf32, #tpu.memory_space<vmem>>, vector<1x1x10xf32>,
    return
  }
  func.func @transform_0(%arg0: i32) -> (i32, i32, i32, i32) {
    %c0_i32 = arith.constant 0 : i32
    %c0_i32_0 = arith.constant 0 : i32
    %c0_i32_1 = arith.constant 0 : i32
    %c0_i32_2 = arith.constant 0 : i32
    return %arg0, %c0_i32, %c0_i32_0, %c0_i32_1 : i32, i32, i32, i32
  }
  func.func @transform_1(%arg0: i32) -> (i32, i32) {
    %c0_i32 = arith.constant 0 : i32
    %c0_i32_0 = arith.constant 0 : i32
    %c0_i32_1 = arith.constant 0 : i32
    return %c0_i32, %c0_i32_0 : i32, i32
  }
  func.func @transform_2(%arg0: i32) -> (i32, i32) {
    %c0_i32 = arith.constant 0 : i32
    %c0_i32_0 = arith.constant 0 : i32
    %c0_i32_1 = arith.constant 0 : i32
    return %c0_i32, %c0_i32_0 : i32, i32
  }
  func.func @transform_3(%arg0: i32) -> (i32, i32) {
    %c0_i32 = arith.constant 0 : i32
    %c0_i32_0 = arith.constant 0 : i32
    %c0_i32_1 = arith.constant 0 : i32
    return %c0_i32, %c0_i32_0 : i32, i32
  }
  func.func @transform_4(%arg0: i32) -> (i32, i32) {
    %c0_i32 = arith.constant 0 : i32
    %c0_i32_0 = arith.constant 0 : i32
    %c0_i32_1 = arith.constant 0 : i32
    return %c0_i32, %c0_i32_0 : i32, i32
  }
  func.func @transform_5(%arg0: i32) -> (i32, i32) {
    %c0_i32 = arith.constant 0 : i32
    %c0_i32_0 = arith.constant 0 : i32
    %c0_i32_1 = arith.constant 0 : i32
    return %c0_i32, %c0_i32_0 : i32, i32
  }
  func.func @transform_6(%arg0: i32) -> (i32, i32) {
    %c0_i32 = arith.constant 0 : i32
    %c0_i32_0 = arith.constant 0 : i32
    %c0_i32_1 = arith.constant 0 : i32
    return %c0_i32, %c0_i32_0 : i32, i32
  }
  func.func @transform_7(%arg0: i32) -> (i32, i32) {
    %c0_i32 = arith.constant 0 : i32
    %c0_i32_0 = arith.constant 0 : i32
    %c0_i32_1 = arith.constant 0 : i32
    return %c0_i32, %c0_i32_0 : i32, i32
  }
  func.func @transform_8(%arg0: i32) -> (i32, i32) {
    %c0_i32 = arith.constant 0 : i32
    %c0_i32_0 = arith.constant 0 : i32
    %c0_i32_1 = arith.constant 0 : i32
    return %c0_i32, %c0_i32_0 : i32, i32
  }
  func.func @transform_9(%arg0: i32) -> (i32, i32) {
    %c0_i32 = arith.constant 0 : i32
    %c0_i32_0 = arith.constant 0 : i32
    %c0_i32_1 = arith.constant 0 : i32
    return %c0_i32, %c0_i32_0 : i32, i32
  }
  func.func @transform_10(%arg0: i32) -> (i32, i32) {
    %c0_i32 = arith.constant 0 : i32
    %c0_i32_0 = arith.constant 0 : i32
    %c0_i32_1 = arith.constant 0 : i32
    return %c0_i32, %c0_i32_0 : i32, i32
  }
  func.func @transform_11(%arg0: i32) -> (i32, i32) {
    %c0_i32 = arith.constant 0 : i32
    %c0_i32_0 = arith.constant 0 : i32
    %c0_i32_1 = arith.constant 0 : i32
    return %c0_i32, %c0_i32_0 : i32, i32
  }
  func.func @transform_12(%arg0: i32) -> (i32, i32) {
    %c0_i32 = arith.constant 0 : i32
    %c0_i32_0 = arith.constant 0 : i32
    %c0_i32_1 = arith.constant 0 : i32
    return %c0_i32, %c0_i32_0 : i32, i32
  }
  func.func @transform_13(%arg0: i32) -> (i32, i32) {
    %c0_i32 = arith.constant 0 : i32
    %c0_i32_0 = arith.constant 0 : i32
    %c0_i32_1 = arith.constant 0 : i32
    return %c0_i32, %c0_i32_0 : i32, i32
  }
  func.func @transform_14(%arg0: i32) -> (i32, i32) {
    %c0_i32 = arith.constant 0 : i32
    %c0_i32_0 = arith.constant 0 : i32
    %c0_i32_1 = arith.constant 0 : i32
    return %c0_i32, %c0_i32_0 : i32, i32
  }
  func.func @transform_15(%arg0: i32) -> (i32, i32) {
    %c0_i32 = arith.constant 0 : i32
    %c0_i32_0 = arith.constant 0 : i32
    %c0_i32_1 = arith.constant 0 : i32
    return %c0_i32, %c0_i32_0 : i32, i32
  }
  func.func @transform_16(%arg0: i32) -> (i32, i32) {
    %c0_i32 = arith.constant 0 : i32
    %c0_i32_0 = arith.constant 0 : i32
    %c0_i32_1 = arith.constant 0 : i32
    return %c0_i32, %c0_i32_0 : i32, i32
  }
  func.func @transform_17(%arg0: i32) -> (i32, i32, i32) {
    %c0_i32 = arith.constant 0 : i32
    %c0_i32_0 = arith.constant 0 : i32
    %c0_i32_1 = arith.constant 0 : i32
    return %arg0, %c0_i32, %c0_i32_0 : i32, i32, i32
  }
}

</mosaic_0001>

<bundles_post_ra>
// kernel: tpu_custom_call.1
= control target key start
LH: loop header
LB: loop body
LE: loop exit
PB: predicated region body
PF: predicated region fallthrough
CT: control target
= control target key end

     0   :  { %s15984_s0 = inlined_call_operand.vmem [shape: f32[2,16,16,8], index: 0, kind: input, shape index: {}]   ;;  %s15985_s1 = inlined_call_operand.vmem [shape: bf16[72,16], index: 1, kind: input, shape index: {}]   ;;  %s15986_s2 = inlined_call_operand.vmem [shape: f32[2,16], index: 2, kind: input, shape index: {}]   ;;  %s15987_s3 = inlined_call_operand.vmem [shape: bf16[144,16], index: 3, kind: input, shape index: {}]   ;;  %s15988_s4 = inlined_call_operand.vmem [shape: f32[2,16], index: 4, kind: input, shape index: {}]   ;;  %s15989_s5 = inlined_call_operand.vmem [shape: bf16[144,16], index: 5, kind: input, shape index: {}]   ;;  %s15990_s6 = inlined_call_operand.vmem [shape: f32[2,16], index: 6, kind: input, shape index: {}]   ;;  %s15991_s7 = inlined_call_operand.vmem [shape: bf16[144,32], index: 7, kind: input, shape index: {}]   ;;  %s15992_s8 = inlined_call_operand.vmem [shape: f32[2,32], index: 8, kind: input, shape index: {}]   ;;  %s15993_s9 = inlined_call_operand.vmem [shape: bf16[288,32], index: 9, kind: input, shape index: {}]   ;;  %s15994_s10 = inlined_call_operand.vmem [shape: f32[2,32], index: 10, kind: input, shape index: {}]   ;;  %s15995_s11 = inlined_call_operand.vmem [shape: bf16[288,64], index: 11, kind: input, shape index: {}]   ;;  %s15996_s12 = inlined_call_operand.vmem [shape: f32[2,64], index: 12, kind: input, shape index: {}]   ;;  %s15997_s13 = inlined_call_operand.vmem [shape: bf16[576,64], index: 13, kind: input, shape index: {}]   ;;  %s15998_s14 = inlined_call_operand.vmem [shape: f32[2,64], index: 14, kind: input, shape index: {}]   ;;  %s15999_s15 = inlined_call_operand.vmem [shape: f32[64,10], index: 15, kind: input, shape index: {}]   ;;  %s16000_s16 = inlined_call_operand.vmem [shape: f32[1,10], index: 16, kind: input, shape index: {}]   ;;  %s16001_s17 = inlined_call_operand.hbm [shape: f32[2,1,10], index: 17, kind: output, shape index: {}]  }
   0x1   :  { %16092 = sst [smem:[#allocation42_spill]] %s15984_s0 }
   0x2   :  { %16093 = sst [smem:[#allocation43_spill]] %s15985_s1 }
   0x3   :  { %16094 = sst [smem:[#allocation44_spill]] %s15986_s2 }
   0x4   :  { %16095 = sst [smem:[#allocation45_spill]] %s15987_s3 }
   0x5   :  { %16096 = sst [smem:[#allocation46_spill]] %s15988_s4 }
   0x6   :  { %16097 = sst [smem:[#allocation47_spill]] %s15989_s5 }
   0x7   :  { %22 = vsyncpa [#allocation10], 0 }
   0x8   :  { %24 = vsyncpa [#allocation10 + $0x1], 0  ;;  %s12085_s24 = smov 0   ;;  %s12087_s25 = smov 0  }
   0x9   :  { %s12089_s26 = smov 0   ;;  %s12091_s27 = smov 0  }
   0xa LB: > { %16098 = sst [smem:[#allocation12_spill]] %s11965_s24  ;;  %s12106_s28 = sadd.s32 4294967295, %s11977_s27   ;;  %s11977_s27 = sphi %s12091_s27, %s16219_s27   ;;  %s11973_s26 = sphi %s12089_s26, %s16221_s26   ;;  %s11969_s25 = sphi %s12087_s25, %s16223_s25   ;;  %s11965_s24 = sphi %s12085_s24, %s16222_s24  }
   0xb   : > { %16099 = sst [smem:[#allocation13_spill]] %s11973_s26  ;;  %s9216_s29 = sadd.s32 4294967294, %s11977_s27  }
   0xc   : > { %s12110_s0 = sadd.s32 1, %s11977_s27   ;;  %s399_s30 = sadd.s32 1, %s11973_s26 }
   0xd   : > { %16100 = sst [smem:[#allocation14_spill]] %s12110_s0  ;;  %s396_s18 = ssub.s32 %s11977_s27, %s12110_s0 }
   0xe   : > { %p409_p0 = scmp.ne.s32.totalorder %s11973_s26, %s11969_s25  ;;  %p397_p1 = scmp.eq.s32.totalorder %s396_s18, 0 }
   0xf   : > { %p410_p2 = scmp.eq.s32.totalorder %s12106_s28, 1  ;;  %p415_p3 = scmp.ne.s32.totalorder %s11969_s25, %s11965_s24 }
  0x10   : > { %p416_p4 = scmp.eq.s32.totalorder %s9216_s29, 1  ;;  %p9219_p7 = scmp.ge.s32.totalorder %s11977_s27, 1 }
  0x11   : > { %s12121_s19 = scalar_select %p397_p1, %s11973_s26, %s399_s30  }
  0x12   : > { %p12123_p5 = por %p410_p2, %p409_p0  ;;  %p12127_p6 = por %p416_p4, %p415_p3 }
  0x13   : > { %16101 = sst [smem:[#allocation15_spill]] %s12121_s19  ;;  %p490_p8 = scmp.lt.s32.totalorder %s11977_s27, 3 }
  0x14   : > { %s16103_s20 = scalar_select %p12127_p6, 1, 0 }
  0x15   : > { %p491_p9 = pnand %p9219_p7, %p490_p8 }
  0x16   : > { %16104 = sst [smem:[#allocation16_spill]] %s16103_s20 }
  0x17   : > { %494 = sbr.rel (%p491_p9) target bundleno = 3165 (0xc5d), region = 88 }
  0x1e   : > { %vm579_vm0 = vcmask 64512   ;;  %vm582_vm1 = vcmask 58368   ;;  %v16027_v0 = vmov 0.0   ;;  %p541_p10 = scmp.lt.s32.totalorder %s12106_s28, 1  ;;  %vm2013_vm2 = vcmask 130048   ;;  %s16105_s30 = sld [smem:[#allocation42_spill]] }
  0x1f   : > { %580 = vst.msk [vmem:[#allocation2] sm:$0xff] %vm579_vm0, %v16027_v0  ;;  %581 = vst.msk [vmem:[#allocation2 + $0x8] sm:$0xff] %vm579_vm0, %v16027_v0  ;;  %vm2079_vm3 = vcmask 261120   ;;  %s16003_s23 = smov 24   ;;  %s16010_s29 = smov 32   ;;  %vm2345_vm4 = vcmask 1043456  }
  0x20   : > { %583 = vst.msk [vmem:[#allocation2 + $0x10] sm:$0x3] %vm582_vm1, %v16027_v0  ;;  %586 = vst.msk [vmem:[#allocation2 + $0x28] sm:$0x3] %vm582_vm1, %v16027_v0  ;;  %s12243_s21 = scalar_select %p541_p10, %s12106_s28, 1  ;;  %vm2046_vm5 = vcmask 195584  }
  0x21   : > { %584 = vst.msk [vmem:[#allocation2 + $0x18] sm:$0xff] %vm579_vm0, %v16027_v0  ;;  %585 = vst.msk [vmem:[#allocation2 + $0x20] sm:$0xff] %vm579_vm0, %v16027_v0  ;;  %s16016_s19 = smov 56   ;;  %s16018_s26 = smov 64   ;;  %vm2112_vm6 = vcmask 326656   ;;  %vm2145_vm7 = vcmask 392192  }
  0x22   : > { %587 = vst.msk [vmem:[#allocation2 + $0x30] sm:$0xff] %vm579_vm0, %v16027_v0  ;;  %588 = vst.msk [vmem:[#allocation2 + $0x38] sm:$0xff] %vm579_vm0, %v16027_v0  ;;  %s9402_s22 = sshll.u32 %s12243_s21, 8  ;;  %s16005_s21 = smov 16   ;;  %vm2178_vm8 = vcmask 457728   ;;  %vm2211_vm9 = vcmask 523264  }
  0x23   : > { %589 = vst.msk [vmem:[#allocation2 + $0x40] sm:$0x3] %vm582_vm1, %v16027_v0  ;;  %592 = vst.msk [vmem:[#allocation2 + $0x58] sm:$0x3] %vm582_vm1, %v16027_v0  ;;  %s16114_s0 = smov 64   ;;  %vm2296_vm10 = vcmask 588800  }
  0x24   : > { %590 = vst.msk [vmem:[#allocation2 + $0x48] sm:$0xff] %vm579_vm0, %v16027_v0  ;;  %591 = vst.msk [vmem:[#allocation2 + $0x50] sm:$0xff] %vm579_vm0, %v16027_v0  ;;  %s12463_s18 = scalar_lea.vmem %s16105_s30, %s9402_s22  ;;  %s16007_s22 = smov 8   ;;  %vm2618_vm11 = vcmask 123904   ;;  %vm4017_vm12 = vcmask 654336   ;;  %vm4050_vm13 = vcmask 785408  }
  0x25   : > { %593 = vst.msk [vmem:[#allocation2 + $0x60] sm:$0xff] %vm579_vm0, %v16027_v0  ;;  %594 = vst.msk [vmem:[#allocation2 + $0x68] sm:$0xff] %vm579_vm0, %v16027_v0  ;;  %v547_v1 = vld [vmem:[%s12463_s18] sm:$0xff]  ;;  %v548_v2 = vld [vmem:[%s12463_s18 + $0x8] sm:$0xff]  ;;  %s16014_s30 = smov 40   ;;  %s16115_s3 = sld [smem:[#allocation45_spill]] }
  0x26   : > { %595 = vst.msk [vmem:[#allocation2 + $0x70] sm:$0x3] %vm582_vm1, %v16027_v0  ;;  %598 = vst.msk [vmem:[#allocation2 + $0x88] sm:$0x3] %vm582_vm1, %v16027_v0  ;;  %v549_v3 = vld [vmem:[%s12463_s18 + $0x10] sm:$0xff]  ;;  %v732_v4 = vld [vmem:[#allocation2 + $0x2] sm:$0xff] }
  0x27   : > { %596 = vst.msk [vmem:[#allocation2 + $0x78] sm:$0xff] %vm579_vm0, %v16027_v0  ;;  %597 = vst.msk [vmem:[#allocation2 + $0x80] sm:$0xff] %vm579_vm0, %v16027_v0  ;;  %v733_v5 = vld [vmem:[#allocation2 + $0xa] sm:$0xff]  ;;  %v700_v6 = vld [vmem:[#allocation2 + $0x1] sm:$0xff]  ;;  %s16116_s2 = sld [smem:[#allocation44_spill]]  ;;  %s16118_s24 = smov 96  }
  0x28   : > { %599 = vst.msk [vmem:[#allocation2 + $0x90] sm:$0xff] %vm579_vm0, %v16027_v0  ;;  %600 = vst.msk [vmem:[#allocation2 + $0x98] sm:$0xff] %vm579_vm0, %v16027_v0  ;;  %v9718_v7 = vpack.i.bf16 %v733_v5, %v732_v4  ;;  %v701_v8 = vld [vmem:[#allocation2 + $0x9] sm:$0xff]  ;;  %v550_v9 = vld [vmem:[%s12463_s18 + $0x18] sm:$0xff]  ;;  %vm4083_vm14 = vcmask 916480   ;;  %s16154_s4 = sld [smem:[#allocation46_spill]] }
  0x29   : > { %601 = vst.msk [vmem:[#allocation2 + $0xa0] sm:$0x3] %vm582_vm1, %v16027_v0  ;;  %604 = vst.msk [vmem:[#allocation2 + $0xb8] sm:$0x3] %vm582_vm1, %v16027_v0  ;;  %v551_v10 = vld [vmem:[%s12463_s18 + $0x20] sm:$0xff]  ;;  %v9713_v11 = vpack.i.bf16 %v701_v8, %v700_v6  ;;  %v552_v12 = vld [vmem:[%s12463_s18 + $0x28] sm:$0xff] }
  0x2a   : > { %602 = vst.msk [vmem:[#allocation2 + $0xa8] sm:$0xff] %vm579_vm0, %v16027_v0  ;;  %603 = vst.msk [vmem:[#allocation2 + $0xb0] sm:$0xff] %vm579_vm0, %v16027_v0  ;;  %v553_v13 = vld [vmem:[%s12463_s18 + $0x30] sm:$0xff]  ;;  %v554_v14 = vld [vmem:[%s12463_s18 + $0x38] sm:$0xff]  ;;  %9719 = vrot.lane.b32.xlu1 %v9718_v7, %s16005_s21  ;;  %s16155_s5 = sld [smem:[#allocation47_spill]]  ;;  %vm7183_vm15 = vcmask 254976  }
  0x2b   : > { %605 = vst.msk [vmem:[#allocation2 + $0xc0] sm:$0xff] %vm579_vm0, %v16027_v0  ;;  %606 = vst.msk [vmem:[#allocation2 + $0xc8] sm:$0xff] %vm579_vm0, %v16027_v0  ;;  %v555_v15 = vld [vmem:[%s12463_s18 + $0x40] sm:$0xff]  ;;  %v556_v16 = vld [vmem:[%s12463_s18 + $0x48] sm:$0xff]  ;;  %9714 = vrot.lane.b32.xlu0 %v9713_v11, %s16007_s22 }
  0x2c   : > { %607 = vst.msk [vmem:[#allocation2 + $0xd0] sm:$0x3] %vm582_vm1, %v16027_v0  ;;  %610 = vst.msk [vmem:[#allocation2 + $0xe8] sm:$0x3] %vm582_vm1, %v16027_v0  ;;  %v557_v17 = vld [vmem:[%s12463_s18 + $0x50] sm:$0xff]  ;;  %v558_v18 = vld [vmem:[%s12463_s18 + $0x58] sm:$0xff] }
  0x2d   : > { %608 = vst.msk [vmem:[#allocation2 + $0xd8] sm:$0xff] %vm579_vm0, %v16027_v0  ;;  %609 = vst.msk [vmem:[#allocation2 + $0xe0] sm:$0xff] %vm579_vm0, %v16027_v0  ;;  %v559_v19 = vld [vmem:[%s12463_s18 + $0x60] sm:$0xff]  ;;  %v560_v20 = vld [vmem:[%s12463_s18 + $0x68] sm:$0xff] }
  0x2e   : > { %611 = vst.msk [vmem:[#allocation2 + $0xf0] sm:$0xff] %vm579_vm0, %v16027_v0  ;;  %612 = vst.msk [vmem:[#allocation2 + $0xf8] sm:$0xff] %vm579_vm0, %v16027_v0  ;;  %v561_v21 = vld [vmem:[%s12463_s18 + $0x70] sm:$0xff]  ;;  %v562_v22 = vld [vmem:[%s12463_s18 + $0x78] sm:$0xff] }
  0x2f   : > { %613 = vst.msk [vmem:[#allocation2 + $0x100] sm:$0x3] %vm582_vm1, %v16027_v0  ;;  %616 = vst.msk [vmem:[#allocation2 + $0x118] sm:$0x3] %vm582_vm1, %v16027_v0  ;;  %v563_v23 = vld [vmem:[%s12463_s18 + $0x80] sm:$0xff]  ;;  %v564_v24 = vld [vmem:[%s12463_s18 + $0x88] sm:$0xff] }
  0x30   : > { %614 = vst.msk [vmem:[#allocation2 + $0x108] sm:$0xff] %vm579_vm0, %v16027_v0  ;;  %615 = vst.msk [vmem:[#allocation2 + $0x110] sm:$0xff] %vm579_vm0, %v16027_v0  ;;  %v565_v50 = vld [vmem:[%s12463_s18 + $0x90] sm:$0xff]  ;;  %v566_v52 = vld [vmem:[%s12463_s18 + $0x98] sm:$0xff] }
  0x31   : > { %617 = vst.msk [vmem:[#allocation2 + $0x120] sm:$0xff] %vm579_vm0, %v16027_v0  ;;  %618 = vst.msk [vmem:[#allocation2 + $0x128] sm:$0xff] %vm579_vm0, %v16027_v0  ;;  %v567_v56 = vld [vmem:[%s12463_s18 + $0xa0] sm:$0xff]  ;;  %v568_v57 = vld [vmem:[%s12463_s18 + $0xa8] sm:$0xff] }
  0x32   : > { %619 = vst.msk [vmem:[#allocation2 + $0x130] sm:$0x3] %vm582_vm1, %v16027_v0  ;;  %622 = vst.msk [vmem:[#allocation2 + $0x148] sm:$0x3] %vm582_vm1, %v16027_v0  ;;  %v569_v61 = vld [vmem:[%s12463_s18 + $0xb0] sm:$0xff] }
  0x33   : > { %620 = vst.msk [vmem:[#allocation2 + $0x138] sm:$0xff] %vm579_vm0, %v16027_v0  ;;  %621 = vst.msk [vmem:[#allocation2 + $0x140] sm:$0xff] %vm579_vm0, %v16027_v0 }
  0x34   : > { %623 = vst.msk [vmem:[#allocation2 + $0x150] sm:$0xff] %vm579_vm0, %v16027_v0  ;;  %624 = vst.msk [vmem:[#allocation2 + $0x158] sm:$0xff] %vm579_vm0, %v16027_v0 }
  0x35   : > { %625 = vst.msk [vmem:[#allocation2 + $0x160] sm:$0x3] %vm582_vm1, %v16027_v0  ;;  %628 = vst.msk [vmem:[#allocation2 + $0x178] sm:$0x3] %vm582_vm1, %v16027_v0 }
  0x36   : > { %626 = vst.msk [vmem:[#allocation2 + $0x168] sm:$0xff] %vm579_vm0, %v16027_v0  ;;  %627 = vst.msk [vmem:[#allocation2 + $0x170] sm:$0xff] %vm579_vm0, %v16027_v0 }
  0x37   : > { %629 = vst.msk [vmem:[#allocation2 + $0x180] sm:$0xff] %vm579_vm0, %v16027_v0  ;;  %630 = vst.msk [vmem:[#allocation2 + $0x188] sm:$0xff] %vm579_vm0, %v16027_v0 }
  0x38   : > { %631 = vst.msk [vmem:[#allocation2 + $0x190] sm:$0x3] %vm582_vm1, %v16027_v0  ;;  %634 = vst.msk [vmem:[#allocation2 + $0x1a8] sm:$0x3] %vm582_vm1, %v16027_v0  ;;  %vm11992_vm1 = vmmov 0  }
  0x39   : > { %632 = vst.msk [vmem:[#allocation2 + $0x198] sm:$0xff] %vm579_vm0, %v16027_v0  ;;  %633 = vst.msk [vmem:[#allocation2 + $0x1a0] sm:$0xff] %vm579_vm0, %v16027_v0 }
  0x3a   : > { %2616 = vst.msk [vmem:[#allocation3] sm:$0xff] %vm2013_vm2, %v16027_v0  ;;  %2617 = vst.msk [vmem:[#allocation3 + $0x8] sm:$0xff] %vm2013_vm2, %v16027_v0 }
  0x3b   : > { %2620 = vst.msk [vmem:[#allocation3 + $0x18] sm:$0xff] %vm2013_vm2, %v16027_v0  ;;  %2621 = vst.msk [vmem:[#allocation3 + $0x20] sm:$0xff] %vm2013_vm2, %v16027_v0 }
  0x3c   : > { %2623 = vst.msk [vmem:[#allocation3 + $0x30] sm:$0xff] %vm2013_vm2, %v16027_v0  ;;  %2624 = vst.msk [vmem:[#allocation3 + $0x38] sm:$0xff] %vm2013_vm2, %v16027_v0 }
  0x3d   : > { %2626 = vst.msk [vmem:[#allocation3 + $0x48] sm:$0xff] %vm2013_vm2, %v16027_v0  ;;  %2627 = vst.msk [vmem:[#allocation3 + $0x50] sm:$0xff] %vm2013_vm2, %v16027_v0 }
  0x3e   : > { %2629 = vst.msk [vmem:[#allocation3 + $0x60] sm:$0xff] %vm2013_vm2, %v16027_v0  ;;  %2630 = vst.msk [vmem:[#allocation3 + $0x68] sm:$0xff] %vm2013_vm2, %v16027_v0 }
  0x3f   : > { %2632 = vst.msk [vmem:[#allocation3 + $0x78] sm:$0xff] %vm2013_vm2, %v16027_v0  ;;  %2633 = vst.msk [vmem:[#allocation3 + $0x80] sm:$0xff] %vm2013_vm2, %v16027_v0 }
  0x40   : > { %2635 = vst.msk [vmem:[#allocation3 + $0x90] sm:$0xff] %vm2013_vm2, %v16027_v0  ;;  %2636 = vst.msk [vmem:[#allocation3 + $0x98] sm:$0xff] %vm2013_vm2, %v16027_v0 }
  0x41   : > { %2638 = vst.msk [vmem:[#allocation3 + $0xa8] sm:$0xff] %vm2013_vm2, %v16027_v0  ;;  %2639 = vst.msk [vmem:[#allocation3 + $0xb0] sm:$0xff] %vm2013_vm2, %v16027_v0 }
  0x42   : > { %2641 = vst.msk [vmem:[#allocation3 + $0xc0] sm:$0xff] %vm2013_vm2, %v16027_v0  ;;  %2642 = vst.msk [vmem:[#allocation3 + $0xc8] sm:$0xff] %vm2013_vm2, %v16027_v0 }
  0x43   : > { %2644 = vst.msk [vmem:[#allocation3 + $0xd8] sm:$0xff] %vm2013_vm2, %v16027_v0  ;;  %2645 = vst.msk [vmem:[#allocation3 + $0xe0] sm:$0xff] %vm2013_vm2, %v16027_v0 }
  0x44   : > { %2647 = vst.msk [vmem:[#allocation3 + $0xf0] sm:$0xff] %vm2013_vm2, %v16027_v0  ;;  %2648 = vst.msk [vmem:[#allocation3 + $0xf8] sm:$0xff] %vm2013_vm2, %v16027_v0 }
  0x45   : > { %2650 = vst.msk [vmem:[#allocation3 + $0x108] sm:$0xff] %vm2013_vm2, %v16027_v0  ;;  %2651 = vst.msk [vmem:[#allocation3 + $0x110] sm:$0xff] %vm2013_vm2, %v16027_v0 }
  0x46   : > { %2653 = vst.msk [vmem:[#allocation3 + $0x120] sm:$0xff] %vm2013_vm2, %v16027_v0  ;;  %2654 = vst.msk [vmem:[#allocation3 + $0x128] sm:$0xff] %vm2013_vm2, %v16027_v0 }
  0x47   : > { %2656 = vst.msk [vmem:[#allocation3 + $0x138] sm:$0xff] %vm2013_vm2, %v16027_v0  ;;  %2657 = vst.msk [vmem:[#allocation3 + $0x140] sm:$0xff] %vm2013_vm2, %v16027_v0 }
  0x48   : > { %2659 = vst.msk [vmem:[#allocation3 + $0x150] sm:$0xff] %vm2013_vm2, %v16027_v0  ;;  %2660 = vst.msk [vmem:[#allocation3 + $0x158] sm:$0xff] %vm2013_vm2, %v16027_v0 }
  0x49   : > { %2662 = vst.msk [vmem:[#allocation3 + $0x168] sm:$0xff] %vm2013_vm2, %v16027_v0  ;;  %2663 = vst.msk [vmem:[#allocation3 + $0x170] sm:$0xff] %vm2013_vm2, %v16027_v0 }
  0x4a   : > { %2665 = vst.msk [vmem:[#allocation3 + $0x180] sm:$0xff] %vm2013_vm2, %v16027_v0  ;;  %2666 = vst.msk [vmem:[#allocation3 + $0x188] sm:$0xff] %vm2013_vm2, %v16027_v0 }
  0x4b   : > { %2668 = vst.msk [vmem:[#allocation3 + $0x198] sm:$0xff] %vm2013_vm2, %v16027_v0  ;;  %2669 = vst.msk [vmem:[#allocation3 + $0x1a0] sm:$0xff] %vm2013_vm2, %v16027_v0 }
  0x4c   : > { %4535 = vst.msk [vmem:[#allocation4] sm:$0xff] %vm2013_vm2, %v16027_v0  ;;  %4536 = vst.msk [vmem:[#allocation4 + $0x8] sm:$0xff] %vm2013_vm2, %v16027_v0 }
  0x4d   : > { %4538 = vst.msk [vmem:[#allocation4 + $0x18] sm:$0xff] %vm2013_vm2, %v16027_v0  ;;  %4539 = vst.msk [vmem:[#allocation4 + $0x20] sm:$0xff] %vm2013_vm2, %v16027_v0 }
  0x4e   : > { %4541 = vst.msk [vmem:[#allocation4 + $0x30] sm:$0xff] %vm2013_vm2, %v16027_v0  ;;  %4542 = vst.msk [vmem:[#allocation4 + $0x38] sm:$0xff] %vm2013_vm2, %v16027_v0 }
  0x4f   : > { %4544 = vst.msk [vmem:[#allocation4 + $0x48] sm:$0xff] %vm2013_vm2, %v16027_v0  ;;  %4545 = vst.msk [vmem:[#allocation4 + $0x50] sm:$0xff] %vm2013_vm2, %v16027_v0 }
  0x50   : > { %4547 = vst.msk [vmem:[#allocation4 + $0x60] sm:$0xff] %vm2013_vm2, %v16027_v0  ;;  %4548 = vst.msk [vmem:[#allocation4 + $0x68] sm:$0xff] %vm2013_vm2, %v16027_v0 }
  0x51   : > { %4550 = vst.msk [vmem:[#allocation4 + $0x78] sm:$0xff] %vm2013_vm2, %v16027_v0  ;;  %4551 = vst.msk [vmem:[#allocation4 + $0x80] sm:$0xff] %vm2013_vm2, %v16027_v0 }
  0x52   : > { %4553 = vst.msk [vmem:[#allocation4 + $0x90] sm:$0xff] %vm2013_vm2, %v16027_v0  ;;  %4554 = vst.msk [vmem:[#allocation4 + $0x98] sm:$0xff] %vm2013_vm2, %v16027_v0 }
  0x53   : > { %4556 = vst.msk [vmem:[#allocation4 + $0xa8] sm:$0xff] %vm2013_vm2, %v16027_v0  ;;  %4557 = vst.msk [vmem:[#allocation4 + $0xb0] sm:$0xff] %vm2013_vm2, %v16027_v0 }
  0x54   : > { %4559 = vst.msk [vmem:[#allocation4 + $0xc0] sm:$0xff] %vm2013_vm2, %v16027_v0  ;;  %4560 = vst.msk [vmem:[#allocation4 + $0xc8] sm:$0xff] %vm2013_vm2, %v16027_v0 }
  0x55   : > { %4562 = vst.msk [vmem:[#allocation4 + $0xd8] sm:$0xff] %vm2013_vm2, %v16027_v0  ;;  %4563 = vst.msk [vmem:[#allocation4 + $0xe0] sm:$0xff] %vm2013_vm2, %v16027_v0 }
  0x56   : > { %4565 = vst.msk [vmem:[#allocation4 + $0xf0] sm:$0xff] %vm2013_vm2, %v16027_v0  ;;  %4566 = vst.msk [vmem:[#allocation4 + $0xf8] sm:$0xff] %vm2013_vm2, %v16027_v0 }
  0x57   : > { %4568 = vst.msk [vmem:[#allocation4 + $0x108] sm:$0xff] %vm2013_vm2, %v16027_v0  ;;  %4569 = vst.msk [vmem:[#allocation4 + $0x110] sm:$0xff] %vm2013_vm2, %v16027_v0 }
  0x58   : > { %4571 = vst.msk [vmem:[#allocation4 + $0x120] sm:$0xff] %vm2013_vm2, %v16027_v0  ;;  %4572 = vst.msk [vmem:[#allocation4 + $0x128] sm:$0xff] %vm2013_vm2, %v16027_v0 }
  0x59   : > { %4574 = vst.msk [vmem:[#allocation4 + $0x138] sm:$0xff] %vm2013_vm2, %v16027_v0  ;;  %4575 = vst.msk [vmem:[#allocation4 + $0x140] sm:$0xff] %vm2013_vm2, %v16027_v0 }
  0x5a   : > { %4577 = vst.msk [vmem:[#allocation4 + $0x150] sm:$0xff] %vm2013_vm2, %v16027_v0  ;;  %4578 = vst.msk [vmem:[#allocation4 + $0x158] sm:$0xff] %vm2013_vm2, %v16027_v0 }
  0x5b   : > { %4580 = vst.msk [vmem:[#allocation4 + $0x168] sm:$0xff] %vm2013_vm2, %v16027_v0  ;;  %4581 = vst.msk [vmem:[#allocation4 + $0x170] sm:$0xff] %vm2013_vm2, %v16027_v0 }
  0x5c   : > { %4583 = vst.msk [vmem:[#allocation4 + $0x180] sm:$0xff] %vm2013_vm2, %v16027_v0  ;;  %4584 = vst.msk [vmem:[#allocation4 + $0x188] sm:$0xff] %vm2013_vm2, %v16027_v0 }
  0x5d   : > { %4586 = vst.msk [vmem:[#allocation4 + $0x198] sm:$0xff] %vm2013_vm2, %v16027_v0  ;;  %4587 = vst.msk [vmem:[#allocation4 + $0x1a0] sm:$0xff] %vm2013_vm2, %v16027_v0 }
  0x5e   : > { %6482 = vst.msk [vmem:[#allocation5] sm:$0xff] %vm2013_vm2, %v16027_v0  ;;  %6483 = vst.msk [vmem:[#allocation5 + $0x8] sm:$0xff] %vm2013_vm2, %v16027_v0 }
  0x5f   : > { %6485 = vst.msk [vmem:[#allocation5 + $0x18] sm:$0xff] %vm2013_vm2, %v16027_v0  ;;  %6486 = vst.msk [vmem:[#allocation5 + $0x20] sm:$0xff] %vm2013_vm2, %v16027_v0 }
  0x60   : > { %6488 = vst.msk [vmem:[#allocation5 + $0x30] sm:$0xff] %vm2013_vm2, %v16027_v0  ;;  %6489 = vst.msk [vmem:[#allocation5 + $0x38] sm:$0xff] %vm2013_vm2, %v16027_v0 }
  0x61   : > { %6491 = vst.msk [vmem:[#allocation5 + $0x48] sm:$0xff] %vm2013_vm2, %v16027_v0  ;;  %6492 = vst.msk [vmem:[#allocation5 + $0x50] sm:$0xff] %vm2013_vm2, %v16027_v0 }
  0x62   : > { %6494 = vst.msk [vmem:[#allocation5 + $0x60] sm:$0xff] %vm2013_vm2, %v16027_v0  ;;  %6495 = vst.msk [vmem:[#allocation5 + $0x68] sm:$0xff] %vm2013_vm2, %v16027_v0 }
  0x63   : > { %6497 = vst.msk [vmem:[#allocation5 + $0x78] sm:$0xff] %vm2013_vm2, %v16027_v0  ;;  %6498 = vst.msk [vmem:[#allocation5 + $0x80] sm:$0xff] %vm2013_vm2, %v16027_v0 }
  0x64   : > { %6500 = vst.msk [vmem:[#allocation5 + $0x90] sm:$0xff] %vm2013_vm2, %v16027_v0  ;;  %6501 = vst.msk [vmem:[#allocation5 + $0x98] sm:$0xff] %vm2013_vm2, %v16027_v0 }
  0x65   : > { %6503 = vst.msk [vmem:[#allocation5 + $0xa8] sm:$0xff] %vm2013_vm2, %v16027_v0  ;;  %6504 = vst.msk [vmem:[#allocation5 + $0xb0] sm:$0xff] %vm2013_vm2, %v16027_v0 }
  0x66   : > { %6506 = vst.msk [vmem:[#allocation5 + $0xc0] sm:$0xff] %vm2013_vm2, %v16027_v0  ;;  %6507 = vst.msk [vmem:[#allocation5 + $0xc8] sm:$0xff] %vm2013_vm2, %v16027_v0 }
  0x67   : > { %6509 = vst.msk [vmem:[#allocation5 + $0xd8] sm:$0xff] %vm2013_vm2, %v16027_v0  ;;  %6510 = vst.msk [vmem:[#allocation5 + $0xe0] sm:$0xff] %vm2013_vm2, %v16027_v0 }
  0x68   : > { %6512 = vst.msk [vmem:[#allocation5 + $0xf0] sm:$0xff] %vm2013_vm2, %v16027_v0  ;;  %6513 = vst.msk [vmem:[#allocation5 + $0xf8] sm:$0xff] %vm2013_vm2, %v16027_v0 }
  0x69   : > { %6515 = vst.msk [vmem:[#allocation5 + $0x108] sm:$0xff] %vm2013_vm2, %v16027_v0  ;;  %6516 = vst.msk [vmem:[#allocation5 + $0x110] sm:$0xff] %vm2013_vm2, %v16027_v0 }
  0x6a   : > { %6518 = vst.msk [vmem:[#allocation5 + $0x120] sm:$0xff] %vm2013_vm2, %v16027_v0  ;;  %6519 = vst.msk [vmem:[#allocation5 + $0x128] sm:$0xff] %vm2013_vm2, %v16027_v0 }
  0x6b   : > { %6521 = vst.msk [vmem:[#allocation5 + $0x138] sm:$0xff] %vm2013_vm2, %v16027_v0  ;;  %6522 = vst.msk [vmem:[#allocation5 + $0x140] sm:$0xff] %vm2013_vm2, %v16027_v0 }
  0x6c   : > { %6524 = vst.msk [vmem:[#allocation5 + $0x150] sm:$0xff] %vm2013_vm2, %v16027_v0  ;;  %6525 = vst.msk [vmem:[#allocation5 + $0x158] sm:$0xff] %vm2013_vm2, %v16027_v0 }
  0x6d   : > { %6527 = vst.msk [vmem:[#allocation5 + $0x168] sm:$0xff] %vm2013_vm2, %v16027_v0  ;;  %6528 = vst.msk [vmem:[#allocation5 + $0x170] sm:$0xff] %vm2013_vm2, %v16027_v0 }
  0x6e   : > { %6530 = vst.msk [vmem:[#allocation5 + $0x180] sm:$0xff] %vm2013_vm2, %v16027_v0  ;;  %6531 = vst.msk [vmem:[#allocation5 + $0x188] sm:$0xff] %vm2013_vm2, %v16027_v0 }
  0x6f   : > { %636 = vst.msk [vmem:[#allocation2 + $0x19] sm:$0xff] %vm579_vm0, %v547_v1  ;;  %637 = vst.msk [vmem:[#allocation2 + $0x21] sm:$0xff] %vm579_vm0, %v548_v2  ;;  %v570_v2 = vld [vmem:[%s12463_s18 + $0xb8] sm:$0xff] }
  0x70   : > { %638 = vst.msk [vmem:[#allocation2 + $0x31] sm:$0xff] %vm579_vm0, %v549_v3  ;;  %639 = vst.msk [vmem:[#allocation2 + $0x39] sm:$0xff] %vm579_vm0, %v550_v9  ;;  %v571_v9 = vld [vmem:[%s12463_s18 + $0xc0] sm:$0xff] }
  0x71   : > { %640 = vst.msk [vmem:[#allocation2 + $0x49] sm:$0xff] %vm579_vm0, %v551_v10  ;;  %641 = vst.msk [vmem:[#allocation2 + $0x51] sm:$0xff] %vm579_vm0, %v552_v12  ;;  %v572_v12 = vld [vmem:[%s12463_s18 + $0xc8] sm:$0xff] }
  0x72   : > { %642 = vst.msk [vmem:[#allocation2 + $0x61] sm:$0xff] %vm579_vm0, %v553_v13  ;;  %643 = vst.msk [vmem:[#allocation2 + $0x69] sm:$0xff] %vm579_vm0, %v554_v14 }
  0x73   : > { %644 = vst.msk [vmem:[#allocation2 + $0x79] sm:$0xff] %vm579_vm0, %v555_v15  ;;  %645 = vst.msk [vmem:[#allocation2 + $0x81] sm:$0xff] %vm579_vm0, %v556_v16 }
  0x74   : > { %646 = vst.msk [vmem:[#allocation2 + $0x91] sm:$0xff] %vm579_vm0, %v557_v17  ;;  %647 = vst.msk [vmem:[#allocation2 + $0x99] sm:$0xff] %vm579_vm0, %v558_v18 }
  0x75   : > { %648 = vst.msk [vmem:[#allocation2 + $0xa9] sm:$0xff] %vm579_vm0, %v559_v19  ;;  %649 = vst.msk [vmem:[#allocation2 + $0xb1] sm:$0xff] %vm579_vm0, %v560_v20 }
  0x76   : > { %7182 = vst.msk [vmem:[#allocation6] sm:$0xff] %vm2079_vm3, %v16027_v0  ;;  %7185 = vst.msk [vmem:[#allocation6 + $0x10] sm:$0xff] %vm2079_vm3, %v16027_v0  ;;  %v734_v25 = vld [vmem:[#allocation2 + $0x1a] sm:$0xff]  ;;  %v735_v26 = vld [vmem:[#allocation2 + $0x22] sm:$0xff] }
  0x77   : > { %7187 = vst.msk [vmem:[#allocation6 + $0x20] sm:$0xff] %vm2079_vm3, %v16027_v0  ;;  %7189 = vst.msk [vmem:[#allocation6 + $0x30] sm:$0xff] %vm2079_vm3, %v16027_v0  ;;  %v702_v27 = vld [vmem:[#allocation2 + $0x19] sm:$0xff]  ;;  %v9728_v28 = vpack.i.bf16 %v735_v26, %v734_v25  ;;  %v703_v29 = vld [vmem:[#allocation2 + $0x21] sm:$0xff] }
  0x78   : > { %7191 = vst.msk [vmem:[#allocation6 + $0x40] sm:$0xff] %vm2079_vm3, %v16027_v0  ;;  %7193 = vst.msk [vmem:[#allocation6 + $0x50] sm:$0xff] %vm2079_vm3, %v16027_v0  ;;  %v766_v30 = vld [vmem:[#allocation2 + $0x30] sm:$0xff]  ;;  %v12541_v31 = vld [vmem:[#allocation2 + $0x18] sm:$0xff]  ;;  %v9723_v32 = vpack.i.bf16 %v703_v29, %v702_v27 }
  0x79   : > { %7195 = vst.msk [vmem:[#allocation6 + $0x60] sm:$0xff] %vm2079_vm3, %v16027_v0  ;;  %7197 = vst.msk [vmem:[#allocation6 + $0x70] sm:$0xff] %vm2079_vm3, %v16027_v0  ;;  %v767_v33 = vld [vmem:[#allocation2 + $0x38] sm:$0xff]  ;;  %v12543_v34 = vld [vmem:[#allocation2 + $0x20] sm:$0xff]  ;;  %9729 = vrot.lane.b32.xlu1 %v9728_v28, %s16005_s21  ;;  %s16111_s21 = smov 40  }
  0x7a   : > { %7199 = vst.msk [vmem:[#allocation6 + $0x80] sm:$0xff] %vm2079_vm3, %v16027_v0  ;;  %7201 = vst.msk [vmem:[#allocation6 + $0x90] sm:$0xff] %vm2079_vm3, %v16027_v0  ;;  %v9738_v35 = vpack.i.bf16 %v767_v33, %v766_v30  ;;  %9724 = vrot.lane.b32.xlu0 %v9723_v32, %s16007_s22  ;;  %v9733_v36 = vpack.i.bf16 %v12543_v34, %v12541_v31  ;;  %v798_v37 = vld [vmem:[#allocation2 + $0x31] sm:$0xff]  ;;  %v799_v38 = vld [vmem:[#allocation2 + $0x39] sm:$0xff]  ;;  %s16106_s22 = sld [smem:[#allocation43_spill]] }
  0x7b   : > { %7921 = vst.msk [vmem:[#allocation7] sm:$0xff] %vm2079_vm3, %v16027_v0  ;;  %7923 = vst.msk [vmem:[#allocation7 + $0x10] sm:$0xff] %vm2079_vm3, %v16027_v0  ;;  %v9748_v39 = vpack.i.bf16 %v799_v38, %v798_v37  ;;  %v830_v40 = vld [vmem:[#allocation2 + $0x32] sm:$0xff]  ;;  %v831_v41 = vld [vmem:[#allocation2 + $0x3a] sm:$0xff] }
  0x7c   : > { %7925 = vst.msk [vmem:[#allocation7 + $0x20] sm:$0xff] %vm2079_vm3, %v16027_v0  ;;  %7927 = vst.msk [vmem:[#allocation7 + $0x30] sm:$0xff] %vm2079_vm3, %v16027_v0  ;;  %v9758_v42 = vpack.i.bf16 %v831_v41, %v830_v40  ;;  %v863_v43 = vld [vmem:[#allocation2 + $0x48] sm:$0xff]  ;;  %v864_v44 = vld [vmem:[#allocation2 + $0x50] sm:$0xff] }
  0x7d   : > { %7929 = vst.msk [vmem:[#allocation7 + $0x40] sm:$0xff] %vm2079_vm3, %v16027_v0  ;;  %7931 = vst.msk [vmem:[#allocation7 + $0x50] sm:$0xff] %vm2079_vm3, %v16027_v0  ;;  %9739 = vrot.lane.b32.xlu1 %v9738_v35, %s16003_s23  ;;  %v9768_v45 = vpack.i.bf16 %v864_v44, %v863_v43  ;;  %v895_v46 = vld [vmem:[#allocation2 + $0x49] sm:$0xff]  ;;  %v896_v47 = vld [vmem:[#allocation2 + $0x51] sm:$0xff] }
  0x7e   : > { %7933 = vst.msk [vmem:[#allocation7 + $0x60] sm:$0xff] %vm2079_vm3, %v16027_v0  ;;  %7935 = vst.msk [vmem:[#allocation7 + $0x70] sm:$0xff] %vm2079_vm3, %v16027_v0  ;;  %9734 = vrot.lane.b32.xlu0 %v9733_v36, %s16003_s23  ;;  %v9778_v51 = vpack.i.bf16 %v896_v47, %v895_v46  ;;  %v927_v53 = vld [vmem:[#allocation2 + $0x4a] sm:$0xff]  ;;  %v928_v54 = vld [vmem:[#allocation2 + $0x52] sm:$0xff]  ;;  %s16110_s23 = smov 32  }
  0x7f   : > { %7937 = vst.msk [vmem:[#allocation7 + $0x80] sm:$0xff] %vm2079_vm3, %v16027_v0  ;;  %v9788_v58 = vpack.i.bf16 %v928_v54, %v927_v53  ;;  %v770_v62 = vld [vmem:[#allocation2 + $0x60] sm:$0xff]  ;;  %v771_v63 = vld [vmem:[#allocation2 + $0x68] sm:$0xff]  ;;  %v867_v10 = vld [vmem:[#allocation2 + $0x78] sm:$0xff] }
  0x80   : > { %650 = vst.msk [vmem:[#allocation2 + $0xc1] sm:$0xff] %vm579_vm0, %v561_v21  ;;  %651 = vst.msk [vmem:[#allocation2 + $0xc9] sm:$0xff] %vm579_vm0, %v562_v22  ;;  %v11783_v48 = vld [vmem:[%s16106_s22] sm:$0xff]   ;;  %v11784_v49 = vld [vmem:[%s16106_s22 + $0x8] sm:$0xff]   ;;  %v9818_v5 = vpack.i.bf16 %v771_v63, %v770_v62 }
  0x81   : > { %652 = vst.msk [vmem:[#allocation2 + $0xd9] sm:$0xff] %vm579_vm0, %v563_v23  ;;  %653 = vst.msk [vmem:[#allocation2 + $0xe1] sm:$0xff] %vm579_vm0, %v564_v24  ;;  %9749 = vrot.lane.b32.xlu1 %v9748_v39, %s16010_s29  ;;  %9553 = vmatprep.subr.bf16.mxu0 %v11783_v48  ;;  %v11785_v55 = vld [vmem:[%s16106_s22 + $0x10] sm:$0xff]   ;;  %v11786_v59 = vld [vmem:[%s16106_s22 + $0x18] sm:$0xff]  }
  0x82   : > { %9744 = vrot.lane.b32.xlu0 %v9723_v32, %s16010_s29  ;;  %s16012_s29 = smov 48   ;;  %654 = vst.msk [vmem:[#allocation2 + $0xf1] sm:$0xff] %vm579_vm0, %v565_v50  ;;  %655 = vst.msk [vmem:[#allocation2 + $0xf9] sm:$0xff] %vm579_vm0, %v566_v52  ;;  %9554 = vmatpush3.bf16.msra.mxu0 %v11783_v48  ;;  %v11787_v60 = vld [vmem:[%s16106_s22 + $0x20] ss:$0 sps:$4 sm:$0xff]   ;;  %v802_v3 = vld [vmem:[#allocation2 + $0x61] sm:$0xff] }
  0x83   : > { %9555 = vmatprep.subr.bf16.mxu0 %v11784_v49  ;;  %656 = vst.msk [vmem:[#allocation2 + $0x109] sm:$0xff] %vm579_vm0, %v567_v56  ;;  %657 = vst.msk [vmem:[#allocation2 + $0x111] sm:$0xff] %vm579_vm0, %v568_v57  ;;  %v2347_v1 = vsel %vm2345_vm4, %v11787_v60, 0  ;;  %v803_v4 = vld [vmem:[#allocation2 + $0x69] sm:$0xff]  ;;  %v868_v11 = vld [vmem:[#allocation2 + $0x80] sm:$0xff]  ;;  %s16113_s22 = smov 56  }
  0x84   : > { %658 = vst.msk [vmem:[#allocation2 + $0x121] sm:$0xff] %vm579_vm0, %v569_v61  ;;  %659 = vst.msk [vmem:[#allocation2 + $0x129] sm:$0xff] %vm579_vm0, %v570_v2  ;;  %v834_v6 = vld [vmem:[#allocation2 + $0x62] sm:$0xff]  ;;  %v9828_v7 = vpack.i.bf16 %v803_v4, %v802_v3  ;;  %v835_v8 = vld [vmem:[#allocation2 + $0x6a] sm:$0xff]  ;;  %v9848_v16 = vpack.i.bf16 %v868_v11, %v867_v10 }
  0x85   : > { %9759 = vrot.lane.b32.xlu1 %v9758_v42, %s16014_s30  ;;  %660 = vst.msk [vmem:[#allocation2 + $0x139] sm:$0xff] %vm579_vm0, %v571_v9  ;;  %v9838_v13 = vpack.i.bf16 %v835_v8, %v834_v6  ;;  %661 = vst.msk [vmem:[#allocation2 + $0x141] sm:$0xff] %vm579_vm0, %v572_v12  ;;  %v899_v14 = vld [vmem:[#allocation2 + $0x79] sm:$0xff]  ;;  %v900_v15 = vld [vmem:[#allocation2 + $0x81] sm:$0xff] }
  0x86   : > { %9754 = vrot.lane.b32.xlu0 %v9728_v28, %s16014_s30  ;;  %9556 = vmatpush3.bf16.msra.mxu0 %v11784_v49  ;;  %s16109_s30 = smov 24   ;;  %v9858_v17 = vpack.i.bf16 %v900_v15, %v899_v14  ;;  %v931_v18 = vld [vmem:[#allocation2 + $0x7a] sm:$0xff]  ;;  %v932_v19 = vld [vmem:[#allocation2 + $0x82] sm:$0xff]  ;;  %v573_v21 = vld [vmem:[%s12463_s18 + $0xd0] sm:$0xff]  ;;  %2625 = vst.msk [vmem:[#allocation3 + $0x40] sm:$0x3] %vm2618_vm11, %v16027_v0 }
  0x87   : > { %9557 = vmatprep.subr.bf16.mxu0 %v11785_v55  ;;  %v9868_v20 = vpack.i.bf16 %v932_v19, %v931_v18  ;;  %v574_v22 = vld [vmem:[%s12463_s18 + $0xd8] sm:$0xff]  ;;  %v774_v23 = vld [vmem:[#allocation2 + $0x90] sm:$0xff]  ;;  %662 = vst.msk [vmem:[#allocation2 + $0x151] sm:$0xff] %vm579_vm0, %v573_v21  ;;  %v575_v32 = vld [vmem:[%s12463_s18 + $0xe0] sm:$0xff] }
  0x88   : > { %v775_v24 = vld [vmem:[#allocation2 + $0x98] sm:$0xff]  ;;  %663 = vst.msk [vmem:[#allocation2 + $0x159] sm:$0xff] %vm579_vm0, %v574_v22  ;;  %v871_v33 = vld [vmem:[#allocation2 + $0xa8] sm:$0xff]  ;;  %664 = vst.msk [vmem:[#allocation2 + $0x169] sm:$0xff] %vm579_vm0, %v575_v32 }
  0x89   : > { %9769 = vrot.lane.b32.xlu1 %v9768_v45, %s16012_s29  ;;  %v806_v25 = vld [vmem:[#allocation2 + $0x91] sm:$0xff]  ;;  %v807_v26 = vld [vmem:[#allocation2 + $0x99] sm:$0xff]  ;;  %v9898_v27 = vpack.i.bf16 %v775_v24, %v774_v23  ;;  %v576_v36 = vld [vmem:[%s12463_s18 + $0xe8] sm:$0xff]  ;;  %2619 = vst.msk [vmem:[#allocation3 + $0x10] sm:$0x3] %vm2618_vm11, %v16027_v0 }
  0x8a   : > { %9764 = vrot.lane.b32.xlu0 %v9738_v35, %s16012_s29  ;;  %9558 = vmatpush3.bf16.msra.mxu0 %v11785_v55  ;;  %s16108_s29 = smov 16   ;;  %v838_v28 = vld [vmem:[#allocation2 + $0x92] sm:$0xff]  ;;  %v839_v29 = vld [vmem:[#allocation2 + $0x9a] sm:$0xff]  ;;  %v9908_v30 = vpack.i.bf16 %v807_v26, %v806_v25  ;;  %665 = vst.msk [vmem:[#allocation2 + $0x171] sm:$0xff] %vm579_vm0, %v576_v36  ;;  %v903_v38 = vld [vmem:[#allocation2 + $0xa9] sm:$0xff] }
  0x8b   : > { %9559 = vmatprep.subr.bf16.mxu0 %v11786_v59  ;;  %v872_v35 = vld [vmem:[#allocation2 + $0xb0] sm:$0xff]  ;;  %v9918_v37 = vpack.i.bf16 %v839_v29, %v838_v28  ;;  %v578_v46 = vld [vmem:[%s12463_s18 + $0xf8] sm:$0xff]  ;;  %v778_v47 = vld [vmem:[#allocation2 + $0xc0] sm:$0xff]  ;;  %2622 = vst.msk [vmem:[#allocation3 + $0x28] sm:$0x3] %vm2618_vm11, %v16027_v0 }
  0x8c   : > { %v9928_v40 = vpack.i.bf16 %v872_v35, %v871_v33  ;;  %v936_v43 = vld [vmem:[#allocation2 + $0xb2] sm:$0xff]  ;;  %v779_v48 = vld [vmem:[#allocation2 + $0xc8] sm:$0xff]  ;;  %667 = vst.msk [vmem:[#allocation2 + $0x189] sm:$0xff] %vm579_vm0, %v578_v46  ;;  %v876_v57 = vld [vmem:[#allocation2 + $0xe0] sm:$0xff] }
  0x8d   : > { %9779 = vrot.lane.b32.xlu1 %v9778_v51, %s16016_s19  ;;  %v810_v49 = vld [vmem:[#allocation2 + $0xc1] sm:$0xff]  ;;  %v811_v50 = vld [vmem:[#allocation2 + $0xc9] sm:$0xff]  ;;  %v875_v56 = vld [vmem:[#allocation2 + $0xd8] sm:$0xff]  ;;  %2628 = vst.msk [vmem:[#allocation3 + $0x58] sm:$0x3] %vm2618_vm11, %v16027_v0 }
  0x8e   : > { %9774 = vrot.lane.b32.xlu0 %v9748_v39, %s16016_s19  ;;  %s16107_s19 = smov 8   ;;  %9560 = vmatpush3.bf16.msra.mxu0 %v11786_v59  ;;  %v842_v52 = vld [vmem:[#allocation2 + $0xc2] sm:$0xff]  ;;  %v843_v53 = vld [vmem:[#allocation2 + $0xca] sm:$0xff]  ;;  %v9988_v54 = vpack.i.bf16 %v811_v50, %v810_v49  ;;  %v12647_v59 = vpack.i.bf16 %v876_v57, %v875_v56  ;;  %v907_v61 = vld [vmem:[#allocation2 + $0xd9] sm:$0xff]  ;;  %2631 = vst.msk [vmem:[#allocation3 + $0x70] sm:$0x3] %vm2618_vm11, %v16027_v0 }
  0x8f   : > { %9658 = vmatprep.subr.msk.bf16.mxu0 %vm2345_vm4, %v11787_v60  ;;  %v9998_v55 = vpack.i.bf16 %v843_v53, %v842_v52  ;;  %v908_v62 = vld [vmem:[#allocation2 + $0xe1] sm:$0xff]  ;;  %v782_v12 = vld [vmem:[#allocation2 + $0xf0] sm:$0xff]  ;;  %v815_v23 = vld [vmem:[#allocation2 + $0xf9] sm:$0xff]  ;;  %2634 = vst.msk [vmem:[#allocation3 + $0x88] sm:$0x3] %vm2618_vm11, %v16027_v0 }
  0x90   : > { %v12652_v63 = vpack.i.bf16 %v908_v62, %v907_v61  ;;  %v940_v2 = vld [vmem:[#allocation2 + $0xe2] sm:$0xff]  ;;  %v814_v22 = vld [vmem:[#allocation2 + $0xf1] sm:$0xff]  ;;  %2637 = vst.msk [vmem:[#allocation3 + $0xa0] sm:$0x3] %vm2618_vm11, %v16027_v0  ;;  %2640 = vst.msk [vmem:[#allocation3 + $0xb8] sm:$0x3] %vm2618_vm11, %v16027_v0 }
  0x91   : > { %9789 = vrot.lane.b32.xlu1 %v9788_v58, %s16018_s26  ;;  %v669_v14 = vld [vmem:[#allocation2 + $0x8] sm:$0xff]  ;;  %v668_v15 = vld [vmem:[#allocation2] sm:$0xff]  ;;  %v846_v24 = vld [vmem:[#allocation2 + $0xf2] sm:$0xff]  ;;  %2643 = vst.msk [vmem:[#allocation3 + $0xd0] sm:$0x3] %vm2618_vm11, %v16027_v0 }
  0x92   : > { %9784 = vrot.lane.b32.xlu0 %v9758_v42, %s16018_s26  ;;  %9562 = vmatpush3.bf16.msra.mxu0 %v2347_v1  ;;  %s16112_s26 = smov 48   ;;  %v939_v1 = vld [vmem:[#allocation2 + $0xda] sm:$0xff]  ;;  %v879_v32 = vld [vmem:[#allocation2 + $0x108] sm:$0xff]  ;;  %v880_v33 = vld [vmem:[#allocation2 + $0x110] sm:$0xff]  ;;  %2646 = vst.msk [vmem:[#allocation3 + $0xe8] sm:$0x3] %vm2618_vm11, %v16027_v0 }
  0x93   : > { %2649 = vst.msk [vmem:[#allocation3 + $0x100] sm:$0x3] %vm2618_vm11, %v16027_v0  ;;  %2652 = vst.msk [vmem:[#allocation3 + $0x118] sm:$0x3] %vm2618_vm11, %v16027_v0 }
  0x94   : > { %2655 = vst.msk [vmem:[#allocation3 + $0x130] sm:$0x3] %vm2618_vm11, %v16027_v0  ;;  %2658 = vst.msk [vmem:[#allocation3 + $0x148] sm:$0x3] %vm2618_vm11, %v16027_v0 }
  0x95   : > { %9799 = vrot.lane.b32.xlu1 %v9778_v51, %s16107_s19  ;;  %2661 = vst.msk [vmem:[#allocation3 + $0x160] sm:$0x3] %vm2618_vm11, %v16027_v0  ;;  %2664 = vst.msk [vmem:[#allocation3 + $0x178] sm:$0x3] %vm2618_vm11, %v16027_v0 }
  0x96   : > { %9794 = vrot.lane.b32.xlu0 %v9748_v39, %s16107_s19  ;;  %v904_v39 = vld [vmem:[#allocation2 + $0xb1] sm:$0xff]  ;;  %2667 = vst.msk [vmem:[#allocation3 + $0x190] sm:$0x3] %vm2618_vm11, %v16027_v0  ;;  %2670 = vst.msk [vmem:[#allocation3 + $0x1a8] sm:$0x3] %vm2618_vm11, %v16027_v0 }
  0x97   : > { %v9938_v41 = vpack.i.bf16 %v904_v39, %v903_v38  ;;  %4537 = vst.msk [vmem:[#allocation4 + $0x10] sm:$0x3] %vm2618_vm11, %v16027_v0  ;;  %4540 = vst.msk [vmem:[#allocation4 + $0x28] sm:$0x3] %vm2618_vm11, %v16027_v0 }
  0x98   : > { %4543 = vst.msk [vmem:[#allocation4 + $0x40] sm:$0x3] %vm2618_vm11, %v16027_v0  ;;  %4546 = vst.msk [vmem:[#allocation4 + $0x58] sm:$0x3] %vm2618_vm11, %v16027_v0 }
  0x99   : > { %9809 = vrot.lane.b32.xlu1 %v9788_v58, %s16108_s29  ;;  %4549 = vst.msk [vmem:[#allocation4 + $0x70] sm:$0x3] %vm2618_vm11, %v16027_v0  ;;  %4552 = vst.msk [vmem:[#allocation4 + $0x88] sm:$0x3] %vm2618_vm11, %v16027_v0 }
  0x9a   : > { %9804 = vrot.lane.b32.xlu0 %v9758_v42, %s16108_s29  ;;  %v935_v42 = vld [vmem:[#allocation2 + $0xaa] sm:$0xff]  ;;  %4555 = vst.msk [vmem:[#allocation4 + $0xa0] sm:$0x3] %vm2618_vm11, %v16027_v0  ;;  %4558 = vst.msk [vmem:[#allocation4 + $0xb8] sm:$0x3] %vm2618_vm11, %v16027_v0 }
  0x9b   : > { %v9948_v44 = vpack.i.bf16 %v936_v43, %v935_v42  ;;  %4561 = vst.msk [vmem:[#allocation4 + $0xd0] sm:$0x3] %vm2618_vm11, %v16027_v0  ;;  %4564 = vst.msk [vmem:[#allocation4 + $0xe8] sm:$0x3] %vm2618_vm11, %v16027_v0 }
  0x9c   : > { %4567 = vst.msk [vmem:[#allocation4 + $0x100] sm:$0x3] %vm2618_vm11, %v16027_v0  ;;  %4570 = vst.msk [vmem:[#allocation4 + $0x118] sm:$0x3] %vm2618_vm11, %v16027_v0 }
  0x9d   : > { %9819 = vrot.lane.b32.xlu1 %v9818_v5, %s16109_s30  ;;  %v9715_v60 = vpop.permute.xlu0 %9714  ;;  %4573 = vst.msk [vmem:[#allocation4 + $0x130] sm:$0x3] %vm2618_vm11, %v16027_v0  ;;  %4576 = vst.msk [vmem:[#allocation4 + $0x148] sm:$0x3] %vm2618_vm11, %v16027_v0 }
  0x9e   : > { %9814 = vrot.lane.b32.xlu0 %v9768_v45, %s16109_s30  ;;  %v577_v45 = vld [vmem:[%s12463_s18 + $0xf0] sm:$0xff]  ;;  %v9717_v9 = vunpack.i.h.bf16 %v9715_v60  ;;  %v9716_v10 = vunpack.i.l.bf16 %v9715_v60  ;;  %4579 = vst.msk [vmem:[#allocation4 + $0x160] sm:$0x3] %vm2618_vm11, %v16027_v0  ;;  %4582 = vst.msk [vmem:[#allocation4 + $0x178] sm:$0x3] %vm2618_vm11, %v16027_v0 }
  0x9f   : > { %666 = vst.msk [vmem:[#allocation2 + $0x181] sm:$0xff] %vm579_vm0, %v577_v45 }
  0xa0   : > { %v1982_v25 = vsel %vm579_vm0, %v669_v14, %v9717_v9  ;;  %v1981_v26 = vsel %vm579_vm0, %v668_v15, %v9716_v10  ;;  %4585 = vst.msk [vmem:[#allocation4 + $0x190] sm:$0x3] %vm2618_vm11, %v16027_v0  ;;  %4588 = vst.msk [vmem:[#allocation4 + $0x1a8] sm:$0x3] %vm2618_vm11, %v16027_v0 }
  0xa1   : > { %9829 = vrot.lane.b32.xlu1 %v9828_v7, %s16110_s23  ;;  %6484 = vst.msk [vmem:[#allocation5 + $0x10] sm:$0x3] %vm2618_vm11, %v16027_v0  ;;  %6487 = vst.msk [vmem:[#allocation5 + $0x28] sm:$0x3] %vm2618_vm11, %v16027_v0 }
  0xa2   : > { %9824 = vrot.lane.b32.xlu0 %v9778_v51, %s16110_s23  ;;  %v9978_v51 = vpack.i.bf16 %v779_v48, %v778_v47  ;;  %6490 = vst.msk [vmem:[#allocation5 + $0x40] sm:$0x3] %vm2618_vm11, %v16027_v0  ;;  %6493 = vst.msk [vmem:[#allocation5 + $0x58] sm:$0x3] %vm2618_vm11, %v16027_v0 }
  0xa3   : > { %6496 = vst.msk [vmem:[#allocation5 + $0x70] sm:$0x3] %vm2618_vm11, %v16027_v0  ;;  %6499 = vst.msk [vmem:[#allocation5 + $0x88] sm:$0x3] %vm2618_vm11, %v16027_v0 }
  0xa4   : > { %6502 = vst.msk [vmem:[#allocation5 + $0xa0] sm:$0x3] %vm2618_vm11, %v16027_v0  ;;  %6505 = vst.msk [vmem:[#allocation5 + $0xb8] sm:$0x3] %vm2618_vm11, %v16027_v0 }
  0xa5   : > { %9839 = vrot.lane.b32.xlu1 %v9838_v13, %s16111_s21  ;;  %6508 = vst.msk [vmem:[#allocation5 + $0xd0] sm:$0x3] %vm2618_vm11, %v16027_v0  ;;  %6511 = vst.msk [vmem:[#allocation5 + $0xe8] sm:$0x3] %vm2618_vm11, %v16027_v0 }
  0xa6   : > { %9834 = vrot.lane.b32.xlu0 %v9788_v58, %s16111_s21  ;;  %v12645_v58 = vpop.permute.xlu1 %9719  ;;  %6514 = vst.msk [vmem:[#allocation5 + $0x100] sm:$0x3] %vm2618_vm11, %v16027_v0  ;;  %6517 = vst.msk [vmem:[#allocation5 + $0x118] sm:$0x3] %vm2618_vm11, %v16027_v0 }
  0xa7   : > { %v9722_v18 = vunpack.i.h.bf16 %v12645_v58  ;;  %v9721_v19 = vunpack.i.l.bf16 %v12645_v58  ;;  %6520 = vst.msk [vmem:[#allocation5 + $0x130] sm:$0x3] %vm2618_vm11, %v16027_v0  ;;  %6523 = vst.msk [vmem:[#allocation5 + $0x148] sm:$0x3] %vm2618_vm11, %v16027_v0 }
  0xa8   : > { %6526 = vst.msk [vmem:[#allocation5 + $0x160] sm:$0x3] %vm2618_vm11, %v16027_v0  ;;  %6529 = vst.msk [vmem:[#allocation5 + $0x178] sm:$0x3] %vm2618_vm11, %v16027_v0 }
  0xa9   : > { %9849 = vrot.lane.b32.xlu1 %v9848_v16, %s16112_s26  ;;  %v2014_v42 = vsel %vm2013_vm2, %v1981_v26, %v9721_v19  ;;  %v2015_v43 = vsel %vm2013_vm2, %v1982_v25, %v9722_v18  ;;  %6532 = vst.msk [vmem:[#allocation5 + $0x190] sm:$0x3] %vm2618_vm11, %v16027_v0 }
  0xaa   : > { %9844 = vrot.lane.b32.xlu0 %v9818_v5, %s16112_s26  ;;  %v12657_v5 = vpack.i.bf16 %v940_v2, %v939_v1 }
  0xad   : > { %9859 = vrot.lane.b32.xlu1 %v9858_v17, %s16113_s22 }
  0xae   : > { %9854 = vrot.lane.b32.xlu0 %v9828_v7, %s16113_s22 }
  0xb1   : > { %9869 = vrot.lane.b32.xlu1 %v9868_v20, %s16114_s0 }
  0xb2   : > { %9864 = vrot.lane.b32.xlu0 %v9838_v13, %s16114_s0 }
  0xb5   : > { %9879 = vrot.lane.b32.xlu1 %v9858_v17, %s16107_s19 }
  0xb6   : > { %9874 = vrot.lane.b32.xlu0 %v9828_v7, %s16107_s19 }
  0xb9   : > { %9889 = vrot.lane.b32.xlu1 %v9868_v20, %s16108_s29 }
  0xba   : > { %9884 = vrot.lane.b32.xlu0 %v9838_v13, %s16108_s29  ;;  %v783_v13 = vld [vmem:[#allocation2 + $0xf8] sm:$0xff] }
  0xbb   : > { %v12674_v21 = vpack.i.bf16 %v783_v13, %v782_v12 }
  0xbd   : > { %9899 = vrot.lane.b32.xlu1 %v9898_v27, %s16109_s30 }
  0xbe   : > { %9894 = vrot.lane.b32.xlu0 %v9848_v16, %s16109_s30 }
  0xc1   : > { %9909 = vrot.lane.b32.xlu1 %v9908_v30, %s16110_s23 }
  0xc2   : > { %9904 = vrot.lane.b32.xlu0 %v9858_v17, %s16110_s23 }
  0xc5   : > { %9919 = vrot.lane.b32.xlu1 %v9918_v37, %s16111_s21 }
  0xc6   : > { %9914 = vrot.lane.b32.xlu0 %v9868_v20, %s16111_s21 }
  0xc9   : > { %9929 = vrot.lane.b32.xlu1 %v9928_v40, %s16112_s26 }
  0xca   : > { %9924 = vrot.lane.b32.xlu0 %v9898_v27, %s16112_s26 }
  0xcd   : > { %9939 = vrot.lane.b32.xlu1 %v9938_v41, %s16113_s22 }
  0xce   : > { %9934 = vrot.lane.b32.xlu0 %v9908_v30, %s16113_s22 }
  0xd1   : > { %9949 = vrot.lane.b32.xlu1 %v9948_v44, %s16114_s0 }
  0xd2   : > { %9944 = vrot.lane.b32.xlu0 %v9918_v37, %s16114_s0 }
  0xd5   : > { %9959 = vrot.lane.b32.xlu1 %v9938_v41, %s16107_s19 }
  0xd6   : > { %9954 = vrot.lane.b32.xlu0 %v9908_v30, %s16107_s19  ;;  %v847_v30 = vld [vmem:[#allocation2 + $0xfa] sm:$0xff] }
  0xd9   : > { %9969 = vrot.lane.b32.xlu1 %v9948_v44, %s16108_s29 }
  0xda   : > { %9964 = vrot.lane.b32.xlu0 %v9918_v37, %s16108_s29 }
  0xdd   : > { %9979 = vrot.lane.b32.xlu1 %v9978_v51, %s16109_s30 }
  0xde   : > { %9974 = vrot.lane.b32.xlu0 %v9928_v40, %s16109_s30 }
  0xe1   : > { %9989 = vrot.lane.b32.xlu1 %v9988_v54, %s16110_s23 }
  0xe2   : > { %9984 = vrot.lane.b32.xlu0 %v9938_v41, %s16110_s23  ;;  %v12685_v41 = vpack.i.bf16 %v815_v23, %v814_v22 }
  0xe5   : > { %9999 = vrot.lane.b32.xlu1 %v9998_v55, %s16111_s21 }
  0xe6   : > { %9994 = vrot.lane.b32.xlu0 %v9948_v44, %s16111_s21  ;;  %v12689_v44 = vpack.i.bf16 %v847_v30, %v846_v24 }
  0xe9   : > { %10009 = vrot.lane.b32.xlu1 %v12647_v59, %s16112_s26 }
  0xea   : > { %10004 = vrot.lane.b32.xlu0 %v9978_v51, %s16112_s26 }
  0xeb   : > { %v9730_v3 = vpop.permute.xlu1 %9729 }
  0xec   : > { %v9725_v4 = vpop.permute.xlu0 %9724  ;;  %v9732_v27 = vunpack.i.h.bf16 %v9730_v3  ;;  %v9731_v28 = vunpack.i.l.bf16 %v9730_v3 }
  0xed   : > { %10019 = vrot.lane.b32.xlu1 %v12652_v63, %s16113_s22  ;;  %v9727_v16 = vunpack.i.h.bf16 %v9725_v4  ;;  %v9726_v17 = vunpack.i.l.bf16 %v9725_v4 }
  0xee   : > { %10014 = vrot.lane.b32.xlu0 %v9988_v54, %s16113_s22 }
  0xef   : > { %v9740_v6 = vpop.permute.xlu1 %9739  ;;  %v1983_v35 = vsel %vm579_vm0, %v12541_v31, %v9726_v17  ;;  %v1984_v36 = vsel %vm579_vm0, %v12543_v34, %v9727_v16  ;;  %v12691_v34 = vpack.i.bf16 %v880_v33, %v879_v32 }
  0xf0   : > { %v9735_v7 = vpop.permute.xlu0 %9734  ;;  %v9742_v37 = vunpack.i.h.bf16 %v9740_v6  ;;  %v9741_v38 = vunpack.i.l.bf16 %v9740_v6  ;;  %v2016_v45 = vsel %vm2013_vm2, %v1983_v35, %v9731_v28  ;;  %v2017_v46 = vsel %vm2013_vm2, %v1984_v36, %v9732_v27  ;;  %v911_v35 = vld [vmem:[#allocation2 + $0x109] sm:$0xff]  ;;  %v912_v36 = vld [vmem:[#allocation2 + $0x111] sm:$0xff] }
  0xf1   : > { %10029 = vrot.lane.b32.xlu1 %v12657_v5, %s16114_s0  ;;  %v9737_v39 = vunpack.i.h.bf16 %v9735_v7  ;;  %v9736_v40 = vunpack.i.l.bf16 %v9735_v7 }
  0xf2   : > { %10024 = vrot.lane.b32.xlu0 %v9998_v55, %s16114_s0  ;;  %v2049_v50 = vsel %vm2046_vm5, %v2016_v45, %v9741_v38  ;;  %v2050_v51 = vsel %vm2046_vm5, %v2017_v46, %v9742_v37  ;;  %v944_v45 = vld [vmem:[#allocation2 + $0x112] sm:$0xff] }
  0xf3   : > { %v12663_v8 = vpop.permute.xlu1 %9749 }
  0xf4   : > { %v12665_v11 = vpop.permute.xlu0 %9744  ;;  %v9752_v47 = vunpack.i.h.bf16 %v12663_v8  ;;  %v9751_v48 = vunpack.i.l.bf16 %v12663_v8 }
  0xf5   : > { %10039 = vrot.lane.b32.xlu1 %v12652_v63, %s16107_s19  ;;  %v9747_v52 = vunpack.i.h.bf16 %v12665_v11  ;;  %v9746_v53 = vunpack.i.l.bf16 %v12665_v11 }
  0xf6   : > { %10034 = vrot.lane.b32.xlu0 %v9988_v54, %s16107_s19  ;;  %v2048_v54 = vsel %vm2046_vm5, %v2015_v43, %v9737_v39  ;;  %v2082_v2 = vsel %vm2079_vm3, %v2049_v50, %v9751_v48  ;;  %v2083_v3 = vsel %vm2079_vm3, %v2050_v51, %v9752_v47 }
  0xf7   : > { %v12672_v20 = vpop.permute.xlu1 %9759  ;;  %v2081_v9 = vsel %vm2079_vm3, %v2048_v54, %v9747_v52  ;;  %v786_v52 = vld [vmem:[#allocation2 + $0x120] sm:$0xff] }
  0xf8   : > { %v9755_v29 = vpop.permute.xlu0 %9754  ;;  %v9762_v56 = vunpack.i.h.bf16 %v12672_v20  ;;  %v9761_v57 = vunpack.i.l.bf16 %v12672_v20  ;;  %v818_v54 = vld [vmem:[#allocation2 + $0x121] sm:$0xff] }
  0xf9   : > { %10049 = vrot.lane.b32.xlu1 %v12657_v5, %s16108_s29  ;;  %v9757_v58 = vunpack.i.h.bf16 %v9755_v29  ;;  %v9756_v60 = vunpack.i.l.bf16 %v9755_v29 }
  0xfa   : > { %10044 = vrot.lane.b32.xlu0 %v9998_v55, %s16108_s29  ;;  %v2047_v55 = vsel %vm2046_vm5, %v2014_v42, %v9736_v40  ;;  %v2116_v12 = vsel %vm2112_vm6, %v2083_v3, %v9762_v56  ;;  %v850_v56 = vld [vmem:[#allocation2 + $0x122] sm:$0xff] }
  0xfb   : > { %v9770_v31 = vpop.permute.xlu1 %9769  ;;  %v2080_v8 = vsel %vm2079_vm3, %v2047_v55, %v9746_v53  ;;  %v2114_v16 = vsel %vm2112_vm6, %v2081_v9, %v9757_v58  ;;  %v787_v53 = vld [vmem:[#allocation2 + $0x128] sm:$0xff]  ;;  %v672_v9 = vld [vmem:[#allocation2 + $0x30] sm:$0xff] }
  0xfc   : > { %v9765_v49 = vpop.permute.xlu0 %9764  ;;  %v9772_v61 = vunpack.i.h.bf16 %v9770_v31  ;;  %v9771_v62 = vunpack.i.l.bf16 %v9770_v31  ;;  %v2113_v15 = vsel %vm2112_vm6, %v2080_v8, %v9756_v60  ;;  %v12739_v31 = vpack.i.bf16 %v912_v36, %v911_v35  ;;  %v819_v55 = vld [vmem:[#allocation2 + $0x129] sm:$0xff] }
  0xfd   : > { %10059 = vrot.lane.b32.xlu1 %v12674_v21, %s16109_s30  ;;  %v9767_v4 = vunpack.i.h.bf16 %v9765_v49  ;;  %v9766_v6 = vunpack.i.l.bf16 %v9765_v49  ;;  %v851_v60 = vld [vmem:[#allocation2 + $0x12a] sm:$0xff] }
  0xfe   : > { %10054 = vrot.lane.b32.xlu0 %v12647_v59, %s16109_s30  ;;  %v2115_v59 = vsel %vm2112_vm6, %v2082_v2, %v9761_v57  ;;  %v2149_v18 = vsel %vm2145_vm7, %v2116_v12, %v9772_v61  ;;  %v883_v61 = vld [vmem:[#allocation2 + $0x138] sm:$0xff]  ;;  %v675_v2 = vld [vmem:[#allocation2 + $0x50] sm:$0xff] }
  0xff   : > { %v9780_v1 = vpop.permute.xlu1 %9779  ;;  %v2148_v17 = vsel %vm2145_vm7, %v2115_v59, %v9771_v62  ;;  %v2146_v24 = vsel %vm2145_vm7, %v2113_v15, %v9766_v6  ;;  %v2147_v25 = vsel %vm2145_vm7, %v2114_v16, %v9767_v4  ;;  %v884_v62 = vld [vmem:[#allocation2 + $0x140] sm:$0xff]  ;;  %v12769_v16 = vpack.i.bf16 %v851_v60, %v850_v56 }
 0x100   : > { %v9775_v7 = vpop.permute.xlu0 %9774  ;;  %v9782_v10 = vunpack.i.h.bf16 %v9780_v1  ;;  %v9781_v11 = vunpack.i.l.bf16 %v9780_v1  ;;  %v674_v1 = vld [vmem:[#allocation2 + $0x48] sm:$0xff] }
 0x101   : > { %10069 = vrot.lane.b32.xlu1 %v12685_v41, %s16110_s23  ;;  %v9777_v13 = vunpack.i.h.bf16 %v9775_v7  ;;  %v9776_v14 = vunpack.i.l.bf16 %v9775_v7 }
 0x102   : > { %10064 = vrot.lane.b32.xlu0 %v12652_v63, %s16110_s23  ;;  %v2181_v26 = vsel %vm2178_vm8, %v2148_v17, %v9781_v11  ;;  %v2182_v63 = vsel %vm2178_vm8, %v2149_v18, %v9782_v10  ;;  %v673_v10 = vld [vmem:[#allocation2 + $0x38] sm:$0xff]  ;;  %v12771_v17 = vpack.i.bf16 %v884_v62, %v883_v61 }
 0x103   : > { %v9790_v19 = vpop.permute.xlu1 %9789  ;;  %v2179_v32 = vsel %vm2178_vm8, %v2146_v24, %v9776_v14  ;;  %v2180_v33 = vsel %vm2178_vm8, %v2147_v25, %v9777_v13  ;;  %v12763_v13 = vpack.i.bf16 %v787_v53, %v786_v52  ;;  %v12765_v14 = vpack.i.bf16 %v819_v55, %v818_v54 }
 0x104   : > { %v9792_v20 = vunpack.i.h.bf16 %v9790_v19  ;;  %v9791_v22 = vunpack.i.l.bf16 %v9790_v19  ;;  %v9785_v23 = vpop.permute.xlu0 %9784 }
 0x105   : > { %v9787_v27 = vunpack.i.h.bf16 %v9785_v23  ;;  %v9786_v28 = vunpack.i.l.bf16 %v9785_v23  ;;  %10079 = vrot.lane.b32.xlu1 %v12689_v44, %s16111_s21 }
 0x106   : > { %v2214_v29 = vsel %vm2211_vm9, %v2181_v26, %v9791_v22  ;;  %v2215_v30 = vsel %vm2211_vm9, %v2182_v63, %v9792_v20  ;;  %10074 = vrot.lane.b32.xlu0 %v12657_v5, %s16111_s21  ;;  %v943_v5 = vld [vmem:[#allocation2 + $0x10a] sm:$0xff] }
 0x107   : > { %v9800_v37 = vpop.permute.xlu1 %9799  ;;  %v2212_v38 = vsel %vm2211_vm9, %v2179_v32, %v9786_v28  ;;  %v2213_v39 = vsel %vm2211_vm9, %v2180_v33, %v9787_v27  ;;  %v2245_v40 = vpack.c.bf16 %v2215_v30, %v2214_v29  ;;  %v12747_v48 = vpack.i.bf16 %v944_v45, %v943_v5 }
 0x108   : > { %v9795_v42 = vpop.permute.xlu0 %9794  ;;  %v2244_v43 = vpack.c.bf16 %v2213_v39, %v2212_v38  ;;  %v9802_v57 = vunpack.i.h.bf16 %v9800_v37  ;;  %v9801_v58 = vunpack.i.l.bf16 %v9800_v37 }
 0x109   : > { %10089 = vrot.lane.b32.xlu1 %v12691_v34, %s16112_s26  ;;  %v9797_v3 = vunpack.i.h.bf16 %v9795_v42  ;;  %v9796_v4 = vunpack.i.l.bf16 %v9795_v42 }
 0x10a   : > { %10084 = vrot.lane.b32.xlu0 %v12674_v21, %s16112_s26  ;;  %9563 = vmatprep.mubr.msk.bf16.mxu0 %vm2296_vm10, %v2244_v43  ;;  %v1988_v18 = vsel %vm579_vm0, %v675_v2, %v9802_v57  ;;  %v1987_v19 = vsel %vm579_vm0, %v674_v1, %v9801_v58 }
 0x10b   : > { %9564 = vmatmul.mubr.msk.bf16.vlgmr.msra.gmra.mrb[0].mxu0 %vm2296_vm10, %v2245_v40  ;;  %v9810_v46 = vpop.permute.xlu1 %9809  ;;  %v1986_v23 = vsel %vm579_vm0, %v673_v10, %v9797_v3  ;;  %v1985_v24 = vsel %vm579_vm0, %v672_v9, %v9796_v4 }
 0x10c   : > { %v9805_v47 = vpop.permute.xlu0 %9804  ;;  %v9812_v6 = vunpack.i.h.bf16 %v9810_v46  ;;  %v9811_v7 = vunpack.i.l.bf16 %v9810_v46 }
 0x10d   : > { %10099 = vrot.lane.b32.xlu1 %v12739_v31, %s16113_s22  ;;  %v9807_v11 = vunpack.i.h.bf16 %v9805_v47  ;;  %v9806_v59 = vunpack.i.l.bf16 %v9805_v47 }
 0x10e   : > { %10094 = vrot.lane.b32.xlu0 %v12685_v41, %s16113_s22  ;;  %v2020_v25 = vsel %vm2013_vm2, %v1987_v19, %v9811_v7  ;;  %v2021_v26 = vsel %vm2013_vm2, %v1988_v18, %v9812_v6  ;;  %v915_v18 = vld [vmem:[#allocation2 + $0x139] sm:$0xff]  ;;  %v916_v19 = vld [vmem:[#allocation2 + $0x141] sm:$0xff] }
 0x10f   : > { %v9820_v49 = vpop.permute.xlu1 %9819  ;;  %v2018_v27 = vsel %vm2013_vm2, %v1985_v24, %v9806_v59  ;;  %v2019_v28 = vsel %vm2013_vm2, %v1986_v23, %v9807_v11 }
 0x110   : > { %v9815_v50 = vpop.permute.xlu0 %9814  ;;  %v9821_v15 = vunpack.i.l.bf16 %v9820_v49 }
 0x111   : > { %10109 = vrot.lane.b32.xlu1 %v12747_v48, %s16114_s0  ;;  %v9817_v20 = vunpack.i.h.bf16 %v9815_v50  ;;  %v9816_v22 = vunpack.i.l.bf16 %v9815_v50 }
 0x112   : > { %10104 = vrot.lane.b32.xlu0 %v12689_v44, %s16114_s0 }
 0x113   : > { %v12755_v21 = vpop.permute.xlu1 %9829  ;;  %v2051_v37 = vsel %vm2046_vm5, %v2018_v27, %v9816_v22  ;;  %v2052_v38 = vsel %vm2046_vm5, %v2019_v28, %v9817_v20  ;;  %v948_v27 = vld [vmem:[#allocation2 + $0x142] sm:$0xff] }
 0x114   : > { %v12757_v51 = vpop.permute.xlu0 %9824  ;;  %v9832_v29 = vunpack.i.h.bf16 %v12755_v21  ;;  %v9831_v30 = vunpack.i.l.bf16 %v12755_v21 }
 0x115   : > { %10119 = vrot.lane.b32.xlu1 %v12739_v31, %s16107_s19  ;;  %v9827_v35 = vunpack.i.h.bf16 %v12757_v51  ;;  %v9826_v36 = vunpack.i.l.bf16 %v12757_v51 }
 0x116   : > { %10114 = vrot.lane.b32.xlu0 %v12685_v41, %s16107_s19  ;;  %v9822_v41 = vunpack.i.h.bf16 %v9820_v49 }
 0x117   : > { %v9840_v8 = vpop.permute.xlu1 %9839  ;;  %v2084_v52 = vsel %vm2079_vm3, %v2051_v37, %v9826_v36  ;;  %v2085_v53 = vsel %vm2079_vm3, %v2052_v38, %v9827_v35  ;;  %v790_v35 = vld [vmem:[#allocation2 + $0x150] sm:$0xff]  ;;  %v791_v36 = vld [vmem:[#allocation2 + $0x158] sm:$0xff] }
 0x118   : > { %v9835_v12 = vpop.permute.xlu0 %9834  ;;  %v2054_v33 = vsel %vm2046_vm5, %v2021_v26, %v9822_v41  ;;  %v9842_v39 = vunpack.i.h.bf16 %v9840_v8  ;;  %v9841_v40 = vunpack.i.l.bf16 %v9840_v8  ;;  %v822_v37 = vld [vmem:[#allocation2 + $0x151] sm:$0xff]  ;;  %v823_v38 = vld [vmem:[#allocation2 + $0x159] sm:$0xff] }
 0x119   : > { %10129 = vrot.lane.b32.xlu1 %v12747_v48, %s16108_s29  ;;  %v9837_v42 = vunpack.i.h.bf16 %v9835_v12  ;;  %v9836_v43 = vunpack.i.l.bf16 %v9835_v12  ;;  %v2087_v49 = vsel %vm2079_vm3, %v2054_v33, %v9832_v29 }
 0x11a   : > { %10124 = vrot.lane.b32.xlu0 %v12689_v44, %s16108_s29  ;;  %v2053_v44 = vsel %vm2046_vm5, %v2020_v25, %v9821_v15  ;;  %v2120_v56 = vsel %vm2112_vm6, %v2087_v49, %v9842_v39  ;;  %v854_v39 = vld [vmem:[#allocation2 + $0x152] sm:$0xff] }
 0x11b   : > { %v9850_v63 = vpop.permute.xlu1 %9849  ;;  %v2086_v47 = vsel %vm2079_vm3, %v2053_v44, %v9831_v30  ;;  %v2117_v60 = vsel %vm2112_vm6, %v2084_v52, %v9836_v43  ;;  %v2118_v61 = vsel %vm2112_vm6, %v2085_v53, %v9837_v42  ;;  %v855_v43 = vld [vmem:[#allocation2 + $0x15a] sm:$0xff] }
 0x11c   : > { %v9845_v32 = vpop.permute.xlu0 %9844  ;;  %v9852_v5 = vunpack.i.h.bf16 %v9850_v63  ;;  %v9851_v45 = vunpack.i.l.bf16 %v9850_v63  ;;  %v12825_v63 = vpack.i.bf16 %v916_v19, %v915_v18  ;;  %v676_v53 = vld [vmem:[#allocation2 + $0x60] sm:$0xff] }
 0x11d   : > { %10139 = vrot.lane.b32.xlu1 %v12763_v13, %s16109_s30  ;;  %v9847_v50 = vunpack.i.h.bf16 %v9845_v32  ;;  %v9846_v21 = vunpack.i.l.bf16 %v9845_v32 }
 0x11e   : > { %10134 = vrot.lane.b32.xlu0 %v12691_v34, %s16109_s30  ;;  %v2119_v34 = vsel %vm2112_vm6, %v2086_v47, %v9841_v40  ;;  %v2153_v1 = vsel %vm2145_vm7, %v2120_v56, %v9852_v5  ;;  %v887_v5 = vld [vmem:[#allocation2 + $0x168] sm:$0xff]  ;;  %v679_v47 = vld [vmem:[#allocation2 + $0x80] sm:$0xff] }
 0x11f   : > { %v9860_v46 = vpop.permute.xlu1 %9859  ;;  %v2152_v62 = vsel %vm2145_vm7, %v2119_v34, %v9851_v45  ;;  %v2150_v3 = vsel %vm2145_vm7, %v2117_v60, %v9846_v21  ;;  %v2151_v4 = vsel %vm2145_vm7, %v2118_v61, %v9847_v50  ;;  %v888_v45 = vld [vmem:[#allocation2 + $0x170] sm:$0xff]  ;;  %v12855_v61 = vpack.i.bf16 %v855_v43, %v854_v39 }
 0x120   : > { %v9855_v51 = vpop.permute.xlu0 %9854  ;;  %v9862_v54 = vunpack.i.h.bf16 %v9860_v46  ;;  %v9861_v55 = vunpack.i.l.bf16 %v9860_v46  ;;  %v678_v46 = vld [vmem:[#allocation2 + $0x78] sm:$0xff] }
 0x121   : > { %10149 = vrot.lane.b32.xlu1 %v12765_v14, %s16110_s23  ;;  %v9857_v57 = vunpack.i.h.bf16 %v9855_v51  ;;  %v9856_v58 = vunpack.i.l.bf16 %v9855_v51 }
 0x122   : > { %10144 = vrot.lane.b32.xlu0 %v12739_v31, %s16110_s23  ;;  %v2185_v9 = vsel %vm2178_vm8, %v2152_v62, %v9861_v55  ;;  %v2186_v31 = vsel %vm2178_vm8, %v2153_v1, %v9862_v54  ;;  %v677_v54 = vld [vmem:[#allocation2 + $0x68] sm:$0xff]  ;;  %v12857_v62 = vpack.i.bf16 %v888_v45, %v887_v5 }
 0x123   : > { %v9870_v2 = vpop.permute.xlu1 %9869  ;;  %v2183_v59 = vsel %vm2178_vm8, %v2150_v3, %v9856_v58  ;;  %v2184_v12 = vsel %vm2178_vm8, %v2151_v4, %v9857_v57  ;;  %v12849_v57 = vpack.i.bf16 %v791_v36, %v790_v35  ;;  %v12851_v58 = vpack.i.bf16 %v823_v38, %v822_v37 }
 0x124   : > { %v9872_v6 = vunpack.i.h.bf16 %v9870_v2  ;;  %v9871_v7 = vunpack.i.l.bf16 %v9870_v2  ;;  %v9865_v8 = vpop.permute.xlu0 %9864 }
 0x125   : > { %v9867_v10 = vunpack.i.h.bf16 %v9865_v8  ;;  %v9866_v11 = vunpack.i.l.bf16 %v9865_v8  ;;  %10159 = vrot.lane.b32.xlu1 %v12769_v16, %s16111_s21 }
 0x126   : > { %v2218_v41 = vsel %vm2211_vm9, %v2185_v9, %v9871_v7  ;;  %v2219_v15 = vsel %vm2211_vm9, %v2186_v31, %v9872_v6  ;;  %10154 = vrot.lane.b32.xlu0 %v12747_v48, %s16111_s21  ;;  %v947_v48 = vld [vmem:[#allocation2 + $0x13a] sm:$0xff] }
 0x127   : > { %v2216_v20 = vsel %vm2211_vm9, %v2183_v59, %v9866_v11  ;;  %v2217_v22 = vsel %vm2211_vm9, %v2184_v12, %v9867_v10  ;;  %v9880_v23 = vpop.permute.xlu1 %9879  ;;  %v2247_v24 = vpack.c.bf16 %v2219_v15, %v2218_v41  ;;  %v12833_v30 = vpack.i.bf16 %v948_v27, %v947_v48 }
 0x128   : > { %v9875_v25 = vpop.permute.xlu0 %9874  ;;  %v2246_v26 = vpack.c.bf16 %v2217_v22, %v2216_v20  ;;  %v9882_v40 = vunpack.i.h.bf16 %v9880_v23  ;;  %v9881_v42 = vunpack.i.l.bf16 %v9880_v23 }
 0x129   : > { %10169 = vrot.lane.b32.xlu1 %v12771_v17, %s16112_s26  ;;  %v9877_v49 = vunpack.i.h.bf16 %v9875_v25  ;;  %v9876_v50 = vunpack.i.l.bf16 %v9875_v25 }
 0x12a   : > { %10164 = vrot.lane.b32.xlu0 %v12763_v13, %s16112_s26  ;;  %9567 = vmatprep.mubr.msk.bf16.mxu0 %vm2296_vm10, %v2246_v26  ;;  %v1992_v1 = vsel %vm579_vm0, %v679_v47, %v9882_v40  ;;  %v1991_v2 = vsel %vm579_vm0, %v678_v46, %v9881_v42 }
 0x12b   : > { %9568 = vmatmul.mubr.msk.bf16.gmra.mrb[4].mxu0 %vm2296_vm10, %v2247_v24  ;;  %v9890_v28 = vpop.permute.xlu1 %9889  ;;  %v1990_v6 = vsel %vm579_vm0, %v677_v54, %v9877_v49  ;;  %v1989_v7 = vsel %vm579_vm0, %v676_v53, %v9876_v50 }
 0x12c   : > { %v9885_v29 = vpop.permute.xlu0 %9884  ;;  %v9892_v21 = vunpack.i.h.bf16 %v9890_v28  ;;  %v9891_v51 = vunpack.i.l.bf16 %v9890_v28 }
 0x12d   : > { %10179 = vrot.lane.b32.xlu1 %v12825_v63, %s16113_s22  ;;  %v9887_v55 = vunpack.i.h.bf16 %v9885_v29  ;;  %v9886_v34 = vunpack.i.l.bf16 %v9885_v29 }
 0x12e   : > { %10174 = vrot.lane.b32.xlu0 %v12765_v14, %s16113_s22  ;;  %v2024_v8 = vsel %vm2013_vm2, %v1991_v2, %v9891_v51  ;;  %v2025_v9 = vsel %vm2013_vm2, %v1992_v1, %v9892_v21  ;;  %v919_v1 = vld [vmem:[#allocation2 + $0x169] sm:$0xff]  ;;  %v920_v2 = vld [vmem:[#allocation2 + $0x171] sm:$0xff] }
 0x12f   : > { %v9900_v32 = vpop.permute.xlu1 %9899  ;;  %v2022_v10 = vsel %vm2013_vm2, %v1989_v7, %v9886_v34  ;;  %v2023_v11 = vsel %vm2013_vm2, %v1990_v6, %v9887_v55 }
 0x130   : > { %v9895_v44 = vpop.permute.xlu0 %9894  ;;  %v9901_v60 = vunpack.i.l.bf16 %v9900_v32 }
 0x131   : > { %10189 = vrot.lane.b32.xlu1 %v12833_v30, %s16114_s0  ;;  %v9897_v3 = vunpack.i.h.bf16 %v9895_v44  ;;  %v9896_v4 = vunpack.i.l.bf16 %v9895_v44 }
 0x132   : > { %10184 = vrot.lane.b32.xlu0 %v12769_v16, %s16114_s0 }
 0x133   : > { %v12841_v13 = vpop.permute.xlu1 %9909  ;;  %v2055_v20 = vsel %vm2046_vm5, %v2022_v10, %v9896_v4  ;;  %v2056_v22 = vsel %vm2046_vm5, %v2023_v11, %v9897_v3  ;;  %v952_v10 = vld [vmem:[#allocation2 + $0x172] sm:$0xff] }
 0x134   : > { %v12843_v33 = vpop.permute.xlu0 %9904  ;;  %v9912_v59 = vunpack.i.h.bf16 %v12841_v13  ;;  %v9911_v12 = vunpack.i.l.bf16 %v12841_v13 }
 0x135   : > { %10199 = vrot.lane.b32.xlu1 %v12825_v63, %s16107_s19  ;;  %v9907_v18 = vunpack.i.h.bf16 %v12843_v33  ;;  %v9906_v19 = vunpack.i.l.bf16 %v12843_v33 }
 0x136   : > { %10194 = vrot.lane.b32.xlu0 %v12765_v14, %s16107_s19  ;;  %v9902_v14 = vunpack.i.h.bf16 %v9900_v32 }
 0x137   : > { %v9920_v52 = vpop.permute.xlu1 %9919  ;;  %v2088_v35 = vsel %vm2079_vm3, %v2055_v20, %v9906_v19  ;;  %v2089_v36 = vsel %vm2079_vm3, %v2056_v22, %v9907_v18  ;;  %v795_v18 = vld [vmem:[#allocation2 + $0x188] sm:$0xff] }
 0x138   : > { %v9915_v56 = vpop.permute.xlu0 %9914  ;;  %v2058_v15 = vsel %vm2046_vm5, %v2025_v9, %v9902_v14  ;;  %v9922_v23 = vunpack.i.h.bf16 %v9920_v52  ;;  %v9921_v24 = vunpack.i.l.bf16 %v9920_v52  ;;  %v826_v20 = vld [vmem:[#allocation2 + $0x181] sm:$0xff] }
 0x139   : > { %10209 = vrot.lane.b32.xlu1 %v12833_v30, %s16108_s29  ;;  %v9917_v25 = vunpack.i.h.bf16 %v9915_v56  ;;  %v9916_v26 = vunpack.i.l.bf16 %v9915_v56  ;;  %v2091_v32 = vsel %vm2079_vm3, %v2058_v15, %v9912_v59  ;;  %v794_v15 = vld [vmem:[#allocation2 + $0x180] sm:$0xff] }
 0x13a   : > { %10204 = vrot.lane.b32.xlu0 %v12769_v16, %s16108_s29  ;;  %v2057_v16 = vsel %vm2046_vm5, %v2024_v8, %v9901_v60  ;;  %v2124_v39 = vsel %vm2112_vm6, %v2091_v32, %v9922_v23  ;;  %v827_v23 = vld [vmem:[#allocation2 + $0x189] sm:$0xff] }
 0x13b   : > { %v9930_v31 = vpop.permute.xlu1 %9929  ;;  %v2090_v29 = vsel %vm2079_vm3, %v2057_v16, %v9911_v12  ;;  %v2121_v43 = vsel %vm2112_vm6, %v2088_v35, %v9916_v26  ;;  %v2122_v5 = vsel %vm2112_vm6, %v2089_v36, %v9917_v25  ;;  %v859_v25 = vld [vmem:[#allocation2 + $0x18a] sm:$0xff] }
 0x13c   : > { %v9925_v41 = vpop.permute.xlu0 %9924  ;;  %v9932_v48 = vunpack.i.h.bf16 %v9930_v31  ;;  %v9931_v27 = vunpack.i.l.bf16 %v9930_v31  ;;  %v12911_v31 = vpack.i.bf16 %v920_v2, %v919_v1  ;;  %v683_v26 = vld [vmem:[#allocation2 + $0xb0] sm:$0xff]  ;;  %v682_v32 = vld [vmem:[#allocation2 + $0xa8] sm:$0xff] }
 0x13d   : > { %10219 = vrot.lane.b32.xlu1 %v12849_v57, %s16109_s30  ;;  %v9927_v44 = vunpack.i.h.bf16 %v9925_v41  ;;  %v9926_v13 = vunpack.i.l.bf16 %v9925_v41 }
 0x13e   : > { %10214 = vrot.lane.b32.xlu0 %v12771_v17, %s16109_s30  ;;  %v2123_v17 = vsel %vm2112_vm6, %v2090_v29, %v9921_v24  ;;  %v2157_v46 = vsel %vm2145_vm7, %v2124_v39, %v9932_v48  ;;  %v858_v24 = vld [vmem:[#allocation2 + $0x182] sm:$0xff] }
 0x13f   : > { %v9940_v28 = vpop.permute.xlu1 %9939  ;;  %v2156_v45 = vsel %vm2145_vm7, %v2123_v17, %v9931_v27  ;;  %v2154_v49 = vsel %vm2145_vm7, %v2121_v43, %v9926_v13  ;;  %v2155_v50 = vsel %vm2145_vm7, %v2122_v5, %v9927_v44  ;;  %v12935_v27 = vpack.i.bf16 %v795_v18, %v794_v15  ;;  %v12939_v29 = vld [vmem:[#allocation2 + $0x1a0] sm:$0xff] }
 0x140   : > { %v9935_v33 = vpop.permute.xlu0 %9934  ;;  %v9942_v37 = vunpack.i.h.bf16 %v9940_v28  ;;  %v9941_v38 = vunpack.i.l.bf16 %v9940_v28  ;;  %v12937_v28 = vld [vmem:[#allocation2 + $0x198] sm:$0xff] }
 0x141   : > { %10229 = vrot.lane.b32.xlu1 %v12851_v58, %s16110_s23  ;;  %v9937_v40 = vunpack.i.h.bf16 %v9935_v33  ;;  %v9936_v42 = vunpack.i.l.bf16 %v9935_v33 }
 0x142   : > { %10224 = vrot.lane.b32.xlu0 %v12825_v63, %s16110_s23  ;;  %v2189_v53 = vsel %vm2178_vm8, %v2156_v45, %v9941_v38  ;;  %v2190_v63 = vsel %vm2178_vm8, %v2157_v46, %v9942_v37  ;;  %v680_v37 = vld [vmem:[#allocation2 + $0x90] sm:$0xff]  ;;  %v681_v38 = vld [vmem:[#allocation2 + $0x98] sm:$0xff]  ;;  %v10328_v46 = vpack.i.bf16 %v12939_v29, %v12937_v28 }
 0x143   : > { %v9950_v47 = vpop.permute.xlu1 %9949  ;;  %v2187_v34 = vsel %vm2178_vm8, %v2154_v49, %v9936_v42  ;;  %v2188_v56 = vsel %vm2178_vm8, %v2155_v50, %v9937_v40  ;;  %v12941_v42 = vpack.i.bf16 %v827_v23, %v826_v20  ;;  %v2768_v28 = vld [vmem:[#allocation3 + $0x2] sm:$0xff]  ;;  %v2769_v29 = vld [vmem:[#allocation3 + $0xa] sm:$0xff] }
 0x144   : > { %v9952_v21 = vunpack.i.h.bf16 %v9950_v47  ;;  %v9951_v51 = vunpack.i.l.bf16 %v9950_v47  ;;  %v9945_v52 = vpop.permute.xlu0 %9944 }
 0x145   : > { %v9947_v54 = vunpack.i.h.bf16 %v9945_v52  ;;  %v9946_v55 = vunpack.i.l.bf16 %v9945_v52  ;;  %10239 = vrot.lane.b32.xlu1 %v12855_v61, %s16111_s21 }
 0x146   : > { %v2222_v14 = vsel %vm2211_vm9, %v2189_v53, %v9951_v51  ;;  %v2223_v60 = vsel %vm2211_vm9, %v2190_v63, %v9952_v21  ;;  %10234 = vrot.lane.b32.xlu0 %v12833_v30, %s16111_s21  ;;  %v951_v30 = vld [vmem:[#allocation2 + $0x16a] sm:$0xff] }
 0x147   : > { %v2220_v3 = vsel %vm2211_vm9, %v2187_v34, %v9946_v55  ;;  %v2221_v4 = vsel %vm2211_vm9, %v2188_v56, %v9947_v54  ;;  %v9960_v6 = vpop.permute.xlu1 %9959  ;;  %v2249_v7 = vpack.c.bf16 %v2223_v60, %v2222_v14  ;;  %v12919_v12 = vpack.i.bf16 %v952_v10, %v951_v30 }
 0x148   : > { %v9955_v8 = vpop.permute.xlu0 %9954  ;;  %v2248_v9 = vpack.c.bf16 %v2221_v4, %v2220_v3  ;;  %v9962_v22 = vunpack.i.h.bf16 %v9960_v6  ;;  %v9961_v48 = vunpack.i.l.bf16 %v9960_v6 }
 0x149   : > { %10249 = vrot.lane.b32.xlu1 %v12857_v62, %s16112_s26  ;;  %v9957_v44 = vunpack.i.h.bf16 %v9955_v8  ;;  %v9956_v13 = vunpack.i.l.bf16 %v9955_v8 }
 0x14a   : > { %10244 = vrot.lane.b32.xlu0 %v12849_v57, %s16112_s26  ;;  %9571 = vmatprep.mubr.msk.bf16.mxu0 %vm2296_vm10, %v2248_v9  ;;  %v1996_v43 = vsel %vm579_vm0, %v683_v26, %v9962_v22  ;;  %v1995_v47 = vsel %vm579_vm0, %v682_v32, %v9961_v48 }
 0x14b   : > { %9572 = vmatmul.mubr.msk.bf16.gmra.mrb[8].mxu0 %vm2296_vm10, %v2249_v7  ;;  %v9970_v11 = vpop.permute.xlu1 %9969  ;;  %v1994_v51 = vsel %vm579_vm0, %v681_v38, %v9957_v44  ;;  %v1993_v52 = vsel %vm579_vm0, %v680_v37, %v9956_v13 }
 0x14c   : > { %v9965_v59 = vpop.permute.xlu0 %9964  ;;  %v9972_v33 = vunpack.i.h.bf16 %v9970_v11  ;;  %v9971_v35 = vunpack.i.l.bf16 %v9970_v11 }
 0x14d   : > { %10259 = vrot.lane.b32.xlu1 %v12911_v31, %s16113_s22  ;;  %v9967_v17 = vunpack.i.h.bf16 %v9965_v59  ;;  %v9966_v39 = vunpack.i.l.bf16 %v9965_v59 }
 0x14e   : > { %10254 = vrot.lane.b32.xlu0 %v12851_v58, %s16113_s22  ;;  %v2028_v53 = vsel %vm2013_vm2, %v1995_v47, %v9971_v35  ;;  %v2029_v63 = vsel %vm2013_vm2, %v1996_v43, %v9972_v33 }
 0x14f   : > { %v9980_v41 = vpop.permute.xlu1 %9979  ;;  %v2026_v55 = vsel %vm2013_vm2, %v1993_v52, %v9966_v39  ;;  %v2027_v34 = vsel %vm2013_vm2, %v1994_v51, %v9967_v17 }
 0x150   : > { %v9975_v16 = vpop.permute.xlu0 %9974  ;;  %v9982_v5 = vunpack.i.h.bf16 %v9980_v41  ;;  %v9981_v45 = vunpack.i.l.bf16 %v9980_v41 }
 0x151   : > { %10269 = vrot.lane.b32.xlu1 %v12919_v12, %s16114_s0  ;;  %v9977_v49 = vunpack.i.h.bf16 %v9975_v16  ;;  %v9976_v50 = vunpack.i.l.bf16 %v9975_v16 }
 0x152   : > { %10264 = vrot.lane.b32.xlu0 %v12855_v61, %s16114_s0  ;;  %v2062_v1 = vsel %vm2046_vm5, %v2029_v63, %v9982_v5 }
 0x153   : > { %v12927_v57 = vpop.permute.xlu1 %9989  ;;  %v2059_v4 = vsel %vm2046_vm5, %v2026_v55, %v9976_v50  ;;  %v2060_v6 = vsel %vm2046_vm5, %v2027_v34, %v9977_v49  ;;  %v923_v49 = vld [vmem:[#allocation2 + $0x199] sm:$0xff]  ;;  %v924_v50 = vld [vmem:[#allocation2 + $0x1a1] sm:$0xff] }
 0x154   : > { %v12929_v19 = vpop.permute.xlu0 %9984  ;;  %v9991_v21 = vunpack.i.l.bf16 %v12927_v57  ;;  %v9992_v56 = vunpack.i.h.bf16 %v12927_v57  ;;  %v10338_v55 = vpack.i.bf16 %v924_v50, %v923_v49  ;;  %v956_v34 = vld [vmem:[#allocation2 + $0x1a2] sm:$0xff] }
 0x155   : > { %10279 = vrot.lane.b32.xlu1 %v12911_v31, %s16107_s19  ;;  %v9986_v14 = vunpack.i.l.bf16 %v12929_v19  ;;  %v9987_v2 = vunpack.i.h.bf16 %v12929_v19 }
 0x156   : > { %10274 = vrot.lane.b32.xlu0 %v12851_v58, %s16107_s19  ;;  %v12943_v58 = vpack.i.bf16 %v859_v25, %v858_v24  ;;  %v2095_v41 = vsel %vm2079_vm3, %v2062_v1, %v9992_v56  ;;  %v2737_v1 = vld [vmem:[#allocation3 + $0x9] sm:$0xff] }
 0x157   : > { %v10000_v36 = vpop.permute.xlu1 %9999  ;;  %v2092_v16 = vsel %vm2079_vm3, %v2059_v4, %v9986_v14  ;;  %v2093_v19 = vsel %vm2079_vm3, %v2060_v6, %v9987_v2  ;;  %v10358_v2 = vpack.i.bf16 %v2769_v29, %v2768_v28 }
 0x158   : > { %v9995_v40 = vpop.permute.xlu0 %9994  ;;  %v10001_v3 = vunpack.i.l.bf16 %v10000_v36  ;;  %v10002_v8 = vunpack.i.h.bf16 %v10000_v36 }
 0x159   : > { %10289 = vrot.lane.b32.xlu1 %v12919_v12, %s16108_s29  ;;  %v9997_v9 = vunpack.i.h.bf16 %v9995_v40  ;;  %v9996_v30 = vunpack.i.l.bf16 %v9995_v40 }
 0x15a   : > { %10284 = vrot.lane.b32.xlu0 %v12855_v61, %s16108_s29  ;;  %v2061_v61 = vsel %vm2046_vm5, %v2028_v53, %v9981_v45  ;;  %v2128_v23 = vsel %vm2112_vm6, %v2095_v41, %v10002_v8 }
 0x15b   : > { %v10010_v54 = vpop.permute.xlu1 %10009  ;;  %v2094_v7 = vsel %vm2079_vm3, %v2061_v61, %v9991_v21  ;;  %v2125_v26 = vsel %vm2112_vm6, %v2092_v16, %v9996_v30  ;;  %v2126_v48 = vsel %vm2112_vm6, %v2093_v19, %v9997_v9  ;;  %v2736_v61 = vld [vmem:[#allocation3 + $0x1] sm:$0xff]  ;;  %v687_v9 = vld [vmem:[#allocation2 + $0xe0] sm:$0xff] }
 0x15c   : > { %v12962_v60 = vpop.permute.xlu0 %10004  ;;  %v10012_v10 = vunpack.i.h.bf16 %v10010_v54  ;;  %v10011_v11 = vunpack.i.l.bf16 %v10010_v54  ;;  %v684_v16 = vld [vmem:[#allocation2 + $0xc0] sm:$0xff] }
 0x15d   : > { %10299 = vrot.lane.b32.xlu1 %v12935_v27, %s16109_s30  ;;  %v10007_v57 = vunpack.i.h.bf16 %v12962_v60  ;;  %v10006_v15 = vunpack.i.l.bf16 %v12962_v60 }
 0x15e   : > { %10294 = vrot.lane.b32.xlu0 %v12857_v62, %s16109_s30  ;;  %v2127_v62 = vsel %vm2112_vm6, %v2094_v7, %v10001_v3  ;;  %v2161_v44 = vsel %vm2145_vm7, %v2128_v23, %v10012_v10  ;;  %v10353_v3 = vpack.i.bf16 %v2737_v1, %v2736_v61  ;;  %s16088_s30 = smov 112  }
 0x15f   : > { %v12974_v59 = vpop.permute.xlu1 %10019  ;;  %v2160_v32 = vsel %vm2145_vm7, %v2127_v62, %v10011_v11  ;;  %v2159_v33 = vsel %vm2145_vm7, %v2126_v48, %v10007_v57  ;;  %v685_v57 = vld [vmem:[#allocation2 + $0xc8] sm:$0xff] }
 0x160   : > { %v12980_v18 = vpop.permute.xlu0 %10014  ;;  %v10022_v20 = vunpack.i.h.bf16 %v12974_v59  ;;  %v10021_v22 = vunpack.i.l.bf16 %v12974_v59 }
 0x161   : > { %10309 = vrot.lane.b32.xlu1 %v12941_v42, %s16110_s23  ;;  %v10017_v24 = vunpack.i.h.bf16 %v12980_v18  ;;  %v10016_v25 = vunpack.i.l.bf16 %v12980_v18 }
 0x162   : > { %10304 = vrot.lane.b32.xlu0 %v12911_v31, %s16110_s23  ;;  %v2158_v31 = vsel %vm2145_vm7, %v2125_v26, %v10006_v15  ;;  %v2193_v38 = vsel %vm2178_vm8, %v2160_v32, %v10021_v22  ;;  %v2194_v17 = vsel %vm2178_vm8, %v2161_v44, %v10022_v20 }
 0x163   : > { %v12997_v13 = vpop.permute.xlu1 %10029  ;;  %v2191_v43 = vsel %vm2178_vm8, %v2158_v31, %v10016_v25  ;;  %v2192_v5 = vsel %vm2178_vm8, %v2159_v33, %v10017_v24 }
 0x164   : > { %v10032_v35 = vunpack.i.h.bf16 %v12997_v13  ;;  %v10031_v36 = vunpack.i.l.bf16 %v12997_v13  ;;  %v10025_v37 = vpop.permute.xlu0 %10024 }
 0x165   : > { %v10027_v39 = vunpack.i.h.bf16 %v10025_v37  ;;  %v10026_v40 = vunpack.i.l.bf16 %v10025_v37  ;;  %10319 = vrot.lane.b32.xlu1 %v12943_v58, %s16111_s21 }
 0x166   : > { %v2226_v45 = vsel %vm2211_vm9, %v2193_v38, %v10031_v36  ;;  %v2227_v47 = vsel %vm2211_vm9, %v2194_v17, %v10032_v35  ;;  %10314 = vrot.lane.b32.xlu0 %v12919_v12, %s16111_s21  ;;  %v955_v12 = vld [vmem:[#allocation2 + $0x19a] sm:$0xff]  ;;  %s16025_s21 = smov 96  }
 0x167   : > { %v2224_v21 = vsel %vm2211_vm9, %v2191_v43, %v10026_v40  ;;  %v2225_v51 = vsel %vm2211_vm9, %v2192_v5, %v10027_v39  ;;  %v10040_v52 = vpop.permute.xlu1 %10039  ;;  %v2251_v53 = vpack.c.bf16 %v2227_v47, %v2226_v45  ;;  %v10348_v60 = vpack.i.bf16 %v956_v34, %v955_v12 }
 0x168   : > { %v10035_v63 = vpop.permute.xlu0 %10034  ;;  %v2250_v54 = vpack.c.bf16 %v2225_v51, %v2224_v21  ;;  %v10042_v7 = vunpack.i.h.bf16 %v10040_v52  ;;  %v10041_v8 = vunpack.i.l.bf16 %v10040_v52 }
 0x169   : > { %10329 = vrot.lane.b32.xlu1 %v10328_v46, %s16112_s26  ;;  %v10037_v30 = vunpack.i.h.bf16 %v10035_v63  ;;  %v10036_v10 = vunpack.i.l.bf16 %v10035_v63 }
 0x16a   : > { %10324 = vrot.lane.b32.xlu0 %v12935_v27, %s16112_s26  ;;  %9575 = vmatprep.mubr.msk.bf16.mxu0 %vm2296_vm10, %v2250_v54  ;;  %v2000_v20 = vsel %vm579_vm0, %v687_v9, %v10042_v7 }
 0x16b   : > { %9576 = vmatmul.mubr.msk.bf16.gmra.mrb[12].mxu0 %vm2296_vm10, %v2251_v53  ;;  %v10050_v56 = vpop.permute.xlu1 %10049  ;;  %v1998_v25 = vsel %vm579_vm0, %v685_v57, %v10037_v30  ;;  %v1997_v26 = vsel %vm579_vm0, %v684_v16, %v10036_v10 }
 0x16c   : > { %v10045_v14 = vpop.permute.xlu0 %10044  ;;  %v10052_v11 = vunpack.i.h.bf16 %v10050_v56  ;;  %v10051_v59 = vunpack.i.l.bf16 %v10050_v56 }
 0x16d   : > { %10339 = vrot.lane.b32.xlu1 %v10338_v55, %s16113_s22  ;;  %v10047_v15 = vunpack.i.h.bf16 %v10045_v14 }
 0x16e   : > { %10334 = vrot.lane.b32.xlu0 %v12941_v42, %s16113_s22  ;;  %v686_v42 = vld [vmem:[#allocation2 + $0xd8] sm:$0xff]  ;;  %v2033_v32 = vsel %vm2013_vm2, %v2000_v20, %v10052_v11  ;;  %s16157_s22 = smov 112  }
 0x16f   : > { %v10060_v46 = vpop.permute.xlu1 %10059  ;;  %v1999_v22 = vsel %vm579_vm0, %v686_v42, %v10041_v8  ;;  %v2031_v31 = vsel %vm2013_vm2, %v1998_v25, %v10047_v15 }
 0x170   : > { %v10055_v27 = vpop.permute.xlu0 %10054  ;;  %v10062_v19 = vunpack.i.h.bf16 %v10060_v46  ;;  %v10061_v62 = vunpack.i.l.bf16 %v10060_v46  ;;  %v2032_v48 = vsel %vm2013_vm2, %v1999_v22, %v10051_v59 }
 0x171   : > { %10349 = vrot.lane.b32.xlu1 %v10348_v60, %s16114_s0  ;;  %v10057_v23 = vunpack.i.h.bf16 %v10055_v27  ;;  %v10056_v24 = vunpack.i.l.bf16 %v10055_v27 }
 0x172   : > { %10344 = vrot.lane.b32.xlu0 %v12943_v58, %s16114_s0  ;;  %v10046_v58 = vunpack.i.l.bf16 %v10045_v14  ;;  %v2065_v37 = vsel %vm2046_vm5, %v2032_v48, %v10061_v62  ;;  %v2066_v38 = vsel %vm2046_vm5, %v2033_v32, %v10062_v19 }
 0x173   : > { %v10070_v4 = vpop.permute.xlu1 %10069  ;;  %v2064_v43 = vsel %vm2046_vm5, %v2031_v31, %v10057_v23  ;;  %v691_v31 = vld [vmem:[#allocation2 + $0x110] sm:$0xff] }
 0x174   : > { %v10065_v6 = vpop.permute.xlu0 %10064  ;;  %v2030_v13 = vsel %vm2013_vm2, %v1997_v26, %v10046_v58  ;;  %v10072_v33 = vunpack.i.h.bf16 %v10070_v4  ;;  %v10071_v35 = vunpack.i.l.bf16 %v10070_v4 }
 0x175   : > { %10359 = vrot.lane.b32.xlu1 %v10358_v2, %s16110_s23  ;;  %v10067_v17 = vunpack.i.h.bf16 %v10065_v6  ;;  %v10066_v39 = vunpack.i.l.bf16 %v10065_v6  ;;  %v2063_v40 = vsel %vm2046_vm5, %v2030_v13, %v10056_v24  ;;  %v690_v13 = vld [vmem:[#allocation2 + $0x108] sm:$0xff] }
 0x176   : > { %10354 = vrot.lane.b32.xlu0 %v10353_v3, %s16108_s29  ;;  %v2098_v52 = vsel %vm2079_vm3, %v2065_v37, %v10071_v35  ;;  %v2099_v53 = vsel %vm2079_vm3, %v2066_v38, %v10072_v33  ;;  %v689_v37 = vld [vmem:[#allocation2 + $0xf8] sm:$0xff] }
 0x177   : > { %v10080_v41 = vpop.permute.xlu1 %10079  ;;  %v2096_v12 = vsel %vm2079_vm3, %v2063_v40, %v10066_v39  ;;  %v2097_v34 = vsel %vm2079_vm3, %v2064_v43, %v10067_v17 }
 0x178   : > { %v10075_v18 = vpop.permute.xlu0 %10074  ;;  %v10082_v5 = vunpack.i.h.bf16 %v10080_v41  ;;  %v10081_v45 = vunpack.i.l.bf16 %v10080_v41 }
 0x179   : > { %v10077_v47 = vunpack.i.h.bf16 %v10075_v18  ;;  %v10076_v49 = vunpack.i.l.bf16 %v10075_v18 }
 0x17a   : > { %v2131_v60 = vsel %vm2112_vm6, %v2098_v52, %v10081_v45  ;;  %v2132_v28 = vsel %vm2112_vm6, %v2099_v53, %v10082_v5 }
 0x17b   : > { %v10090_v44 = vpop.permute.xlu1 %10089  ;;  %v2129_v61 = vsel %vm2112_vm6, %v2096_v12, %v10076_v49  ;;  %v2130_v1 = vsel %vm2112_vm6, %v2097_v34, %v10077_v47 }
 0x17c   : > { %v10085_v36 = vpop.permute.xlu0 %10084  ;;  %v10092_v50 = vunpack.i.h.bf16 %v10090_v44  ;;  %v10091_v21 = vunpack.i.l.bf16 %v10090_v44 }
 0x17d   : > { %v10087_v63 = vunpack.i.h.bf16 %v10085_v36  ;;  %v10086_v54 = vunpack.i.l.bf16 %v10085_v36  ;;  %v688_v36 = vld [vmem:[#allocation2 + $0xf0] sm:$0xff] }
 0x17e   : > { %v2164_v27 = vsel %vm2145_vm7, %v2131_v60, %v10091_v21  ;;  %v2165_v2 = vsel %vm2145_vm7, %v2132_v28, %v10092_v50 }
 0x17f   : > { %v10100_v51 = vpop.permute.xlu1 %10099  ;;  %v2162_v4 = vsel %vm2145_vm7, %v2129_v61, %v10086_v54  ;;  %v2163_v6 = vsel %vm2145_vm7, %v2130_v1, %v10087_v63 }
 0x180   : > { %v10095_v55 = vpop.permute.xlu0 %10094  ;;  %v10102_v56 = vunpack.i.h.bf16 %v10100_v51  ;;  %v10101_v14 = vunpack.i.l.bf16 %v10100_v51 }
 0x181   : > { %v10097_v29 = vunpack.i.h.bf16 %v10095_v55  ;;  %v10096_v46 = vunpack.i.l.bf16 %v10095_v55 }
 0x182   : > { %v2197_v9 = vsel %vm2178_vm8, %v2164_v27, %v10101_v14  ;;  %v2198_v30 = vsel %vm2178_vm8, %v2165_v2, %v10102_v56 }
 0x183   : > { %v10110_v3 = vpop.permute.xlu1 %10109  ;;  %v2195_v59 = vsel %vm2178_vm8, %v2162_v4, %v10096_v46  ;;  %v2196_v41 = vsel %vm2178_vm8, %v2163_v6, %v10097_v29 }
 0x184   : > { %v10112_v7 = vunpack.i.h.bf16 %v10110_v3  ;;  %v10111_v8 = vunpack.i.l.bf16 %v10110_v3  ;;  %v10105_v42 = vpop.permute.xlu0 %10104 }
 0x185   : > { %v10107_v10 = vunpack.i.h.bf16 %v10105_v42  ;;  %v10106_v11 = vunpack.i.l.bf16 %v10105_v42 }
 0x186   : > { %v2230_v16 = vsel %vm2211_vm9, %v2197_v9, %v10111_v8  ;;  %v2231_v57 = vsel %vm2211_vm9, %v2198_v30, %v10112_v7 }
 0x187   : > { %v2228_v15 = vsel %vm2211_vm9, %v2195_v59, %v10106_v11  ;;  %v2229_v58 = vsel %vm2211_vm9, %v2196_v41, %v10107_v10  ;;  %v10120_v18 = vpop.permute.xlu1 %10119  ;;  %v2253_v19 = vpack.c.bf16 %v2231_v57, %v2230_v16 }
 0x188   : > { %v10115_v62 = vpop.permute.xlu0 %10114  ;;  %v2252_v20 = vpack.c.bf16 %v2229_v58, %v2228_v15  ;;  %v10122_v48 = vunpack.i.h.bf16 %v10120_v18  ;;  %v10121_v32 = vunpack.i.l.bf16 %v10120_v18 }
 0x189   : > { %v10117_v33 = vunpack.i.h.bf16 %v10115_v62  ;;  %v10116_v35 = vunpack.i.l.bf16 %v10115_v62 }
 0x18a   : > { %9579 = vmatprep.mubr.msk.bf16.mxu0 %vm2296_vm10, %v2252_v20  ;;  %v2004_v40 = vsel %vm579_vm0, %v691_v31, %v10122_v48  ;;  %v2003_v43 = vsel %vm579_vm0, %v690_v13, %v10121_v32 }
 0x18b   : > { %9580 = vmatmul.mubr.msk.bf16.gmra.mrb[16].mxu0 %vm2296_vm10, %v2253_v19  ;;  %v10130_v22 = vpop.permute.xlu1 %10129  ;;  %v2002_v49 = vsel %vm579_vm0, %v689_v37, %v10117_v33  ;;  %v2001_v50 = vsel %vm579_vm0, %v688_v36, %v10116_v35 }
 0x18c   : > { %v10125_v23 = vpop.permute.xlu0 %10124  ;;  %v10132_v38 = vunpack.i.h.bf16 %v10130_v22  ;;  %v10131_v17 = vunpack.i.l.bf16 %v10130_v22 }
 0x18d   : > { %v10127_v5 = vunpack.i.h.bf16 %v10125_v23  ;;  %v10126_v45 = vunpack.i.l.bf16 %v10125_v23 }
 0x18e   : > { %v2036_v63 = vsel %vm2013_vm2, %v2003_v43, %v10131_v17  ;;  %v2037_v54 = vsel %vm2013_vm2, %v2004_v40, %v10132_v38 }
 0x18f   : > { %v10140_v24 = vpop.permute.xlu1 %10139  ;;  %v2034_v12 = vsel %vm2013_vm2, %v2001_v50, %v10126_v45  ;;  %v2035_v34 = vsel %vm2013_vm2, %v2002_v49, %v10127_v5 }
 0x190   : > { %v10135_v25 = vpop.permute.xlu0 %10134  ;;  %v10142_v21 = vunpack.i.h.bf16 %v10140_v24  ;;  %v10141_v51 = vunpack.i.l.bf16 %v10140_v24 }
 0x191   : > { %v10137_v52 = vunpack.i.h.bf16 %v10135_v25  ;;  %v10136_v53 = vunpack.i.l.bf16 %v10135_v25 }
 0x192   : > { %v2069_v28 = vsel %vm2046_vm5, %v2036_v63, %v10141_v51  ;;  %v2070_v29 = vsel %vm2046_vm5, %v2037_v54, %v10142_v21 }
 0x193   : > { %v10150_v26 = vpop.permute.xlu1 %10149  ;;  %v2067_v1 = vsel %vm2046_vm5, %v2034_v12, %v10136_v53  ;;  %v2068_v27 = vsel %vm2046_vm5, %v2035_v34, %v10137_v52 }
 0x194   : > { %v10145_v44 = vpop.permute.xlu0 %10144  ;;  %v10152_v56 = vunpack.i.h.bf16 %v10150_v26  ;;  %v10151_v14 = vunpack.i.l.bf16 %v10150_v26 }
 0x195   : > { %v10147_v46 = vunpack.i.h.bf16 %v10145_v44  ;;  %v10146_v61 = vunpack.i.l.bf16 %v10145_v44 }
 0x196   : > { %v2102_v9 = vsel %vm2079_vm3, %v2069_v28, %v10151_v14  ;;  %v2103_v30 = vsel %vm2079_vm3, %v2070_v29, %v10152_v56  ;;  %v692_v56 = vld [vmem:[#allocation2 + $0x120] sm:$0xff]  ;;  %v693_v14 = vld [vmem:[#allocation2 + $0x128] sm:$0xff] }
 0x197   : > { %v10160_v39 = vpop.permute.xlu1 %10159  ;;  %v2100_v41 = vsel %vm2079_vm3, %v2067_v1, %v10146_v61  ;;  %v2101_v16 = vsel %vm2079_vm3, %v2068_v27, %v10147_v46  ;;  %v11905_v46 = vld [vmem:[#allocation2 + $0x140] sm:$0xff]  ;;  %v11906_v1 = vld [vmem:[#allocation2 + $0x138] sm:$0xff] }
 0x198   : > { %v10155_v47 = vpop.permute.xlu0 %10154  ;;  %v10162_v2 = vunpack.i.h.bf16 %v10160_v39  ;;  %v10161_v3 = vunpack.i.l.bf16 %v10160_v39 }
 0x199   : > { %v10157_v4 = vunpack.i.h.bf16 %v10155_v47  ;;  %v10156_v6 = vunpack.i.l.bf16 %v10155_v47 }
 0x19a   : > { %v2135_v58 = vsel %vm2112_vm6, %v2102_v9, %v10161_v3  ;;  %v2136_v18 = vsel %vm2112_vm6, %v2103_v30, %v10162_v2 }
 0x19b   : > { %v10170_v55 = vpop.permute.xlu1 %10169  ;;  %v2133_v20 = vsel %vm2112_vm6, %v2100_v41, %v10156_v6  ;;  %v2134_v22 = vsel %vm2112_vm6, %v2101_v16, %v10157_v4 }
 0x19c   : > { %v10165_v60 = vpop.permute.xlu0 %10164  ;;  %v10172_v7 = vunpack.i.h.bf16 %v10170_v55  ;;  %v10171_v8 = vunpack.i.l.bf16 %v10170_v55 }
 0x19d   : > { %v10167_v10 = vunpack.i.h.bf16 %v10165_v60  ;;  %v10166_v11 = vunpack.i.l.bf16 %v10165_v60 }
 0x19e   : > { %v2168_v23 = vsel %vm2145_vm7, %v2135_v58, %v10171_v8  ;;  %v2169_v24 = vsel %vm2145_vm7, %v2136_v18, %v10172_v7 }
 0x19f   : > { %v10180_v42 = vpop.permute.xlu1 %10179  ;;  %v2166_v26 = vsel %vm2145_vm7, %v2133_v20, %v10166_v11  ;;  %v2167_v48 = vsel %vm2145_vm7, %v2134_v22, %v10167_v10 }
 0x1a0   : > { %v10175_v59 = vpop.permute.xlu0 %10174  ;;  %v10182_v57 = vunpack.i.h.bf16 %v10180_v42  ;;  %v10181_v15 = vunpack.i.l.bf16 %v10180_v42 }
 0x1a1   : > { %v10177_v19 = vunpack.i.h.bf16 %v10175_v59  ;;  %v10176_v62 = vunpack.i.l.bf16 %v10175_v59 }
 0x1a2   : > { %v2201_v31 = vsel %vm2178_vm8, %v2168_v23, %v10181_v15  ;;  %v2202_v33 = vsel %vm2178_vm8, %v2169_v24, %v10182_v57 }
 0x1a3   : > { %v10190_v25 = vpop.permute.xlu1 %10189  ;;  %v2199_v37 = vsel %vm2178_vm8, %v2166_v26, %v10176_v62  ;;  %v2200_v38 = vsel %vm2178_vm8, %v2167_v48, %v10177_v19 }
 0x1a4   : > { %v10192_v32 = vunpack.i.h.bf16 %v10190_v25  ;;  %v10191_v44 = vunpack.i.l.bf16 %v10190_v25  ;;  %v10185_v13 = vpop.permute.xlu0 %10184 }
 0x1a5   : > { %v10187_v35 = vunpack.i.h.bf16 %v10185_v13  ;;  %v10186_v36 = vunpack.i.l.bf16 %v10185_v13 }
 0x1a6   : > { %v2234_v17 = vsel %vm2211_vm9, %v2201_v31, %v10191_v44  ;;  %v2235_v39 = vsel %vm2211_vm9, %v2202_v33, %v10192_v32 }
 0x1a7   : > { %v2232_v40 = vsel %vm2211_vm9, %v2199_v37, %v10186_v36  ;;  %v2233_v43 = vsel %vm2211_vm9, %v2200_v38, %v10187_v35  ;;  %v10200_v5 = vpop.permute.xlu1 %10199  ;;  %v2255_v45 = vpack.c.bf16 %v2235_v39, %v2234_v17 }
 0x1a8   : > { %v10195_v47 = vpop.permute.xlu0 %10194  ;;  %v2254_v49 = vpack.c.bf16 %v2233_v43, %v2232_v40  ;;  %v10202_v63 = vunpack.i.h.bf16 %v10200_v5  ;;  %v10201_v54 = vunpack.i.l.bf16 %v10200_v5 }
 0x1a9   : > { %v10197_v12 = vunpack.i.h.bf16 %v10195_v47  ;;  %v10196_v34 = vunpack.i.l.bf16 %v10195_v47 }
 0x1aa   : > { %9583 = vmatprep.mubr.msk.bf16.mxu0 %vm2296_vm10, %v2254_v49  ;;  %v2008_v61 = vsel %vm579_vm0, %v11905_v46, %v10202_v63  ;;  %v2007_v27 = vsel %vm579_vm0, %v11906_v1, %v10201_v54 }
 0x1ab   : > { %9584 = vmatmul.mubr.msk.bf16.gmra.mrb[20].mxu0 %vm2296_vm10, %v2255_v45  ;;  %v10210_v50 = vpop.permute.xlu1 %10209  ;;  %v2006_v6 = vsel %vm579_vm0, %v693_v14, %v10197_v12  ;;  %v2005_v7 = vsel %vm579_vm0, %v692_v56, %v10196_v34 }
 0x1ac   : > { %v10205_v21 = vpop.permute.xlu0 %10204  ;;  %v10212_v60 = vunpack.i.h.bf16 %v10210_v50  ;;  %v10211_v28 = vunpack.i.l.bf16 %v10210_v50 }
 0x1ad   : > { %v10207_v2 = vunpack.i.h.bf16 %v10205_v21  ;;  %v10206_v3 = vunpack.i.l.bf16 %v10205_v21 }
 0x1ae   : > { %v2040_v10 = vsel %vm2013_vm2, %v2007_v27, %v10211_v28  ;;  %v2041_v11 = vsel %vm2013_vm2, %v2008_v61, %v10212_v60 }
 0x1af   : > { %v10220_v51 = vpop.permute.xlu1 %10219  ;;  %v2038_v41 = vsel %vm2013_vm2, %v2005_v7, %v10206_v3  ;;  %v2039_v16 = vsel %vm2013_vm2, %v2006_v6, %v10207_v2 }
 0x1b0   : > { %v10215_v52 = vpop.permute.xlu0 %10214  ;;  %v10222_v8 = vunpack.i.h.bf16 %v10220_v51  ;;  %v10221_v42 = vunpack.i.l.bf16 %v10220_v51 }
 0x1b1   : > { %v10217_v9 = vunpack.i.h.bf16 %v10215_v52  ;;  %v10216_v30 = vunpack.i.l.bf16 %v10215_v52 }
 0x1b2   : > { %v2073_v18 = vsel %vm2046_vm5, %v2040_v10, %v10221_v42  ;;  %v2074_v19 = vsel %vm2046_vm5, %v2041_v11, %v10222_v8 }
 0x1b3   : > { %v10230_v53 = vpop.permute.xlu1 %10229  ;;  %v2071_v22 = vsel %vm2046_vm5, %v2038_v41, %v10216_v30  ;;  %v2072_v23 = vsel %vm2046_vm5, %v2039_v16, %v10217_v9 }
 0x1b4   : > { %v10225_v55 = vpop.permute.xlu0 %10224  ;;  %v10232_v57 = vunpack.i.h.bf16 %v10230_v53  ;;  %v10231_v15 = vunpack.i.l.bf16 %v10230_v53 }
 0x1b5   : > { %v10227_v62 = vunpack.i.h.bf16 %v10225_v55  ;;  %v10226_v20 = vunpack.i.l.bf16 %v10225_v55 }
 0x1b6   : > { %v2106_v31 = vsel %vm2079_vm3, %v2073_v18, %v10231_v15  ;;  %v2107_v33 = vsel %vm2079_vm3, %v2074_v19, %v10232_v57  ;;  %v11908_v19 = vld [vmem:[#allocation2 + $0x168] sm:$0xff] }
 0x1b7   : > { %v10240_v29 = vpop.permute.xlu1 %10239  ;;  %v2104_v38 = vsel %vm2079_vm3, %v2071_v22, %v10226_v20  ;;  %v2105_v17 = vsel %vm2079_vm3, %v2072_v23, %v10227_v62  ;;  %v11788_v22 = vld [vmem:[%s16115_s3] sm:$0xff]   ;;  %v11909_v23 = vld [vmem:[#allocation2 + $0x150] sm:$0xff] }
 0x1b8   : > { %v10235_v4 = vpop.permute.xlu0 %10234  ;;  %v10242_v24 = vunpack.i.h.bf16 %v10240_v29  ;;  %v10241_v25 = vunpack.i.l.bf16 %v10240_v29 }
 0x1b9   : > { %v10237_v26 = vunpack.i.h.bf16 %v10235_v4  ;;  %v10236_v48 = vunpack.i.l.bf16 %v10235_v4 }
 0x1ba   : > { %v2139_v43 = vsel %vm2112_vm6, %v2106_v31, %v10241_v25  ;;  %v2140_v5 = vsel %vm2112_vm6, %v2107_v33, %v10242_v24 }
 0x1bb   : > { %v10250_v59 = vpop.permute.xlu1 %10249  ;;  %v2137_v49 = vsel %vm2112_vm6, %v2104_v38, %v10236_v48  ;;  %v2138_v50 = vsel %vm2112_vm6, %v2105_v17, %v10237_v26  ;;  %v16049_v26 = vmov 0   ;;  %v11910_v48 = vld [vmem:[#allocation2 + $0x158] sm:$0xff] }
 0x1bc   : > { %v10245_v58 = vpop.permute.xlu0 %10244  ;;  %v10252_v32 = vunpack.i.h.bf16 %v10250_v59  ;;  %v10251_v44 = vunpack.i.l.bf16 %v10250_v59  ;;  %4268 = vmatprep.subr.bf16.mxu1 %v16049_v26  ;;  %6183 = vmatprep.subr.bf16.mxu0 %v16049_v26 }
 0x1bd   : > { %v10247_v35 = vunpack.i.h.bf16 %v10245_v58  ;;  %v10246_v36 = vunpack.i.l.bf16 %v10245_v58  ;;  %v11907_v58 = vld [vmem:[#allocation2 + $0x170] sm:$0xff]  ;;  %4269 = vmatpush1.bf16.msra.mxu1 %v11788_v22 }
 0x1be   : > { %v2172_v21 = vsel %vm2145_vm7, %v2139_v43, %v10251_v44  ;;  %v2173_v51 = vsel %vm2145_vm7, %v2140_v5, %v10252_v32  ;;  %4270 = vmatprep.subr.bf16.mxu1 %v16049_v26  ;;  %v11789_v5 = vld [vmem:[%s16115_s3 + $0x8] sm:$0xff]  }
 0x1bf   : > { %v10260_v13 = vpop.permute.xlu1 %10259  ;;  %v2170_v53 = vsel %vm2145_vm7, %v2137_v49, %v10246_v36  ;;  %v2171_v63 = vsel %vm2145_vm7, %v2138_v50, %v10247_v35 }
 0x1c0   : > { %v10255_v37 = vpop.permute.xlu0 %10254  ;;  %v10262_v39 = vunpack.i.h.bf16 %v10260_v13  ;;  %v10261_v40 = vunpack.i.l.bf16 %v10260_v13 }
 0x1c1   : > { %v10257_v45 = vunpack.i.h.bf16 %v10255_v37  ;;  %v10256_v47 = vunpack.i.l.bf16 %v10255_v37  ;;  %4271 = vmatpush1.bf16.msra.mxu1 %v11789_v5 }
 0x1c2   : > { %v2205_v34 = vsel %vm2178_vm8, %v2172_v21, %v10261_v40  ;;  %v2206_v56 = vsel %vm2178_vm8, %v2173_v51, %v10262_v39  ;;  %4272 = vmatprep.subr.bf16.mxu1 %v16049_v26 }
 0x1c3   : > { %v10270_v52 = vpop.permute.xlu1 %10269  ;;  %v2203_v28 = vsel %vm2178_vm8, %v2170_v53, %v10256_v47  ;;  %v2204_v29 = vsel %vm2178_vm8, %v2171_v63, %v10257_v45 }
 0x1c4   : > { %v10272_v54 = vunpack.i.h.bf16 %v10270_v52  ;;  %v10271_v55 = vunpack.i.l.bf16 %v10270_v52  ;;  %v10265_v12 = vpop.permute.xlu0 %10264 }
 0x1c5   : > { %v10267_v14 = vunpack.i.h.bf16 %v10265_v12  ;;  %v10266_v60 = vunpack.i.l.bf16 %v10265_v12 }
 0x1c6   : > { %v2238_v46 = vsel %vm2211_vm9, %v2205_v34, %v10271_v55  ;;  %v2239_v61 = vsel %vm2211_vm9, %v2206_v56, %v10272_v54 }
 0x1c7   : > { %v2236_v1 = vsel %vm2211_vm9, %v2203_v28, %v10266_v60  ;;  %v2237_v27 = vsel %vm2211_vm9, %v2204_v29, %v10267_v14  ;;  %v10280_v2 = vpop.permute.xlu1 %10279  ;;  %v2257_v3 = vpack.c.bf16 %v2239_v61, %v2238_v46  ;;  %v13275_v14 = vld [vmem:[%s16116_s2] ss:$0 sm:$0xff] }
 0x1c8   : > { %v10275_v4 = vpop.permute.xlu0 %10274  ;;  %v2256_v6 = vpack.c.bf16 %v2237_v27, %v2236_v1  ;;  %v10282_v30 = vunpack.i.h.bf16 %v10280_v2  ;;  %v10281_v10 = vunpack.i.l.bf16 %v10280_v2 }
 0x1c9   : > { %v10276_v11 = vunpack.i.l.bf16 %v10275_v4  ;;  %v10277_v59 = vunpack.i.h.bf16 %v10275_v4  ;;  %v13287_v4 = vld [vmem:[%s16116_s2 + $0x1] ss:$0 sm:$0xff] }
 0x1ca   : > { %9587 = vmatprep.mubr.msk.bf16.mxu0 %vm2296_vm10, %v2256_v6  ;;  %v2012_v18 = vsel %vm579_vm0, %v11907_v58, %v10282_v30  ;;  %v2011_v62 = vsel %vm579_vm0, %v11908_v19, %v10281_v10 }
 0x1cb   : > { %9588 = vmatmul.mubr.msk.bf16.gmra.mrb[24].mxu0 %vm2296_vm10, %v2257_v3  ;;  %v10290_v7 = vpop.permute.xlu1 %10289  ;;  %v2009_v24 = vsel %vm579_vm0, %v11909_v23, %v10276_v11  ;;  %v2010_v32 = vsel %vm579_vm0, %v11910_v48, %v10277_v59 }
 0x1cc   : > { %v10285_v8 = vpop.permute.xlu0 %10284  ;;  %v10292_v16 = vunpack.i.h.bf16 %v10290_v7  ;;  %v10291_v57 = vunpack.i.l.bf16 %v10290_v7 }
 0x1cd   : > { %v10286_v20 = vunpack.i.l.bf16 %v10285_v8  ;;  %v10287_v25 = vunpack.i.h.bf16 %v10285_v8 }
 0x1ce   : > { %v2044_v33 = vsel %vm2013_vm2, %v2011_v62, %v10291_v57  ;;  %v2045_v35 = vsel %vm2013_vm2, %v2012_v18, %v10292_v16 }
 0x1cf   : > { %v10300_v42 = vpop.permute.xlu1 %10299  ;;  %v2042_v17 = vsel %vm2013_vm2, %v2009_v24, %v10286_v20  ;;  %v2043_v45 = vsel %vm2013_vm2, %v2010_v32, %v10287_v25 }
 0x1d0   : > { %v10295_v9 = vpop.permute.xlu0 %10294  ;;  %v10302_v44 = vunpack.i.h.bf16 %v10300_v42  ;;  %v10301_v13 = vunpack.i.l.bf16 %v10300_v42 }
 0x1d1   : > { %v10297_v36 = vunpack.i.h.bf16 %v10295_v9  ;;  %v10296_v37 = vunpack.i.l.bf16 %v10295_v9 }
 0x1d2   : > { %v2077_v21 = vsel %vm2046_vm5, %v2044_v33, %v10301_v13  ;;  %v2078_v51 = vsel %vm2046_vm5, %v2045_v35, %v10302_v44 }
 0x1d3   : > { %v10310_v41 = vpop.permute.xlu1 %10309  ;;  %v2075_v54 = vsel %vm2046_vm5, %v2042_v17, %v10296_v37  ;;  %v2076_v55 = vsel %vm2046_vm5, %v2043_v45, %v10297_v36  ;;  %v11791_v17 = vld [vmem:[%s16115_s3 + $0x18] sm:$0xff]  }
 0x1d4   : > { %v10305_v15 = vpop.permute.xlu0 %10304  ;;  %v10312_v39 = vunpack.i.h.bf16 %v10310_v41  ;;  %v10311_v40 = vunpack.i.l.bf16 %v10310_v41 }
 0x1d5   : > { %v10306_v43 = vunpack.i.l.bf16 %v10305_v15  ;;  %v10307_v47 = vunpack.i.h.bf16 %v10305_v15  ;;  %v11790_v15 = vld [vmem:[%s16115_s3 + $0x10] sm:$0xff]  }
 0x1d6   : > { %v2110_v60 = vsel %vm2079_vm3, %v2077_v21, %v10311_v40  ;;  %v2111_v28 = vsel %vm2079_vm3, %v2078_v51, %v10312_v39  ;;  %4273 = vmatpush1.bf16.msra.mxu1 %v11790_v15 }
 0x1d7   : > { %v10320_v31 = vpop.permute.xlu1 %10319  ;;  %v2108_v29 = vsel %vm2079_vm3, %v2075_v54, %v10306_v43  ;;  %v2109_v61 = vsel %vm2079_vm3, %v2076_v55, %v10307_v47  ;;  %4274 = vmatprep.subr.bf16.mxu1 %v16049_v26  ;;  %v11793_v54 = vld [vmem:[%s16115_s3 + $0x28] sm:$0xff]  }
 0x1d8   : > { %v10315_v38 = vpop.permute.xlu0 %10314  ;;  %v10322_v49 = vunpack.i.h.bf16 %v10320_v31  ;;  %v10321_v50 = vunpack.i.l.bf16 %v10320_v31 }
 0x1d9   : > { %v10317_v52 = vunpack.i.h.bf16 %v10315_v38  ;;  %v10316_v53 = vunpack.i.l.bf16 %v10315_v38 }
 0x1da   : > { %v2143_v1 = vsel %vm2112_vm6, %v2110_v60, %v10321_v50  ;;  %v2144_v27 = vsel %vm2112_vm6, %v2111_v28, %v10322_v49  ;;  %4275 = vmatpush1.bf16.msra.mxu1 %v11791_v17 }
 0x1db   : > { %v10330_v63 = vpop.permute.xlu1 %10329  ;;  %v2141_v6 = vsel %vm2112_vm6, %v2108_v29, %v10316_v53  ;;  %v2142_v7 = vsel %vm2112_vm6, %v2109_v61, %v10317_v52  ;;  %4276 = vmatprep.subr.bf16.mxu1 %v16049_v26 }
 0x1dc   : > { %v10332_v12 = vunpack.i.h.bf16 %v10330_v63  ;;  %v10331_v34 = vunpack.i.l.bf16 %v10330_v63  ;;  %v10325_v56 = vpop.permute.xlu0 %10324  ;;  %v11792_v63 = vld [vmem:[%s16115_s3 + $0x20] sm:$0xff]  }
 0x1dd   : > { %v10326_v46 = vunpack.i.l.bf16 %v10325_v56  ;;  %v10327_v2 = vunpack.i.h.bf16 %v10325_v56 }
 0x1de   : > { %v9565_v3 = vpop.f32.mrb[0].mxu0  ;;  %v2176_v8 = vsel %vm2145_vm7, %v2143_v1, %v10331_v34  ;;  %v2177_v10 = vsel %vm2145_vm7, %v2144_v27, %v10332_v12  ;;  %4277 = vmatpush1.bf16.msra.mxu1 %v11792_v63  ;;  %v11794_v1 = vld [vmem:[%s16115_s3 + $0x30] sm:$0xff]   ;;  %v11795_v27 = vld [vmem:[%s16115_s3 + $0x38] sm:$0xff]  }
 0x1df   : > { %v2517_v42 = vmul.f32 %v9565_v3, %v13275_v14  ;;  %v2383_v9 = vpop.f32.mrb[1].mxu0  ;;  %v10340_v30 = vpop.permute.xlu1 %10339  ;;  %v2174_v58 = vsel %vm2145_vm7, %v2141_v6, %v10326_v46  ;;  %v2175_v22 = vsel %vm2145_vm7, %v2142_v7, %v10327_v2  ;;  %4278 = vmatprep.subr.bf16.mxu1 %v16049_v26  ;;  %v11796_v6 = vld [vmem:[%s16115_s3 + $0x40] sm:$0xff]  }
 0x1e0   : > { %v2515_v11 = vmul.f32 %v13275_v14, %v2383_v9  ;;  %v10342_v59 = vunpack.i.h.bf16 %v10340_v30  ;;  %v10341_v41 = vunpack.i.l.bf16 %v10340_v30  ;;  %v10335_v16 = vpop.permute.xlu0 %10334  ;;  %v9566_v57 = vpop.f32.mrb[2].mxu0 }
 0x1e1   : > { %v13300_v18 = vadd.f32 %v13287_v4, %v2517_v42  ;;  %v10336_v19 = vunpack.i.l.bf16 %v10335_v16  ;;  %v2518_v62 = vmul.f32 %v9566_v57, %v13275_v14  ;;  %v2386_v20 = vpop.f32.mrb[3].mxu0  ;;  %v10337_v24 = vunpack.i.h.bf16 %v10335_v16 }
 0x1e2   : > { %v13305_v23 = vadd.f32 %v13287_v4, %v2515_v11  ;;  %v2516_v25 = vmul.f32 %v13275_v14, %v2386_v20  ;;  %v2209_v32 = vsel %vm2178_vm8, %v2176_v8, %v10341_v41  ;;  %v2210_v44 = vsel %vm2178_vm8, %v2177_v10, %v10342_v59  ;;  %4279 = vmatpush1.bf16.msra.mxu1 %v11793_v54 }
 0x1e3   : > { %v16045_v48 = vmax.f32 %v13300_v18, 0.0  ;;  %v13312_v13 = vadd.f32 %v13287_v4, %v2518_v62  ;;  %v10350_v31 = vpop.permute.xlu1 %10349  ;;  %v2207_v39 = vsel %vm2178_vm8, %v2174_v58, %v10336_v19  ;;  %v2208_v45 = vsel %vm2178_vm8, %v2175_v22, %v10337_v24  ;;  %4280 = vmatprep.subr.bf16.mxu1 %v16049_v26 }
 0x1e4   : > { %v16048_v33 = vmax.f32 %v13305_v23, 0.0  ;;  %v13317_v35 = vadd.f32 %v13287_v4, %v2516_v25  ;;  %v10352_v36 = vunpack.i.h.bf16 %v10350_v31  ;;  %v10351_v37 = vunpack.i.l.bf16 %v10350_v31  ;;  %v10345_v38 = vpop.permute.xlu0 %10344 }
 0x1e5   : > { %2674 = vst.msk [vmem:[#allocation3 + $0x31] sm:$0xff] %vm2013_vm2, %v16045_v48  ;;  %v16044_v40 = vmax.f32 %v13312_v13, 0.0  ;;  %v10347_v43 = vunpack.i.h.bf16 %v10345_v38  ;;  %v10346_v5 = vunpack.i.l.bf16 %v10345_v38 }
 0x1e6   : > { %2672 = vst.msk [vmem:[#allocation3 + $0x19] sm:$0xff] %vm2013_vm2, %v16048_v33  ;;  %v16046_v47 = vmax.f32 %v13317_v35, 0.0  ;;  %v2242_v49 = vsel %vm2211_vm9, %v2209_v32, %v10351_v37  ;;  %v2243_v50 = vsel %vm2211_vm9, %v2210_v44, %v10352_v36  ;;  %4281 = vmatpush1.bf16.msra.mxu1 %v11794_v1 }
 0x1e7   : > { %2675 = vst.msk [vmem:[#allocation3 + $0x39] sm:$0xff] %vm2013_vm2, %v16044_v40  ;;  %v2240_v21 = vsel %vm2211_vm9, %v2207_v39, %v10346_v5  ;;  %v2241_v51 = vsel %vm2211_vm9, %v2208_v45, %v10347_v43  ;;  %v2259_v52 = vpack.c.bf16 %v2243_v50, %v2242_v49  ;;  %4282 = vmatprep.subr.bf16.mxu1 %v16049_v26 }
 0x1e8   : > { %2673 = vst.msk [vmem:[#allocation3 + $0x21] sm:$0xff] %vm2013_vm2, %v16046_v47  ;;  %v2258_v53 = vpack.c.bf16 %v2241_v51, %v2240_v21 }
 0x1ea   : > { %9591 = vmatprep.mubr.msk.bf16.mxu0 %vm2296_vm10, %v2258_v53  ;;  %4283 = vmatpush1.bf16.msra.mxu1 %v11795_v27 }
 0x1eb   : > { %9592 = vmatmul.mubr.msk.bf16.gmra.mrb[28].mxu0 %vm2296_vm10, %v2259_v52  ;;  %4284 = vmatprep.subr.bf16.mxu1 %v16049_v26 }
 0x1ec   : > { %v2929_v55 = vld [vmem:[#allocation3 + $0x31] sm:$0xff] }
 0x1ed   : > { %v13352_v29 = vld [vmem:[#allocation3 + $0x30] sm:$0xff]  ;;  %v13379_v7 = vld [vmem:[#allocation3 + $0x18] sm:$0xff] }
 0x1ee   : > { %v2961_v12 = vld [vmem:[#allocation3 + $0x32] sm:$0xff]  ;;  %v2962_v34 = vld [vmem:[#allocation3 + $0x3a] sm:$0xff]  ;;  %4285 = vmatpush1.bf16.msra.mxu1 %v11796_v6 }
 0x1ef   : > { %v2930_v56 = vld [vmem:[#allocation3 + $0x39] sm:$0xff]  ;;  %v4117_v60 = vpack.c.bf16 %v2962_v34, %v2961_v12  ;;  %v10383_v2 = vpack.i.bf16 %v2962_v34, %v2961_v12  ;;  %7083 = vmatprep.subr.bf16.mxu1 %v16049_v26  ;;  %v2865_v9 = vld [vmem:[#allocation3 + $0x22] sm:$0xff] }
 0x1f0   : > { %v10368_v28 = vpack.i.bf16 %v2930_v56, %v2929_v55  ;;  %v13354_v46 = vld [vmem:[#allocation3 + $0x38] sm:$0xff]  ;;  %v13372_v3 = vld [vmem:[#allocation3 + $0x20] sm:$0xff] }
 0x1f1   : > { %v10363_v61 = vpack.i.bf16 %v13354_v46, %v13352_v29  ;;  %9254 = vmatprep.mubr.msk.bf16.mxu1 %vm2013_vm2, %v4117_v60  ;;  %v10398_v8 = vpack.i.bf16 %v13372_v3, %v13379_v7  ;;  %v2864_v42 = vld [vmem:[#allocation3 + $0x1a] sm:$0xff] }
 0x1f2   : > { %10369 = vrot.lane.b32.xlu0 %v10368_v28, %s16088_s30  ;;  %v2833_v30 = vld [vmem:[#allocation3 + $0x21] sm:$0xff]  ;;  %v2832_v41 = vld [vmem:[#allocation3 + $0x19] sm:$0xff]  ;;  %v10408_v16 = vpack.i.bf16 %v2865_v9, %v2864_v42 }
 0x1f3   : > { %10364 = vrot.lane.b32.xlu1 %v10363_v61, %s16025_s21  ;;  %s16090_s21 = smov 80   ;;  %v10403_v58 = vpack.i.bf16 %v2833_v30, %v2832_v41 }
 0x1f6   : > { %10379 = vrot.lane.b32.xlu0 %v10368_v28, %s16114_s0 }
 0x1f7   : > { %10374 = vrot.lane.b32.xlu1 %v10363_v61, %s16112_s26 }
 0x1fa   : > { %10389 = vrot.lane.b32.xlu0 %v10368_v28, %s16108_s29 }
 0x1fb   : > { %10384 = vrot.lane.b32.xlu1 %v10383_v2, %s16090_s21 }
 0x1fe   : > { %10399 = vrot.lane.b32.xlu0 %v10398_v8, %s16112_s26  ;;  %v9569_v10 = vpop.f32.mrb[4].mxu0 }
 0x1ff   : > { %10394 = vrot.lane.b32.xlu1 %v10383_v2, %s16110_s23  ;;  %v2521_v11 = vmul.f32 %v9569_v10, %v13275_v14  ;;  %v2399_v59 = vpop.f32.mrb[5].mxu0 }
 0x200   : > { %v2519_v57 = vmul.f32 %v13275_v14, %v2399_v59  ;;  %v9570_v15 = vpop.f32.mrb[6].mxu0 }
 0x201   : > { %v13389_v19 = vadd.f32 %v13287_v4, %v2521_v11  ;;  %v2522_v62 = vmul.f32 %v9570_v15, %v13275_v14  ;;  %v2402_v20 = vpop.f32.mrb[7].mxu0 }
 0x202   : > { %10409 = vrot.lane.b32.xlu0 %v10408_v16, %s16090_s21  ;;  %v13394_v22 = vadd.f32 %v13287_v4, %v2519_v57  ;;  %v2520_v24 = vmul.f32 %v13275_v14, %v2402_v20 }
 0x203   : > { %10404 = vrot.lane.b32.xlu1 %v10403_v58, %s16114_s0  ;;  %v16040_v25 = vmax.f32 %v13389_v19, 0.0  ;;  %v13400_v32 = vadd.f32 %v13287_v4, %v2522_v62 }
 0x204   : > { %v16043_v44 = vmax.f32 %v13394_v22, 0.0  ;;  %v13404_v31 = vadd.f32 %v13287_v4, %v2520_v24 }
 0x205   : > { %16117 = vst [vmem:[#allocation17_spill] sm:$0xff] %v13400_v32  ;;  %2678 = vst.msk [vmem:[#allocation3 + $0x61] sm:$0xff] %vm2013_vm2, %v16040_v25  ;;  %v16039_v36 = vmax.f32 %v13400_v32, 0.0  ;;  %v2704_v25 = vld [vmem:[#allocation3] sm:$0xff] }
 0x206   : > { %10419 = vrot.lane.b32.xlu0 %v10408_v16, %s16110_s23  ;;  %2676 = vst.msk [vmem:[#allocation3 + $0x49] sm:$0xff] %vm2013_vm2, %v16043_v44  ;;  %v16042_v37 = vmax.f32 %v13404_v31, 0.0 }
 0x207   : > { %10414 = vrot.lane.b32.xlu1 %v10403_v58, %s16108_s29  ;;  %2679 = vst.msk [vmem:[#allocation3 + $0x69] sm:$0xff] %vm2013_vm2, %v16039_v36 }
 0x208   : > { %2677 = vst.msk [vmem:[#allocation3 + $0x51] sm:$0xff] %vm2013_vm2, %v16042_v37 }
 0x20c   : > { %v2933_v38 = vld [vmem:[#allocation3 + $0x61] sm:$0xff] }
 0x20d   : > { %v13422_v17 = vld [vmem:[#allocation3 + $0x60] sm:$0xff]  ;;  %v13450_v55 = vld [vmem:[#allocation3 + $0x48] sm:$0xff] }
 0x20e   : > { %v2934_v39 = vld [vmem:[#allocation3 + $0x69] sm:$0xff] }
 0x20f   : > { %v13424_v43 = vld [vmem:[#allocation3 + $0x68] sm:$0xff]  ;;  %v10428_v45 = vpack.i.bf16 %v2934_v39, %v2933_v38  ;;  %v13434_v51 = vld [vmem:[#allocation3 + $0x52] sm:$0xff] }
 0x210   : > { %v13426_v5 = vld [vmem:[#allocation3 + $0x62] sm:$0xff]  ;;  %v10423_v49 = vpack.i.bf16 %v13424_v43, %v13422_v17  ;;  %v13430_v50 = vld [vmem:[#allocation3 + $0x6a] sm:$0xff] }
 0x211   : > { %v13432_v21 = vld [vmem:[#allocation3 + $0x4a] sm:$0xff]  ;;  %10429 = vrot.lane.b32.xlu0 %v10428_v45, %s16088_s30  ;;  %v10443_v63 = vpack.i.bf16 %v13430_v50, %v13426_v5 }
 0x212   : > { %10424 = vrot.lane.b32.xlu1 %v10423_v49, %s16118_s24  ;;  %v13446_v54 = vld [vmem:[#allocation3 + $0x50] sm:$0xff]  ;;  %v10478_v59 = vpack.i.bf16 %v13434_v51, %v13432_v21 }
 0x213   : > { %v10458_v12 = vpack.i.bf16 %v13446_v54, %v13450_v55  ;;  %v2932_v34 = vld [vmem:[#allocation3 + $0x51] sm:$0xff]  ;;  %v2931_v60 = vld [vmem:[#allocation3 + $0x49] sm:$0xff] }
 0x214   : > { %v10463_v1 = vpack.i.bf16 %v2932_v34, %v2931_v60 }
 0x215   : > { %10439 = vrot.lane.b32.xlu0 %v10428_v45, %s16114_s0 }
 0x216   : > { %10434 = vrot.lane.b32.xlu1 %v10423_v49, %s16112_s26 }
 0x219   : > { %10449 = vrot.lane.b32.xlu0 %v10428_v45, %s16108_s29 }
 0x21a   : > { %10444 = vrot.lane.b32.xlu1 %v10443_v63, %s16090_s21 }
 0x21d   : > { %10459 = vrot.lane.b32.xlu0 %v10458_v12, %s16118_s24 }
 0x21e   : > { %10454 = vrot.lane.b32.xlu1 %v10443_v63, %s16110_s23  ;;  %v9573_v56 = vpop.f32.mrb[8].mxu0 }
 0x21f   : > { %v2525_v28 = vmul.f32 %v9573_v56, %v13275_v14  ;;  %v2415_v61 = vpop.f32.mrb[9].mxu0 }
 0x220   : > { %v2523_v27 = vmul.f32 %v13275_v14, %v2415_v61  ;;  %v9574_v2 = vpop.f32.mrb[10].mxu0 }
 0x221   : > { %v13459_v6 = vadd.f32 %v13287_v4, %v2525_v28  ;;  %v2526_v8 = vmul.f32 %v9574_v2, %v13275_v14  ;;  %10469 = vrot.lane.b32.xlu0 %v10458_v12, %s16112_s26  ;;  %v2418_v42 = vpop.f32.mrb[11].mxu0 }
 0x222   : > { %10464 = vrot.lane.b32.xlu1 %v10463_v1, %s16088_s30  ;;  %v13465_v9 = vadd.f32 %v13287_v4, %v2523_v27  ;;  %v2524_v30 = vmul.f32 %v13275_v14, %v2418_v42 }
 0x223   : > { %16119 = vst [vmem:[#allocation18_spill] sm:$0xff] %v13459_v6  ;;  %v16034_v10 = vmax.f32 %v13459_v6, 0.0  ;;  %v13470_v11 = vadd.f32 %v13287_v4, %v2526_v8 }
 0x224   : > { %16120 = vst [vmem:[#allocation19_spill] sm:$0xff] %v13465_v9  ;;  %v16038_v41 = vmax.f32 %v13465_v9, 0.0  ;;  %v13476_v16 = vadd.f32 %v13287_v4, %v2524_v30 }
 0x225   : > { %16121 = vst [vmem:[#allocation20_spill] sm:$0xff] %v13470_v11  ;;  %2682 = vst.msk [vmem:[#allocation3 + $0x91] sm:$0xff] %vm2013_vm2, %v16034_v10  ;;  %v16033_v57 = vmax.f32 %v13470_v11, 0.0  ;;  %10479 = vrot.lane.b32.xlu0 %v10478_v59, %s16090_s21 }
 0x226   : > { %16122 = vst [vmem:[#allocation21_spill] sm:$0xff] %v13476_v16  ;;  %10474 = vrot.lane.b32.xlu1 %v10463_v1, %s16114_s0  ;;  %2680 = vst.msk [vmem:[#allocation3 + $0x79] sm:$0xff] %vm2013_vm2, %v16038_v41  ;;  %v16035_v15 = vmax.f32 %v13476_v16, 0.0 }
 0x227   : > { %2683 = vst.msk [vmem:[#allocation3 + $0x99] sm:$0xff] %vm2013_vm2, %v16033_v57 }
 0x228   : > { %2681 = vst.msk [vmem:[#allocation3 + $0x81] sm:$0xff] %vm2013_vm2, %v16035_v15 }
 0x229   : > { %10489 = vrot.lane.b32.xlu0 %v10478_v59, %s16110_s23 }
 0x22a   : > { %10484 = vrot.lane.b32.xlu1 %v10463_v1, %s16108_s29 }
 0x22c   : > { %v2937_v58 = vld [vmem:[#allocation3 + $0x91] sm:$0xff] }
 0x22d   : > { %v2905_v20 = vld [vmem:[#allocation3 + $0x90] sm:$0xff]  ;;  %v2903_v28 = vld [vmem:[#allocation3 + $0x78] sm:$0xff] }
 0x22e   : > { %v2938_v62 = vld [vmem:[#allocation3 + $0x99] sm:$0xff] }
 0x22f   : > { %v2906_v24 = vld [vmem:[#allocation3 + $0x98] sm:$0xff]  ;;  %v10498_v38 = vpack.i.bf16 %v2938_v62, %v2937_v58  ;;  %v13498_v49 = vld [vmem:[#allocation3 + $0x82] sm:$0xff] }
 0x230   : > { %v10493_v39 = vpack.i.bf16 %v2906_v24, %v2905_v20  ;;  %v13496_v45 = vld [vmem:[#allocation3 + $0x7a] sm:$0xff]  ;;  %v2874_v12 = vld [vmem:[#allocation3 + $0x92] sm:$0xff] }
 0x231   : > { %10499 = vrot.lane.b32.xlu0 %v10498_v38, %s16088_s30  ;;  %v2875_v34 = vld [vmem:[#allocation3 + $0x9a] sm:$0xff] }
 0x232   : > { %10494 = vrot.lane.b32.xlu1 %v10493_v39, %s16118_s24  ;;  %v10513_v56 = vpack.i.bf16 %v2875_v34, %v2874_v12  ;;  %v2904_v60 = vld [vmem:[#allocation3 + $0x80] sm:$0xff] }
 0x233   : > { %v10528_v61 = vpack.i.bf16 %v2904_v60, %v2903_v28  ;;  %v2936_v1 = vld [vmem:[#allocation3 + $0x81] sm:$0xff]  ;;  %v2935_v2 = vld [vmem:[#allocation3 + $0x79] sm:$0xff] }
 0x234   : > { %v10533_v30 = vpack.i.bf16 %v2936_v1, %v2935_v2 }
 0x235   : > { %10509 = vrot.lane.b32.xlu0 %v10498_v38, %s16114_s0 }
 0x236   : > { %10504 = vrot.lane.b32.xlu1 %v10493_v39, %s16112_s26 }
 0x239   : > { %10519 = vrot.lane.b32.xlu0 %v10498_v38, %s16108_s29 }
 0x23a   : > { %10514 = vrot.lane.b32.xlu1 %v10513_v56, %s16090_s21 }
 0x23d   : > { %10529 = vrot.lane.b32.xlu0 %v10528_v61, %s16118_s24 }
 0x23e   : > { %10524 = vrot.lane.b32.xlu1 %v10513_v56, %s16110_s23  ;;  %v9577_v27 = vpop.f32.mrb[12].mxu0  ;;  %v10548_v56 = vpack.i.bf16 %v13498_v49, %v13496_v45 }
 0x23f   : > { %v2529_v8 = vmul.f32 %v9577_v27, %v13275_v14  ;;  %v2431_v42 = vpop.f32.mrb[13].mxu0 }
 0x240   : > { %v2527_v59 = vmul.f32 %v13275_v14, %v2431_v42  ;;  %v9578_v58 = vpop.f32.mrb[14].mxu0 }
 0x241   : > { %v13513_v62 = vadd.f32 %v13287_v4, %v2529_v8  ;;  %v2530_v20 = vmul.f32 %v9578_v58, %v13275_v14  ;;  %10539 = vrot.lane.b32.xlu0 %v10528_v61, %s16112_s26  ;;  %v2434_v24 = vpop.f32.mrb[15].mxu0 }
 0x242   : > { %10534 = vrot.lane.b32.xlu1 %v10533_v30, %s16088_s30  ;;  %v13519_v38 = vadd.f32 %v13287_v4, %v2527_v59  ;;  %v2528_v39 = vmul.f32 %v13275_v14, %v2434_v24 }
 0x243   : > { %16123 = vst [vmem:[#allocation22_spill] sm:$0xff] %v13513_v62  ;;  %v16030_v12 = vmax.f32 %v13513_v62, 0.0  ;;  %v13524_v34 = vadd.f32 %v13287_v4, %v2530_v20 }
 0x244   : > { %16124 = vst [vmem:[#allocation23_spill] sm:$0xff] %v13519_v38  ;;  %v16032_v60 = vmax.f32 %v13519_v38, 0.0  ;;  %v13530_v28 = vadd.f32 %v13287_v4, %v2528_v39 }
 0x245   : > { %16125 = vst [vmem:[#allocation24_spill] sm:$0xff] %v13524_v34  ;;  %2686 = vst.msk [vmem:[#allocation3 + $0xc1] sm:$0xff] %vm2013_vm2, %v16030_v12  ;;  %v16029_v61 = vmax.f32 %v13524_v34, 0.0  ;;  %10549 = vrot.lane.b32.xlu0 %v10548_v56, %s16090_s21 }
 0x246   : > { %16126 = vst [vmem:[#allocation25_spill] sm:$0xff] %v13530_v28  ;;  %10544 = vrot.lane.b32.xlu1 %v10533_v30, %s16114_s0  ;;  %2684 = vst.msk [vmem:[#allocation3 + $0xa9] sm:$0xff] %vm2013_vm2, %v16032_v60  ;;  %v16031_v1 = vmax.f32 %v13530_v28, 0.0 }
 0x247   : > { %2687 = vst.msk [vmem:[#allocation3 + $0xc9] sm:$0xff] %vm2013_vm2, %v16029_v61  ;;  %v10355_v61 = vpop.permute.xlu0 %10354 }
 0x248   : > { %2685 = vst.msk [vmem:[#allocation3 + $0xb1] sm:$0xff] %vm2013_vm2, %v16031_v1  ;;  %v10360_v1 = vpop.permute.xlu1 %10359  ;;  %v10356_v41 = vunpack.i.l.bf16 %v10355_v61 }
 0x249   : > { %10559 = vrot.lane.b32.xlu0 %v10548_v56, %s16110_s23  ;;  %v10362_v47 = vunpack.i.h.bf16 %v10360_v1 }
 0x24a   : > { %10554 = vrot.lane.b32.xlu1 %v10533_v30, %s16108_s29 }
 0x24c   : > { %v2941_v27 = vld [vmem:[#allocation3 + $0xc1] sm:$0xff] }
 0x24d   : > { %v2909_v8 = vld [vmem:[#allocation3 + $0xc0] sm:$0xff]  ;;  %v2939_v60 = vld [vmem:[#allocation3 + $0xa9] sm:$0xff] }
 0x24e   : > { %v2942_v2 = vld [vmem:[#allocation3 + $0xc9] sm:$0xff] }
 0x24f   : > { %v2910_v42 = vld [vmem:[#allocation3 + $0xc8] sm:$0xff]  ;;  %v10568_v59 = vpack.i.bf16 %v2942_v2, %v2941_v27  ;;  %v13552_v24 = vld [vmem:[#allocation3 + $0xb2] sm:$0xff] }
 0x250   : > { %v10563_v58 = vpack.i.bf16 %v2910_v42, %v2909_v8  ;;  %v13550_v20 = vld [vmem:[#allocation3 + $0xaa] sm:$0xff]  ;;  %v2878_v56 = vld [vmem:[#allocation3 + $0xc2] sm:$0xff] }
 0x251   : > { %10569 = vrot.lane.b32.xlu0 %v10568_v59, %s16088_s30  ;;  %v2879_v0 = vld [vmem:[#allocation3 + $0xca] sm:$0xff] }
 0x252   : > { %10564 = vrot.lane.b32.xlu1 %v10563_v58, %s16118_s24  ;;  %v10583_v30 = vpack.i.bf16 %v2879_v0, %v2878_v56  ;;  %v2908_v27 = vld [vmem:[#allocation3 + $0xb0] sm:$0xff]  ;;  %v2907_v2 = vld [vmem:[#allocation3 + $0xa8] sm:$0xff] }
 0x253   : > { %v10598_v8 = vpack.i.bf16 %v2908_v27, %v2907_v2  ;;  %v2940_v42 = vld [vmem:[#allocation3 + $0xb1] sm:$0xff] }
 0x254   : > { %v10603_v0 = vpack.i.bf16 %v2940_v42, %v2939_v60 }
 0x255   : > { %10579 = vrot.lane.b32.xlu0 %v10568_v59, %s16114_s0 }
 0x256   : > { %10574 = vrot.lane.b32.xlu1 %v10563_v58, %s16112_s26 }
 0x259   : > { %10589 = vrot.lane.b32.xlu0 %v10568_v59, %s16108_s29 }
 0x25a   : > { %10584 = vrot.lane.b32.xlu1 %v10583_v30, %s16090_s21 }
 0x25d   : > { %10599 = vrot.lane.b32.xlu0 %v10598_v8, %s16118_s24 }
 0x25e   : > { %10594 = vrot.lane.b32.xlu1 %v10583_v30, %s16110_s23  ;;  %v9581_v12 = vpop.f32.mrb[16].mxu0 }
 0x25f   : > { %v2533_v57 = vmul.f32 %v9581_v12, %v13275_v14  ;;  %v2447_v58 = vpop.f32.mrb[17].mxu0 }
 0x260   : > { %v2531_v56 = vmul.f32 %v13275_v14, %v2447_v58  ;;  %v9582_v10 = vpop.f32.mrb[18].mxu0 }
 0x261   : > { %v13567_v59 = vadd.f32 %v13287_v4, %v2533_v57  ;;  %v2534_v27 = vmul.f32 %v9582_v10, %v13275_v14  ;;  %10609 = vrot.lane.b32.xlu0 %v10598_v8, %s16112_s26  ;;  %v2450_v30 = vpop.f32.mrb[19].mxu0  ;;  %v10618_v10 = vpack.i.bf16 %v13552_v24, %v13550_v20 }
 0x262   : > { %10604 = vrot.lane.b32.xlu1 %v10603_v0, %s16088_s30  ;;  %v13573_v2 = vadd.f32 %v13287_v4, %v2531_v56  ;;  %v2532_v12 = vmul.f32 %v13275_v14, %v2450_v30 }
 0x263   : > { %16127 = vst [vmem:[#allocation26_spill] sm:$0xff] %v13567_v59  ;;  %v16036_v60 = vmax.f32 %v13567_v59, 0.0  ;;  %v13578_v42 = vadd.f32 %v13287_v4, %v2534_v27 }
 0x264   : > { %16128 = vst [vmem:[#allocation27_spill] sm:$0xff] %v13573_v2  ;;  %v13580_v58 = vpop.permute.xlu0 %10369  ;;  %v16037_v57 = vmax.f32 %v13573_v2, 0.0  ;;  %v13586_v8 = vadd.f32 %v13287_v4, %v2532_v12 }
 0x265   : > { %16129 = vst [vmem:[#allocation28_spill] sm:$0xff] %v13578_v42  ;;  %v13588_v15 = vpop.permute.xlu1 %10364  ;;  %2690 = vst.msk [vmem:[#allocation3 + $0xf1] sm:$0xff] %vm2013_vm2, %v16036_v60  ;;  %v16041_v56 = vmax.f32 %v13578_v42, 0.0  ;;  %10619 = vrot.lane.b32.xlu0 %v10618_v10, %s16090_s21  ;;  %v10371_v2 = vunpack.i.l.bf16 %v13580_v58 }
 0x266   : > { %16130 = vst [vmem:[#allocation29_spill] sm:$0xff] %v13586_v8  ;;  %10614 = vrot.lane.b32.xlu1 %v10603_v0, %s16114_s0  ;;  %2688 = vst.msk [vmem:[#allocation3 + $0xd9] sm:$0xff] %vm2013_vm2, %v16037_v57  ;;  %v16047_v27 = vmax.f32 %v13586_v8, 0.0  ;;  %v10357_v57 = vunpack.i.h.bf16 %v10355_v61 }
 0x267   : > { %2691 = vst.msk [vmem:[#allocation3 + $0xf9] sm:$0xff] %vm2013_vm2, %v16041_v56  ;;  %v2705_v56 = vld [vmem:[#allocation3 + $0x8] sm:$0xff] }
 0x268   : > { %v13603_v30 = vpop.permute.xlu0 %10379  ;;  %2689 = vst.msk [vmem:[#allocation3 + $0xe1] sm:$0xff] %vm2013_vm2, %v16047_v27  ;;  %v10361_v27 = vunpack.i.l.bf16 %v10360_v1 }
 0x269   : > { %v13608_v12 = vpop.permute.xlu1 %10374  ;;  %10629 = vrot.lane.b32.xlu0 %v10618_v10, %s16110_s23  ;;  %v3890_v10 = vsel %vm2013_vm2, %v2705_v56, %v10357_v57 }
 0x26a   : > { %10624 = vrot.lane.b32.xlu1 %v10603_v0, %s16108_s29  ;;  %v3889_v0 = vsel %vm2013_vm2, %v2704_v25, %v10356_v41 }
 0x26c   : > { %v13612_v60 = vpop.permute.xlu0 %10389  ;;  %v2945_v37 = vld [vmem:[#allocation3 + $0xf1] sm:$0xff] }
 0x26d   : > { %v13614_v36 = vpop.permute.xlu1 %10384  ;;  %v2913_v40 = vld [vmem:[#allocation3 + $0xf0] sm:$0xff] }
 0x26e   : > { %v2946_v44 = vld [vmem:[#allocation3 + $0xf9] sm:$0xff] }
 0x26f   : > { %v2914_v48 = vld [vmem:[#allocation3 + $0xf8] sm:$0xff]  ;;  %v10638_v26 = vpack.i.bf16 %v2946_v44, %v2945_v37  ;;  %v13622_v52 = vld [vmem:[#allocation3 + $0xe2] sm:$0xff]  ;;  %v10372_v44 = vunpack.i.h.bf16 %v13580_v58 }
 0x270   : > { %v10400_v33 = vpop.permute.xlu0 %10399  ;;  %v10633_v39 = vpack.i.bf16 %v2914_v48, %v2913_v40  ;;  %v13620_v61 = vld [vmem:[#allocation3 + $0xda] sm:$0xff]  ;;  %v3921_v48 = vsel %vm2079_vm3, %v3889_v0, %v10361_v27  ;;  %v3922_v40 = vsel %vm2079_vm3, %v3890_v10, %v10362_v47  ;;  %v2882_v57 = vld [vmem:[#allocation3 + $0xf2] sm:$0xff]  ;;  %v10366_v10 = vunpack.i.l.bf16 %v13588_v15 }
 0x271   : > { %v13618_v63 = vpop.permute.xlu1 %10394  ;;  %10639 = vrot.lane.b32.xlu0 %v10638_v26, %s16088_s30  ;;  %v10402_v53 = vunpack.i.h.bf16 %v10400_v33  ;;  %v10401_v42 = vunpack.i.l.bf16 %v10400_v33  ;;  %v2883_v56 = vld [vmem:[#allocation3 + $0xfa] sm:$0xff]  ;;  %v10367_v33 = vunpack.i.h.bf16 %v13588_v15 }
 0x272   : > { %10634 = vrot.lane.b32.xlu1 %v10633_v39, %s16118_s24 }
 0x273   : > { %v3954_v27 = vsel %vm2145_vm7, %v3922_v40, %v10402_v53  ;;  %v3953_v47 = vsel %vm2145_vm7, %v3921_v48, %v10401_v42  ;;  %v2912_v42 = vld [vmem:[#allocation3 + $0xe0] sm:$0xff]  ;;  %v2911_v40 = vld [vmem:[#allocation3 + $0xd8] sm:$0xff] }
 0x274   : > { %v10410_v25 = vpop.permute.xlu0 %10409  ;;  %v10668_v58 = vpack.i.bf16 %v2912_v42, %v2911_v40  ;;  %v10688_v42 = vpack.i.bf16 %v13622_v52, %v13620_v61 }
 0x275   : > { %v10405_v37 = vpop.permute.xlu1 %10404  ;;  %v10412_v41 = vunpack.i.h.bf16 %v10410_v25  ;;  %v10411_v1 = vunpack.i.l.bf16 %v10410_v25  ;;  %10649 = vrot.lane.b32.xlu0 %v10638_v26, %s16114_s0 }
 0x276   : > { %v10407_v59 = vunpack.i.h.bf16 %v10405_v37  ;;  %v10406_v8 = vunpack.i.l.bf16 %v10405_v37  ;;  %10644 = vrot.lane.b32.xlu1 %v10633_v39, %s16112_s26  ;;  %v10653_v37 = vpack.i.bf16 %v2883_v56, %v2882_v57  ;;  %v2944_v57 = vld [vmem:[#allocation3 + $0xe1] sm:$0xff] }
 0x278   : > { %v3985_v0 = vsel %vm2211_vm9, %v3953_v47, %v10406_v8  ;;  %v3986_v25 = vsel %vm2211_vm9, %v3954_v27, %v10407_v59 }
 0x279   : > { %v4018_v39 = vsel %vm4017_vm12, %v3985_v0, %v10411_v1  ;;  %v4019_v34 = vsel %vm4017_vm12, %v3986_v25, %v10412_v41  ;;  %10659 = vrot.lane.b32.xlu0 %v10638_v26, %s16108_s29  ;;  %v10420_v41 = vpop.permute.xlu0 %10419  ;;  %v16131_v26 = vpack.c.bf16 %v13434_v51, %v13432_v21  ;;  %v2943_v1 = vld [vmem:[#allocation3 + $0xd9] sm:$0xff] }
 0x27a   : > { %10654 = vrot.lane.b32.xlu1 %v10653_v37, %s16090_s21  ;;  %v4051_v53 = vsel %vm4050_vm13, %v4018_v39, %v10366_v10  ;;  %v4052_v15 = vsel %vm4050_vm13, %v4019_v34, %v10367_v33  ;;  %v10673_v33 = vpack.i.bf16 %v2944_v57, %v2943_v1 }
 0x27b   : > { %v4084_v59 = vsel %vm4083_vm14, %v4051_v53, %v10371_v2  ;;  %v4085_v8 = vsel %vm4083_vm14, %v4052_v15, %v10372_v44  ;;  %v10415_v2 = vpop.permute.xlu1 %10414 }
 0x27c   : > { %v4116_v48 = vpack.c.bf16 %v4085_v8, %v4084_v59  ;;  %v10417_v59 = vunpack.i.h.bf16 %v10415_v2  ;;  %v10416_v8 = vunpack.i.l.bf16 %v10415_v2 }
 0x27d   : > { %10669 = vrot.lane.b32.xlu0 %v10668_v58, %s16118_s24 }
 0x27e   : > { %4301 = vmatmul.mubr.bf16.vlgmr.msra.gmra.mrb[0].mxu1 %v4116_v48  ;;  %10664 = vrot.lane.b32.xlu1 %v10653_v37, %s16110_s23  ;;  %v9585_v34 = vpop.f32.mrb[20].mxu0 }
 0x27f   : > { %9255 = vmatprep.mubr.msk.bf16.mxu1 %vm2013_vm2, %v16131_v26  ;;  %v2537_v44 = vmul.f32 %v9585_v34, %v13275_v14  ;;  %v2463_v56 = vpop.f32.mrb[21].mxu0  ;;  %v10422_v26 = vunpack.i.h.bf16 %v10420_v41  ;;  %v10421_v34 = vunpack.i.l.bf16 %v10420_v41 }
 0x280   : > { %v2535_v27 = vmul.f32 %v13275_v14, %v2463_v56  ;;  %v9586_v47 = vpop.f32.mrb[22].mxu0  ;;  %v3892_v56 = vsel %vm2013_vm2, %v13372_v3, %v10417_v59  ;;  %v10376_v3 = vunpack.i.l.bf16 %v13608_v12 }
 0x281   : > { %v13657_v10 = vadd.f32 %v13287_v4, %v2537_v44  ;;  %v2538_v0 = vmul.f32 %v9586_v47, %v13275_v14  ;;  %v2466_v21 = vpop.f32.mrb[23].mxu0  ;;  %10679 = vrot.lane.b32.xlu0 %v10668_v58, %s16112_s26  ;;  %v3891_v44 = vsel %vm2013_vm2, %v13379_v7, %v10416_v8  ;;  %v10377_v7 = vunpack.i.h.bf16 %v13608_v12 }
 0x282   : > { %10674 = vrot.lane.b32.xlu1 %v10673_v33, %s16088_s30  ;;  %v13662_v51 = vadd.f32 %v13287_v4, %v2535_v27  ;;  %v2536_v25 = vmul.f32 %v13275_v14, %v2466_v21  ;;  %v3923_v41 = vsel %vm2079_vm3, %v3891_v44, %v10421_v34  ;;  %v3924_v27 = vsel %vm2079_vm3, %v3892_v56, %v10422_v26 }
 0x283   : > { %16132 = vst [vmem:[#allocation30_spill] sm:$0xff] %v13657_v10  ;;  %v16057_v37 = vmax.f32 %v13657_v10, 0.0  ;;  %v13668_v39 = vadd.f32 %v13287_v4, %v2538_v0  ;;  %v13670_v53 = vpop.permute.xlu0 %10429  ;;  %v3956_v59 = vsel %vm2145_vm7, %v3924_v27, %v10377_v7  ;;  %v10382_v34 = vunpack.i.h.bf16 %v13603_v30 }
 0x284   : > { %16133 = vst [vmem:[#allocation31_spill] sm:$0xff] %v13662_v51  ;;  %v13672_v15 = vpop.permute.xlu1 %10424  ;;  %v16059_v48 = vmax.f32 %v13662_v51, 0.0  ;;  %v13678_v40 = vadd.f32 %v13287_v4, %v2536_v25  ;;  %v3955_v25 = vsel %vm2145_vm7, %v3923_v41, %v10376_v3  ;;  %v10381_v26 = vunpack.i.l.bf16 %v13603_v30 }
 0x285   : > { %16134 = vst [vmem:[#allocation32_spill] sm:$0xff] %v13668_v39  ;;  %2694 = vst.msk [vmem:[#allocation3 + $0x121] sm:$0xff] %vm2013_vm2, %v16057_v37  ;;  %v16056_v58 = vmax.f32 %v13668_v39, 0.0  ;;  %10689 = vrot.lane.b32.xlu0 %v10688_v42, %s16090_s21  ;;  %v10392_v41 = vunpack.i.h.bf16 %v13612_v60  ;;  %v10391_v27 = vunpack.i.l.bf16 %v13612_v60  ;;  %v10387_v60 = vunpack.i.h.bf16 %v13614_v36 }
 0x286   : > { %16135 = vst [vmem:[#allocation33_spill] sm:$0xff] %v13678_v40  ;;  %10684 = vrot.lane.b32.xlu1 %v10673_v33, %s16114_s0  ;;  %2692 = vst.msk [vmem:[#allocation3 + $0x109] sm:$0xff] %vm2013_vm2, %v16059_v48  ;;  %v16058_v57 = vmax.f32 %v13678_v40, 0.0  ;;  %v10396_v40 = vunpack.i.l.bf16 %v13618_v63 }
 0x287   : > { %2695 = vst.msk [vmem:[#allocation3 + $0x129] sm:$0xff] %vm2013_vm2, %v16056_v58  ;;  %v13693_v1 = vpop.permute.xlu0 %10439 }
 0x288   : > { %v13695_v2 = vpop.permute.xlu1 %10434  ;;  %2693 = vst.msk [vmem:[#allocation3 + $0x111] sm:$0xff] %vm2013_vm2, %v16058_v57 }
 0x289   : > { %10699 = vrot.lane.b32.xlu0 %v10688_v42, %s16110_s23 }
 0x28a   : > { %10694 = vrot.lane.b32.xlu1 %v10673_v33, %s16108_s29 }
 0x28b   : > { %v13710_v0 = vpop.permute.xlu0 %10449 }
 0x28c   : > { %v13708_v47 = vpop.permute.xlu1 %10444  ;;  %v2949_v21 = vld [vmem:[#allocation3 + $0x121] sm:$0xff] }
 0x28d   : > { %v2917_v8 = vld [vmem:[#allocation3 + $0x120] sm:$0xff]  ;;  %v2947_v51 = vld [vmem:[#allocation3 + $0x109] sm:$0xff] }
 0x28e   : > { %v2950_v33 = vld [vmem:[#allocation3 + $0x129] sm:$0xff] }
 0x28f   : > { %v2918_v42 = vld [vmem:[#allocation3 + $0x128] sm:$0xff]  ;;  %v10460_v56 = vpop.permute.xlu0 %10459  ;;  %v13720_v58 = vpack.i.bf16 %v2950_v33, %v2949_v21  ;;  %v2948_v12 = vld [vmem:[#allocation3 + $0x111] sm:$0xff]  ;;  %v3987_v21 = vsel %vm2211_vm9, %v3955_v25, %v10381_v26  ;;  %v3988_v33 = vsel %vm2211_vm9, %v3956_v59, %v10382_v34 }
 0x290   : > { %v13718_v44 = vpop.permute.xlu1 %10454  ;;  %v13722_v37 = vpack.i.bf16 %v2918_v42, %v2917_v8  ;;  %v2916_v57 = vld [vmem:[#allocation3 + $0x110] sm:$0xff]  ;;  %v13724_v48 = vld [vmem:[#allocation3 + $0x122] sm:$0xff]  ;;  %v10462_v39 = vunpack.i.h.bf16 %v10460_v56  ;;  %v10461_v10 = vunpack.i.l.bf16 %v10460_v56  ;;  %v10386_v8 = vunpack.i.l.bf16 %v13614_v36 }
 0x291   : > { %v13728_v7 = vld [vmem:[#allocation3 + $0x10a] sm:$0xff]  ;;  %v13730_v3 = vld [vmem:[#allocation3 + $0x112] sm:$0xff]  ;;  %10709 = vrot.lane.b32.xlu0 %v13720_v58, %s16088_s30  ;;  %v10397_v42 = vunpack.i.h.bf16 %v13618_v63  ;;  %v10718_v38 = vpack.i.bf16 %v2948_v12, %v2947_v51  ;;  %v4021_v26 = vsel %vm4017_vm12, %v3988_v33, %v10387_v60  ;;  %v3893_v12 = vsel %vm2013_vm2, %v13352_v29, %v10391_v27 }
 0x292   : > { %v13732_v30 = vld [vmem:[#allocation3 + $0x12a] sm:$0xff]  ;;  %10704 = vrot.lane.b32.xlu1 %v13722_v37, %s16118_s24  ;;  %v4020_v36 = vsel %vm4017_vm12, %v3987_v21, %v10386_v8 }
 0x293   : > { %v2915_v56 = vld [vmem:[#allocation3 + $0x108] sm:$0xff]  ;;  %v10470_v28 = vpop.permute.xlu0 %10469  ;;  %v4053_v51 = vsel %vm4050_vm13, %v4020_v36, %v10461_v10 }
 0x294   : > { %v10465_v62 = vpop.permute.xlu1 %10464  ;;  %v10713_v11 = vpack.i.bf16 %v2916_v57, %v2915_v56  ;;  %v10472_v16 = vunpack.i.h.bf16 %v10470_v28  ;;  %v10471_v63 = vunpack.i.l.bf16 %v10470_v28  ;;  %v4054_v57 = vsel %vm4050_vm13, %v4021_v26, %v10462_v39 }
 0x295   : > { %v10467_v59 = vunpack.i.h.bf16 %v10465_v62  ;;  %v10466_v34 = vunpack.i.l.bf16 %v10465_v62  ;;  %v3894_v62 = vsel %vm2013_vm2, %v13354_v46, %v10392_v41  ;;  %v3925_v28 = vsel %vm2079_vm3, %v3893_v12, %v10396_v40 }
 0x296   : > { %10719 = vrot.lane.b32.xlu1 %v10718_v38, %s16088_s30  ;;  %10714 = vrot.lane.b32.xlu0 %v10713_v11, %s16118_s24  ;;  %v3926_v60 = vsel %vm2079_vm3, %v3894_v62, %v10397_v42  ;;  %v3957_v27 = vsel %vm2145_vm7, %v3925_v28, %v10471_v63  ;;  %v16136_v41 = vpack.c.bf16 %v13430_v50, %v13426_v5  ;;  %v10427_v42 = vunpack.i.h.bf16 %v13672_v15 }
 0x297   : > { %v4086_v21 = vsel %vm4083_vm14, %v4053_v51, %v10466_v34  ;;  %v4087_v33 = vsel %vm4083_vm14, %v4054_v57, %v10467_v59  ;;  %v10480_v56 = vpop.permute.xlu0 %10479  ;;  %v3958_v29 = vsel %vm2145_vm7, %v3926_v60, %v10472_v16  ;;  %v10426_v16 = vunpack.i.l.bf16 %v13672_v15 }
 0x298   : > { %v10475_v8 = vpop.permute.xlu1 %10474  ;;  %v4118_v25 = vpack.c.bf16 %v4087_v33, %v4086_v21  ;;  %v10482_v39 = vunpack.i.h.bf16 %v10480_v56  ;;  %v10481_v26 = vunpack.i.l.bf16 %v10480_v56  ;;  %v10432_v34 = vunpack.i.h.bf16 %v13670_v53 }
 0x299   : > { %v10477_v10 = vunpack.i.h.bf16 %v10475_v8  ;;  %v10476_v36 = vunpack.i.l.bf16 %v10475_v8  ;;  %v10431_v63 = vunpack.i.l.bf16 %v13670_v53 }
 0x29a   : > { %4309 = vmatmul.mubr.bf16.gmra.mrb[4].mxu1 %v4118_v25  ;;  %10729 = vrot.lane.b32.xlu1 %v10718_v38, %s16114_s0 }
 0x29b   : > { %v3989_v46 = vsel %vm2211_vm9, %v3957_v27, %v10476_v36  ;;  %v3990_v40 = vsel %vm2211_vm9, %v3958_v29, %v10477_v10  ;;  %10724 = vrot.lane.b32.xlu0 %v10713_v11, %s16112_s26  ;;  %9256 = vmatprep.mubr.msk.bf16.mxu1 %vm2013_vm2, %v16136_v41  ;;  %v10733_v11 = vpack.i.bf16 %v13730_v3, %v13728_v7  ;;  %v10490_v51 = vpop.permute.xlu0 %10489  ;;  %v13801_v36 = vld [vmem:[%s16116_s2] ss:$0 sm:$0xff] }
 0x29c   : > { %v4022_v59 = vsel %vm4017_vm12, %v3989_v46, %v10481_v26  ;;  %v4023_v25 = vsel %vm4017_vm12, %v3990_v40, %v10482_v39  ;;  %v10485_v62 = vpop.permute.xlu1 %10484 }
 0x29d   : > { %v4055_v5 = vsel %vm4050_vm13, %v4022_v59, %v10426_v16  ;;  %v4056_v50 = vsel %vm4050_vm13, %v4023_v25, %v10427_v42  ;;  %v10487_v26 = vunpack.i.h.bf16 %v10485_v62  ;;  %v10486_v29 = vunpack.i.l.bf16 %v10485_v62 }
 0x29e   : > { %10739 = vrot.lane.b32.xlu1 %v10718_v38, %s16108_s29  ;;  %v9589_v15 = vpop.f32.mrb[24].mxu0  ;;  %v4088_v57 = vsel %vm4083_vm14, %v4055_v5, %v10431_v63  ;;  %v4089_v12 = vsel %vm4083_vm14, %v4056_v50, %v10432_v34  ;;  %v10492_v16 = vunpack.i.h.bf16 %v10490_v51  ;;  %v10491_v59 = vunpack.i.l.bf16 %v10490_v51 }
 0x29f   : > { %10734 = vrot.lane.b32.xlu0 %v10733_v11, %s16090_s21  ;;  %v2541_v53 = vmul.f32 %v9589_v15, %v13275_v14  ;;  %v2479_v21 = vpop.f32.mrb[25].mxu0  ;;  %v4120_v33 = vpack.c.bf16 %v4089_v12, %v4088_v57  ;;  %v3895_v34 = vsel %vm2013_vm2, %v13450_v55, %v10486_v29  ;;  %v3896_v63 = vsel %vm2013_vm2, %v13446_v54, %v10487_v26 }
 0x2a0   : > { %v2539_v28 = vmul.f32 %v13275_v14, %v2479_v21  ;;  %v9590_v38 = vpop.f32.mrb[26].mxu0  ;;  %v3927_v50 = vsel %vm2079_vm3, %v3895_v34, %v10491_v59  ;;  %v3928_v51 = vsel %vm2079_vm3, %v3896_v63, %v10492_v16  ;;  %v10437_v55 = vunpack.i.h.bf16 %v13695_v2  ;;  %v2970_v21 = vld [vmem:[#allocation3 + $0x9a] sm:$0xff] }
 0x2a1   : > { %v13789_v60 = vadd.f32 %v13287_v4, %v2541_v53  ;;  %v2542_v8 = vmul.f32 %v9590_v38, %v13275_v14  ;;  %v2482_v56 = vpop.f32.mrb[27].mxu0  ;;  %v16139_v14 = vpack.c.bf16 %v13498_v49, %v13496_v45  ;;  %v13824_v45 = vld [vmem:[%s16116_s2 + $0x1] ss:$0 sm:$0xff]  ;;  %v10436_v54 = vunpack.i.l.bf16 %v13695_v2  ;;  %v2969_v53 = vld [vmem:[#allocation3 + $0x92] sm:$0xff] }
 0x2a2   : > { %4317 = vmatmul.mubr.bf16.gmra.mrb[8].mxu1 %v4120_v33  ;;  %10749 = vrot.lane.b32.xlu1 %v13722_v37, %s16112_s26  ;;  %v13795_v10 = vadd.f32 %v13287_v4, %v2539_v28  ;;  %v2540_v39 = vmul.f32 %v13801_v36, %v2482_v56  ;;  %v13810_v37 = vpack.i.bf16 %v13732_v30, %v13724_v48  ;;  %v10442_v33 = vunpack.i.h.bf16 %v13693_v1 }
 0x2a3   : > { %16137 = vst [vmem:[#allocation34_spill] sm:$0xff] %v13789_v60  ;;  %10744 = vrot.lane.b32.xlu0 %v10733_v11, %s16110_s23  ;;  %9257 = vmatprep.mubr.msk.bf16.mxu1 %vm2013_vm2, %v16139_v14  ;;  %v16071_v27 = vmax.f32 %v13789_v60, 0.0  ;;  %v13814_v46 = vadd.f32 %v13287_v4, %v2542_v8  ;;  %v13816_v40 = vpop.permute.xlu0 %10499  ;;  %v3959_v12 = vsel %vm2145_vm7, %v3927_v50, %v10436_v54  ;;  %v10441_v28 = vunpack.i.l.bf16 %v13693_v1 }
 0x2a4   : > { %16138 = vst [vmem:[#allocation35_spill] sm:$0xff] %v13795_v10  ;;  %v13818_v41 = vpop.permute.xlu1 %10494  ;;  %v16073_v42 = vmax.f32 %v13795_v10, 0.0  ;;  %v13827_v49 = vadd.f32 %v13824_v45, %v2540_v39  ;;  %v3960_v62 = vsel %vm2145_vm7, %v3928_v51, %v10437_v55  ;;  %v4125_v59 = vpack.c.bf16 %v2970_v21, %v2969_v53 }
 0x2a5   : > { %16140 = vst [vmem:[#allocation36_spill] sm:$0xff] %v13814_v46  ;;  %2698 = vst.msk [vmem:[#allocation3 + $0x151] sm:$0xff] %vm2013_vm2, %v16071_v27  ;;  %v16070_v4 = vmax.f32 %v13814_v46, 0.0  ;;  %v3991_v29 = vsel %vm2211_vm9, %v3959_v12, %v10441_v28  ;;  %v3992_v16 = vsel %vm2211_vm9, %v3960_v62, %v10442_v33  ;;  %v10446_v12 = vunpack.i.l.bf16 %v13708_v47 }
 0x2a6   : > { %16141 = vst [vmem:[#allocation37_spill] sm:$0xff] %v13827_v49  ;;  %10759 = vrot.lane.b32.xlu1 %v13810_v37, %s16090_s21  ;;  %2696 = vst.msk [vmem:[#allocation3 + $0x139] sm:$0xff] %vm2013_vm2, %v16073_v42  ;;  %v16072_v25 = vmax.f32 %v13827_v49, 0.0  ;;  %v10452_v62 = vunpack.i.h.bf16 %v13710_v0  ;;  %v10451_v53 = vunpack.i.l.bf16 %v13710_v0  ;;  %v10457_v21 = vunpack.i.h.bf16 %v13718_v44 }
 0x2a7   : > { %10754 = vrot.lane.b32.xlu0 %v13720_v58, %s16114_s0  ;;  %2699 = vst.msk [vmem:[#allocation3 + $0x159] sm:$0xff] %vm2013_vm2, %v16070_v4  ;;  %v13848_v11 = vpop.permute.xlu0 %10509  ;;  %v10447_v4 = vunpack.i.h.bf16 %v13708_v47  ;;  %v10456_v33 = vunpack.i.l.bf16 %v13718_v44  ;;  %v4024_v0 = vsel %vm4017_vm12, %v3991_v29, %v10446_v12 }
 0x2a8   : > { %v13850_v5 = vpop.permute.xlu1 %10504  ;;  %2697 = vst.msk [vmem:[#allocation3 + $0x141] sm:$0xff] %vm2013_vm2, %v16072_v25  ;;  %v3897_v60 = vsel %vm2013_vm2, %v13422_v17, %v10451_v53 }
 0x2a9   : > { %v4025_v25 = vsel %vm4017_vm12, %v3992_v16, %v10447_v4  ;;  %v3929_v29 = vsel %vm2079_vm3, %v3897_v60, %v10456_v33  ;;  %v10501_v33 = vunpack.i.l.bf16 %v13816_v40 }
 0x2ab   : > { %v13861_v57 = vpop.permute.xlu0 %10519 }
 0x2ac   : > { %v13859_v15 = vpop.permute.xlu1 %10514 }
 0x2ad   : > { %v2951_v38 = vld [vmem:[#allocation3 + $0x139] sm:$0xff] }
 0x2ae   : > { %v13867_v8 = vld [vmem:[#allocation3 + $0x138] sm:$0xff] }
 0x2af   : > { %v10530_v2 = vpop.permute.xlu0 %10529  ;;  %v2952_v39 = vld [vmem:[#allocation3 + $0x141] sm:$0xff]  ;;  %v13873_v26 = vld [vmem:[#allocation3 + $0x152] sm:$0xff] }
 0x2b0   : > { %v13869_v56 = vpop.permute.xlu1 %10524  ;;  %v13871_v14 = vld [vmem:[#allocation3 + $0x140] sm:$0xff]  ;;  %v10532_v50 = vunpack.i.h.bf16 %v10530_v2  ;;  %v10531_v51 = vunpack.i.l.bf16 %v10530_v2  ;;  %v13883_v55 = vpack.i.bf16 %v2952_v39, %v2951_v38  ;;  %v3898_v2 = vsel %vm2013_vm2, %v13424_v43, %v10452_v62 }
 0x2b1   : > { %v13877_v34 = vld [vmem:[#allocation3 + $0x13a] sm:$0xff]  ;;  %v13879_v63 = vld [vmem:[#allocation3 + $0x142] sm:$0xff]  ;;  %v10763_v54 = vpack.i.bf16 %v13871_v14, %v13867_v8  ;;  %v3930_v4 = vsel %vm2079_vm3, %v3898_v2, %v10457_v21  ;;  %v10496_v62 = vunpack.i.l.bf16 %v13818_v41 }
 0x2b2   : > { %v13881_v1 = vld [vmem:[#allocation3 + $0x15a] sm:$0xff]  ;;  %10769 = vrot.lane.b32.xlu1 %v13883_v55, %s16088_s30  ;;  %v4057_v6 = vsel %vm4050_vm13, %v4024_v0, %v10531_v51  ;;  %v4058_v46 = vsel %vm4050_vm13, %v4025_v25, %v10532_v50 }
 0x2b3   : > { %10764 = vrot.lane.b32.xlu0 %v10763_v54, %s16118_s24  ;;  %v10540_v38 = vpop.permute.xlu0 %10539 }
 0x2b4   : > { %v10535_v28 = vpop.permute.xlu1 %10534  ;;  %v10542_v44 = vunpack.i.h.bf16 %v10540_v38  ;;  %v10541_v42 = vunpack.i.l.bf16 %v10540_v38 }
 0x2b5   : > { %v10537_v39 = vunpack.i.h.bf16 %v10535_v28  ;;  %v10536_v27 = vunpack.i.l.bf16 %v10535_v28 }
 0x2b6   : > { %10779 = vrot.lane.b32.xlu1 %v13810_v37, %s16110_s23  ;;  %v13921_v37 = vld [vmem:[#allocation3 + $0x158] sm:$0xff] }
 0x2b7   : > { %v4090_v47 = vsel %vm4083_vm14, %v4057_v6, %v10536_v27  ;;  %v4091_v28 = vsel %vm4083_vm14, %v4058_v46, %v10537_v39  ;;  %10774 = vrot.lane.b32.xlu0 %v13720_v58, %s16108_s29  ;;  %v10550_v16 = vpop.permute.xlu0 %10549  ;;  %v3962_v6 = vsel %vm2145_vm7, %v3930_v4, %v10542_v44  ;;  %v3961_v27 = vsel %vm2145_vm7, %v3929_v29, %v10541_v42 }
 0x2b8   : > { %v10545_v25 = vpop.permute.xlu1 %10544  ;;  %v4122_v17 = vpack.c.bf16 %v4091_v28, %v4090_v47  ;;  %v10552_v43 = vunpack.i.h.bf16 %v10550_v16  ;;  %v10551_v12 = vunpack.i.l.bf16 %v10550_v16  ;;  %v10497_v58 = vunpack.i.h.bf16 %v13818_v41  ;;  %v2954_v28 = vld [vmem:[#allocation3 + $0x159] sm:$0xff] }
 0x2b9   : > { %v10547_v50 = vunpack.i.h.bf16 %v10545_v25  ;;  %v10546_v51 = vunpack.i.l.bf16 %v10545_v25  ;;  %v10502_v42 = vunpack.i.h.bf16 %v13816_v40  ;;  %v10793_v41 = vpack.i.bf16 %v13879_v63, %v13877_v34 }
 0x2ba   : > { %4325 = vmatmul.mubr.bf16.gmra.mrb[12].mxu1 %v4122_v17  ;;  %10789 = vrot.lane.b32.xlu1 %v13883_v55, %s16114_s0 }
 0x2bb   : > { %v3993_v60 = vsel %vm2211_vm9, %v3961_v27, %v10546_v51  ;;  %v3994_v46 = vsel %vm2211_vm9, %v3962_v6, %v10547_v50  ;;  %9258 = vmatprep.mubr.msk.bf16.mxu1 %vm2013_vm2, %v4125_v59  ;;  %10784 = vrot.lane.b32.xlu0 %v10763_v54, %s16112_s26  ;;  %v13932_v59 = vld [vmem:[#allocation3 + $0x150] sm:$0xff]  ;;  %v10560_v39 = vpop.permute.xlu0 %10559 }
 0x2bc   : > { %v4026_v53 = vsel %vm4017_vm12, %v3993_v60, %v10551_v12  ;;  %v4027_v21 = vsel %vm4017_vm12, %v3994_v46, %v10552_v43  ;;  %v10798_v38 = vpack.i.bf16 %v13921_v37, %v13932_v59  ;;  %v10555_v40 = vpop.permute.xlu1 %10554  ;;  %v2953_v50 = vld [vmem:[#allocation3 + $0x151] sm:$0xff] }
 0x2bd   : > { %v4059_v2 = vsel %vm4050_vm13, %v4026_v53, %v10496_v62  ;;  %v4060_v47 = vsel %vm4050_vm13, %v4027_v21, %v10497_v58  ;;  %v13950_v6 = vpack.i.bf16 %v2954_v28, %v2953_v50  ;;  %v10557_v46 = vunpack.i.h.bf16 %v10555_v40 }
 0x2be   : > { %v9593_v0 = vpop.f32.mrb[28].mxu0  ;;  %v4092_v54 = vsel %vm4083_vm14, %v4059_v2, %v10501_v33  ;;  %v4093_v44 = vsel %vm4083_vm14, %v4060_v47, %v10502_v42  ;;  %10799 = vrot.lane.b32.xlu1 %v10798_v38, %s16118_s24  ;;  %v10556_v58 = vunpack.i.l.bf16 %v10555_v40  ;;  %v16145_v21 = vpack.c.bf16 %v13552_v24, %v13550_v20 }
 0x2bf   : > { %10794 = vrot.lane.b32.xlu0 %v10793_v41, %s16090_s21  ;;  %v2545_v29 = vmul.f32 %v13801_v36, %v9593_v0  ;;  %v2495_v4 = vpop.f32.mrb[29].mxu0  ;;  %v4124_v17 = vpack.c.bf16 %v4093_v44, %v4092_v54  ;;  %v10562_v24 = vunpack.i.h.bf16 %v10560_v39  ;;  %v10561_v47 = vunpack.i.l.bf16 %v10560_v39  ;;  %v2714_v0 = vld [vmem:[#allocation3 + $0x78] sm:$0xff]  ;;  %v2715_v54 = vld [vmem:[#allocation3 + $0x80] sm:$0xff] }
 0x2c0   : > { %v2543_v25 = vmul.f32 %v13801_v36, %v2495_v4  ;;  %v9594_v16 = vpop.f32.mrb[30].mxu0  ;;  %v3899_v44 = vsel %vm2013_vm2, %v2714_v0, %v10556_v58  ;;  %v10828_v4 = vpack.i.bf16 %v13881_v1, %v13873_v26 }
 0x2c1   : > { %v13947_v51 = vadd.f32 %v13824_v45, %v2545_v29  ;;  %v2546_v43 = vmul.f32 %v13801_v36, %v9594_v16  ;;  %v2498_v12 = vpop.f32.mrb[31].mxu0  ;;  %v3931_v40 = vsel %vm2079_vm3, %v3899_v44, %v10561_v47 }
 0x2c2   : > { %v13953_v27 = vadd.f32 %v13824_v45, %v2543_v25  ;;  %v2544_v60 = vmul.f32 %v13801_v36, %v2498_v12  ;;  %4333 = vmatmul.mubr.bf16.gmra.mrb[16].mxu1 %v4124_v17  ;;  %10809 = vrot.lane.b32.xlu1 %v13883_v55, %s16108_s29  ;;  %v3900_v55 = vsel %vm2013_vm2, %v2715_v54, %v10557_v46  ;;  %v10507_v25 = vunpack.i.h.bf16 %v13850_v5  ;;  %v14015_v12 = vld [vmem:[#allocation3 + $0xca] sm:$0xff] }
 0x2c3   : > { %16142 = vst [vmem:[#allocation38_spill] sm:$0xff] %v13947_v51  ;;  %v16077_v62 = vmax.f32 %v13947_v51, 0.0  ;;  %v13958_v53 = vadd.f32 %v13824_v45, %v2546_v43  ;;  %9259 = vmatprep.mubr.msk.bf16.mxu1 %vm2013_vm2, %v16145_v21  ;;  %10804 = vrot.lane.b32.xlu0 %v13950_v6, %s16088_s30  ;;  %v13966_v42 = vpop.permute.xlu0 %10569  ;;  %v3932_v29 = vsel %vm2079_vm3, %v3900_v55, %v10562_v24  ;;  %v14013_v43 = vld [vmem:[#allocation3 + $0xc2] sm:$0xff] }
 0x2c4   : > { %16143 = vst [vmem:[#allocation39_spill] sm:$0xff] %v13953_v27  ;;  %v13968_v33 = vpop.permute.xlu1 %10564  ;;  %v16079_v36 = vmax.f32 %v13953_v27, 0.0  ;;  %v13972_v2 = vadd.f32 %v13824_v45, %v2544_v60  ;;  %v3964_v50 = vsel %vm2145_vm7, %v3932_v29, %v10507_v25  ;;  %v10512_v60 = vunpack.i.h.bf16 %v13848_v11 }
 0x2c5   : > { %16144 = vst [vmem:[#allocation40_spill] sm:$0xff] %v13958_v53  ;;  %2702 = vst.msk [vmem:[#allocation3 + $0x181] sm:$0xff] %vm2013_vm2, %v16077_v62  ;;  %v16076_v20 = vmax.f32 %v13958_v53, 0.0 }
 0x2c6   : > { %16146 = vst [vmem:[#allocation41_spill] sm:$0xff] %v13972_v2  ;;  %2700 = vst.msk [vmem:[#allocation3 + $0x169] sm:$0xff] %vm2013_vm2, %v16079_v36  ;;  %v16078_v45 = vmax.f32 %v13972_v2, 0.0  ;;  %10819 = vrot.lane.b32.xlu1 %v10798_v38, %s16112_s26  ;;  %v3996_v55 = vsel %vm2211_vm9, %v3964_v50, %v10512_v60  ;;  %v10516_v50 = vunpack.i.l.bf16 %v13859_v15  ;;  %v10522_v60 = vunpack.i.h.bf16 %v13861_v57  ;;  %v2717_v2 = vld [vmem:[#allocation3 + $0x98] sm:$0xff] }
 0x2c7   : > { %2703 = vst.msk [vmem:[#allocation3 + $0x189] sm:$0xff] %vm2013_vm2, %v16076_v20  ;;  %10814 = vrot.lane.b32.xlu0 %v10793_v41, %s16110_s23  ;;  %v13990_v28 = vpop.permute.xlu0 %10579  ;;  %v10506_v41 = vunpack.i.l.bf16 %v13850_v5  ;;  %v10511_v5 = vunpack.i.l.bf16 %v13848_v11 }
 0x2c8   : > { %v13992_v39 = vpop.permute.xlu1 %10574  ;;  %2701 = vst.msk [vmem:[#allocation3 + $0x171] sm:$0xff] %vm2013_vm2, %v16078_v45 }
 0x2c9   : > { %v3963_v38 = vsel %vm2145_vm7, %v3931_v40, %v10506_v41  ;;  %v4129_v40 = vpack.c.bf16 %v14015_v12, %v14013_v43  ;;  %v10521_v43 = vunpack.i.l.bf16 %v13861_v57  ;;  %v10527_v12 = vunpack.i.h.bf16 %v13869_v56 }
 0x2ca   : > { %10829 = vrot.lane.b32.xlu1 %v10828_v4, %s16090_s21  ;;  %v3995_v44 = vsel %vm2211_vm9, %v3963_v38, %v10511_v5  ;;  %v10517_v38 = vunpack.i.h.bf16 %v13859_v15  ;;  %v10526_v5 = vunpack.i.l.bf16 %v13869_v56  ;;  %v2716_v56 = vld [vmem:[#allocation3 + $0x90] sm:$0xff] }
 0x2cb   : > { %10824 = vrot.lane.b32.xlu0 %v13950_v6, %s16114_s0  ;;  %v14008_v17 = vpop.permute.xlu0 %10589  ;;  %v4028_v57 = vsel %vm4017_vm12, %v3995_v44, %v10516_v50  ;;  %v3901_v32 = vsel %vm2013_vm2, %v2716_v56, %v10521_v43 }
 0x2cc   : > { %v14006_v16 = vpop.permute.xlu1 %10584  ;;  %v4029_v51 = vsel %vm4017_vm12, %v3996_v55, %v10517_v38  ;;  %v3933_v44 = vsel %vm2079_vm3, %v3901_v32, %v10526_v5  ;;  %v2925_v5 = vld [vmem:[#allocation3 + $0x180] sm:$0xff] }
 0x2cd   : > { %v2955_v46 = vld [vmem:[#allocation3 + $0x169] sm:$0xff] }
 0x2ce   : > { %v14019_v58 = vld [vmem:[#allocation3 + $0x168] sm:$0xff] }
 0x2cf   : > { %v10600_v24 = vpop.permute.xlu0 %10599  ;;  %v2956_v47 = vld [vmem:[#allocation3 + $0x171] sm:$0xff]  ;;  %v14025_v54 = vld [vmem:[#allocation3 + $0x182] sm:$0xff] }
 0x2d0   : > { %v14021_v21 = vpop.permute.xlu1 %10594  ;;  %v14023_v0 = vld [vmem:[#allocation3 + $0x170] sm:$0xff]  ;;  %v10602_v41 = vunpack.i.h.bf16 %v10600_v24  ;;  %v10601_v20 = vunpack.i.l.bf16 %v10600_v24  ;;  %v14037_v62 = vpack.i.bf16 %v2956_v47, %v2955_v46  ;;  %v3902_v47 = vsel %vm2013_vm2, %v2717_v2, %v10522_v60 }
 0x2d1   : > { %v14031_v29 = vld [vmem:[#allocation3 + $0x16a] sm:$0xff]  ;;  %v14033_v11 = vld [vmem:[#allocation3 + $0x172] sm:$0xff]  ;;  %v10833_v45 = vpack.i.bf16 %v14023_v0, %v14019_v58  ;;  %v3934_v55 = vsel %vm2079_vm3, %v3902_v47, %v10527_v12 }
 0x2d2   : > { %v14035_v25 = vld [vmem:[#allocation3 + $0x18a] sm:$0xff]  ;;  %10839 = vrot.lane.b32.xlu1 %v14037_v62, %s16088_s30  ;;  %v4061_v10 = vsel %vm4050_vm13, %v4028_v57, %v10601_v20  ;;  %v4062_v9 = vsel %vm4050_vm13, %v4029_v51, %v10602_v41 }
 0x2d3   : > { %10834 = vrot.lane.b32.xlu0 %v10833_v45, %s16118_s24  ;;  %v10610_v24 = vpop.permute.xlu0 %10609  ;;  %v2958_v56 = vld [vmem:[#allocation3 + $0x189] sm:$0xff] }
 0x2d4   : > { %v10605_v46 = vpop.permute.xlu1 %10604  ;;  %v10612_v27 = vunpack.i.h.bf16 %v10610_v24  ;;  %v10611_v49 = vunpack.i.l.bf16 %v10610_v24  ;;  %v10863_v24 = vpack.i.bf16 %v14033_v11, %v14031_v29 }
 0x2d5   : > { %v10607_v36 = vunpack.i.h.bf16 %v10605_v46  ;;  %v10606_v53 = vunpack.i.l.bf16 %v10605_v46 }
 0x2d6   : > { %10849 = vrot.lane.b32.xlu1 %v10828_v4, %s16110_s23  ;;  %v10566_v4 = vunpack.i.l.bf16 %v13968_v33 }
 0x2d7   : > { %v4094_v15 = vsel %vm4083_vm14, %v4061_v10, %v10606_v53  ;;  %v4095_v46 = vsel %vm4083_vm14, %v4062_v9, %v10607_v36  ;;  %10844 = vrot.lane.b32.xlu0 %v13950_v6, %s16108_s29  ;;  %v10620_v38 = vpop.permute.xlu0 %10619  ;;  %v3966_v10 = vsel %vm2145_vm7, %v3934_v55, %v10612_v27  ;;  %v3965_v9 = vsel %vm2145_vm7, %v3933_v44, %v10611_v49  ;;  %v2926_v36 = vld [vmem:[#allocation3 + $0x188] sm:$0xff] }
 0x2d8   : > { %v10615_v20 = vpop.permute.xlu1 %10614  ;;  %v4126_v51 = vpack.c.bf16 %v4095_v46, %v4094_v15  ;;  %v10622_v43 = vunpack.i.h.bf16 %v10620_v38  ;;  %v10621_v2 = vunpack.i.l.bf16 %v10620_v38  ;;  %v10567_v6 = vunpack.i.h.bf16 %v13968_v33  ;;  %v2957_v44 = vld [vmem:[#allocation3 + $0x181] sm:$0xff] }
 0x2d9   : > { %v10617_v41 = vunpack.i.h.bf16 %v10615_v20  ;;  %v10616_v50 = vunpack.i.l.bf16 %v10615_v20  ;;  %v10572_v49 = vunpack.i.h.bf16 %v13966_v42  ;;  %v10571_v27 = vunpack.i.l.bf16 %v13966_v42 }
 0x2da   : > { %4341 = vmatmul.mubr.bf16.gmra.mrb[20].mxu1 %v4126_v51  ;;  %10859 = vrot.lane.b32.xlu1 %v14037_v62, %s16114_s0  ;;  %v10873_v55 = vpack.i.bf16 %v2958_v56, %v2957_v44  ;;  %v16147_v20 = vpack.c.bf16 %v13622_v52, %v13620_v61  ;;  %v4686_v56 = vld [vmem:[#allocation4 + $0x2] sm:$0xff]  ;;  %v10582_v44 = vunpack.i.h.bf16 %v13990_v28 }
 0x2db   : > { %v3997_v32 = vsel %vm2211_vm9, %v3965_v9, %v10616_v50  ;;  %v3998_v53 = vsel %vm2211_vm9, %v3966_v10, %v10617_v41  ;;  %9260 = vmatprep.mubr.msk.bf16.mxu1 %vm2013_vm2, %v4129_v40  ;;  %10854 = vrot.lane.b32.xlu0 %v10833_v45, %s16112_s26  ;;  %v10868_v40 = vpack.i.bf16 %v2926_v36, %v2925_v5  ;;  %v10630_v46 = vpop.permute.xlu0 %10629  ;;  %v2719_v9 = vld [vmem:[#allocation3 + $0xb0] sm:$0xff] }
 0x2dc   : > { %v4030_v60 = vsel %vm4017_vm12, %v3997_v32, %v10621_v2  ;;  %v4031_v12 = vsel %vm4017_vm12, %v3998_v53, %v10622_v43  ;;  %v10625_v45 = vpop.permute.xlu1 %10624  ;;  %v2718_v43 = vld [vmem:[#allocation3 + $0xa8] sm:$0xff]  ;;  %v10632_v2 = vunpack.i.h.bf16 %v10630_v46  ;;  %v10631_v10 = vunpack.i.l.bf16 %v10630_v46  ;;  %v2927_v32 = vld [vmem:[#allocation3 + $0x198] sm:$0xff] }
 0x2dd   : > { %v4063_v33 = vsel %vm4050_vm13, %v4030_v60, %v10566_v4  ;;  %v4064_v47 = vsel %vm4050_vm13, %v4031_v12, %v10567_v6  ;;  %v10627_v41 = vunpack.i.h.bf16 %v10625_v45  ;;  %v10626_v50 = vunpack.i.l.bf16 %v10625_v45  ;;  %v2959_v6 = vld [vmem:[#allocation3 + $0x199] sm:$0xff]  ;;  %v2960_v4 = vld [vmem:[#allocation3 + $0x1a1] sm:$0xff] }
 0x2de   : > { %v4096_v15 = vsel %vm4083_vm14, %v4063_v33, %v10571_v27  ;;  %v4097_v57 = vsel %vm4083_vm14, %v4064_v47, %v10572_v49  ;;  %10869 = vrot.lane.b32.xlu1 %v10868_v40, %s16118_s24  ;;  %v10898_v60 = vpack.i.bf16 %v14035_v25, %v14025_v54  ;;  %v4654_v33 = vld [vmem:[#allocation4 + $0x1] sm:$0xff]  ;;  %v10577_v47 = vunpack.i.h.bf16 %v13992_v39  ;;  %v4687_v46 = vld [vmem:[#allocation4 + $0xa] sm:$0xff] }
 0x2df   : > { %10864 = vrot.lane.b32.xlu0 %v10863_v24, %s16090_s21  ;;  %v4128_v42 = vpack.c.bf16 %v4097_v57, %v4096_v15  ;;  %v3903_v53 = vsel %vm2013_vm2, %v2718_v43, %v10626_v50  ;;  %v3904_v36 = vsel %vm2013_vm2, %v2719_v9, %v10627_v41  ;;  %v10576_v15 = vunpack.i.l.bf16 %v13992_v39  ;;  %v4655_v57 = vld [vmem:[#allocation4 + $0x9] sm:$0xff] }
 0x2e0   : > { %v3935_v49 = vsel %vm2079_vm3, %v3903_v53, %v10631_v10  ;;  %v3936_v27 = vsel %vm2079_vm3, %v3904_v36, %v10632_v2  ;;  %v10913_v41 = vpack.i.bf16 %v4655_v57, %v4654_v33  ;;  %v10918_v50 = vpack.i.bf16 %v4687_v46, %v4686_v56  ;;  %v2978_v33 = vld [vmem:[#allocation3 + $0xfa] sm:$0xff]  ;;  %v2721_v56 = vld [vmem:[#allocation3 + $0xc8] sm:$0xff] }
 0x2e1   : > { %v3967_v45 = vsel %vm2145_vm7, %v3935_v49, %v10576_v15  ;;  %v10591_v53 = vunpack.i.l.bf16 %v14008_v17  ;;  %v10597_v36 = vunpack.i.h.bf16 %v14021_v21  ;;  %v2720_v57 = vld [vmem:[#allocation3 + $0xc0] sm:$0xff] }
 0x2e2   : > { %4349 = vmatmul.mubr.bf16.gmra.mrb[24].mxu1 %v4128_v42  ;;  %10879 = vrot.lane.b32.xlu1 %v14037_v62, %s16108_s29  ;;  %v2928_v62 = vld [vmem:[#allocation3 + $0x1a0] sm:$0xff]  ;;  %v3968_v42 = vsel %vm2145_vm7, %v3936_v27, %v10577_v47 }
 0x2e3   : > { %9261 = vmatprep.mubr.msk.bf16.mxu1 %vm2013_vm2, %v16147_v20  ;;  %10874 = vrot.lane.b32.xlu0 %v10873_v55, %s16088_s30  ;;  %v14096_v38 = vpop.permute.xlu0 %10639  ;;  %v10903_v12 = vpack.i.bf16 %v2928_v62, %v2927_v32  ;;  %v4000_v9 = vsel %vm2211_vm9, %v3968_v42, %v10582_v44  ;;  %v10587_v32 = vunpack.i.h.bf16 %v14006_v16  ;;  %v10586_v62 = vunpack.i.l.bf16 %v14006_v16 }
 0x2e4   : > { %v14098_v51 = vpop.permute.xlu1 %10634  ;;  %v3905_v42 = vsel %vm2013_vm2, %v2720_v57, %v10591_v53 }
 0x2e5   : > { %v4033_v16 = vsel %vm4017_vm12, %v4000_v9, %v10587_v32  ;;  %v10637_v53 = vunpack.i.h.bf16 %v14098_v51 }
 0x2e6   : > { %10889 = vrot.lane.b32.xlu1 %v10868_v40, %s16112_s26 }
 0x2e7   : > { %10884 = vrot.lane.b32.xlu0 %v10863_v24, %s16110_s23  ;;  %v14102_v52 = vpop.permute.xlu0 %10649  ;;  %v10908_v24 = vpack.i.bf16 %v2960_v4, %v2959_v6  ;;  %v10596_v6 = vunpack.i.l.bf16 %v14021_v21 }
 0x2e8   : > { %v14104_v61 = vpop.permute.xlu1 %10644 }
 0x2ea   : > { %10899 = vrot.lane.b32.xlu1 %v10898_v60, %s16090_s21 }
 0x2eb   : > { %10894 = vrot.lane.b32.xlu0 %v10873_v55, %s16114_s0  ;;  %v14116_v40 = vpop.permute.xlu0 %10659  ;;  %v10581_v55 = vunpack.i.l.bf16 %v13990_v28  ;;  %v10592_v28 = vunpack.i.h.bf16 %v14008_v17 }
 0x2ec   : > { %v14114_v5 = vpop.permute.xlu1 %10654 }
 0x2ed   : > { %v3999_v10 = vsel %vm2211_vm9, %v3967_v45, %v10581_v55  ;;  %v3906_v44 = vsel %vm2013_vm2, %v2721_v56, %v10592_v28  ;;  %v10636_v28 = vunpack.i.l.bf16 %v14098_v51  ;;  %v2722_v56 = vld [vmem:[#allocation3 + $0xd8] sm:$0xff] }
 0x2ee   : > { %10909 = vrot.lane.b32.xlu1 %v10908_v24, %s16088_s30  ;;  %v4032_v27 = vsel %vm4017_vm12, %v3999_v10, %v10586_v62  ;;  %v2977_v24 = vld [vmem:[#allocation3 + $0xf2] sm:$0xff]  ;;  %v3938_v10 = vsel %vm2079_vm3, %v3906_v44, %v10597_v36  ;;  %v10642_v36 = vunpack.i.h.bf16 %v14096_v38 }
 0x2ef   : > { %10904 = vrot.lane.b32.xlu0 %v10903_v12, %s16118_s24  ;;  %v10670_v39 = vpop.permute.xlu0 %10669 }
 0x2f0   : > { %v14125_v20 = vpop.permute.xlu1 %10664  ;;  %v10672_v43 = vunpack.i.h.bf16 %v10670_v39  ;;  %v10671_v2 = vunpack.i.l.bf16 %v10670_v39  ;;  %v3937_v39 = vsel %vm2079_vm3, %v3905_v42, %v10596_v6 }
 0x2f2   : > { %10919 = vrot.lane.b32.xlu1 %v10918_v50, %s16110_s23  ;;  %v4065_v15 = vsel %vm4050_vm13, %v4032_v27, %v10671_v2  ;;  %v4066_v21 = vsel %vm4050_vm13, %v4033_v16, %v10672_v43  ;;  %v4133_v50 = vpack.c.bf16 %v2978_v33, %v2977_v24 }
 0x2f3   : > { %10914 = vrot.lane.b32.xlu0 %v10913_v41, %s16108_s29  ;;  %v10680_v49 = vpop.permute.xlu0 %10679 }
 0x2f4   : > { %v10675_v4 = vpop.permute.xlu1 %10674  ;;  %v10682_v47 = vunpack.i.h.bf16 %v10680_v49  ;;  %v10681_v17 = vunpack.i.l.bf16 %v10680_v49  ;;  %v10641_v49 = vunpack.i.l.bf16 %v14096_v38 }
 0x2f5   : > { %v10677_v60 = vunpack.i.h.bf16 %v10675_v4  ;;  %v10676_v12 = vunpack.i.l.bf16 %v10675_v4 }
 0x2f6   : > { %v3970_v32 = vsel %vm2145_vm7, %v3938_v10, %v10682_v47  ;;  %v3969_v62 = vsel %vm2145_vm7, %v3937_v39, %v10681_v17  ;;  %v10647_v39 = vunpack.i.h.bf16 %v14104_v61  ;;  %v10646_v10 = vunpack.i.l.bf16 %v14104_v61 }
 0x2f7   : > { %v4098_v46 = vsel %vm4083_vm14, %v4065_v15, %v10676_v12  ;;  %v4099_v45 = vsel %vm4083_vm14, %v4066_v21, %v10677_v60  ;;  %v10690_v43 = vpop.permute.xlu0 %10689 }
 0x2f8   : > { %v10685_v55 = vpop.permute.xlu1 %10684  ;;  %v4130_v41 = vpack.c.bf16 %v4099_v45, %v4098_v46  ;;  %v10692_v4 = vunpack.i.h.bf16 %v10690_v43  ;;  %v10691_v60 = vunpack.i.l.bf16 %v10690_v43  ;;  %v2723_v46 = vld [vmem:[#allocation3 + $0xe0] sm:$0xff] }
 0x2f9   : > { %v10687_v2 = vunpack.i.h.bf16 %v10685_v55  ;;  %v10686_v9 = vunpack.i.l.bf16 %v10685_v55 }
 0x2fa   : > { %4357 = vmatmul.mubr.bf16.gmra.mrb[28].mxu1 %v4130_v41 }
 0x2fb   : > { %v4001_v12 = vsel %vm2211_vm9, %v3969_v62, %v10686_v9  ;;  %v4002_v6 = vsel %vm2211_vm9, %v3970_v32, %v10687_v2  ;;  %9262 = vmatprep.mubr.msk.bf16.mxu1 %vm2013_vm2, %v4133_v50  ;;  %v10700_v33 = vpop.permute.xlu0 %10699  ;;  %v16148_v2 = vpack.c.bf16 %v13730_v3, %v13728_v7  ;;  %v10656_v7 = vunpack.i.l.bf16 %v14114_v5 }
 0x2fc   : > { %v4034_v27 = vsel %vm4017_vm12, %v4001_v12, %v10691_v60  ;;  %v4035_v16 = vsel %vm4017_vm12, %v4002_v6, %v10692_v4  ;;  %v10695_v24 = vpop.permute.xlu1 %10694  ;;  %v10702_v21 = vunpack.i.h.bf16 %v10700_v33  ;;  %v10701_v57 = vunpack.i.l.bf16 %v10700_v33 }
 0x2fd   : > { %v10697_v47 = vunpack.i.h.bf16 %v10695_v24  ;;  %v10696_v17 = vunpack.i.l.bf16 %v10695_v24  ;;  %v4067_v51 = vsel %vm4050_vm13, %v4034_v27, %v10636_v28  ;;  %v4068_v15 = vsel %vm4050_vm13, %v4035_v16, %v10637_v53 }
 0x2fe   : > { %v4100_v45 = vsel %vm4083_vm14, %v4067_v51, %v10641_v49  ;;  %v4101_v38 = vsel %vm4083_vm14, %v4068_v15, %v10642_v36  ;;  %v10652_v4 = vunpack.i.h.bf16 %v14102_v52  ;;  %v10651_v60 = vunpack.i.l.bf16 %v14102_v52 }
 0x2ff   : > { %v3907_v42 = vsel %vm2013_vm2, %v2722_v56, %v10696_v17  ;;  %v3908_v44 = vsel %vm2013_vm2, %v2723_v46, %v10697_v47  ;;  %v4132_v55 = vpack.c.bf16 %v4101_v38, %v4100_v45  ;;  %v10657_v28 = vunpack.i.h.bf16 %v14114_v5  ;;  %v2724_v56 = vld [vmem:[#allocation3 + $0xf0] sm:$0xff]  ;;  %v2725_v46 = vld [vmem:[#allocation3 + $0xf8] sm:$0xff] }
 0x300   : > { %v3939_v41 = vsel %vm2079_vm3, %v3907_v42, %v10701_v57  ;;  %v3940_v50 = vsel %vm2079_vm3, %v3908_v44, %v10702_v21  ;;  %v10662_v16 = vunpack.i.h.bf16 %v14116_v40  ;;  %v10661_v24 = vunpack.i.l.bf16 %v14116_v40 }
 0x301   : > { %v3971_v9 = vsel %vm2145_vm7, %v3939_v41, %v10646_v10  ;;  %v3972_v43 = vsel %vm2145_vm7, %v3940_v50, %v10647_v39  ;;  %v10667_v47 = vunpack.i.h.bf16 %v14125_v20  ;;  %v10666_v17 = vunpack.i.l.bf16 %v14125_v20 }
 0x302   : > { %4365 = vmatmul.mubr.bf16.gmra.mrb[32].mxu1 %v4132_v55  ;;  %v4003_v53 = vsel %vm2211_vm9, %v3971_v9, %v10651_v60  ;;  %v4004_v61 = vsel %vm2211_vm9, %v3972_v43, %v10652_v4  ;;  %v3909_v38 = vsel %vm2013_vm2, %v2724_v56, %v10661_v24  ;;  %v3910_v42 = vsel %vm2013_vm2, %v2725_v46, %v10662_v16 }
 0x303   : > { %9263 = vmatprep.mubr.msk.bf16.mxu1 %vm2013_vm2, %v16148_v2  ;;  %v10710_v32 = vpop.permute.xlu0 %10709  ;;  %v4036_v52 = vsel %vm4017_vm12, %v4003_v53, %v10656_v7  ;;  %v4037_v33 = vsel %vm4017_vm12, %v4004_v61, %v10657_v28  ;;  %v3941_v20 = vsel %vm2079_vm3, %v3909_v38, %v10666_v17  ;;  %v3942_v41 = vsel %vm2079_vm3, %v3910_v42, %v10667_v47 }
 0x304   : > { %v10705_v62 = vpop.permute.xlu1 %10704  ;;  %v16149_v9 = vpack.c.bf16 %v13732_v30, %v13724_v48 }
 0x305   : > { %v10707_v53 = vunpack.i.h.bf16 %v10705_v62  ;;  %v10706_v61 = vunpack.i.l.bf16 %v10705_v62 }
 0x308   : > { %v10720_v3 = vpop.permute.xlu1 %10719  ;;  %v10715_v12 = vpop.permute.xlu0 %10714 }
 0x309   : > { %v10722_v6 = vunpack.i.h.bf16 %v10720_v3  ;;  %v10721_v36 = vunpack.i.l.bf16 %v10720_v3  ;;  %v10717_v49 = vunpack.i.h.bf16 %v10715_v12  ;;  %v10716_v27 = vunpack.i.l.bf16 %v10715_v12 }
 0x30a   : > { %v10712_v3 = vunpack.i.h.bf16 %v10710_v32  ;;  %v10711_v12 = vunpack.i.l.bf16 %v10710_v32 }
 0x30b   : > { %v4069_v5 = vsel %vm4050_vm13, %v4036_v52, %v10716_v27  ;;  %v4070_v51 = vsel %vm4050_vm13, %v4037_v33, %v10717_v49  ;;  %v16150_v52 = vpack.c.bf16 %v13879_v63, %v13877_v34 }
 0x30c   : > { %v10730_v15 = vpop.permute.xlu1 %10729  ;;  %v4102_v21 = vsel %vm4083_vm14, %v4069_v5, %v10721_v36  ;;  %v4103_v57 = vsel %vm4083_vm14, %v4070_v51, %v10722_v6 }
 0x30d   : > { %v10725_v40 = vpop.permute.xlu0 %10724  ;;  %v4134_v45 = vpack.c.bf16 %v4103_v57, %v4102_v21  ;;  %v10732_v50 = vunpack.i.h.bf16 %v10730_v15  ;;  %v10731_v39 = vunpack.i.l.bf16 %v10730_v15  ;;  %v2726_v15 = vld [vmem:[#allocation3 + $0x108] sm:$0xff]  ;;  %v2727_v21 = vld [vmem:[#allocation3 + $0x110] sm:$0xff] }
 0x30e   : > { %v10727_v44 = vunpack.i.h.bf16 %v10725_v40  ;;  %v10726_v55 = vunpack.i.l.bf16 %v10725_v40 }
 0x30f   : > { %4373 = vmatmul.mubr.bf16.gmra.mrb[36].mxu1 %v4134_v45 }
 0x310   : > { %v3974_v10 = vsel %vm2145_vm7, %v3942_v41, %v10727_v44  ;;  %v3973_v2 = vsel %vm2145_vm7, %v3941_v20, %v10726_v55  ;;  %9264 = vmatprep.mubr.msk.bf16.mxu1 %vm2013_vm2, %v16149_v9  ;;  %v10740_v49 = vpop.permute.xlu1 %10739 }
 0x311   : > { %v10735_v43 = vpop.permute.xlu0 %10734  ;;  %v4005_v28 = vsel %vm2211_vm9, %v3973_v2, %v10731_v39  ;;  %v4006_v7 = vsel %vm2211_vm9, %v3974_v10, %v10732_v50  ;;  %v10742_v33 = vunpack.i.h.bf16 %v10740_v49  ;;  %v10741_v47 = vunpack.i.l.bf16 %v10740_v49 }
 0x312   : > { %v10737_v4 = vunpack.i.h.bf16 %v10735_v43  ;;  %v10736_v60 = vunpack.i.l.bf16 %v10735_v43 }
 0x313   : > { %v3911_v57 = vsel %vm2013_vm2, %v2726_v15, %v10741_v47  ;;  %v3912_v56 = vsel %vm2013_vm2, %v2727_v21, %v10742_v33 }
 0x314   : > { %v4038_v6 = vsel %vm4017_vm12, %v4005_v28, %v10736_v60  ;;  %v4039_v36 = vsel %vm4017_vm12, %v4006_v7, %v10737_v4  ;;  %v10750_v32 = vpop.permute.xlu1 %10749 }
 0x315   : > { %v4071_v48 = vsel %vm4050_vm13, %v4038_v6, %v10706_v61  ;;  %v4072_v30 = vsel %vm4050_vm13, %v4039_v36, %v10707_v53  ;;  %v10745_v24 = vpop.permute.xlu0 %10744  ;;  %v10752_v46 = vunpack.i.h.bf16 %v10750_v32  ;;  %v10751_v40 = vunpack.i.l.bf16 %v10750_v32 }
 0x316   : > { %v4104_v27 = vsel %vm4083_vm14, %v4071_v48, %v10711_v12  ;;  %v4105_v16 = vsel %vm4083_vm14, %v4072_v30, %v10712_v3  ;;  %v10747_v17 = vunpack.i.h.bf16 %v10745_v24  ;;  %v10746_v5 = vunpack.i.l.bf16 %v10745_v24 }
 0x317   : > { %v4136_v62 = vpack.c.bf16 %v4105_v16, %v4104_v27  ;;  %v2728_v16 = vld [vmem:[#allocation3 + $0x120] sm:$0xff] }
 0x318   : > { %v3943_v45 = vsel %vm2079_vm3, %v3911_v57, %v10746_v5  ;;  %v3944_v34 = vsel %vm2079_vm3, %v3912_v56, %v10747_v17  ;;  %v10760_v42 = vpop.permute.xlu1 %10759  ;;  %v16151_v17 = vpack.c.bf16 %v13881_v1, %v13873_v26 }
 0x319   : > { %4381 = vmatmul.mubr.bf16.gmra.mrb[40].mxu1 %v4136_v62  ;;  %v10755_v51 = vpop.permute.xlu0 %10754  ;;  %v3975_v44 = vsel %vm2145_vm7, %v3943_v45, %v10751_v40  ;;  %v3976_v55 = vsel %vm2145_vm7, %v3944_v34, %v10752_v46  ;;  %v10762_v20 = vunpack.i.h.bf16 %v10760_v42  ;;  %v10761_v41 = vunpack.i.l.bf16 %v10760_v42  ;;  %v2729_v62 = vld [vmem:[#allocation3 + $0x128] sm:$0xff] }
 0x31a   : > { %9265 = vmatprep.mubr.msk.bf16.mxu1 %vm2013_vm2, %v16150_v52  ;;  %v10757_v63 = vunpack.i.h.bf16 %v10755_v51  ;;  %v10756_v38 = vunpack.i.l.bf16 %v10755_v51 }
 0x31c   : > { %v4007_v50 = vsel %vm2211_vm9, %v3975_v44, %v10756_v38  ;;  %v4008_v39 = vsel %vm2211_vm9, %v3976_v55, %v10757_v63 }
 0x31d   : > { %v4040_v53 = vsel %vm4017_vm12, %v4007_v50, %v10761_v41  ;;  %v4041_v61 = vsel %vm4017_vm12, %v4008_v39, %v10762_v20 }
 0x324   : > { %v10770_v10 = vpop.permute.xlu1 %10769 }
 0x325   : > { %v10765_v2 = vpop.permute.xlu0 %10764  ;;  %v10772_v9 = vunpack.i.h.bf16 %v10770_v10  ;;  %v10771_v43 = vunpack.i.l.bf16 %v10770_v10 }
 0x326   : > { %v10767_v4 = vunpack.i.h.bf16 %v10765_v2  ;;  %v10766_v60 = vunpack.i.l.bf16 %v10765_v2 }
 0x328   : > { %v4073_v28 = vsel %vm4050_vm13, %v4040_v53, %v10766_v60  ;;  %v4074_v7 = vsel %vm4050_vm13, %v4041_v61, %v10767_v4  ;;  %v10780_v3 = vpop.permute.xlu1 %10779 }
 0x329   : > { %v10775_v12 = vpop.permute.xlu0 %10774  ;;  %v4106_v6 = vsel %vm4083_vm14, %v4073_v28, %v10771_v43  ;;  %v4107_v36 = vsel %vm4083_vm14, %v4074_v7, %v10772_v9  ;;  %v10782_v30 = vunpack.i.h.bf16 %v10780_v3  ;;  %v10781_v27 = vunpack.i.l.bf16 %v10780_v3 }
 0x32a   : > { %v10777_v49 = vunpack.i.h.bf16 %v10775_v12  ;;  %v10776_v48 = vunpack.i.l.bf16 %v10775_v12  ;;  %v4138_v24 = vpack.c.bf16 %v4107_v36, %v4106_v6  ;;  %v16152_v6 = vpack.c.bf16 %v14033_v11, %v14031_v29 }
 0x32c   : > { %v3914_v52 = vsel %vm2013_vm2, %v2729_v62, %v10777_v49  ;;  %v3913_v32 = vsel %vm2013_vm2, %v2728_v16, %v10776_v48  ;;  %4389 = vmatmul.mubr.bf16.gmra.mrb[44].mxu1 %v4138_v24  ;;  %v10790_v33 = vpop.permute.xlu1 %10789 }
 0x32d   : > { %v10785_v47 = vpop.permute.xlu0 %10784  ;;  %9266 = vmatprep.mubr.msk.bf16.mxu1 %vm2013_vm2, %v16151_v17  ;;  %v10792_v15 = vunpack.i.h.bf16 %v10790_v33  ;;  %v10791_v21 = vunpack.i.l.bf16 %v10790_v33  ;;  %v3945_v57 = vsel %vm2079_vm3, %v3913_v32, %v10781_v27  ;;  %v3946_v56 = vsel %vm2079_vm3, %v3914_v52, %v10782_v30 }
 0x32e   : > { %v10787_v5 = vunpack.i.h.bf16 %v10785_v47  ;;  %v10786_v51 = vunpack.i.l.bf16 %v10785_v47 }
 0x330   : > { %v3978_v46 = vsel %vm2145_vm7, %v3946_v56, %v10787_v5  ;;  %v3977_v40 = vsel %vm2145_vm7, %v3945_v57, %v10786_v51  ;;  %v10800_v45 = vpop.permute.xlu1 %10799 }
 0x331   : > { %v10795_v34 = vpop.permute.xlu0 %10794  ;;  %v10802_v42 = vunpack.i.h.bf16 %v10800_v45  ;;  %v10801_v26 = vunpack.i.l.bf16 %v10800_v45  ;;  %v4009_v1 = vsel %vm2211_vm9, %v3977_v40, %v10791_v21  ;;  %v4010_v44 = vsel %vm2211_vm9, %v3978_v46, %v10792_v15 }
 0x332   : > { %v10797_v63 = vunpack.i.h.bf16 %v10795_v34  ;;  %v10796_v38 = vunpack.i.l.bf16 %v10795_v34 }
 0x334   : > { %v4042_v55 = vsel %vm4017_vm12, %v4009_v1, %v10796_v38  ;;  %v4043_v20 = vsel %vm4017_vm12, %v4010_v44, %v10797_v63  ;;  %v10810_v10 = vpop.permute.xlu1 %10809 }
 0x335   : > { %v10805_v41 = vpop.permute.xlu0 %10804  ;;  %v4075_v2 = vsel %vm4050_vm13, %v4042_v55, %v10801_v26  ;;  %v4076_v9 = vsel %vm4050_vm13, %v4043_v20, %v10802_v42  ;;  %v10812_v28 = vunpack.i.h.bf16 %v10810_v10  ;;  %v10811_v7 = vunpack.i.l.bf16 %v10810_v10 }
 0x336   : > { %v10807_v50 = vunpack.i.h.bf16 %v10805_v41  ;;  %v10806_v39 = vunpack.i.l.bf16 %v10805_v41 }
 0x337   : > { %v3915_v49 = vsel %vm2013_vm2, %v13867_v8, %v10811_v7  ;;  %v3916_v48 = vsel %vm2013_vm2, %v13871_v14, %v10812_v28 }
 0x338   : > { %v4108_v43 = vsel %vm4083_vm14, %v4075_v2, %v10806_v39  ;;  %v4109_v4 = vsel %vm4083_vm14, %v4076_v9, %v10807_v50  ;;  %v10820_v61 = vpop.permute.xlu1 %10819  ;;  %v16153_v2 = vpack.c.bf16 %v14035_v25, %v14025_v54  ;;  %v14283_v54 = vld [vmem:[%s16154_s4 + $0x1] ss:$0 sm:$0xff] }
 0x339   : > { %v10815_v60 = vpop.permute.xlu0 %10814  ;;  %v4140_v53 = vpack.c.bf16 %v4109_v4, %v4108_v43  ;;  %v10822_v30 = vunpack.i.h.bf16 %v10820_v61  ;;  %v10821_v27 = vunpack.i.l.bf16 %v10820_v61  ;;  %v14276_v4 = vld [vmem:[%s16154_s4] ss:$0 sm:$0xff] }
 0x33a   : > { %v10817_v3 = vunpack.i.h.bf16 %v10815_v60  ;;  %v10816_v12 = vunpack.i.l.bf16 %v10815_v60 }
 0x33b   : > { %4397 = vmatmul.mubr.bf16.gmra.mrb[48].mxu1 %v4140_v53 }
 0x33c   : > { %9267 = vmatprep.mubr.msk.bf16.mxu1 %vm2013_vm2, %v16152_v6  ;;  %v3947_v16 = vsel %vm2079_vm3, %v3915_v49, %v10816_v12  ;;  %v3948_v62 = vsel %vm2079_vm3, %v3916_v48, %v10817_v3  ;;  %v10830_v32 = vpop.permute.xlu1 %10829 }
 0x33d   : > { %v10825_v36 = vpop.permute.xlu0 %10824  ;;  %v3979_v29 = vsel %vm2145_vm7, %v3947_v16, %v10821_v27  ;;  %v3980_v11 = vsel %vm2145_vm7, %v3948_v62, %v10822_v30  ;;  %v10832_v33 = vunpack.i.h.bf16 %v10830_v32  ;;  %v10831_v47 = vunpack.i.l.bf16 %v10830_v32 }
 0x33e   : > { %v10827_v24 = vunpack.i.h.bf16 %v10825_v36  ;;  %v10826_v52 = vunpack.i.l.bf16 %v10825_v36 }
 0x340   : > { %v4011_v8 = vsel %vm2211_vm9, %v3979_v29, %v10826_v52  ;;  %v4012_v17 = vsel %vm2211_vm9, %v3980_v11, %v10827_v24 }
 0x341   : > { %v4044_v56 = vsel %vm4017_vm12, %v4011_v8, %v10831_v47  ;;  %v4045_v46 = vsel %vm4017_vm12, %v4012_v17, %v10832_v33 }
 0x344   : > { %v10840_v14 = vpop.permute.xlu1 %10839 }
 0x345   : > { %v10835_v5 = vpop.permute.xlu0 %10834  ;;  %v10842_v51 = vunpack.i.h.bf16 %v10840_v14  ;;  %v10841_v15 = vunpack.i.l.bf16 %v10840_v14  ;;  %v2991_v14 = vld [vmem:[#allocation3 + $0x19a] sm:$0xff] }
 0x346   : > { %v10837_v21 = vunpack.i.h.bf16 %v10835_v5  ;;  %v10836_v57 = vunpack.i.l.bf16 %v10835_v5  ;;  %v2992_v5 = vld [vmem:[#allocation3 + $0x1a2] sm:$0xff] }
 0x348   : > { %v4077_v40 = vsel %vm4050_vm13, %v4044_v56, %v10836_v57  ;;  %v4078_v45 = vsel %vm4050_vm13, %v4045_v46, %v10837_v21  ;;  %v10850_v34 = vpop.permute.xlu1 %10849  ;;  %v11797_v57 = vld [vmem:[%s16155_s5] sm:$0xff]  }
 0x349   : > { %v10845_v63 = vpop.permute.xlu0 %10844  ;;  %v4110_v38 = vsel %vm4083_vm14, %v4077_v40, %v10841_v15  ;;  %v4111_v42 = vsel %vm4083_vm14, %v4078_v45, %v10842_v51  ;;  %v10852_v55 = vunpack.i.h.bf16 %v10850_v34  ;;  %v10851_v20 = vunpack.i.l.bf16 %v10850_v34  ;;  %6184 = vmatpush1.bf16.msra.mxu0 %v11797_v57  ;;  %v11801_v57 = vld [vmem:[%s16155_s5 + $0x20] sm:$0xff]  }
 0x34a   : > { %v10847_v26 = vunpack.i.h.bf16 %v10845_v63  ;;  %v10846_v1 = vunpack.i.l.bf16 %v10845_v63  ;;  %v4142_v44 = vpack.c.bf16 %v4111_v42, %v4110_v38  ;;  %v4147_v42 = vpack.c.bf16 %v2992_v5, %v2991_v14 }
 0x34c   : > { %v3918_v41 = vsel %vm2013_vm2, %v13921_v37, %v10847_v26  ;;  %v3917_v50 = vsel %vm2013_vm2, %v13932_v59, %v10846_v1  ;;  %4405 = vmatmul.mubr.bf16.gmra.mrb[52].mxu1 %v4142_v44  ;;  %v10860_v39 = vpop.permute.xlu1 %10859  ;;  %v16156_v44 = vmov 0  }
 0x34d   : > { %v10855_v10 = vpop.permute.xlu0 %10854  ;;  %9268 = vmatprep.mubr.msk.bf16.mxu1 %vm2013_vm2, %v16153_v2  ;;  %v10862_v60 = vunpack.i.h.bf16 %v10860_v39  ;;  %v10861_v37 = vunpack.i.l.bf16 %v10860_v39  ;;  %v3949_v53 = vsel %vm2079_vm3, %v3917_v50, %v10851_v20  ;;  %v3950_v59 = vsel %vm2079_vm3, %v3918_v41, %v10852_v55  ;;  %6185 = vmatprep.subr.bf16.mxu0 %v16156_v44  ;;  %v11798_v41 = vld [vmem:[%s16155_s5 + $0x8] sm:$0xff]  }
 0x34e   : > { %v10857_v9 = vunpack.i.h.bf16 %v10855_v10  ;;  %v10856_v43 = vunpack.i.l.bf16 %v10855_v10  ;;  %6186 = vmatpush1.bf16.msra.mxu0 %v11798_v41  ;;  %v11804_v41 = vld [vmem:[%s16155_s5 + $0x38] sm:$0xff]  }
 0x34f   : > { %6187 = vmatprep.subr.bf16.mxu0 %v16156_v44 }
 0x350   : > { %v3982_v25 = vsel %vm2145_vm7, %v3950_v59, %v10857_v9  ;;  %v3981_v28 = vsel %vm2145_vm7, %v3949_v53, %v10856_v43  ;;  %v10870_v12 = vpop.permute.xlu1 %10869 }
 0x351   : > { %v4302_v61 = vpop.f32.mrb[0].mxu1  ;;  %v10865_v6 = vpop.permute.xlu0 %10864  ;;  %v10872_v62 = vunpack.i.h.bf16 %v10870_v12  ;;  %v10871_v24 = vunpack.i.l.bf16 %v10870_v12  ;;  %v4013_v52 = vsel %vm2211_vm9, %v3981_v28, %v10861_v37  ;;  %v4014_v32 = vsel %vm2211_vm9, %v3982_v25, %v10862_v60 }
 0x352   : > { %v4434_v7 = vmul.f32 %v14276_v4, %v4302_v61  ;;  %v4304_v3 = vpop.f32.mrb[1].mxu1  ;;  %v10867_v48 = vunpack.i.h.bf16 %v10865_v6  ;;  %v10866_v30 = vunpack.i.l.bf16 %v10865_v6 }
 0x353   : > { %v4305_v36 = vpop.f32.mrb[2].mxu1 }
 0x354   : > { %v4471_v49 = vadd.f32 %v14283_v54, %v4434_v7  ;;  %v4435_v27 = vmul.f32 %v14276_v4, %v4305_v36  ;;  %v4307_v16 = vpop.f32.mrb[3].mxu1  ;;  %v4046_v11 = vsel %vm4017_vm12, %v4013_v52, %v10866_v30  ;;  %v4047_v33 = vsel %vm4017_vm12, %v4014_v32, %v10867_v48  ;;  %v10880_v8 = vpop.permute.xlu1 %10879 }
 0x355   : > { %v10875_v17 = vpop.permute.xlu0 %10874  ;;  %v10882_v56 = vunpack.i.h.bf16 %v10880_v8  ;;  %v10881_v46 = vunpack.i.l.bf16 %v10880_v8  ;;  %v4079_v40 = vsel %vm4050_vm13, %v4046_v11, %v10871_v24  ;;  %v4080_v45 = vsel %vm4050_vm13, %v4047_v33, %v10872_v62  ;;  %v11800_v33 = vld [vmem:[%s16155_s5 + $0x18] sm:$0xff]  }
 0x356   : > { %v4503_v29 = vmax.f32 %v4471_v49, 0.0  ;;  %v4472_v47 = vadd.f32 %v14283_v54, %v4435_v27  ;;  %v10877_v15 = vunpack.i.h.bf16 %v10875_v17  ;;  %v10876_v21 = vunpack.i.l.bf16 %v10875_v17 }
 0x357   : > { %v3919_v50 = vsel %vm2013_vm2, %v14019_v58, %v10881_v46  ;;  %v3920_v39 = vsel %vm2013_vm2, %v14023_v0, %v10882_v56  ;;  %v11799_v0 = vld [vmem:[%s16155_s5 + $0x10] sm:$0xff]   ;;  %v11802_v56 = vld [vmem:[%s16155_s5 + $0x28] sm:$0xff]  }
 0x358   : > { %4590 = vst.msk [vmem:[#allocation4 + $0x19] sm:$0xff] %vm2013_vm2, %v4503_v29  ;;  %v4504_v51 = vmax.f32 %v4472_v47, 0.0  ;;  %v10890_v34 = vpop.permute.xlu1 %10889  ;;  %v4112_v63 = vsel %vm4083_vm14, %v4079_v40, %v10876_v21  ;;  %v4113_v38 = vsel %vm4083_vm14, %v4080_v45, %v10877_v15  ;;  %6188 = vmatpush1.bf16.msra.mxu0 %v11799_v0 }
 0x359   : > { %v10885_v26 = vpop.permute.xlu0 %10884  ;;  %v4144_v1 = vpack.c.bf16 %v4113_v38, %v4112_v63  ;;  %v10892_v10 = vunpack.i.h.bf16 %v10890_v34  ;;  %v10891_v2 = vunpack.i.l.bf16 %v10890_v34  ;;  %6189 = vmatprep.subr.bf16.mxu0 %v16156_v44 }
 0x35a   : > { %4591 = vst.msk [vmem:[#allocation4 + $0x21] sm:$0xff] %vm2013_vm2, %v4504_v51  ;;  %v10887_v55 = vunpack.i.h.bf16 %v10885_v26  ;;  %v10886_v20 = vunpack.i.l.bf16 %v10885_v26  ;;  %v11803_v26 = vld [vmem:[%s16155_s5 + $0x30] sm:$0xff]  }
 0x35b   : > { %4413 = vmatmul.mubr.bf16.gmra.mrb[56].mxu1 %v4144_v1 }
 0x35c   : > { %v3951_v9 = vsel %vm2079_vm3, %v3919_v50, %v10886_v20  ;;  %v3952_v43 = vsel %vm2079_vm3, %v3920_v39, %v10887_v55  ;;  %v10900_v60 = vpop.permute.xlu1 %10899  ;;  %9269 = vmatprep.mubr.msk.bf16.mxu1 %vm2013_vm2, %v4147_v42  ;;  %6190 = vmatpush1.bf16.msra.mxu0 %v11800_v33 }
 0x35d   : > { %v10895_v37 = vpop.permute.xlu0 %10894  ;;  %v3983_v61 = vsel %vm2145_vm7, %v3951_v9, %v10891_v2  ;;  %v3984_v25 = vsel %vm2145_vm7, %v3952_v43, %v10892_v10  ;;  %v10902_v28 = vunpack.i.h.bf16 %v10900_v60  ;;  %v10901_v7 = vunpack.i.l.bf16 %v10900_v60  ;;  %6191 = vmatprep.subr.bf16.mxu0 %v16156_v44 }
 0x35e   : > { %v10897_v53 = vunpack.i.h.bf16 %v10895_v37  ;;  %v10896_v59 = vunpack.i.l.bf16 %v10895_v37  ;;  %v11805_v37 = vld [vmem:[%s16155_s5 + $0x40] sm:$0xff]  }
 0x35f   : > { %v14316_v58 = vld [vmem:[#allocation4 + $0x18] sm:$0xff] }
 0x360   : > { %v4750_v12 = vld [vmem:[#allocation4 + $0x19] sm:$0xff]  ;;  %v4015_v36 = vsel %vm2211_vm9, %v3983_v61, %v10896_v59  ;;  %v4016_v49 = vsel %vm2211_vm9, %v3984_v25, %v10897_v53  ;;  %v10910_v48 = vpop.permute.xlu1 %10909  ;;  %6192 = vmatpush1.bf16.msra.mxu0 %v11801_v57 }
 0x361   : > { %v14323_v3 = vld [vmem:[#allocation4 + $0x20] sm:$0xff]  ;;  %v10905_v16 = vpop.permute.xlu0 %10904  ;;  %v10912_v62 = vunpack.i.h.bf16 %v10910_v48  ;;  %v10911_v24 = vunpack.i.l.bf16 %v10910_v48  ;;  %v4048_v47 = vsel %vm4017_vm12, %v4015_v36, %v10901_v7  ;;  %v4049_v8 = vsel %vm4017_vm12, %v4016_v49, %v10902_v28  ;;  %6193 = vmatprep.subr.bf16.mxu0 %v16156_v44 }
 0x362   : > { %v4751_v6 = vld [vmem:[#allocation4 + $0x21] sm:$0xff]  ;;  %v10923_v30 = vpack.i.bf16 %v14323_v3, %v14316_v58  ;;  %v10907_v29 = vunpack.i.h.bf16 %v10905_v16  ;;  %v10906_v11 = vunpack.i.l.bf16 %v10905_v16 }
 0x363   : > { %v10928_v27 = vpack.i.bf16 %v4751_v6, %v4750_v12  ;;  %v4782_v52 = vld [vmem:[#allocation4 + $0x1a] sm:$0xff]  ;;  %v4783_v32 = vld [vmem:[#allocation4 + $0x22] sm:$0xff] }
 0x364   : > { %10924 = vrot.lane.b32.xlu0 %v10923_v30, %s16112_s26  ;;  %v10933_v17 = vpack.i.bf16 %v4783_v32, %v4782_v52  ;;  %v4081_v14 = vsel %vm4050_vm13, %v4048_v47, %v10906_v11  ;;  %v4082_v5 = vsel %vm4050_vm13, %v4049_v8, %v10907_v29  ;;  %6194 = vmatpush1.bf16.msra.mxu0 %v11802_v56 }
 0x365   : > { %10929 = vrot.lane.b32.xlu1 %v10928_v27, %s16114_s0  ;;  %v4114_v51 = vsel %vm4083_vm14, %v4081_v14, %v10911_v24  ;;  %v4115_v15 = vsel %vm4083_vm14, %v4082_v5, %v10912_v62  ;;  %6195 = vmatprep.subr.bf16.mxu0 %v16156_v44 }
 0x366   : > { %v4146_v21 = vpack.c.bf16 %v4115_v15, %v4114_v51 }
 0x368   : > { %10934 = vrot.lane.b32.xlu0 %v10933_v17, %s16090_s21  ;;  %4421 = vmatmul.mubr.bf16.gmra.mrb[60].mxu1 %v4146_v21 }
 0x369   : > { %10939 = vrot.lane.b32.xlu1 %v10928_v27, %s16108_s29  ;;  %6196 = vmatpush1.bf16.msra.mxu0 %v11803_v26 }
 0x36a   : > { %6197 = vmatprep.subr.bf16.mxu0 %v16156_v44 }
 0x36c   : > { %10944 = vrot.lane.b32.xlu0 %v10933_v17, %s16110_s23 }
 0x36d   : > { %v4310_v46 = vpop.f32.mrb[4].mxu1  ;;  %6198 = vmatpush1.bf16.msra.mxu0 %v11804_v41 }
 0x36e   : > { %v4436_v40 = vmul.f32 %v14276_v4, %v4310_v46  ;;  %v4312_v45 = vpop.f32.mrb[5].mxu1  ;;  %6199 = vmatprep.subr.bf16.mxu0 %v16156_v44 }
 0x36f   : > { %v4313_v34 = vpop.f32.mrb[6].mxu1 }
 0x370   : > { %v4473_v63 = vadd.f32 %v14283_v54, %v4436_v40  ;;  %v4437_v38 = vmul.f32 %v14276_v4, %v4313_v34  ;;  %v4315_v42 = vpop.f32.mrb[7].mxu1 }
 0x371   : > { %6200 = vmatpush1.bf16.msra.mxu0 %v11805_v37 }
 0x372   : > { %v4505_v1 = vmax.f32 %v4473_v63, 0.0  ;;  %v4474_v55 = vadd.f32 %v14283_v54, %v4437_v38 }
 0x374   : > { %4592 = vst.msk [vmem:[#allocation4 + $0x31] sm:$0xff] %vm2013_vm2, %v4505_v1  ;;  %v4506_v20 = vmax.f32 %v4474_v55, 0.0 }
 0x375   : > { %v4318_v50 = vpop.f32.mrb[8].mxu1 }
 0x376   : > { %4593 = vst.msk [vmem:[#allocation4 + $0x39] sm:$0xff] %vm2013_vm2, %v4506_v20  ;;  %v4438_v39 = vmul.f32 %v14276_v4, %v4318_v50  ;;  %v4320_v10 = vpop.f32.mrb[9].mxu1 }
 0x377   : > { %v4321_v2 = vpop.f32.mrb[10].mxu1 }
 0x378   : > { %v4475_v9 = vadd.f32 %v14283_v54, %v4438_v39  ;;  %v4439_v43 = vmul.f32 %v14276_v4, %v4321_v2  ;;  %v4323_v60 = vpop.f32.mrb[11].mxu1 }
 0x37a   : > { %v4507_v53 = vmax.f32 %v4475_v9, 0.0  ;;  %v4476_v59 = vadd.f32 %v14283_v54, %v4439_v43 }
 0x37b   : > { %v4847_v61 = vld [vmem:[#allocation4 + $0x31] sm:$0xff] }
 0x37c   : > { %4594 = vst.msk [vmem:[#allocation4 + $0x49] sm:$0xff] %vm2013_vm2, %v4507_v53  ;;  %v4508_v0 = vmax.f32 %v4476_v59, 0.0  ;;  %v14376_v36 = vld [vmem:[#allocation4 + $0x30] sm:$0xff] }
 0x37d   : > { %v4879_v25 = vld [vmem:[#allocation4 + $0x32] sm:$0xff]  ;;  %v4880_v28 = vld [vmem:[#allocation4 + $0x3a] sm:$0xff] }
 0x37e   : > { %v4848_v7 = vld [vmem:[#allocation4 + $0x39] sm:$0xff]  ;;  %4595 = vst.msk [vmem:[#allocation4 + $0x51] sm:$0xff] %vm2013_vm2, %v4508_v0  ;;  %v6032_v12 = vpack.c.bf16 %v4880_v28, %v4879_v25  ;;  %v10968_v16 = vpack.i.bf16 %v4880_v28, %v4879_v25 }
 0x37f   : > { %v10953_v6 = vpack.i.bf16 %v4848_v7, %v4847_v61  ;;  %v14378_v49 = vld [vmem:[#allocation4 + $0x38] sm:$0xff] }
 0x380   : > { %v10948_v48 = vpack.i.bf16 %v14378_v49, %v14376_v36  ;;  %9281 = vmatprep.mubr.msk.bf16.mxu0 %vm2013_vm2, %v6032_v12 }
 0x381   : > { %10954 = vrot.lane.b32.xlu0 %v10953_v6, %s16157_s22 }
 0x382   : > { %10949 = vrot.lane.b32.xlu1 %v10948_v48, %s16118_s24 }
 0x383   : > { %v14397_v52 = vld [vmem:[#allocation4 + $0x48] sm:$0xff] }
 0x384   : > { %v4849_v8 = vld [vmem:[#allocation4 + $0x49] sm:$0xff] }
 0x385   : > { %10964 = vrot.lane.b32.xlu0 %v10953_v6, %s16114_s0  ;;  %v14387_v30 = vld [vmem:[#allocation4 + $0x4a] sm:$0xff]  ;;  %v14389_v27 = vld [vmem:[#allocation4 + $0x52] sm:$0xff] }
 0x386   : > { %10959 = vrot.lane.b32.xlu1 %v10948_v48, %s16112_s26  ;;  %v14391_v62 = vld [vmem:[#allocation4 + $0x50] sm:$0xff]  ;;  %v6034_v24 = vpack.c.bf16 %v14389_v27, %v14387_v30  ;;  %v11003_v56 = vpack.i.bf16 %v14389_v27, %v14387_v30 }
 0x387   : > { %v10983_v32 = vpack.i.bf16 %v14391_v62, %v14397_v52  ;;  %v4850_v29 = vld [vmem:[#allocation4 + $0x51] sm:$0xff] }
 0x388   : > { %v10988_v14 = vpack.i.bf16 %v4850_v29, %v4849_v8 }
 0x389   : > { %10974 = vrot.lane.b32.xlu0 %v10953_v6, %s16108_s29 }
 0x38a   : > { %10969 = vrot.lane.b32.xlu1 %v10968_v16, %s16090_s21 }
 0x38d   : > { %10984 = vrot.lane.b32.xlu0 %v10983_v32, %s16118_s24  ;;  %v4326_v11 = vpop.f32.mrb[12].mxu1 }
 0x38e   : > { %10979 = vrot.lane.b32.xlu1 %v10968_v16, %s16110_s23  ;;  %v4440_v33 = vmul.f32 %v14276_v4, %v4326_v11  ;;  %v4328_v47 = vpop.f32.mrb[13].mxu1 }
 0x38f   : > { %v4329_v17 = vpop.f32.mrb[14].mxu1 }
 0x390   : > { %v4477_v5 = vadd.f32 %v14283_v54, %v4440_v33  ;;  %v4441_v51 = vmul.f32 %v14276_v4, %v4329_v17  ;;  %v4331_v15 = vpop.f32.mrb[15].mxu1 }
 0x391   : > { %10994 = vrot.lane.b32.xlu0 %v10983_v32, %s16112_s26 }
 0x392   : > { %10989 = vrot.lane.b32.xlu1 %v10988_v14, %s16157_s22  ;;  %v4509_v21 = vmax.f32 %v4477_v5, 0.0  ;;  %v4478_v57 = vadd.f32 %v14283_v54, %v4441_v51 }
 0x394   : > { %4596 = vst.msk [vmem:[#allocation4 + $0x61] sm:$0xff] %vm2013_vm2, %v4509_v21  ;;  %v4510_v46 = vmax.f32 %v4478_v57, 0.0 }
 0x395   : > { %11004 = vrot.lane.b32.xlu0 %v11003_v56, %s16090_s21  ;;  %v4334_v40 = vpop.f32.mrb[16].mxu1 }
 0x396   : > { %10999 = vrot.lane.b32.xlu1 %v10988_v14, %s16114_s0  ;;  %4597 = vst.msk [vmem:[#allocation4 + $0x69] sm:$0xff] %vm2013_vm2, %v4510_v46  ;;  %v4442_v45 = vmul.f32 %v14276_v4, %v4334_v40  ;;  %v4336_v34 = vpop.f32.mrb[17].mxu1 }
 0x397   : > { %v4337_v63 = vpop.f32.mrb[18].mxu1 }
 0x398   : > { %v4479_v38 = vadd.f32 %v14283_v54, %v4442_v45  ;;  %v4443_v42 = vmul.f32 %v14276_v4, %v4337_v63  ;;  %v4339_v26 = vpop.f32.mrb[19].mxu1 }
 0x399   : > { %11014 = vrot.lane.b32.xlu0 %v11003_v56, %s16110_s23 }
 0x39a   : > { %11009 = vrot.lane.b32.xlu1 %v10988_v14, %s16108_s29  ;;  %v4511_v1 = vmax.f32 %v4479_v38, 0.0  ;;  %v4480_v55 = vadd.f32 %v14283_v54, %v4443_v42 }
 0x39b   : > { %v4851_v20 = vld [vmem:[#allocation4 + $0x61] sm:$0xff] }
 0x39c   : > { %v4819_v41 = vld [vmem:[#allocation4 + $0x60] sm:$0xff]  ;;  %4598 = vst.msk [vmem:[#allocation4 + $0x79] sm:$0xff] %vm2013_vm2, %v4511_v1  ;;  %v4512_v50 = vmax.f32 %v4480_v55, 0.0 }
 0x39d   : > { %v4852_v39 = vld [vmem:[#allocation4 + $0x69] sm:$0xff] }
 0x39e   : > { %v4820_v10 = vld [vmem:[#allocation4 + $0x68] sm:$0xff]  ;;  %v11023_v9 = vpack.i.bf16 %v4852_v39, %v4851_v20  ;;  %4599 = vst.msk [vmem:[#allocation4 + $0x81] sm:$0xff] %vm2013_vm2, %v4512_v50 }
 0x39f   : > { %v14422_v2 = vld [vmem:[#allocation4 + $0x62] sm:$0xff]  ;;  %v11018_v43 = vpack.i.bf16 %v4820_v10, %v4819_v41  ;;  %v14424_v60 = vld [vmem:[#allocation4 + $0x6a] sm:$0xff] }
 0x3a0   : > { %v6036_v37 = vpack.c.bf16 %v14424_v60, %v14422_v2  ;;  %11024 = vrot.lane.b32.xlu0 %v11023_v9, %s16157_s22  ;;  %v11038_v53 = vpack.i.bf16 %v14424_v60, %v14422_v2 }
 0x3a1   : > { %11019 = vrot.lane.b32.xlu1 %v11018_v43, %s16118_s24 }
 0x3a3   : > { %v4821_v28 = vld [vmem:[#allocation4 + $0x78] sm:$0xff] }
 0x3a4   : > { %11034 = vrot.lane.b32.xlu0 %v11023_v9, %s16114_s0  ;;  %v4853_v48 = vld [vmem:[#allocation4 + $0x79] sm:$0xff] }
 0x3a5   : > { %11029 = vrot.lane.b32.xlu1 %v11018_v43, %s16112_s26  ;;  %v14435_v59 = vld [vmem:[#allocation4 + $0x7a] sm:$0xff]  ;;  %v14437_v61 = vld [vmem:[#allocation4 + $0x82] sm:$0xff] }
 0x3a6   : > { %v4822_v0 = vld [vmem:[#allocation4 + $0x80] sm:$0xff]  ;;  %v6038_v25 = vpack.c.bf16 %v14437_v61, %v14435_v59  ;;  %v11073_v5 = vpack.i.bf16 %v14437_v61, %v14435_v59 }
 0x3a7   : > { %v11053_v7 = vpack.i.bf16 %v4822_v0, %v4821_v28  ;;  %v4854_v12 = vld [vmem:[#allocation4 + $0x81] sm:$0xff] }
 0x3a8   : > { %11044 = vrot.lane.b32.xlu0 %v11023_v9, %s16108_s29  ;;  %v11058_v29 = vpack.i.bf16 %v4854_v12, %v4853_v48 }
 0x3a9   : > { %11039 = vrot.lane.b32.xlu1 %v11038_v53, %s16090_s21 }
 0x3ac   : > { %11054 = vrot.lane.b32.xlu0 %v11053_v7, %s16118_s24 }
 0x3ad   : > { %11049 = vrot.lane.b32.xlu1 %v11038_v53, %s16110_s23  ;;  %v4342_v6 = vpop.f32.mrb[20].mxu1 }
 0x3ae   : > { %v4444_v16 = vmul.f32 %v14276_v4, %v4342_v6  ;;  %v4344_v32 = vpop.f32.mrb[21].mxu1 }
 0x3af   : > { %v4345_v11 = vpop.f32.mrb[22].mxu1 }
 0x3b0   : > { %v4481_v33 = vadd.f32 %v14283_v54, %v4444_v16  ;;  %v4445_v47 = vmul.f32 %v14276_v4, %v4345_v11  ;;  %v4347_v8 = vpop.f32.mrb[23].mxu1  ;;  %11064 = vrot.lane.b32.xlu0 %v11053_v7, %s16112_s26 }
 0x3b1   : > { %11059 = vrot.lane.b32.xlu1 %v11058_v29, %s16157_s22 }
 0x3b2   : > { %v4513_v17 = vmax.f32 %v4481_v33, 0.0  ;;  %v4482_v14 = vadd.f32 %v14283_v54, %v4445_v47 }
 0x3b4   : > { %4600 = vst.msk [vmem:[#allocation4 + $0x91] sm:$0xff] %vm2013_vm2, %v4513_v17  ;;  %v4514_v51 = vmax.f32 %v4482_v14, 0.0  ;;  %11074 = vrot.lane.b32.xlu0 %v11073_v5, %s16090_s21 }
 0x3b5   : > { %11069 = vrot.lane.b32.xlu1 %v11058_v29, %s16114_s0  ;;  %v4350_v15 = vpop.f32.mrb[24].mxu1 }
 0x3b6   : > { %4601 = vst.msk [vmem:[#allocation4 + $0x99] sm:$0xff] %vm2013_vm2, %v4514_v51  ;;  %v4446_v21 = vmul.f32 %v14276_v4, %v4350_v15  ;;  %v4352_v57 = vpop.f32.mrb[25].mxu1 }
 0x3b7   : > { %v4353_v56 = vpop.f32.mrb[26].mxu1 }
 0x3b8   : > { %v4483_v46 = vadd.f32 %v14283_v54, %v4446_v21  ;;  %v4447_v40 = vmul.f32 %v14276_v4, %v4353_v56  ;;  %v4355_v45 = vpop.f32.mrb[27].mxu1  ;;  %11084 = vrot.lane.b32.xlu0 %v11073_v5, %s16110_s23 }
 0x3b9   : > { %11079 = vrot.lane.b32.xlu1 %v11058_v29, %s16108_s29 }
 0x3ba   : > { %v4515_v34 = vmax.f32 %v4483_v46, 0.0  ;;  %v4484_v63 = vadd.f32 %v14283_v54, %v4447_v40 }
 0x3bb   : > { %v4855_v42 = vld [vmem:[#allocation4 + $0x91] sm:$0xff] }
 0x3bc   : > { %4602 = vst.msk [vmem:[#allocation4 + $0xa9] sm:$0xff] %vm2013_vm2, %v4515_v34  ;;  %v4516_v38 = vmax.f32 %v4484_v63, 0.0  ;;  %v4823_v26 = vld [vmem:[#allocation4 + $0x90] sm:$0xff] }
 0x3bd   : > { %v4856_v1 = vld [vmem:[#allocation4 + $0x99] sm:$0xff] }
 0x3be   : > { %v4824_v55 = vld [vmem:[#allocation4 + $0x98] sm:$0xff]  ;;  %4603 = vst.msk [vmem:[#allocation4 + $0xb1] sm:$0xff] %vm2013_vm2, %v4516_v38  ;;  %v11093_v41 = vpack.i.bf16 %v4856_v1, %v4855_v42  ;;  %v10915_v38 = vpop.permute.xlu0 %10914 }
 0x3bf   : > { %v14464_v20 = vld [vmem:[#allocation4 + $0x92] sm:$0xff]  ;;  %v11088_v50 = vpack.i.bf16 %v4824_v55, %v4823_v26  ;;  %v14467_v39 = vld [vmem:[#allocation4 + $0x9a] sm:$0xff] }
 0x3c0   : > { %v6040_v10 = vpack.c.bf16 %v14467_v39, %v14464_v20  ;;  %11094 = vrot.lane.b32.xlu0 %v11093_v41, %s16157_s22  ;;  %v11108_v9 = vpack.i.bf16 %v14467_v39, %v14464_v20 }
 0x3c1   : > { %11089 = vrot.lane.b32.xlu1 %v11088_v50, %s16118_s24 }
 0x3c3   : > { %v4825_v53 = vld [vmem:[#allocation4 + $0xa8] sm:$0xff] }
 0x3c4   : > { %11104 = vrot.lane.b32.xlu0 %v11093_v41, %s16114_s0  ;;  %v4857_v12 = vld [vmem:[#allocation4 + $0xa9] sm:$0xff] }
 0x3c5   : > { %11099 = vrot.lane.b32.xlu1 %v11088_v50, %s16112_s26  ;;  %v4826_v43 = vld [vmem:[#allocation4 + $0xb0] sm:$0xff] }
 0x3c6   : > { %v11123_v0 = vpack.i.bf16 %v4826_v43, %v4825_v53  ;;  %v4858_v28 = vld [vmem:[#allocation4 + $0xb1] sm:$0xff] }
 0x3c7   : > { %v11128_v16 = vpack.i.bf16 %v4858_v28, %v4857_v12  ;;  %v4794_v29 = vld [vmem:[#allocation4 + $0xaa] sm:$0xff]  ;;  %v4795_v11 = vld [vmem:[#allocation4 + $0xb2] sm:$0xff] }
 0x3c8   : > { %11114 = vrot.lane.b32.xlu0 %v11093_v41, %s16108_s29  ;;  %v11143_v5 = vpack.i.bf16 %v4795_v11, %v4794_v29  ;;  %v10917_v11 = vunpack.i.h.bf16 %v10915_v38 }
 0x3c9   : > { %11109 = vrot.lane.b32.xlu1 %v11108_v9, %s16090_s21 }
 0x3cc   : > { %11124 = vrot.lane.b32.xlu0 %v11123_v0, %s16118_s24 }
 0x3cd   : > { %11119 = vrot.lane.b32.xlu1 %v11108_v9, %s16110_s23  ;;  %v4358_v7 = vpop.f32.mrb[28].mxu1 }
 0x3ce   : > { %v4448_v6 = vmul.f32 %v14276_v4, %v4358_v7  ;;  %v4360_v48 = vpop.f32.mrb[29].mxu1 }
 0x3cf   : > { %v4361_v32 = vpop.f32.mrb[30].mxu1 }
 0x3d0   : > { %v4485_v33 = vadd.f32 %v14283_v54, %v4448_v6  ;;  %v4449_v47 = vmul.f32 %v14276_v4, %v4361_v32  ;;  %v4363_v8 = vpop.f32.mrb[31].mxu1  ;;  %11134 = vrot.lane.b32.xlu0 %v11123_v0, %s16112_s26  ;;  %v10920_v0 = vpop.permute.xlu1 %10919 }
 0x3d1   : > { %11129 = vrot.lane.b32.xlu1 %v11128_v16, %s16157_s22  ;;  %v4622_v8 = vld [vmem:[#allocation4] sm:$0xff] }
 0x3d2   : > { %v4517_v17 = vmax.f32 %v4485_v33, 0.0  ;;  %v4486_v14 = vadd.f32 %v14283_v54, %v4449_v47  ;;  %v10916_v33 = vunpack.i.l.bf16 %v10915_v38 }
 0x3d4   : > { %4604 = vst.msk [vmem:[#allocation4 + $0xc1] sm:$0xff] %vm2013_vm2, %v4517_v17  ;;  %v4518_v51 = vmax.f32 %v4486_v14, 0.0  ;;  %11144 = vrot.lane.b32.xlu0 %v11143_v5, %s16090_s21  ;;  %v4623_v17 = vld [vmem:[#allocation4 + $0x8] sm:$0xff] }
 0x3d5   : > { %11139 = vrot.lane.b32.xlu1 %v11128_v16, %s16114_s0  ;;  %v4366_v15 = vpop.f32.mrb[32].mxu1 }
 0x3d6   : > { %4605 = vst.msk [vmem:[#allocation4 + $0xc9] sm:$0xff] %vm2013_vm2, %v4518_v51  ;;  %v4450_v21 = vmul.f32 %v14276_v4, %v4366_v15  ;;  %v4368_v57 = vpop.f32.mrb[33].mxu1  ;;  %v10925_v43 = vpop.permute.xlu0 %10924 }
 0x3d7   : > { %v4369_v46 = vpop.f32.mrb[34].mxu1  ;;  %v10921_v57 = vunpack.i.l.bf16 %v10920_v0 }
 0x3d8   : > { %v4487_v56 = vadd.f32 %v14283_v54, %v4450_v21  ;;  %11154 = vrot.lane.b32.xlu0 %v11143_v5, %s16110_s23  ;;  %v4451_v40 = vmul.f32 %v14276_v4, %v4369_v46  ;;  %v4371_v45 = vpop.f32.mrb[35].mxu1  ;;  %v10922_v21 = vunpack.i.h.bf16 %v10920_v0 }
 0x3d9   : > { %11149 = vrot.lane.b32.xlu1 %v11128_v16, %s16108_s29  ;;  %v5808_v45 = vsel %vm2013_vm2, %v4623_v17, %v10917_v11 }
 0x3da   : > { %v4519_v34 = vmax.f32 %v4487_v56, 0.0  ;;  %v4488_v63 = vadd.f32 %v14283_v54, %v4451_v40  ;;  %v10935_v15 = vpop.permute.xlu0 %10934  ;;  %v10930_v56 = vpop.permute.xlu1 %10929 }
 0x3db   : > { %v4859_v42 = vld [vmem:[#allocation4 + $0xc1] sm:$0xff]  ;;  %v10936_v17 = vunpack.i.l.bf16 %v10935_v15 }
 0x3dc   : > { %4606 = vst.msk [vmem:[#allocation4 + $0xd9] sm:$0xff] %vm2013_vm2, %v4519_v34  ;;  %v4520_v26 = vmax.f32 %v4488_v63, 0.0  ;;  %v4827_v55 = vld [vmem:[#allocation4 + $0xc0] sm:$0xff]  ;;  %v5807_v34 = vsel %vm2013_vm2, %v4622_v8, %v10916_v33  ;;  %v10932_v33 = vunpack.i.h.bf16 %v10930_v56  ;;  %v10937_v8 = vunpack.i.h.bf16 %v10935_v15 }
 0x3dd   : > { %v4860_v1 = vld [vmem:[#allocation4 + $0xc9] sm:$0xff] }
 0x3de   : > { %v4828_v41 = vld [vmem:[#allocation4 + $0xc8] sm:$0xff]  ;;  %v11163_v50 = vpack.i.bf16 %v4860_v1, %v4859_v42  ;;  %4607 = vst.msk [vmem:[#allocation4 + $0xe1] sm:$0xff] %vm2013_vm2, %v4520_v26  ;;  %v10927_v42 = vunpack.i.h.bf16 %v10925_v43  ;;  %v10926_v26 = vunpack.i.l.bf16 %v10925_v43  ;;  %v14518_v0 = vpop.permute.xlu0 %10944 }
 0x3df   : > { %v11158_v9 = vpack.i.bf16 %v4828_v41, %v4827_v55  ;;  %v4796_v12 = vld [vmem:[#allocation4 + $0xc2] sm:$0xff]  ;;  %v4797_v6 = vld [vmem:[#allocation4 + $0xca] sm:$0xff]  ;;  %v5840_v55 = vsel %vm2079_vm3, %v5808_v45, %v10922_v21  ;;  %v5839_v41 = vsel %vm2079_vm3, %v5807_v34, %v10921_v57 }
 0x3e0   : > { %11164 = vrot.lane.b32.xlu0 %v11163_v50, %s16157_s22  ;;  %v11178_v47 = vpack.i.bf16 %v4797_v6, %v4796_v12  ;;  %v14520_v12 = vpop.permute.xlu1 %10939  ;;  %v5872_v11 = vsel %vm2145_vm7, %v5840_v55, %v10927_v42 }
 0x3e1   : > { %11159 = vrot.lane.b32.xlu1 %v11158_v9, %s16118_s24 }
 0x3e2   : > { %v4374_v53 = vpop.f32.mrb[36].mxu1 }
 0x3e3   : > { %v4452_v28 = vmul.f32 %v14276_v4, %v4374_v53  ;;  %v4376_v7 = vpop.f32.mrb[37].mxu1  ;;  %v4829_v40 = vld [vmem:[#allocation4 + $0xd8] sm:$0xff] }
 0x3e4   : > { %v4377_v48 = vpop.f32.mrb[38].mxu1  ;;  %11174 = vrot.lane.b32.xlu0 %v11163_v50, %s16114_s0  ;;  %v4861_v53 = vld [vmem:[#allocation4 + $0xd9] sm:$0xff] }
 0x3e5   : > { %11169 = vrot.lane.b32.xlu1 %v11158_v9, %s16112_s26  ;;  %v4489_v16 = vadd.f32 %v14283_v54, %v4452_v28  ;;  %v4453_v32 = vmul.f32 %v14276_v4, %v4377_v48  ;;  %v4379_v29 = vpop.f32.mrb[39].mxu1  ;;  %v4830_v51 = vld [vmem:[#allocation4 + $0xe0] sm:$0xff] }
 0x3e6   : > { %v11193_v63 = vpack.i.bf16 %v4830_v51, %v4829_v40  ;;  %v4862_v38 = vld [vmem:[#allocation4 + $0xe1] sm:$0xff]  ;;  %v5871_v29 = vsel %vm2145_vm7, %v5839_v41, %v10926_v26 }
 0x3e7   : > { %v4521_v14 = vmax.f32 %v4489_v16, 0.0  ;;  %v4490_v5 = vadd.f32 %v14283_v54, %v4453_v32  ;;  %v11198_v7 = vpack.i.bf16 %v4862_v38, %v4861_v53  ;;  %v4798_v16 = vld [vmem:[#allocation4 + $0xda] sm:$0xff]  ;;  %v4799_v32 = vld [vmem:[#allocation4 + $0xe2] sm:$0xff]  ;;  %v5904_v38 = vsel %vm2211_vm9, %v5872_v11, %v10932_v33 }
 0x3e8   : > { %11184 = vrot.lane.b32.xlu0 %v11163_v50, %s16108_s29  ;;  %v11213_v21 = vpack.i.bf16 %v4799_v32, %v4798_v16  ;;  %v10941_v16 = vunpack.i.l.bf16 %v14520_v12  ;;  %v10946_v11 = vunpack.i.l.bf16 %v14518_v0 }
 0x3e9   : > { %11179 = vrot.lane.b32.xlu1 %v11178_v47, %s16090_s21  ;;  %4608 = vst.msk [vmem:[#allocation4 + $0xf1] sm:$0xff] %vm2013_vm2, %v4521_v14  ;;  %v4522_v46 = vmax.f32 %v4490_v5, 0.0 }
 0x3eb   : > { %4609 = vst.msk [vmem:[#allocation4 + $0xf9] sm:$0xff] %vm2013_vm2, %v4522_v46 }
 0x3ec   : > { %v4382_v1 = vpop.f32.mrb[40].mxu1  ;;  %11194 = vrot.lane.b32.xlu0 %v11193_v63, %s16118_s24 }
 0x3ed   : > { %11189 = vrot.lane.b32.xlu1 %v11178_v47, %s16110_s23  ;;  %v4454_v50 = vmul.f32 %v14276_v4, %v4382_v1  ;;  %v4384_v9 = vpop.f32.mrb[41].mxu1  ;;  %v10931_v47 = vunpack.i.l.bf16 %v10930_v56  ;;  %v5936_v1 = vsel %vm4017_vm12, %v5904_v38, %v10937_v8  ;;  %v10947_v8 = vunpack.i.h.bf16 %v14518_v0 }
 0x3ee   : > { %v4385_v28 = vpop.f32.mrb[42].mxu1 }
 0x3ef   : > { %v4491_v43 = vadd.f32 %v14283_v54, %v4454_v50  ;;  %v4455_v6 = vmul.f32 %v14276_v4, %v4385_v28  ;;  %v4387_v48 = vpop.f32.mrb[43].mxu1 }
 0x3f0   : > { %11204 = vrot.lane.b32.xlu0 %v11193_v63, %s16112_s26  ;;  %v5903_v63 = vsel %vm2211_vm9, %v5871_v29, %v10931_v47  ;;  %v10942_v29 = vunpack.i.h.bf16 %v14520_v12  ;;  %v4863_v33 = vld [vmem:[#allocation4 + $0xf1] sm:$0xff] }
 0x3f1   : > { %11199 = vrot.lane.b32.xlu1 %v11198_v7, %s16157_s22  ;;  %v4523_v14 = vmax.f32 %v4491_v43, 0.0  ;;  %v4492_v5 = vadd.f32 %v14283_v54, %v4455_v6  ;;  %v5935_v26 = vsel %vm4017_vm12, %v5903_v63, %v10936_v17  ;;  %v4831_v47 = vld [vmem:[#allocation4 + $0xf0] sm:$0xff] }
 0x3f2   : > { %v14529_v57 = vld [vmem:[#allocation4 + $0xf2] sm:$0xff]  ;;  %v14532_v56 = vld [vmem:[#allocation4 + $0xfa] sm:$0xff]  ;;  %v5810_v12 = vsel %vm2013_vm2, %v14323_v3, %v10942_v29 }
 0x3f3   : > { %v10955_v51 = vpop.permute.xlu0 %10954  ;;  %4610 = vst.msk [vmem:[#allocation4 + $0x109] sm:$0xff] %vm2013_vm2, %v4523_v14  ;;  %v4524_v46 = vmax.f32 %v4492_v5, 0.0  ;;  %v6048_v55 = vpack.c.bf16 %v14532_v56, %v14529_v57  ;;  %v4864_v6 = vld [vmem:[#allocation4 + $0xf9] sm:$0xff]  ;;  %v5842_v30 = vsel %vm2079_vm3, %v5810_v12, %v10947_v8 }
 0x3f4   : > { %v10957_v40 = vunpack.i.h.bf16 %v10955_v51  ;;  %v10956_v45 = vunpack.i.l.bf16 %v10955_v51  ;;  %v10950_v34 = vpop.permute.xlu1 %10949  ;;  %11214 = vrot.lane.b32.xlu0 %v11213_v21, %s16090_s21  ;;  %v4832_v48 = vld [vmem:[#allocation4 + $0xf8] sm:$0xff]  ;;  %v11233_v14 = vpack.i.bf16 %v4864_v6, %v4863_v33  ;;  %v11248_v6 = vpack.i.bf16 %v14532_v56, %v14529_v57 }
 0x3f5   : > { %v10952_v15 = vunpack.i.h.bf16 %v10950_v34  ;;  %v10951_v42 = vunpack.i.l.bf16 %v10950_v34  ;;  %11209 = vrot.lane.b32.xlu1 %v11198_v7, %s16114_s0  ;;  %4611 = vst.msk [vmem:[#allocation4 + $0x111] sm:$0xff] %vm2013_vm2, %v4524_v46  ;;  %v11228_v5 = vpack.i.bf16 %v4832_v48, %v4831_v47 }
 0x3f7   : > { %v5967_v41 = vsel %vm4050_vm13, %v5935_v26, %v10951_v42  ;;  %v5968_v50 = vsel %vm4050_vm13, %v5936_v1, %v10952_v15  ;;  %v10965_v9 = vpop.permute.xlu0 %10964 }
 0x3f8   : > { %v5999_v53 = vsel %vm4083_vm14, %v5967_v41, %v10956_v45  ;;  %v6000_v28 = vsel %vm4083_vm14, %v5968_v50, %v10957_v40  ;;  %v10960_v43 = vpop.permute.xlu1 %10959  ;;  %11224 = vrot.lane.b32.xlu0 %v11213_v21, %s16110_s23  ;;  %v10967_v27 = vunpack.i.h.bf16 %v10965_v9 }
 0x3f9   : > { %v6031_v32 = vpack.c.bf16 %v6000_v28, %v5999_v53  ;;  %11219 = vrot.lane.b32.xlu1 %v11198_v7, %s16108_s29  ;;  %v10962_v51 = vunpack.i.h.bf16 %v10960_v43  ;;  %v10961_v46 = vunpack.i.l.bf16 %v10960_v43  ;;  %v5809_v7 = vsel %vm2013_vm2, %v14316_v58, %v10941_v16 }
 0x3fa   : > { %v5841_v21 = vsel %vm2079_vm3, %v5809_v7, %v10946_v11 }
 0x3fb   : > { %6216 = vmatmul.mubr.bf16.vlgmr.msra.gmra.mrb[32].mxu0 %v6031_v32  ;;  %v14553_v17 = vpop.permute.xlu0 %10974  ;;  %v5873_v63 = vsel %vm2145_vm7, %v5841_v21, %v10961_v46  ;;  %v5874_v38 = vsel %vm2145_vm7, %v5842_v30, %v10962_v51  ;;  %v4833_v46 = vld [vmem:[#allocation4 + $0x108] sm:$0xff] }
 0x3fc   : > { %v10970_v40 = vpop.permute.xlu1 %10969  ;;  %9282 = vmatprep.mubr.msk.bf16.mxu0 %vm2013_vm2, %v6034_v24  ;;  %11234 = vrot.lane.b32.xlu0 %v11233_v14, %s16157_s22  ;;  %v14563_v0 = vld [vmem:[#allocation4 + $0x10a] sm:$0xff]  ;;  %v14568_v45 = vld [vmem:[#allocation4 + $0x112] sm:$0xff]  ;;  %v10966_v24 = vunpack.i.l.bf16 %v10965_v9  ;;  %v5906_v9 = vsel %vm2211_vm9, %v5874_v38, %v10967_v27 }
 0x3fd   : > { %11229 = vrot.lane.b32.xlu1 %v11228_v5, %s16118_s24  ;;  %v6050_v58 = vpack.c.bf16 %v14568_v45, %v14563_v0  ;;  %v10972_v15 = vunpack.i.h.bf16 %v10970_v40  ;;  %v10971_v42 = vunpack.i.l.bf16 %v10970_v40  ;;  %v4834_v48 = vld [vmem:[#allocation4 + $0x110] sm:$0xff]  ;;  %v11283_v60 = vpack.i.bf16 %v14568_v45, %v14563_v0 }
 0x3fe   : > { %v5905_v50 = vsel %vm2211_vm9, %v5873_v63, %v10966_v24  ;;  %v11263_v40 = vpack.i.bf16 %v4834_v48, %v4833_v46  ;;  %v14640_v46 = vld [vmem:[%s16154_s4 + $0x1] ss:$0 sm:$0xff] }
 0x3ff   : > { %v10985_v34 = vpop.permute.xlu0 %10984  ;;  %v4390_v41 = vpop.f32.mrb[44].mxu1  ;;  %v5937_v16 = vsel %vm4017_vm12, %v5905_v50, %v10971_v42  ;;  %v5938_v32 = vsel %vm4017_vm12, %v5906_v9, %v10972_v15  ;;  %v4865_v15 = vld [vmem:[#allocation4 + $0x109] sm:$0xff]  ;;  %v10977_v42 = vunpack.i.h.bf16 %v14553_v17 }
 0x400   : > { %v14575_v26 = vpop.permute.xlu1 %10979  ;;  %11244 = vrot.lane.b32.xlu0 %v11233_v14, %s16114_s0  ;;  %v10987_v3 = vunpack.i.h.bf16 %v10985_v34  ;;  %v10986_v1 = vunpack.i.l.bf16 %v10985_v34  ;;  %v4456_v53 = vmul.f32 %v14276_v4, %v4390_v41  ;;  %v4392_v28 = vpop.f32.mrb[45].mxu1  ;;  %v4866_v34 = vld [vmem:[#allocation4 + $0x111] sm:$0xff] }
 0x401   : > { %11239 = vrot.lane.b32.xlu1 %v11228_v5, %s16112_s26  ;;  %v4393_v29 = vpop.f32.mrb[46].mxu1  ;;  %v10981_v41 = vunpack.i.l.bf16 %v14575_v26 }
 0x402   : > { %v4493_v33 = vadd.f32 %v14283_v54, %v4456_v53  ;;  %v4457_v47 = vmul.f32 %v14276_v4, %v4393_v29  ;;  %v4395_v8 = vpop.f32.mrb[47].mxu1  ;;  %v5969_v7 = vsel %vm4050_vm13, %v5937_v16, %v10986_v1  ;;  %v5970_v12 = vsel %vm4050_vm13, %v5938_v32, %v10987_v3 }
 0x403   : > { %v10995_v43 = vpop.permute.xlu0 %10994  ;;  %v10976_v3 = vunpack.i.l.bf16 %v14553_v17  ;;  %v10982_v1 = vunpack.i.h.bf16 %v14575_v26 }
 0x404   : > { %v10990_v11 = vpop.permute.xlu1 %10989  ;;  %11254 = vrot.lane.b32.xlu0 %v11233_v14, %s16108_s29  ;;  %v4525_v21 = vmax.f32 %v4493_v33, 0.0  ;;  %v4494_v30 = vadd.f32 %v14283_v54, %v4457_v47  ;;  %v11268_v54 = vpack.i.bf16 %v4866_v34, %v4865_v15  ;;  %v10997_v50 = vunpack.i.h.bf16 %v10995_v43 }
 0x405   : > { %v10992_v5 = vunpack.i.h.bf16 %v10990_v11  ;;  %v10991_v51 = vunpack.i.l.bf16 %v10990_v11  ;;  %11249 = vrot.lane.b32.xlu1 %v11248_v6, %s16090_s21  ;;  %v10996_v9 = vunpack.i.l.bf16 %v10995_v43  ;;  %v5811_v17 = vsel %vm2013_vm2, %v14376_v36, %v10976_v3  ;;  %v14624_v43 = vld [vmem:[%s16154_s4] ss:$0 sm:$0xff] }
 0x406   : > { %4612 = vst.msk [vmem:[#allocation4 + $0x121] sm:$0xff] %vm2013_vm2, %v4525_v21  ;;  %v4526_v14 = vmax.f32 %v4494_v30, 0.0  ;;  %v5843_v16 = vsel %vm2079_vm3, %v5811_v17, %v10981_v41 }
 0x407   : > { %v6001_v27 = vsel %vm4083_vm14, %v5969_v7, %v10991_v51  ;;  %v6002_v4 = vsel %vm4083_vm14, %v5970_v12, %v10992_v5  ;;  %v14596_v63 = vpop.permute.xlu0 %11004  ;;  %v5875_v36 = vsel %vm2145_vm7, %v5843_v16, %v10996_v9 }
 0x408   : > { %v6033_v24 = vpack.c.bf16 %v6002_v4, %v6001_v27  ;;  %11264 = vrot.lane.b32.xlu0 %v11263_v40, %s16118_s24  ;;  %v11000_v38 = vpop.permute.xlu1 %10999  ;;  %4613 = vst.msk [vmem:[#allocation4 + $0x129] sm:$0xff] %vm2013_vm2, %v4526_v14  ;;  %v11007_v11 = vunpack.i.h.bf16 %v14596_v63  ;;  %v11006_v33 = vunpack.i.l.bf16 %v14596_v63 }
 0x409   : > { %11259 = vrot.lane.b32.xlu1 %v11248_v6, %s16110_s23  ;;  %v11002_v53 = vunpack.i.h.bf16 %v11000_v38  ;;  %v11001_v28 = vunpack.i.l.bf16 %v11000_v38 }
 0x40a   : > { %6224 = vmatmul.mubr.bf16.gmra.mrb[36].mxu0 %v6033_v24 }
 0x40b   : > { %9283 = vmatprep.mubr.msk.bf16.mxu0 %vm2013_vm2, %v6036_v37  ;;  %v14611_v2 = vpop.permute.xlu0 %11014  ;;  %v5812_v37 = vsel %vm2013_vm2, %v14378_v49, %v10977_v42  ;;  %v5907_v5 = vsel %vm2211_vm9, %v5875_v36, %v11001_v28 }
 0x40c   : > { %11274 = vrot.lane.b32.xlu0 %v11263_v40, %s16112_s26  ;;  %v11010_v26 = vpop.permute.xlu1 %11009  ;;  %v5844_v48 = vsel %vm2079_vm3, %v5812_v37, %v10982_v1 }
 0x40d   : > { %11269 = vrot.lane.b32.xlu1 %v11268_v54, %s16157_s22  ;;  %v5876_v49 = vsel %vm2145_vm7, %v5844_v48, %v10997_v50  ;;  %v4867_v1 = vld [vmem:[#allocation4 + $0x121] sm:$0xff]  ;;  %v11011_v41 = vunpack.i.l.bf16 %v11010_v26 }
 0x40e   : > { %v4398_v6 = vpop.f32.mrb[48].mxu1  ;;  %v5908_v51 = vsel %vm2211_vm9, %v5876_v49, %v11002_v53  ;;  %v4835_v9 = vld [vmem:[#allocation4 + $0x120] sm:$0xff]  ;;  %v5939_v53 = vsel %vm4017_vm12, %v5907_v5, %v11006_v33  ;;  %v11016_v49 = vunpack.i.l.bf16 %v14611_v2 }
 0x40f   : > { %v4458_v32 = vmul.f32 %v14624_v43, %v4398_v6  ;;  %v4400_v29 = vpop.f32.mrb[49].mxu1  ;;  %v14633_v8 = vld [vmem:[#allocation4 + $0x122] sm:$0xff]  ;;  %v14644_v27 = vld [vmem:[#allocation4 + $0x12a] sm:$0xff]  ;;  %v5940_v28 = vsel %vm4017_vm12, %v5908_v51, %v11007_v11  ;;  %v11017_v11 = vunpack.i.h.bf16 %v14611_v2  ;;  %v5813_v33 = vsel %vm2013_vm2, %v14397_v52, %v11011_v41 }
 0x410   : > { %11284 = vrot.lane.b32.xlu0 %v11283_v60, %s16090_s21  ;;  %v4401_v47 = vpop.f32.mrb[50].mxu1  ;;  %v4868_v30 = vld [vmem:[#allocation4 + $0x129] sm:$0xff]  ;;  %v6052_v63 = vpack.c.bf16 %v14644_v27, %v14633_v8  ;;  %v5845_v52 = vsel %vm2079_vm3, %v5813_v33, %v11016_v49 }
 0x411   : > { %11279 = vrot.lane.b32.xlu1 %v11268_v54, %s16114_s0  ;;  %v4495_v40 = vadd.f32 %v14640_v46, %v4458_v32  ;;  %v4459_v7 = vmul.f32 %v14624_v43, %v4401_v47  ;;  %v4403_v12 = vpop.f32.mrb[51].mxu1  ;;  %v4836_v14 = vld [vmem:[#allocation4 + $0x128] sm:$0xff]  ;;  %v11303_v50 = vpack.i.bf16 %v4868_v30, %v4867_v1 }
 0x412   : > { %v11025_v21 = vpop.permute.xlu0 %11024  ;;  %v11298_v6 = vpack.i.bf16 %v4836_v14, %v4835_v9 }
 0x413   : > { %v11027_v4 = vunpack.i.h.bf16 %v11025_v21  ;;  %v11026_v24 = vunpack.i.l.bf16 %v11025_v21  ;;  %v11020_v34 = vpop.permute.xlu1 %11019  ;;  %v4527_v38 = vmax.f32 %v4495_v40, 0.0  ;;  %v4496_v15 = vadd.f32 %v14640_v46, %v4459_v7 }
 0x414   : > { %v11022_v42 = vunpack.i.h.bf16 %v11020_v34  ;;  %v11021_v3 = vunpack.i.l.bf16 %v11020_v34  ;;  %11294 = vrot.lane.b32.xlu0 %v11283_v60, %s16110_s23  ;;  %v11012_v60 = vunpack.i.h.bf16 %v11010_v26 }
 0x415   : > { %11289 = vrot.lane.b32.xlu1 %v11268_v54, %s16108_s29  ;;  %4614 = vst.msk [vmem:[#allocation4 + $0x139] sm:$0xff] %vm2013_vm2, %v4527_v38  ;;  %v4528_v37 = vmax.f32 %v4496_v15, 0.0 }
 0x416   : > { %v11035_v17 = vpop.permute.xlu0 %11034  ;;  %v5971_v48 = vsel %vm4050_vm13, %v5939_v53, %v11021_v3  ;;  %v5972_v16 = vsel %vm4050_vm13, %v5940_v28, %v11022_v42  ;;  %v5814_v47 = vsel %vm2013_vm2, %v14391_v62, %v11012_v60  ;;  %v11318_v62 = vpack.i.bf16 %v14644_v27, %v14633_v8 }
 0x417   : > { %v11030_v32 = vpop.permute.xlu1 %11029  ;;  %v6003_v54 = vsel %vm4083_vm14, %v5971_v48, %v11026_v24  ;;  %v6004_v29 = vsel %vm4083_vm14, %v5972_v16, %v11027_v4  ;;  %4615 = vst.msk [vmem:[#allocation4 + $0x141] sm:$0xff] %vm2013_vm2, %v4528_v37  ;;  %v11037_v2 = vunpack.i.h.bf16 %v11035_v17  ;;  %v11036_v7 = vunpack.i.l.bf16 %v11035_v17 }
 0x418   : > { %11304 = vrot.lane.b32.xlu0 %v11303_v50, %s16157_s22  ;;  %v6035_v36 = vpack.c.bf16 %v6004_v29, %v6003_v54  ;;  %v11032_v5 = vunpack.i.h.bf16 %v11030_v32  ;;  %v11031_v51 = vunpack.i.l.bf16 %v11030_v32  ;;  %v5846_v12 = vsel %vm2079_vm3, %v5814_v47, %v11017_v11 }
 0x419   : > { %11299 = vrot.lane.b32.xlu1 %v11298_v6, %s16118_s24 }
 0x41a   : > { %6232 = vmatmul.mubr.bf16.gmra.mrb[40].mxu0 %v6035_v36  ;;  %v14665_v26 = vpop.permute.xlu0 %11044  ;;  %v5877_v30 = vsel %vm2145_vm7, %v5845_v52, %v11031_v51  ;;  %v5878_v59 = vsel %vm2145_vm7, %v5846_v12, %v11032_v5 }
 0x41b   : > { %v11040_v40 = vpop.permute.xlu1 %11039  ;;  %9284 = vmatprep.mubr.msk.bf16.mxu0 %vm2013_vm2, %v6038_v25  ;;  %v5909_v41 = vsel %vm2211_vm9, %v5877_v30, %v11036_v7  ;;  %v5910_v9 = vsel %vm2211_vm9, %v5878_v59, %v11037_v2  ;;  %v11046_v30 = vunpack.i.l.bf16 %v14665_v26 }
 0x41c   : > { %11314 = vrot.lane.b32.xlu0 %v11303_v50, %s16114_s0  ;;  %v11042_v61 = vunpack.i.h.bf16 %v11040_v40  ;;  %v11041_v25 = vunpack.i.l.bf16 %v11040_v40  ;;  %v14691_v3 = vld [vmem:[#allocation4 + $0x138] sm:$0xff] }
 0x41d   : > { %11309 = vrot.lane.b32.xlu1 %v11298_v6, %s16112_s26  ;;  %v4869_v11 = vld [vmem:[#allocation4 + $0x139] sm:$0xff] }
 0x41e   : > { %v11055_v21 = vpop.permute.xlu0 %11054  ;;  %v14683_v24 = vld [vmem:[#allocation4 + $0x140] sm:$0xff]  ;;  %v5941_v6 = vsel %vm4017_vm12, %v5909_v41, %v11041_v25  ;;  %v5942_v48 = vsel %vm4017_vm12, %v5910_v9, %v11042_v61  ;;  %v11047_v61 = vunpack.i.h.bf16 %v14665_v26  ;;  %v4631_v9 = vld [vmem:[#allocation4 + $0x68] sm:$0xff] }
 0x41f   : > { %v14681_v4 = vpop.permute.xlu1 %11049  ;;  %v14685_v34 = vld [vmem:[#allocation4 + $0x13a] sm:$0xff]  ;;  %v14689_v14 = vld [vmem:[#allocation4 + $0x142] sm:$0xff]  ;;  %v11057_v38 = vunpack.i.h.bf16 %v11055_v21  ;;  %v11056_v15 = vunpack.i.l.bf16 %v11055_v21  ;;  %v4406_v42 = vpop.f32.mrb[52].mxu1  ;;  %v11333_v37 = vpack.i.bf16 %v14683_v24, %v14691_v3 }
 0x420   : > { %11324 = vrot.lane.b32.xlu0 %v11303_v50, %s16108_s29  ;;  %v6054_v1 = vpack.c.bf16 %v14689_v14, %v14685_v34  ;;  %v4460_v53 = vmul.f32 %v14624_v43, %v4406_v42  ;;  %v4408_v28 = vpop.f32.mrb[53].mxu1  ;;  %v4870_v17 = vld [vmem:[#allocation4 + $0x141] sm:$0xff]  ;;  %v11353_v59 = vpack.i.bf16 %v14689_v14, %v14685_v34  ;;  %v11051_v25 = vunpack.i.l.bf16 %v14681_v4 }
 0x421   : > { %11319 = vrot.lane.b32.xlu1 %v11318_v62, %s16090_s21  ;;  %v4409_v16 = vpop.f32.mrb[54].mxu1  ;;  %v11338_v33 = vpack.i.bf16 %v4870_v17, %v4869_v11  ;;  %v5973_v47 = vsel %vm4050_vm13, %v5941_v6, %v11056_v15  ;;  %v5974_v5 = vsel %vm4050_vm13, %v5942_v48, %v11057_v38  ;;  %v11052_v38 = vunpack.i.h.bf16 %v14681_v4  ;;  %v4630_v42 = vld [vmem:[#allocation4 + $0x60] sm:$0xff] }
 0x422   : > { %v11065_v50 = vpop.permute.xlu0 %11064  ;;  %v4497_v32 = vadd.f32 %v14640_v46, %v4460_v53  ;;  %v4461_v54 = vmul.f32 %v14624_v43, %v4409_v16  ;;  %v4411_v29 = vpop.f32.mrb[55].mxu1  ;;  %v5815_v20 = vsel %vm2013_vm2, %v4630_v42, %v11046_v30  ;;  %v5816_v26 = vsel %vm2013_vm2, %v4631_v9, %v11047_v61 }
 0x423   : > { %v11060_v60 = vpop.permute.xlu1 %11059  ;;  %v11066_v15 = vunpack.i.l.bf16 %v11065_v50  ;;  %v11067_v41 = vunpack.i.h.bf16 %v11065_v50  ;;  %v5847_v28 = vsel %vm2079_vm3, %v5815_v20, %v11051_v25  ;;  %v5848_v4 = vsel %vm2079_vm3, %v5816_v26, %v11052_v38 }
 0x424   : > { %v11062_v36 = vunpack.i.h.bf16 %v11060_v60  ;;  %v11061_v49 = vunpack.i.l.bf16 %v11060_v60  ;;  %11334 = vrot.lane.b32.xlu0 %v11333_v37, %s16118_s24  ;;  %v4529_v51 = vmax.f32 %v4497_v32, 0.0  ;;  %v4498_v40 = vadd.f32 %v14640_v46, %v4461_v54 }
 0x425   : > { %11329 = vrot.lane.b32.xlu1 %v11318_v62, %s16110_s23  ;;  %v5879_v17 = vsel %vm2145_vm7, %v5847_v28, %v11066_v15  ;;  %v5880_v16 = vsel %vm2145_vm7, %v5848_v4, %v11067_v41 }
 0x426   : > { %v6005_v52 = vsel %vm4083_vm14, %v5973_v47, %v11061_v49  ;;  %v6006_v2 = vsel %vm4083_vm14, %v5974_v5, %v11062_v36  ;;  %4616 = vst.msk [vmem:[#allocation4 + $0x151] sm:$0xff] %vm2013_vm2, %v4529_v51  ;;  %v4530_v12 = vmax.f32 %v4498_v40, 0.0  ;;  %v14712_v21 = vpop.permute.xlu0 %11074 }
 0x427   : > { %v6037_v7 = vpack.c.bf16 %v6006_v2, %v6005_v52  ;;  %v11070_v62 = vpop.permute.xlu1 %11069  ;;  %v11077_v60 = vunpack.i.h.bf16 %v14712_v21  ;;  %v11076_v32 = vunpack.i.l.bf16 %v14712_v21 }
 0x428   : > { %11344 = vrot.lane.b32.xlu0 %v11333_v37, %s16112_s26  ;;  %4617 = vst.msk [vmem:[#allocation4 + $0x159] sm:$0xff] %vm2013_vm2, %v4530_v12  ;;  %v11072_v39 = vunpack.i.h.bf16 %v11070_v62 }
 0x429   : > { %11339 = vrot.lane.b32.xlu1 %v11338_v33, %s16157_s22  ;;  %6240 = vmatmul.mubr.bf16.gmra.mrb[44].mxu0 %v6037_v7 }
 0x42a   : > { %9285 = vmatprep.mubr.msk.bf16.mxu0 %vm2013_vm2, %v6040_v10  ;;  %v11071_v10 = vunpack.i.l.bf16 %v11070_v62  ;;  %v14730_v53 = vpop.permute.xlu0 %11084 }
 0x42b   : > { %v14734_v37 = vpop.permute.xlu1 %11079 }
 0x42c   : > { %11354 = vrot.lane.b32.xlu0 %v11353_v59, %s16090_s21  ;;  %v5911_v47 = vsel %vm2211_vm9, %v5879_v17, %v11071_v10  ;;  %v11081_v26 = vunpack.i.l.bf16 %v14734_v37 }
 0x42d   : > { %11349 = vrot.lane.b32.xlu1 %v11338_v33, %s16114_s0  ;;  %v4871_v50 = vld [vmem:[#allocation4 + $0x151] sm:$0xff]  ;;  %v5943_v41 = vsel %vm4017_vm12, %v5911_v47, %v11076_v32 }
 0x42e   : > { %v4414_v6 = vpop.f32.mrb[56].mxu1  ;;  %v14740_v48 = vld [vmem:[#allocation4 + $0x150] sm:$0xff] }
 0x42f   : > { %v4462_v54 = vmul.f32 %v14624_v43, %v4414_v6  ;;  %v4416_v29 = vpop.f32.mrb[57].mxu1  ;;  %v4872_v36 = vld [vmem:[#allocation4 + $0x159] sm:$0xff]  ;;  %v4889_v6 = vld [vmem:[#allocation4 + $0xaa] sm:$0xff] }
 0x430   : > { %11364 = vrot.lane.b32.xlu0 %v11353_v59, %s16110_s23  ;;  %v14746_v49 = vld [vmem:[#allocation4 + $0x158] sm:$0xff]  ;;  %v4417_v5 = vpop.f32.mrb[58].mxu1  ;;  %v11373_v40 = vpack.i.bf16 %v4872_v36, %v4871_v50 }
 0x431   : > { %11359 = vrot.lane.b32.xlu1 %v11338_v33, %s16108_s29  ;;  %v14748_v11 = vld [vmem:[#allocation4 + $0x152] sm:$0xff]  ;;  %v5912_v33 = vsel %vm2211_vm9, %v5880_v16, %v11072_v39  ;;  %v11368_v52 = vpack.i.bf16 %v14746_v49, %v14740_v48  ;;  %v14754_v2 = vld [vmem:[#allocation4 + $0x15a] sm:$0xff]  ;;  %v4499_v7 = vadd.f32 %v14640_v46, %v4462_v54  ;;  %v4463_v12 = vmul.f32 %v14624_v43, %v4417_v5  ;;  %v4419_v21 = vpop.f32.mrb[59].mxu1 }
 0x432   : > { %v11095_v51 = vpop.permute.xlu0 %11094  ;;  %v6056_v38 = vpack.c.bf16 %v14754_v2, %v14748_v11  ;;  %v5944_v9 = vsel %vm4017_vm12, %v5912_v33, %v11077_v60  ;;  %v4890_v50 = vld [vmem:[#allocation4 + $0xb2] sm:$0xff]  ;;  %v11082_v16 = vunpack.i.h.bf16 %v14734_v37  ;;  %v11086_v54 = vunpack.i.l.bf16 %v14730_v53  ;;  %v4633_v5 = vld [vmem:[#allocation4 + $0x80] sm:$0xff] }
 0x433   : > { %v11096_v62 = vunpack.i.l.bf16 %v11095_v51  ;;  %v11090_v30 = vpop.permute.xlu1 %11089  ;;  %v11097_v59 = vunpack.i.h.bf16 %v11095_v51  ;;  %v4531_v15 = vmax.f32 %v4499_v7, 0.0  ;;  %v4500_v42 = vadd.f32 %v14640_v46, %v4463_v12  ;;  %v4632_v29 = vld [vmem:[#allocation4 + $0x78] sm:$0xff] }
 0x434   : > { %v11092_v61 = vunpack.i.h.bf16 %v11090_v30  ;;  %v11091_v25 = vunpack.i.l.bf16 %v11090_v30  ;;  %11374 = vrot.lane.b32.xlu0 %v11373_v40, %s16157_s22  ;;  %v6042_v47 = vpack.c.bf16 %v4890_v50, %v4889_v6  ;;  %v11087_v33 = vunpack.i.h.bf16 %v14730_v53 }
 0x435   : > { %11369 = vrot.lane.b32.xlu1 %v11368_v52, %s16118_s24  ;;  %4618 = vst.msk [vmem:[#allocation4 + $0x169] sm:$0xff] %vm2013_vm2, %v4531_v15  ;;  %v4532_v28 = vmax.f32 %v4500_v42, 0.0  ;;  %v5817_v37 = vsel %vm2013_vm2, %v4632_v29, %v11081_v26  ;;  %v5818_v12 = vsel %vm2013_vm2, %v4633_v5, %v11082_v16 }
 0x436   : > { %v14765_v20 = vpop.permute.xlu0 %11104  ;;  %v5975_v39 = vsel %vm4050_vm13, %v5943_v41, %v11091_v25  ;;  %v5976_v10 = vsel %vm4050_vm13, %v5944_v9, %v11092_v61  ;;  %v5849_v30 = vsel %vm2079_vm3, %v5817_v37, %v11086_v54  ;;  %v5850_v42 = vsel %vm2079_vm3, %v5818_v12, %v11087_v33 }
 0x437   : > { %v11100_v4 = vpop.permute.xlu1 %11099  ;;  %v6007_v17 = vsel %vm4083_vm14, %v5975_v39, %v11096_v62  ;;  %v6008_v60 = vsel %vm4083_vm14, %v5976_v10, %v11097_v59  ;;  %4619 = vst.msk [vmem:[#allocation4 + $0x171] sm:$0xff] %vm2013_vm2, %v4532_v28  ;;  %v11106_v53 = vunpack.i.l.bf16 %v14765_v20  ;;  %v11107_v15 = vunpack.i.h.bf16 %v14765_v20 }
 0x438   : > { %11384 = vrot.lane.b32.xlu0 %v11373_v40, %s16114_s0  ;;  %v6039_v32 = vpack.c.bf16 %v6008_v60, %v6007_v17  ;;  %v11101_v51 = vunpack.i.l.bf16 %v11100_v4  ;;  %v11102_v21 = vunpack.i.h.bf16 %v11100_v4 }
 0x439   : > { %11379 = vrot.lane.b32.xlu1 %v11368_v52, %s16112_s26  ;;  %v11388_v52 = vpack.i.bf16 %v14754_v2, %v14748_v11 }
 0x43a   : > { %v14778_v36 = vpop.permute.xlu0 %11114  ;;  %6248 = vmatmul.mubr.bf16.gmra.mrb[48].mxu0 %v6039_v32  ;;  %v5881_v41 = vsel %vm2145_vm7, %v5849_v30, %v11101_v51  ;;  %v5882_v26 = vsel %vm2145_vm7, %v5850_v42, %v11102_v21 }
 0x43b   : > { %v11110_v7 = vpop.permute.xlu1 %11109  ;;  %9286 = vmatprep.mubr.msk.bf16.mxu0 %vm2013_vm2, %v6042_v47  ;;  %v4422_v62 = vpop.f32.mrb[60].mxu1  ;;  %v5913_v47 = vsel %vm2211_vm9, %v5881_v41, %v11106_v53  ;;  %v5914_v51 = vsel %vm2211_vm9, %v5882_v26, %v11107_v15  ;;  %v4892_v15 = vld [vmem:[#allocation4 + $0xca] sm:$0xff] }
 0x43c   : > { %11394 = vrot.lane.b32.xlu0 %v11373_v40, %s16108_s29  ;;  %v4464_v59 = vmul.f32 %v14624_v43, %v4422_v62  ;;  %v4424_v61 = vpop.f32.mrb[61].mxu1  ;;  %v11111_v9 = vunpack.i.l.bf16 %v11110_v7  ;;  %v14796_v10 = vld [vmem:[#allocation4 + $0x168] sm:$0xff]  ;;  %v11112_v28 = vunpack.i.h.bf16 %v11110_v7 }
 0x43d   : > { %11389 = vrot.lane.b32.xlu1 %v11388_v52, %s16090_s21  ;;  %v4425_v39 = vpop.f32.mrb[62].mxu1  ;;  %v4873_v37 = vld [vmem:[#allocation4 + $0x169] sm:$0xff] }
 0x43e   : > { %v11125_v25 = vpop.permute.xlu0 %11124  ;;  %v4501_v4 = vadd.f32 %v14640_v46, %v4464_v59  ;;  %v4465_v17 = vmul.f32 %v14624_v43, %v4425_v39  ;;  %v4427_v6 = vpop.f32.mrb[63].mxu1  ;;  %v14801_v50 = vld [vmem:[#allocation4 + $0x170] sm:$0xff]  ;;  %v5945_v7 = vsel %vm4017_vm12, %v5913_v47, %v11111_v9  ;;  %v5946_v62 = vsel %vm4017_vm12, %v5914_v51, %v11112_v28 }
 0x43f   : > { %v14794_v40 = vpop.permute.xlu1 %11119  ;;  %v4874_v20 = vld [vmem:[#allocation4 + $0x171] sm:$0xff]  ;;  %v11127_v60 = vunpack.i.h.bf16 %v11125_v25  ;;  %v11126_v32 = vunpack.i.l.bf16 %v11125_v25  ;;  %v11403_v54 = vpack.i.bf16 %v14801_v50, %v14796_v10  ;;  %v4891_v25 = vld [vmem:[#allocation4 + $0xc2] sm:$0xff]  ;;  %v11116_v6 = vunpack.i.l.bf16 %v14778_v36 }
 0x440   : > { %v14803_v16 = vld [vmem:[#allocation4 + $0x16a] sm:$0xff]  ;;  %v14808_v29 = vld [vmem:[#allocation4 + $0x172] sm:$0xff]  ;;  %v4533_v33 = vmax.f32 %v4501_v4, 0.0  ;;  %v4502_v43 = vadd.f32 %v14640_v46, %v4465_v17  ;;  %v6044_v28 = vpack.c.bf16 %v4892_v15, %v4891_v25  ;;  %v11117_v17 = vunpack.i.h.bf16 %v14778_v36 }
 0x441   : > { %11399 = vrot.lane.b32.xlu1 %v11388_v52, %s16110_s23  ;;  %11404 = vrot.lane.b32.xlu0 %v11403_v54, %s16118_s24  ;;  %v11408_v52 = vpack.i.bf16 %v4874_v20, %v4873_v37  ;;  %v6058_v21 = vpack.c.bf16 %v14808_v29, %v14803_v16  ;;  %v5977_v59 = vsel %vm4050_vm13, %v5945_v7, %v11126_v32  ;;  %v11122_v20 = vunpack.i.h.bf16 %v14794_v40  ;;  %v4634_v32 = vld [vmem:[#allocation4 + $0x90] sm:$0xff] }
 0x442   : > { %v11135_v5 = vpop.permute.xlu0 %11134  ;;  %4620 = vst.msk [vmem:[#allocation4 + $0x181] sm:$0xff] %vm2013_vm2, %v4533_v33  ;;  %v4534_v53 = vmax.f32 %v4502_v43, 0.0  ;;  %v5978_v61 = vsel %vm4050_vm13, %v5946_v62, %v11127_v60  ;;  %v11423_v4 = vpack.i.bf16 %v14808_v29, %v14803_v16  ;;  %v11121_v60 = vunpack.i.l.bf16 %v14794_v40  ;;  %v4635_v33 = vld [vmem:[#allocation4 + $0x98] sm:$0xff] }
 0x443   : > { %v11130_v12 = vpop.permute.xlu1 %11129  ;;  %v11136_v47 = vunpack.i.l.bf16 %v11135_v5  ;;  %v5820_v36 = vsel %vm2013_vm2, %v4635_v33, %v11117_v17  ;;  %v4845_v33 = vld [vmem:[#allocation4 + $0x198] sm:$0xff] }
 0x444   : > { %v11132_v30 = vunpack.i.h.bf16 %v11130_v12  ;;  %v11131_v46 = vunpack.i.l.bf16 %v11130_v12  ;;  %4621 = vst.msk [vmem:[#allocation4 + $0x189] sm:$0xff] %vm2013_vm2, %v4534_v53  ;;  %v5819_v12 = vsel %vm2013_vm2, %v4634_v32, %v11116_v6 }
 0x445   : > { %11409 = vrot.lane.b32.xlu1 %v11408_v52, %s16157_s22  ;;  %11414 = vrot.lane.b32.xlu0 %v11403_v54, %s16112_s26  ;;  %v11137_v54 = vunpack.i.h.bf16 %v11135_v5  ;;  %v5852_v5 = vsel %vm2079_vm3, %v5820_v36, %v11122_v20  ;;  %v4877_v36 = vld [vmem:[#allocation4 + $0x199] sm:$0xff] }
 0x446   : > { %v6009_v42 = vsel %vm4083_vm14, %v5977_v59, %v11131_v46  ;;  %v6010_v41 = vsel %vm4083_vm14, %v5978_v61, %v11132_v30  ;;  %v11145_v39 = vpop.permute.xlu0 %11144  ;;  %v5851_v59 = vsel %vm2079_vm3, %v5819_v12, %v11121_v60 }
 0x447   : > { %v6041_v9 = vpack.c.bf16 %v6010_v41, %v6009_v42  ;;  %v11140_v26 = vpop.permute.xlu1 %11139  ;;  %v5883_v25 = vsel %vm2145_vm7, %v5851_v59, %v11136_v47  ;;  %v5884_v15 = vsel %vm2145_vm7, %v5852_v5, %v11137_v54  ;;  %v11147_v42 = vunpack.i.h.bf16 %v11145_v39  ;;  %v4893_v59 = vld [vmem:[#allocation4 + $0xda] sm:$0xff] }
 0x448   : > { %v11142_v43 = vunpack.i.h.bf16 %v11140_v26  ;;  %v11141_v37 = vunpack.i.l.bf16 %v11140_v26  ;;  %v11146_v41 = vunpack.i.l.bf16 %v11145_v39 }
 0x449   : > { %11419 = vrot.lane.b32.xlu1 %v11408_v52, %s16114_s0  ;;  %6256 = vmatmul.mubr.bf16.gmra.mrb[52].mxu0 %v6041_v9  ;;  %v4843_v53 = vld [vmem:[#allocation4 + $0x180] sm:$0xff] }
 0x44a   : > { %9287 = vmatprep.mubr.msk.bf16.mxu0 %vm2013_vm2, %v6044_v28  ;;  %11424 = vrot.lane.b32.xlu0 %v11423_v4, %s16090_s21  ;;  %v14840_v62 = vpop.permute.xlu0 %11154  ;;  %v4875_v9 = vld [vmem:[#allocation4 + $0x181] sm:$0xff]  ;;  %v5915_v26 = vsel %vm2211_vm9, %v5883_v25, %v11141_v37  ;;  %v5916_v28 = vsel %vm2211_vm9, %v5884_v15, %v11142_v43 }
 0x44b   : > { %v4844_v51 = vld [vmem:[#allocation4 + $0x188] sm:$0xff]  ;;  %v11150_v40 = vpop.permute.xlu1 %11149  ;;  %v5947_v54 = vsel %vm4017_vm12, %v5915_v26, %v11146_v41  ;;  %v5948_v39 = vsel %vm4017_vm12, %v5916_v28, %v11147_v42 }
 0x44c   : > { %v14836_v7 = vld [vmem:[#allocation4 + $0x182] sm:$0xff]  ;;  %v14842_v46 = vld [vmem:[#allocation4 + $0x18a] sm:$0xff]  ;;  %v11152_v41 = vunpack.i.h.bf16 %v11150_v40  ;;  %v11151_v42 = vunpack.i.l.bf16 %v11150_v40 }
 0x44d   : > { %11429 = vrot.lane.b32.xlu1 %v11408_v52, %s16108_s29  ;;  %v4876_v30 = vld [vmem:[#allocation4 + $0x189] sm:$0xff]  ;;  %v11438_v52 = vpack.i.bf16 %v4844_v51, %v4843_v53  ;;  %v6060_v61 = vpack.c.bf16 %v14842_v46, %v14836_v7  ;;  %v4846_v51 = vld [vmem:[#allocation4 + $0x1a0] sm:$0xff] }
 0x44e   : > { %11434 = vrot.lane.b32.xlu0 %v11423_v4, %s16110_s23  ;;  %v11443_v17 = vpack.i.bf16 %v4876_v30, %v4875_v9  ;;  %v4894_v25 = vld [vmem:[#allocation4 + $0xe2] sm:$0xff]  ;;  %v11458_v9 = vpack.i.bf16 %v4846_v51, %v4845_v33 }
 0x44f   : > { %v4878_v15 = vld [vmem:[#allocation4 + $0x1a1] sm:$0xff]  ;;  %v6046_v28 = vpack.c.bf16 %v4894_v25, %v4893_v59 }
 0x451   : > { %11439 = vrot.lane.b32.xlu1 %v11438_v52, %s16118_s24 }
 0x452   : > { %v11165_v6 = vpop.permute.xlu0 %11164  ;;  %11444 = vrot.lane.b32.xlu0 %v11443_v17, %s16157_s22 }
 0x453   : > { %v11160_v4 = vpop.permute.xlu1 %11159  ;;  %v11167_v20 = vunpack.i.h.bf16 %v11165_v6  ;;  %v11166_v60 = vunpack.i.l.bf16 %v11165_v6  ;;  %v11468_v6 = vpack.i.bf16 %v4878_v15, %v4877_v36 }
 0x454   : > { %v11162_v32 = vunpack.i.h.bf16 %v11160_v4  ;;  %v11161_v47 = vunpack.i.l.bf16 %v11160_v4  ;;  %v11157_v4 = vunpack.i.h.bf16 %v14840_v62 }
 0x455   : > { %11449 = vrot.lane.b32.xlu1 %v11438_v52, %s16112_s26  ;;  %v11463_v52 = vpack.i.bf16 %v14842_v46, %v14836_v7 }
 0x456   : > { %v5979_v43 = vsel %vm4050_vm13, %v5947_v54, %v11161_v47  ;;  %v5980_v37 = vsel %vm4050_vm13, %v5948_v39, %v11162_v32  ;;  %v11175_v12 = vpop.permute.xlu0 %11174  ;;  %11454 = vrot.lane.b32.xlu0 %v11443_v17, %s16114_s0  ;;  %v4637_v32 = vld [vmem:[#allocation4 + $0xb0] sm:$0xff] }
 0x457   : > { %v11170_v53 = vpop.permute.xlu1 %11169  ;;  %v6011_v30 = vsel %vm4083_vm14, %v5979_v43, %v11166_v60  ;;  %v6012_v5 = vsel %vm4083_vm14, %v5980_v37, %v11167_v20  ;;  %v11156_v20 = vunpack.i.l.bf16 %v14840_v62  ;;  %v4636_v60 = vld [vmem:[#allocation4 + $0xa8] sm:$0xff]  ;;  %v5822_v17 = vsel %vm2013_vm2, %v4637_v32, %v11152_v41 }
 0x458   : > { %v6043_v26 = vpack.c.bf16 %v6012_v5, %v6011_v30  ;;  %v5821_v54 = vsel %vm2013_vm2, %v4636_v60, %v11151_v42  ;;  %v11172_v39 = vunpack.i.h.bf16 %v11170_v53  ;;  %v11171_v33 = vunpack.i.l.bf16 %v11170_v53 }
 0x459   : > { %11464 = vrot.lane.b32.xlu1 %v11463_v52, %s16090_s21  ;;  %v11177_v51 = vunpack.i.h.bf16 %v11175_v12  ;;  %v11176_v43 = vunpack.i.l.bf16 %v11175_v12  ;;  %v5853_v62 = vsel %vm2079_vm3, %v5821_v54, %v11156_v20  ;;  %v5854_v37 = vsel %vm2079_vm3, %v5822_v17, %v11157_v4  ;;  %s16167_s21 = smov 80  }
 0x45a   : > { %6264 = vmatmul.mubr.bf16.gmra.mrb[56].mxu0 %v6043_v26  ;;  %v11185_v47 = vpop.permute.xlu0 %11184  ;;  %11459 = vrot.lane.b32.xlu0 %v11458_v9, %s16118_s24  ;;  %v5885_v5 = vsel %vm2145_vm7, %v5853_v62, %v11171_v33  ;;  %v5886_v59 = vsel %vm2145_vm7, %v5854_v37, %v11172_v39 }
 0x45b   : > { %v11180_v40 = vpop.permute.xlu1 %11179  ;;  %9288 = vmatprep.mubr.msk.bf16.mxu0 %vm2013_vm2, %v6046_v28  ;;  %v5917_v42 = vsel %vm2211_vm9, %v5885_v5, %v11176_v43  ;;  %v5918_v52 = vsel %vm2211_vm9, %v5886_v59, %v11177_v51  ;;  %v11187_v17 = vunpack.i.h.bf16 %v11185_v47  ;;  %v11186_v54 = vunpack.i.l.bf16 %v11185_v47  ;;  %v4638_v5 = vld [vmem:[#allocation4 + $0xc0] sm:$0xff]  ;;  %v4639_v59 = vld [vmem:[#allocation4 + $0xc8] sm:$0xff] }
 0x45c   : > { %v11182_v25 = vunpack.i.h.bf16 %v11180_v40  ;;  %v11181_v53 = vunpack.i.l.bf16 %v11180_v40 }
 0x45d   : > { %11469 = vrot.lane.b32.xlu1 %v11468_v6, %s16157_s22  ;;  %v5823_v47 = vsel %vm2013_vm2, %v4638_v5, %v11186_v54 }
 0x45e   : > { %v11195_v36 = vpop.permute.xlu0 %11194  ;;  %v5949_v26 = vsel %vm4017_vm12, %v5917_v42, %v11181_v53  ;;  %v5950_v28 = vsel %vm4017_vm12, %v5918_v52, %v11182_v25 }
 0x45f   : > { %v11190_v30 = vpop.permute.xlu1 %11189  ;;  %v11197_v15 = vunpack.i.h.bf16 %v11195_v36  ;;  %v11196_v41 = vunpack.i.l.bf16 %v11195_v36 }
 0x460   : > { %v11192_v43 = vunpack.i.h.bf16 %v11190_v30  ;;  %v11191_v62 = vunpack.i.l.bf16 %v11190_v30 }
 0x461   : > { %v5981_v20 = vsel %vm4050_vm13, %v5949_v26, %v11196_v41  ;;  %v5982_v60 = vsel %vm4050_vm13, %v5950_v28, %v11197_v15  ;;  %v5824_v15 = vsel %vm2013_vm2, %v4639_v59, %v11187_v17 }
 0x462   : > { %v11205_v9 = vpop.permute.xlu0 %11204  ;;  %v5856_v30 = vsel %vm2079_vm3, %v5824_v15, %v11192_v43  ;;  %v5855_v52 = vsel %vm2079_vm3, %v5823_v47, %v11191_v62  ;;  %v4641_v15 = vld [vmem:[#allocation4 + $0xe0] sm:$0xff] }
 0x463   : > { %v11200_v12 = vpop.permute.xlu1 %11199  ;;  %v11207_v37 = vunpack.i.h.bf16 %v11205_v9  ;;  %v11206_v36 = vunpack.i.l.bf16 %v11205_v9 }
 0x464   : > { %v11202_v6 = vunpack.i.h.bf16 %v11200_v12  ;;  %v11201_v4 = vunpack.i.l.bf16 %v11200_v12 }
 0x465   : > { %v5887_v9 = vsel %vm2145_vm7, %v5855_v52, %v11206_v36  ;;  %v5888_v12 = vsel %vm2145_vm7, %v5856_v30, %v11207_v37 }
 0x466   : > { %v6013_v32 = vsel %vm4083_vm14, %v5981_v20, %v11201_v4  ;;  %v6014_v40 = vsel %vm4083_vm14, %v5982_v60, %v11202_v6  ;;  %v11215_v39 = vpop.permute.xlu0 %11214 }
 0x467   : > { %v11210_v33 = vpop.permute.xlu1 %11209  ;;  %v6045_v51 = vpack.c.bf16 %v6014_v40, %v6013_v32  ;;  %v11217_v26 = vunpack.i.h.bf16 %v11215_v39  ;;  %v11216_v28 = vunpack.i.l.bf16 %v11215_v39 }
 0x468   : > { %v11212_v25 = vunpack.i.h.bf16 %v11210_v33  ;;  %v11211_v53 = vunpack.i.l.bf16 %v11210_v33 }
 0x469   : > { %6272 = vmatmul.mubr.bf16.gmra.mrb[60].mxu0 %v6045_v51 }
 0x46a   : > { %9289 = vmatprep.mubr.msk.bf16.mxu0 %vm2013_vm2, %v6048_v55  ;;  %v11225_v41 = vpop.permute.xlu0 %11224  ;;  %v5919_v57 = vsel %vm2211_vm9, %v5887_v9, %v11211_v53  ;;  %v5920_v56 = vsel %vm2211_vm9, %v5888_v12, %v11212_v25  ;;  %v4640_v53 = vld [vmem:[#allocation4 + $0xd8] sm:$0xff] }
 0x46b   : > { %v11220_v42 = vpop.permute.xlu1 %11219  ;;  %v5951_v40 = vsel %vm4017_vm12, %v5919_v57, %v11216_v28  ;;  %v5952_v17 = vsel %vm4017_vm12, %v5920_v56, %v11217_v26  ;;  %v11227_v59 = vunpack.i.h.bf16 %v11225_v41  ;;  %v11226_v25 = vunpack.i.l.bf16 %v11225_v41 }
 0x46c   : > { %v11222_v37 = vunpack.i.h.bf16 %v11220_v42  ;;  %v11221_v36 = vunpack.i.l.bf16 %v11220_v42 }
 0x46e   : > { %v11235_v55 = vpop.permute.xlu0 %11234  ;;  %v5826_v52 = vsel %vm2013_vm2, %v4641_v15, %v11222_v37  ;;  %v5825_v9 = vsel %vm2013_vm2, %v4640_v53, %v11221_v36 }
 0x46f   : > { %v11230_v6 = vpop.permute.xlu1 %11229  ;;  %v11237_v4 = vunpack.i.h.bf16 %v11235_v55  ;;  %v11236_v20 = vunpack.i.l.bf16 %v11235_v55  ;;  %v5857_v41 = vsel %vm2079_vm3, %v5825_v9, %v11226_v25  ;;  %v5858_v57 = vsel %vm2079_vm3, %v5826_v52, %v11227_v59 }
 0x470   : > { %v11232_v60 = vunpack.i.h.bf16 %v11230_v6  ;;  %v11231_v32 = vunpack.i.l.bf16 %v11230_v6 }
 0x472   : > { %v5983_v54 = vsel %vm4050_vm13, %v5951_v40, %v11231_v32  ;;  %v5984_v33 = vsel %vm4050_vm13, %v5952_v17, %v11232_v60  ;;  %v11245_v51 = vpop.permute.xlu0 %11244 }
 0x473   : > { %v11240_v39 = vpop.permute.xlu1 %11239  ;;  %v6015_v43 = vsel %vm4083_vm14, %v5983_v54, %v11236_v20  ;;  %v6016_v62 = vsel %vm4083_vm14, %v5984_v33, %v11237_v4  ;;  %v11247_v42 = vunpack.i.h.bf16 %v11245_v51  ;;  %v11246_v28 = vunpack.i.l.bf16 %v11245_v51 }
 0x474   : > { %v6047_v5 = vpack.c.bf16 %v6016_v62, %v6015_v43  ;;  %v11242_v12 = vunpack.i.h.bf16 %v11240_v39  ;;  %v11241_v26 = vunpack.i.l.bf16 %v11240_v39 }
 0x476   : > { %6280 = vmatmul.mubr.bf16.gmra.mrb[64].mxu0 %v6047_v5  ;;  %v11255_v47 = vpop.permute.xlu0 %11254  ;;  %v5889_v6 = vsel %vm2145_vm7, %v5857_v41, %v11241_v26  ;;  %v5890_v4 = vsel %vm2145_vm7, %v5858_v57, %v11242_v12  ;;  %v4642_v26 = vld [vmem:[#allocation4 + $0xf0] sm:$0xff] }
 0x477   : > { %v11250_v30 = vpop.permute.xlu1 %11249  ;;  %9290 = vmatprep.mubr.msk.bf16.mxu0 %vm2013_vm2, %v6050_v58  ;;  %v5921_v0 = vsel %vm2211_vm9, %v5889_v6, %v11246_v28  ;;  %v5922_v45 = vsel %vm2211_vm9, %v5890_v4, %v11247_v42  ;;  %v11257_v5 = vunpack.i.h.bf16 %v11255_v47  ;;  %v11256_v59 = vunpack.i.l.bf16 %v11255_v47  ;;  %v4643_v42 = vld [vmem:[#allocation4 + $0xf8] sm:$0xff] }
 0x478   : > { %v11252_v20 = vunpack.i.h.bf16 %v11250_v30  ;;  %v11251_v60 = vunpack.i.l.bf16 %v11250_v30 }
 0x479   : > { %v5828_v57 = vsel %vm2013_vm2, %v4643_v42, %v11257_v5  ;;  %v5827_v47 = vsel %vm2013_vm2, %v4642_v26, %v11256_v59 }
 0x47a   : > { %v11265_v56 = vpop.permute.xlu0 %11264  ;;  %v5953_v54 = vsel %vm4017_vm12, %v5921_v0, %v11251_v60  ;;  %v5954_v33 = vsel %vm4017_vm12, %v5922_v45, %v11252_v20 }
 0x47b   : > { %v11260_v55 = vpop.permute.xlu1 %11259  ;;  %v11267_v32 = vunpack.i.h.bf16 %v11265_v56  ;;  %v11266_v40 = vunpack.i.l.bf16 %v11265_v56 }
 0x47c   : > { %v11262_v30 = vunpack.i.h.bf16 %v11260_v55  ;;  %v11261_v52 = vunpack.i.l.bf16 %v11260_v55 }
 0x47d   : > { %v5985_v43 = vsel %vm4050_vm13, %v5953_v54, %v11266_v40  ;;  %v5986_v62 = vsel %vm4050_vm13, %v5954_v33, %v11267_v32 }
 0x47e   : > { %v11275_v58 = vpop.permute.xlu0 %11274  ;;  %v5860_v55 = vsel %vm2079_vm3, %v5828_v57, %v11262_v30  ;;  %v5859_v4 = vsel %vm2079_vm3, %v5827_v47, %v11261_v52  ;;  %v4644_v52 = vld [vmem:[#allocation4 + $0x108] sm:$0xff] }
 0x47f   : > { %v11270_v17 = vpop.permute.xlu1 %11269  ;;  %v11277_v9 = vunpack.i.h.bf16 %v11275_v58  ;;  %v11276_v12 = vunpack.i.l.bf16 %v11275_v58 }
 0x480   : > { %v11272_v51 = vunpack.i.h.bf16 %v11270_v17  ;;  %v11271_v39 = vunpack.i.l.bf16 %v11270_v17 }
 0x481   : > { %v5891_v20 = vsel %vm2145_vm7, %v5859_v4, %v11276_v12  ;;  %v5892_v60 = vsel %vm2145_vm7, %v5860_v55, %v11277_v9  ;;  %v4645_v9 = vld [vmem:[#allocation4 + $0x110] sm:$0xff] }
 0x482   : > { %v6017_v37 = vsel %vm4083_vm14, %v5985_v43, %v11271_v39  ;;  %v6018_v36 = vsel %vm4083_vm14, %v5986_v62, %v11272_v51  ;;  %v11285_v25 = vpop.permute.xlu0 %11284 }
 0x483   : > { %v11280_v53 = vpop.permute.xlu1 %11279  ;;  %v6049_v15 = vpack.c.bf16 %v6018_v36, %v6017_v37  ;;  %v11287_v32 = vunpack.i.h.bf16 %v11285_v25  ;;  %v11286_v40 = vunpack.i.l.bf16 %v11285_v25 }
 0x484   : > { %v11282_v28 = vunpack.i.h.bf16 %v11280_v53  ;;  %v11281_v41 = vunpack.i.l.bf16 %v11280_v53 }
 0x485   : > { %6288 = vmatmul.mubr.bf16.gmra.mrb[68].mxu0 %v6049_v15 }
 0x486   : > { %9291 = vmatprep.mubr.msk.bf16.mxu0 %vm2013_vm2, %v6052_v63  ;;  %v11295_v56 = vpop.permute.xlu0 %11294  ;;  %v5923_v8 = vsel %vm2211_vm9, %v5891_v20, %v11281_v41  ;;  %v5924_v27 = vsel %vm2211_vm9, %v5892_v60, %v11282_v28 }
 0x487   : > { %v11290_v6 = vpop.permute.xlu1 %11289  ;;  %v5955_v33 = vsel %vm4017_vm12, %v5923_v8, %v11286_v40  ;;  %v5956_v51 = vsel %vm4017_vm12, %v5924_v27, %v11287_v32  ;;  %v11297_v15 = vunpack.i.h.bf16 %v11295_v56  ;;  %v11296_v30 = vunpack.i.l.bf16 %v11295_v56 }
 0x488   : > { %v11292_v59 = vunpack.i.h.bf16 %v11290_v6  ;;  %v11291_v25 = vunpack.i.l.bf16 %v11290_v6 }
 0x48a   : > { %v11305_v63 = vpop.permute.xlu0 %11304  ;;  %v5830_v42 = vsel %vm2013_vm2, %v4645_v9, %v11292_v59  ;;  %v5829_v28 = vsel %vm2013_vm2, %v4644_v52, %v11291_v25  ;;  %v4646_v52 = vld [vmem:[#allocation4 + $0x120] sm:$0xff]  ;;  %v4647_v9 = vld [vmem:[#allocation4 + $0x128] sm:$0xff] }
 0x48b   : > { %v11300_v0 = vpop.permute.xlu1 %11299  ;;  %v11307_v45 = vunpack.i.h.bf16 %v11305_v63  ;;  %v11306_v58 = vunpack.i.l.bf16 %v11305_v63  ;;  %v5861_v56 = vsel %vm2079_vm3, %v5829_v28, %v11296_v30  ;;  %v5862_v55 = vsel %vm2079_vm3, %v5830_v42, %v11297_v15 }
 0x48c   : > { %v11302_v17 = vunpack.i.h.bf16 %v11300_v0  ;;  %v11301_v54 = vunpack.i.l.bf16 %v11300_v0 }
 0x48e   : > { %v5987_v39 = vsel %vm4050_vm13, %v5955_v33, %v11301_v54  ;;  %v5988_v43 = vsel %vm4050_vm13, %v5956_v51, %v11302_v17  ;;  %v11315_v62 = vpop.permute.xlu0 %11314 }
 0x48f   : > { %v11310_v37 = vpop.permute.xlu1 %11309  ;;  %v6019_v36 = vsel %vm4083_vm14, %v5987_v39, %v11306_v58  ;;  %v6020_v5 = vsel %vm4083_vm14, %v5988_v43, %v11307_v45  ;;  %v11317_v47 = vunpack.i.h.bf16 %v11315_v62  ;;  %v11316_v6 = vunpack.i.l.bf16 %v11315_v62 }
 0x490   : > { %v6051_v53 = vpack.c.bf16 %v6020_v5, %v6019_v36  ;;  %v11312_v41 = vunpack.i.h.bf16 %v11310_v37  ;;  %v11311_v57 = vunpack.i.l.bf16 %v11310_v37 }
 0x492   : > { %6296 = vmatmul.mubr.bf16.gmra.mrb[72].mxu0 %v6051_v53  ;;  %v11325_v12 = vpop.permute.xlu0 %11324  ;;  %v5893_v60 = vsel %vm2145_vm7, %v5861_v56, %v11311_v57  ;;  %v5894_v32 = vsel %vm2145_vm7, %v5862_v55, %v11312_v41 }
 0x493   : > { %v11320_v26 = vpop.permute.xlu1 %11319  ;;  %9292 = vmatprep.mubr.msk.bf16.mxu0 %vm2013_vm2, %v6054_v1  ;;  %v5925_v34 = vsel %vm2211_vm9, %v5893_v60, %v11316_v6  ;;  %v5926_v14 = vsel %vm2211_vm9, %v5894_v32, %v11317_v47  ;;  %v11327_v62 = vunpack.i.h.bf16 %v11325_v12  ;;  %v11326_v37 = vunpack.i.l.bf16 %v11325_v12 }
 0x494   : > { %v11322_v40 = vunpack.i.h.bf16 %v11320_v26  ;;  %v11321_v8 = vunpack.i.l.bf16 %v11320_v26 }
 0x495   : > { %v5832_v28 = vsel %vm2013_vm2, %v4647_v9, %v11327_v62  ;;  %v5831_v12 = vsel %vm2013_vm2, %v4646_v52, %v11326_v37 }
 0x496   : > { %v11335_v4 = vpop.permute.xlu0 %11334  ;;  %v5957_v45 = vsel %vm4017_vm12, %v5925_v34, %v11321_v8  ;;  %v5958_v58 = vsel %vm4017_vm12, %v5926_v14, %v11322_v40 }
 0x497   : > { %v11330_v20 = vpop.permute.xlu1 %11329  ;;  %v11337_v27 = vunpack.i.h.bf16 %v11335_v4  ;;  %v11336_v63 = vunpack.i.l.bf16 %v11335_v4 }
 0x498   : > { %v11332_v25 = vunpack.i.h.bf16 %v11330_v20  ;;  %v11331_v53 = vunpack.i.l.bf16 %v11330_v20 }
 0x499   : > { %v5989_v33 = vsel %vm4050_vm13, %v5957_v45, %v11336_v63  ;;  %v5990_v51 = vsel %vm4050_vm13, %v5958_v58, %v11337_v27 }
 0x49a   : > { %v11345_v1 = vpop.permute.xlu0 %11344  ;;  %v5864_v47 = vsel %vm2079_vm3, %v5832_v28, %v11332_v25  ;;  %v5863_v6 = vsel %vm2079_vm3, %v5831_v12, %v11331_v53 }
 0x49b   : > { %v11340_v0 = vpop.permute.xlu1 %11339  ;;  %v11347_v15 = vunpack.i.h.bf16 %v11345_v1  ;;  %v11346_v30 = vunpack.i.l.bf16 %v11345_v1 }
 0x49c   : > { %v11342_v17 = vunpack.i.h.bf16 %v11340_v0  ;;  %v11341_v54 = vunpack.i.l.bf16 %v11340_v0 }
 0x49d   : > { %v5895_v56 = vsel %vm2145_vm7, %v5863_v6, %v11346_v30  ;;  %v5896_v55 = vsel %vm2145_vm7, %v5864_v47, %v11347_v15 }
 0x49e   : > { %v6021_v39 = vsel %vm4083_vm14, %v5989_v33, %v11341_v54  ;;  %v6022_v43 = vsel %vm4083_vm14, %v5990_v51, %v11342_v17  ;;  %v11355_v36 = vpop.permute.xlu0 %11354 }
 0x49f   : > { %v11350_v5 = vpop.permute.xlu1 %11349  ;;  %v6053_v59 = vpack.c.bf16 %v6022_v43, %v6021_v39  ;;  %v11357_v4 = vunpack.i.h.bf16 %v11355_v36  ;;  %v11356_v20 = vunpack.i.l.bf16 %v11355_v36 }
 0x4a0   : > { %v11352_v26 = vunpack.i.h.bf16 %v11350_v5  ;;  %v11351_v42 = vunpack.i.l.bf16 %v11350_v5 }
 0x4a1   : > { %6304 = vmatmul.mubr.bf16.gmra.mrb[76].mxu0 %v6053_v59 }
 0x4a2   : > { %9293 = vmatprep.mubr.msk.bf16.mxu0 %vm2013_vm2, %v6056_v38  ;;  %v11365_v41 = vpop.permute.xlu0 %11364  ;;  %v5927_v11 = vsel %vm2211_vm9, %v5895_v56, %v11351_v42  ;;  %v5928_v2 = vsel %vm2211_vm9, %v5896_v55, %v11352_v26 }
 0x4a3   : > { %v11360_v57 = vpop.permute.xlu1 %11359  ;;  %v5959_v63 = vsel %vm4017_vm12, %v5927_v11, %v11356_v20  ;;  %v5960_v34 = vsel %vm4017_vm12, %v5928_v2, %v11357_v4  ;;  %v11367_v39 = vunpack.i.h.bf16 %v11365_v41  ;;  %v11366_v43 = vunpack.i.l.bf16 %v11365_v41 }
 0x4a4   : > { %v11362_v54 = vunpack.i.h.bf16 %v11360_v57  ;;  %v11361_v33 = vunpack.i.l.bf16 %v11360_v57 }
 0x4a6   : > { %v11375_v38 = vpop.permute.xlu0 %11374  ;;  %v5834_v36 = vsel %vm2013_vm2, %v14683_v24, %v11362_v54  ;;  %v5833_v5 = vsel %vm2013_vm2, %v14691_v3, %v11361_v33 }
 0x4a7   : > { %v11370_v60 = vpop.permute.xlu1 %11369  ;;  %v11377_v32 = vunpack.i.h.bf16 %v11375_v38  ;;  %v11376_v40 = vunpack.i.l.bf16 %v11375_v38  ;;  %v5865_v30 = vsel %vm2079_vm3, %v5833_v5, %v11366_v43  ;;  %v5866_v52 = vsel %vm2079_vm3, %v5834_v36, %v11367_v39 }
 0x4a8   : > { %v11372_v8 = vunpack.i.h.bf16 %v11370_v60  ;;  %v11371_v27 = vunpack.i.l.bf16 %v11370_v60 }
 0x4aa   : > { %v5991_v14 = vsel %vm4050_vm13, %v5959_v63, %v11371_v27  ;;  %v5992_v1 = vsel %vm4050_vm13, %v5960_v34, %v11372_v8  ;;  %v11385_v0 = vpop.permute.xlu0 %11384 }
 0x4ab   : > { %v11380_v45 = vpop.permute.xlu1 %11379  ;;  %v6023_v58 = vsel %vm4083_vm14, %v5991_v14, %v11376_v40  ;;  %v6024_v17 = vsel %vm4083_vm14, %v5992_v1, %v11377_v32  ;;  %v11387_v53 = vunpack.i.h.bf16 %v11385_v0  ;;  %v11386_v15 = vunpack.i.l.bf16 %v11385_v0 }
 0x4ac   : > { %v6055_v51 = vpack.c.bf16 %v6024_v17, %v6023_v58  ;;  %v11382_v59 = vunpack.i.h.bf16 %v11380_v45  ;;  %v11381_v25 = vunpack.i.l.bf16 %v11380_v45 }
 0x4ae   : > { %6312 = vmatmul.mubr.bf16.gmra.mrb[80].mxu0 %v6055_v51  ;;  %v11395_v62 = vpop.permute.xlu0 %11394  ;;  %v5897_v26 = vsel %vm2145_vm7, %v5865_v30, %v11381_v25  ;;  %v5898_v16 = vsel %vm2145_vm7, %v5866_v52, %v11382_v59  ;;  %v4909_v25 = vld [vmem:[#allocation4 + $0x19a] sm:$0xff] }
 0x4af   : > { %v11390_v37 = vpop.permute.xlu1 %11389  ;;  %9294 = vmatprep.mubr.msk.bf16.mxu0 %vm2013_vm2, %v6058_v21  ;;  %v5929_v3 = vsel %vm2211_vm9, %v5897_v26, %v11386_v15  ;;  %v5930_v12 = vsel %vm2211_vm9, %v5898_v16, %v11387_v53  ;;  %v11396_v11 = vunpack.i.l.bf16 %v11395_v62  ;;  %v11397_v60 = vunpack.i.h.bf16 %v11395_v62  ;;  %v4910_v53 = vld [vmem:[#allocation4 + $0x1a2] sm:$0xff] }
 0x4b0   : > { %v11392_v29 = vunpack.i.h.bf16 %v11390_v37  ;;  %v11391_v21 = vunpack.i.l.bf16 %v11390_v37 }
 0x4b1   : > { %v5835_v0 = vsel %vm2013_vm2, %v14740_v48, %v11396_v11  ;;  %v5836_v58 = vsel %vm2013_vm2, %v14746_v49, %v11397_v60 }
 0x4b2   : > { %v5961_v57 = vsel %vm4017_vm12, %v5929_v3, %v11391_v21  ;;  %v5962_v47 = vsel %vm4017_vm12, %v5930_v12, %v11392_v29  ;;  %v6062_v3 = vpack.c.bf16 %v4910_v53, %v4909_v25 }
 0x4b3   : > { %v11400_v9 = vpop.permute.xlu1 %11399  ;;  %v11405_v42 = vpop.permute.xlu0 %11404 }
 0x4b4   : > { %v11407_v24 = vunpack.i.h.bf16 %v11405_v42  ;;  %v11406_v28 = vunpack.i.l.bf16 %v11405_v42  ;;  %v11401_v32 = vunpack.i.l.bf16 %v11400_v9  ;;  %v11402_v27 = vunpack.i.h.bf16 %v11400_v9 }
 0x4b6   : > { %v5993_v55 = vsel %vm4050_vm13, %v5961_v57, %v11406_v28  ;;  %v5994_v4 = vsel %vm4050_vm13, %v5962_v47, %v11407_v24  ;;  %v5867_v17 = vsel %vm2079_vm3, %v5835_v0, %v11401_v32  ;;  %v5868_v33 = vsel %vm2079_vm3, %v5836_v58, %v11402_v27  ;;  %v15026_v32 = vld [vmem:[%s15990_s6] ss:$0 sm:$0xff]  ;;  %v15035_v0 = vld [vmem:[%s15990_s6 + $0x1] ss:$0 sm:$0xff] }
 0x4b7   : > { %v11410_v41 = vpop.permute.xlu1 %11409  ;;  %v11415_v20 = vpop.permute.xlu0 %11414 }
 0x4b8   : > { %v11412_v6 = vunpack.i.h.bf16 %v11410_v41  ;;  %v11411_v56 = vunpack.i.l.bf16 %v11410_v41  ;;  %v11416_v63 = vunpack.i.l.bf16 %v11415_v20  ;;  %v11417_v34 = vunpack.i.h.bf16 %v11415_v20 }
 0x4ba   : > { %v6025_v2 = vsel %vm4083_vm14, %v5993_v55, %v11411_v56  ;;  %v6026_v38 = vsel %vm4083_vm14, %v5994_v4, %v11412_v6  ;;  %v5899_v51 = vsel %vm2145_vm7, %v5867_v17, %v11416_v63  ;;  %v5900_v43 = vsel %vm2145_vm7, %v5868_v33, %v11417_v34 }
 0x4bb   : > { %v11420_v40 = vpop.permute.xlu1 %11419  ;;  %v6057_v8 = vpack.c.bf16 %v6026_v38, %v6025_v2 }
 0x4bc   : > { %v11421_v14 = vunpack.i.l.bf16 %v11420_v40  ;;  %v11425_v1 = vpop.permute.xlu0 %11424  ;;  %v11422_v45 = vunpack.i.h.bf16 %v11420_v40 }
 0x4bd   : > { %6320 = vmatmul.mubr.bf16.gmra.mrb[84].mxu0 %v6057_v8  ;;  %v11426_v39 = vunpack.i.l.bf16 %v11425_v1  ;;  %v11427_v62 = vunpack.i.h.bf16 %v11425_v1 }
 0x4be   : > { %9295 = vmatprep.mubr.msk.bf16.mxu0 %vm2013_vm2, %v6060_v61  ;;  %v5931_v48 = vsel %vm2211_vm9, %v5899_v51, %v11421_v14  ;;  %v5932_v46 = vsel %vm2211_vm9, %v5900_v43, %v11422_v45 }
 0x4bf   : > { %v11430_v54 = vpop.permute.xlu1 %11429  ;;  %v5963_v49 = vsel %vm4017_vm12, %v5931_v48, %v11426_v39  ;;  %v5964_v15 = vsel %vm4017_vm12, %v5932_v46, %v11427_v62 }
 0x4c0   : > { %v11432_v37 = vunpack.i.h.bf16 %v11430_v54  ;;  %v11435_v7 = vpop.permute.xlu0 %11434  ;;  %v11431_v61 = vunpack.i.l.bf16 %v11430_v54 }
 0x4c1   : > { %v11437_v52 = vunpack.i.h.bf16 %v11435_v7  ;;  %v11436_v9 = vunpack.i.l.bf16 %v11435_v7 }
 0x4c2   : > { %v5838_v30 = vsel %vm2013_vm2, %v14801_v50, %v11432_v37  ;;  %v5837_v24 = vsel %vm2013_vm2, %v14796_v10, %v11431_v61 }
 0x4c3   : > { %v11440_v36 = vpop.permute.xlu1 %11439  ;;  %v5870_v47 = vsel %vm2079_vm3, %v5838_v30, %v11437_v52  ;;  %v5869_v55 = vsel %vm2079_vm3, %v5837_v24, %v11436_v9 }
 0x4c4   : > { %v11442_v5 = vunpack.i.h.bf16 %v11440_v36  ;;  %v11441_v59 = vunpack.i.l.bf16 %v11440_v36  ;;  %v11445_v26 = vpop.permute.xlu0 %11444  ;;  %v16158_v36 = vmax.f32 %v13305_v23, 0.0 }
 0x4c5   : > { %v11447_v21 = vunpack.i.h.bf16 %v11445_v26  ;;  %v11446_v42 = vunpack.i.l.bf16 %v11445_v26 }
 0x4c6   : > { %v5996_v16 = vsel %vm4050_vm13, %v5964_v15, %v11442_v5  ;;  %v5995_v29 = vsel %vm4050_vm13, %v5963_v49, %v11441_v59  ;;  %v16159_v59 = vmax.f32 %v13317_v35, 0.0  ;;  %v16160_v35 = vmax.f32 %v13300_v18, 0.0  ;;  %v6585_v18 = vld [vmem:[#allocation5 + $0x1] ss:$2 sm:$0xff] }
 0x4c7   : > { %v11450_v28 = vpop.permute.xlu1 %11449  ;;  %v6027_v57 = vsel %vm4083_vm14, %v5995_v29, %v11446_v42  ;;  %v6028_v50 = vsel %vm4083_vm14, %v5996_v16, %v11447_v21 }
 0x4c8   : > { %v11452_v12 = vunpack.i.h.bf16 %v11450_v28  ;;  %v11451_v41 = vunpack.i.l.bf16 %v11450_v28  ;;  %v11455_v6 = vpop.permute.xlu0 %11454  ;;  %v6059_v56 = vpack.c.bf16 %v6028_v50, %v6027_v57  ;;  %v11806_v57 = vld [vmem:[%s15991_s7] sm:$0xff]  }
 0x4c9   : > { %v11457_v20 = vunpack.i.h.bf16 %v11455_v6  ;;  %v11456_v11 = vunpack.i.l.bf16 %v11455_v6  ;;  %7084 = vmatpush1.bf16.msra.mxu1 %v11806_v57  ;;  %v6601_v50 = vld [vmem:[#allocation5 + $0x2] ss:$2 sm:$0xff] }
 0x4ca   : > { %v5902_v4 = vsel %vm2145_vm7, %v5870_v47, %v11452_v12  ;;  %v5901_v10 = vsel %vm2145_vm7, %v5869_v55, %v11451_v41  ;;  %6328 = vmatmul.mubr.bf16.gmra.mrb[88].mxu0 %v6059_v56  ;;  %7085 = vmatprep.subr.bf16.mxu1 %v16156_v44  ;;  %v11807_v47 = vld [vmem:[%s15991_s7 + $0x8] sm:$0xff]  }
 0x4cb   : > { %v11465_v2 = vpop.permute.xlu1 %11464  ;;  %9296 = vmatprep.mubr.msk.bf16.mxu0 %vm2013_vm2, %v6062_v3  ;;  %v5934_v40 = vsel %vm2211_vm9, %v5902_v4, %v11457_v20  ;;  %v5933_v63 = vsel %vm2211_vm9, %v5901_v10, %v11456_v11  ;;  %v16161_v3 = vmax.f32 %v13312_v13, 0.0 }
 0x4cc   : > { %v11467_v38 = vunpack.i.h.bf16 %v11465_v2  ;;  %v11466_v60 = vunpack.i.l.bf16 %v11465_v2  ;;  %v11460_v8 = vpop.permute.xlu0 %11459 }
 0x4cd   : > { %v11462_v14 = vunpack.i.h.bf16 %v11460_v8  ;;  %v11461_v1 = vunpack.i.l.bf16 %v11460_v8  ;;  %7086 = vmatpush1.bf16.msra.mxu1 %v11807_v47  ;;  %v16162_v8 = vmax.f32 %v13394_v22, 0.0  ;;  %v11810_v22 = vld [vmem:[%s15991_s7 + $0x20] sm:$0xff]  }
 0x4ce   : > { %v6217_v27 = vpop.f32.mrb[32].mxu0  ;;  %v5966_v34 = vsel %vm4017_vm12, %v5934_v40, %v11467_v38  ;;  %v5965_v58 = vsel %vm4017_vm12, %v5933_v63, %v11466_v60  ;;  %7087 = vmatprep.subr.bf16.mxu1 %v16156_v44  ;;  %v11808_v40 = vld [vmem:[%s15991_s7 + $0x10] sm:$0xff]  }
 0x4cf   : > { %v6219_v45 = vpop.f32.mrb[33].mxu0  ;;  %v6349_v17 = vmul.f32 %v15026_v32, %v6217_v27  ;;  %v11470_v33 = vpop.permute.xlu1 %11469  ;;  %v5998_v48 = vsel %vm4050_vm13, %v5966_v34, %v11462_v14  ;;  %v5997_v7 = vsel %vm4050_vm13, %v5965_v58, %v11461_v1  ;;  %v11809_v34 = vld [vmem:[%s15991_s7 + $0x18] sm:$0xff]   ;;  %v16163_v1 = vmax.f32 %v13404_v31, 0.0  ;;  %v11811_v31 = vld [vmem:[%s15991_s7 + $0x28] sm:$0xff]  }
 0x4d0   : > { %v6220_v54 = vpop.f32.mrb[34].mxu0  ;;  %v11472_v39 = vunpack.i.h.bf16 %v11470_v33  ;;  %v11471_v37 = vunpack.i.l.bf16 %v11470_v33 }
 0x4d1   : > { %v6350_v51 = vmul.f32 %v15026_v32, %v6220_v54  ;;  %v6222_v43 = vpop.f32.mrb[35].mxu0  ;;  %v6386_v62 = vadd.f32 %v15035_v0, %v6349_v17  ;;  %7088 = vmatpush1.bf16.msra.mxu1 %v11808_v40 }
 0x4d2   : > { %v6030_v61 = vsel %vm4083_vm14, %v5998_v48, %v11472_v39  ;;  %v6029_v5 = vsel %vm4083_vm14, %v5997_v7, %v11471_v37  ;;  %7089 = vmatprep.subr.bf16.mxu1 %v16156_v44 }
 0x4d3   : > { %v6387_v46 = vadd.f32 %v15035_v0, %v6350_v51  ;;  %v6418_v49 = vadd.f32 %v6386_v62, %v16158_v36  ;;  %v6061_v53 = vpack.c.bf16 %v6030_v61, %v6029_v5  ;;  %v11812_v61 = vld [vmem:[%s15991_s7 + $0x30] sm:$0xff]   ;;  %v16164_v5 = vmax.f32 %v13389_v19, 0.0  ;;  %v11813_v19 = vld [vmem:[%s15991_s7 + $0x38] sm:$0xff]  }
 0x4d5   : > { %v6419_v25 = vadd.f32 %v6387_v46, %v16159_v59  ;;  %v6450_v15 = vmax.f32 %v6418_v49, 0.0  ;;  %6336 = vmatmul.mubr.bf16.gmra.mrb[92].mxu0 %v6061_v53  ;;  %7090 = vmatpush1.bf16.msra.mxu1 %v11809_v34 }
 0x4d6   : > { %7091 = vmatprep.subr.bf16.mxu1 %v16156_v44 }
 0x4d7   : > { %v6451_v30 = vmax.f32 %v6419_v25, 0.0  ;;  %6537 = vst.msk [vmem:[#allocation5 + $0x19] sm:$0xff] %vm2013_vm2, %v6450_v15 }
 0x4d9   : > { %6538 = vst.msk [vmem:[#allocation5 + $0x21] sm:$0xff] %vm2013_vm2, %v6451_v30  ;;  %7092 = vmatpush1.bf16.msra.mxu1 %v11810_v22  ;;  %v16165_v30 = vld [vmem:[#allocation17_spill] sm:$0xff] }
 0x4da   : > { %7093 = vmatprep.subr.bf16.mxu1 %v16156_v44 }
 0x4dd   : > { %v6225_v52 = vpop.f32.mrb[36].mxu0  ;;  %7094 = vmatpush1.bf16.msra.mxu1 %v11811_v31 }
 0x4de   : > { %v6351_v9 = vmul.f32 %v15026_v32, %v6225_v52  ;;  %v6227_v26 = vpop.f32.mrb[37].mxu0  ;;  %7095 = vmatprep.subr.bf16.mxu1 %v16156_v44  ;;  %v16166_v52 = vmax.f32 %v16165_v30, 0.0  ;;  %v16176_v30 = vld [vmem:[#allocation23_spill] sm:$0xff] }
 0x4df   : > { %v6228_v16 = vpop.f32.mrb[38].mxu0 }
 0x4e0   : > { %v6388_v23 = vadd.f32 %v15035_v0, %v6351_v9  ;;  %v6352_v29 = vmul.f32 %v15026_v32, %v6228_v16  ;;  %v6230_v21 = vpop.f32.mrb[39].mxu0  ;;  %v6616_v39 = vld [vmem:[#allocation5 + $0x18] ss:$2 sm:$0xff]  ;;  %v6632_v43 = vld [vmem:[#allocation5 + $0x19] ss:$2 sm:$0xff] }
 0x4e1   : > { %v6648_v26 = vld [vmem:[#allocation5 + $0x1a] ss:$2 sm:$0xff]  ;;  %7096 = vmatpush1.bf16.msra.mxu1 %v11812_v61 }
 0x4e2   : > { %v6420_v42 = vadd.f32 %v6388_v23, %v16160_v35  ;;  %v6389_v24 = vadd.f32 %v15035_v0, %v6352_v29  ;;  %7097 = vmatprep.subr.bf16.mxu1 %v16156_v44  ;;  %v11814_v29 = vld [vmem:[%s15991_s7 + $0x40] sm:$0xff]  }
 0x4e4   : > { %v6452_v28 = vmax.f32 %v6420_v42, 0.0  ;;  %v6421_v12 = vadd.f32 %v6389_v24, %v16161_v3 }
 0x4e5   : > { %7098 = vmatpush1.bf16.msra.mxu1 %v11813_v19  ;;  %v16178_v19 = vld [vmem:[#allocation25_spill] sm:$0xff] }
 0x4e6   : > { %6539 = vst.msk [vmem:[#allocation5 + $0x31] sm:$0xff] %vm2013_vm2, %v6452_v28  ;;  %v6453_v41 = vmax.f32 %v6421_v12, 0.0  ;;  %7099 = vmatprep.subr.bf16.mxu1 %v16156_v44 }
 0x4e8   : > { %6540 = vst.msk [vmem:[#allocation5 + $0x39] sm:$0xff] %vm2013_vm2, %v6453_v41 }
 0x4e9   : > { %7100 = vmatpush1.bf16.msra.mxu1 %v11814_v29 }
 0x4ed   : > { %v6233_v13 = vpop.f32.mrb[40].mxu0 }
 0x4ee   : > { %v6353_v6 = vmul.f32 %v15026_v32, %v6233_v13  ;;  %v6235_v56 = vpop.f32.mrb[41].mxu0 }
 0x4ef   : > { %v6587_v55 = vld [vmem:[#allocation5 + $0x31] ss:$2 sm:$0xff]  ;;  %v6603_v4 = vld [vmem:[#allocation5 + $0x32] ss:$2 sm:$0xff]  ;;  %v6236_v20 = vpop.f32.mrb[42].mxu0 }
 0x4f0   : > { %v11473_v11 = vpack.i.bf16 %v6587_v55, %v6585_v18  ;;  %v11478_v10 = vpack.i.bf16 %v6603_v4, %v6601_v50  ;;  %v6390_v2 = vadd.f32 %v15035_v0, %v6353_v6  ;;  %v6354_v38 = vmul.f32 %v15026_v32, %v6236_v20  ;;  %v6238_v60 = vpop.f32.mrb[43].mxu0  ;;  %v6696_v21 = vld [vmem:[#allocation5 + $0x32] ss:$2 sm:$0xff]  ;;  %v6680_v35 = vld [vmem:[#allocation5 + $0x31] ss:$2 sm:$0xff] }
 0x4f1   : > { %v6664_v18 = vld [vmem:[#allocation5 + $0x30] ss:$2 sm:$0xff] }
 0x4f2   : > { %11474 = vrot.lane.b32.xlu0 %v11473_v11, %s16108_s29  ;;  %11479 = vrot.lane.b32.xlu1 %v11478_v10, %s16110_s23  ;;  %v6422_v27 = vadd.f32 %v6390_v2, %v16162_v8  ;;  %v6391_v63 = vadd.f32 %v15035_v0, %v6354_v38  ;;  %v16168_v55 = vld [vmem:[#allocation19_spill] sm:$0xff]  ;;  %v16170_v2 = vld [vmem:[#allocation21_spill] sm:$0xff] }
 0x4f3   : > { %v16169_v4 = vmax.f32 %v16168_v55, 0.0  ;;  %v16171_v38 = vmax.f32 %v16170_v2, 0.0 }
 0x4f4   : > { %v6454_v14 = vmax.f32 %v6422_v27, 0.0  ;;  %v6423_v45 = vadd.f32 %v6391_v63, %v16163_v1 }
 0x4f6   : > { %6541 = vst.msk [vmem:[#allocation5 + $0x49] sm:$0xff] %vm2013_vm2, %v6454_v14  ;;  %v6455_v58 = vmax.f32 %v6423_v45, 0.0 }
 0x4f8   : > { %6542 = vst.msk [vmem:[#allocation5 + $0x51] sm:$0xff] %vm2013_vm2, %v6455_v58  ;;  %v16172_v58 = vld [vmem:[#allocation18_spill] sm:$0xff] }
 0x4f9   : > { %v16173_v22 = vmax.f32 %v16172_v58, 0.0 }
 0x4fc   : > { %v6241_v17 = vpop.f32.mrb[44].mxu0 }
 0x4fd   : > { %v6355_v54 = vmul.f32 %v15026_v32, %v6241_v17  ;;  %v6243_v33 = vpop.f32.mrb[45].mxu0 }
 0x4fe   : > { %v6244_v51 = vpop.f32.mrb[46].mxu0  ;;  %v16174_v33 = vld [vmem:[#allocation20_spill] sm:$0xff] }
 0x4ff   : > { %v6392_v48 = vadd.f32 %v15035_v0, %v6355_v54  ;;  %v6356_v62 = vmul.f32 %v15026_v32, %v6244_v51  ;;  %v6246_v37 = vpop.f32.mrb[47].mxu0  ;;  %v6618_v7 = vld [vmem:[#allocation5 + $0x48] ss:$2 sm:$0xff]  ;;  %v6634_v46 = vld [vmem:[#allocation5 + $0x49] ss:$2 sm:$0xff]  ;;  %v16175_v51 = vmax.f32 %v16174_v33, 0.0 }
 0x500   : > { %v11483_v36 = vpack.i.bf16 %v6618_v7, %v6616_v39  ;;  %v11488_v49 = vpack.i.bf16 %v6634_v46, %v6632_v43  ;;  %v6650_v53 = vld [vmem:[#allocation5 + $0x4a] ss:$2 sm:$0xff] }
 0x501   : > { %v6424_v59 = vadd.f32 %v6392_v48, %v16164_v5  ;;  %v6393_v25 = vadd.f32 %v15035_v0, %v6356_v62  ;;  %v11493_v16 = vpack.i.bf16 %v6650_v53, %v6648_v26  ;;  %v16184_v33 = vld [vmem:[#allocation27_spill] sm:$0xff] }
 0x502   : > { %11484 = vrot.lane.b32.xlu0 %v11483_v36, %s16112_s26  ;;  %11489 = vrot.lane.b32.xlu1 %v11488_v49, %s16114_s0 }
 0x503   : > { %v6456_v15 = vmax.f32 %v6424_v59, 0.0  ;;  %v6425_v9 = vadd.f32 %v6393_v25, %v16166_v52  ;;  %v16177_v52 = vmax.f32 %v16176_v30, 0.0 }
 0x505   : > { %6543 = vst.msk [vmem:[#allocation5 + $0x61] sm:$0xff] %vm2013_vm2, %v6456_v15  ;;  %v6457_v23 = vmax.f32 %v6425_v9, 0.0 }
 0x506   : > { %11494 = vrot.lane.b32.xlu0 %v11493_v16, %s16167_s21 }
 0x507   : > { %6544 = vst.msk [vmem:[#allocation5 + $0x69] sm:$0xff] %vm2013_vm2, %v6457_v23  ;;  %v16179_v23 = vmax.f32 %v16178_v19, 0.0 }
 0x50d   : > { %v6249_v42 = vpop.f32.mrb[48].mxu0 }
 0x50e   : > { %v6698_v24 = vld [vmem:[#allocation5 + $0x62] ss:$2 sm:$0xff]  ;;  %v6682_v28 = vld [vmem:[#allocation5 + $0x61] ss:$2 sm:$0xff]  ;;  %v6357_v3 = vmul.f32 %v15026_v32, %v6249_v42  ;;  %v6251_v12 = vpop.f32.mrb[49].mxu0 }
 0x50f   : > { %v6992_v41 = vpack.c.bf16 %v6698_v24, %v6696_v21  ;;  %v11503_v57 = vpack.i.bf16 %v6682_v28, %v6680_v35  ;;  %v6666_v50 = vld [vmem:[#allocation5 + $0x60] ss:$2 sm:$0xff]  ;;  %v6252_v47 = vpop.f32.mrb[50].mxu0  ;;  %v6589_v37 = vld [vmem:[#allocation5 + $0x61] ss:$2 sm:$0xff] }
 0x510   : > { %v11498_v13 = vpack.i.bf16 %v6666_v50, %v6664_v18  ;;  %v6394_v44 = vadd.f32 %v15035_v0, %v6357_v3  ;;  %v6358_v6 = vmul.f32 %v15026_v32, %v6252_v47  ;;  %v6254_v56 = vpop.f32.mrb[51].mxu0  ;;  %v6605_v62 = vld [vmem:[#allocation5 + $0x62] ss:$2 sm:$0xff] }
 0x511   : > { %9308 = vmatprep.mubr.msk.bf16.mxu1 %vm2013_vm2, %v6992_v41  ;;  %11504 = vrot.lane.b32.xlu0 %v11503_v57, %s16157_s22 }
 0x512   : > { %11499 = vrot.lane.b32.xlu1 %v11498_v13, %s16118_s24  ;;  %v6426_v20 = vadd.f32 %v6394_v44, %v16169_v4  ;;  %v6395_v11 = vadd.f32 %v15035_v0, %v6358_v6  ;;  %v16180_v13 = vld [vmem:[#allocation22_spill] sm:$0xff] }
 0x513   : > { %v16181_v44 = vmax.f32 %v16180_v13, 0.0 }
 0x514   : > { %v6458_v10 = vmax.f32 %v6426_v20, 0.0  ;;  %v6427_v60 = vadd.f32 %v6395_v11, %v16171_v38 }
 0x516   : > { %6545 = vst.msk [vmem:[#allocation5 + $0x79] sm:$0xff] %vm2013_vm2, %v6458_v10  ;;  %v6459_v40 = vmax.f32 %v6427_v60, 0.0  ;;  %v16182_v10 = vld [vmem:[#allocation24_spill] sm:$0xff] }
 0x517   : > { %v16183_v2 = vmax.f32 %v16182_v10, 0.0  ;;  %v16194_v10 = vld [vmem:[#allocation33_spill] sm:$0xff] }
 0x518   : > { %6546 = vst.msk [vmem:[#allocation5 + $0x81] sm:$0xff] %vm2013_vm2, %v6459_v40 }
 0x51c   : > { %v6257_v8 = vpop.f32.mrb[52].mxu0 }
 0x51d   : > { %v6359_v27 = vmul.f32 %v15026_v32, %v6257_v8  ;;  %v6259_v63 = vpop.f32.mrb[53].mxu0 }
 0x51e   : > { %v6260_v34 = vpop.f32.mrb[54].mxu0 }
 0x51f   : > { %v6396_v14 = vadd.f32 %v15035_v0, %v6359_v27  ;;  %v6360_v1 = vmul.f32 %v15026_v32, %v6260_v34  ;;  %v6262_v45 = vpop.f32.mrb[55].mxu0  ;;  %v6636_v57 = vld [vmem:[#allocation5 + $0x79] ss:$2 sm:$0xff]  ;;  %v6620_v50 = vld [vmem:[#allocation5 + $0x78] ss:$2 sm:$0xff] }
 0x520   : > { %v6652_v60 = vld [vmem:[#allocation5 + $0x7a] ss:$2 sm:$0xff] }
 0x521   : > { %v6428_v17 = vadd.f32 %v6396_v14, %v16173_v22  ;;  %v6397_v31 = vadd.f32 %v15035_v0, %v6360_v1 }
 0x523   : > { %v6460_v54 = vmax.f32 %v6428_v17, 0.0  ;;  %v6429_v39 = vadd.f32 %v6397_v31, %v16175_v51  ;;  %v16185_v51 = vmax.f32 %v16184_v33, 0.0 }
 0x525   : > { %6547 = vst.msk [vmem:[#allocation5 + $0x91] sm:$0xff] %vm2013_vm2, %v6460_v54  ;;  %v6461_v43 = vmax.f32 %v6429_v39, 0.0 }
 0x527   : > { %6548 = vst.msk [vmem:[#allocation5 + $0x99] sm:$0xff] %vm2013_vm2, %v6461_v43 }
 0x52d   : > { %v6265_v48 = vpop.f32.mrb[56].mxu0 }
 0x52e   : > { %v6361_v7 = vmul.f32 %v15026_v32, %v6265_v48  ;;  %v6267_v46 = vpop.f32.mrb[57].mxu0  ;;  %v6607_v61 = vld [vmem:[#allocation5 + $0x92] ss:$2 sm:$0xff]  ;;  %v6591_v36 = vld [vmem:[#allocation5 + $0x91] ss:$2 sm:$0xff] }
 0x52f   : > { %v6268_v49 = vpop.f32.mrb[58].mxu0  ;;  %v11513_v5 = vpack.i.bf16 %v6607_v61, %v6605_v62  ;;  %v11508_v59 = vpack.i.bf16 %v6591_v36, %v6589_v37  ;;  %v6668_v22 = vld [vmem:[#allocation5 + $0x90] ss:$2 sm:$0xff]  ;;  %v6684_v31 = vld [vmem:[#allocation5 + $0x91] ss:$2 sm:$0xff] }
 0x530   : > { %v6398_v25 = vadd.f32 %v15035_v0, %v6361_v7  ;;  %v6362_v53 = vmul.f32 %v15026_v32, %v6268_v49  ;;  %v6270_v15 = vpop.f32.mrb[59].mxu0  ;;  %v16186_v7 = vld [vmem:[#allocation29_spill] sm:$0xff] }
 0x531   : > { %11514 = vrot.lane.b32.xlu0 %v11513_v5, %s16110_s23  ;;  %11509 = vrot.lane.b32.xlu1 %v11508_v59, %s16108_s29  ;;  %v16187_v46 = vmax.f32 %v16186_v7, 0.0 }
 0x532   : > { %v6430_v9 = vadd.f32 %v6398_v25, %v16177_v52  ;;  %v6399_v26 = vadd.f32 %v15035_v0, %v6362_v53  ;;  %v16188_v52 = vld [vmem:[#allocation26_spill] sm:$0xff] }
 0x534   : > { %v6462_v16 = vmax.f32 %v6430_v9, 0.0  ;;  %v6431_v29 = vadd.f32 %v6399_v26, %v16179_v23  ;;  %v16189_v9 = vmax.f32 %v16188_v52, 0.0  ;;  %v16190_v23 = vld [vmem:[#allocation28_spill] sm:$0xff] }
 0x535   : > { %v6571_v52 = vld [vmem:[#allocation5 + $0x30] ss:$2 sm:$0xff] }
 0x536   : > { %6549 = vst.msk [vmem:[#allocation5 + $0xa9] sm:$0xff] %vm2013_vm2, %v6462_v16  ;;  %v6463_v21 = vmax.f32 %v6431_v29, 0.0  ;;  %v16191_v29 = vmax.f32 %v16190_v23, 0.0 }
 0x538   : > { %6550 = vst.msk [vmem:[#allocation5 + $0xb1] sm:$0xff] %vm2013_vm2, %v6463_v21 }
 0x53c   : > { %v6273_v35 = vpop.f32.mrb[60].mxu0 }
 0x53d   : > { %v6363_v42 = vmul.f32 %v15026_v32, %v6273_v35  ;;  %v6275_v24 = vpop.f32.mrb[61].mxu0 }
 0x53e   : > { %v6276_v28 = vpop.f32.mrb[62].mxu0 }
 0x53f   : > { %v6400_v3 = vadd.f32 %v15035_v0, %v6363_v42  ;;  %v6364_v12 = vmul.f32 %v15026_v32, %v6276_v28  ;;  %v6278_v41 = vpop.f32.mrb[63].mxu0  ;;  %v6638_v18 = vld [vmem:[#allocation5 + $0xa9] ss:$2 sm:$0xff]  ;;  %v6622_v47 = vld [vmem:[#allocation5 + $0xa8] ss:$2 sm:$0xff] }
 0x540   : > { %v11523_v55 = vpack.i.bf16 %v6638_v18, %v6636_v57  ;;  %v11518_v4 = vpack.i.bf16 %v6622_v47, %v6620_v50  ;;  %v6654_v20 = vld [vmem:[#allocation5 + $0xaa] ss:$2 sm:$0xff] }
 0x541   : > { %v6432_v6 = vadd.f32 %v6400_v3, %v16181_v44  ;;  %v6401_v56 = vadd.f32 %v15035_v0, %v6364_v12  ;;  %v11528_v8 = vpack.i.bf16 %v6654_v20, %v6652_v60  ;;  %v16192_v44 = vld [vmem:[#allocation31_spill] sm:$0xff] }
 0x542   : > { %11524 = vrot.lane.b32.xlu0 %v11523_v55, %s16114_s0  ;;  %11519 = vrot.lane.b32.xlu1 %v11518_v4, %s16112_s26 }
 0x543   : > { %v6464_v11 = vmax.f32 %v6432_v6, 0.0  ;;  %v6433_v38 = vadd.f32 %v6401_v56, %v16183_v2  ;;  %v16193_v6 = vmax.f32 %v16192_v44, 0.0  ;;  %v16195_v2 = vmax.f32 %v16194_v10, 0.0 }
 0x545   : > { %6551 = vst.msk [vmem:[#allocation5 + $0xc1] sm:$0xff] %vm2013_vm2, %v6464_v11  ;;  %v6465_v40 = vmax.f32 %v6433_v38, 0.0 }
 0x546   : > { %11529 = vrot.lane.b32.xlu1 %v11528_v8, %s16167_s21 }
 0x547   : > { %6552 = vst.msk [vmem:[#allocation5 + $0xc9] sm:$0xff] %vm2013_vm2, %v6465_v40 }
 0x549   : > { %v6281_v27 = vpop.f32.mrb[64].mxu0 }
 0x54a   : > { %v6365_v63 = vmul.f32 %v15026_v32, %v6281_v27  ;;  %v6283_v34 = vpop.f32.mrb[65].mxu0 }
 0x54b   : > { %v6284_v14 = vpop.f32.mrb[66].mxu0 }
 0x54c   : > { %v6402_v1 = vadd.f32 %v15035_v0, %v6365_v63  ;;  %v6366_v45 = vmul.f32 %v15026_v32, %v6284_v14  ;;  %v6286_v58 = vpop.f32.mrb[67].mxu0 }
 0x54e   : > { %v6670_v17 = vld [vmem:[#allocation5 + $0xc0] ss:$2 sm:$0xff]  ;;  %v6686_v54 = vld [vmem:[#allocation5 + $0xc1] ss:$2 sm:$0xff]  ;;  %v6434_v39 = vadd.f32 %v6402_v1, %v16185_v51  ;;  %v6403_v43 = vadd.f32 %v15035_v0, %v6366_v45 }
 0x54f   : > { %v11533_v48 = vpack.i.bf16 %v6670_v17, %v6668_v22  ;;  %v11538_v62 = vpack.i.bf16 %v6686_v54, %v6684_v31  ;;  %v6593_v18 = vld [vmem:[#allocation5 + $0xc1] ss:$2 sm:$0xff]  ;;  %v6609_v47 = vld [vmem:[#allocation5 + $0xc2] ss:$2 sm:$0xff] }
 0x550   : > { %v6466_v37 = vmax.f32 %v6434_v39, 0.0  ;;  %v6435_v61 = vadd.f32 %v6403_v43, %v16187_v46  ;;  %v16196_v31 = vld [vmem:[#allocation30_spill] sm:$0xff] }
 0x551   : > { %11534 = vrot.lane.b32.xlu0 %v11533_v48, %s16118_s24  ;;  %11539 = vrot.lane.b32.xlu1 %v11538_v62, %s16157_s22  ;;  %v16197_v54 = vmax.f32 %v16196_v31, 0.0 }
 0x552   : > { %6553 = vst.msk [vmem:[#allocation5 + $0xd9] sm:$0xff] %vm2013_vm2, %v6466_v37  ;;  %v6467_v36 = vmax.f32 %v6435_v61, 0.0  ;;  %v6569_v61 = vld [vmem:[#allocation5] ss:$2 sm:$0xff] }
 0x554   : > { %6554 = vst.msk [vmem:[#allocation5 + $0xe1] sm:$0xff] %vm2013_vm2, %v6467_v36 }
 0x558   : > { %v6289_v49 = vpop.f32.mrb[68].mxu0 }
 0x559   : > { %v6367_v5 = vmul.f32 %v15026_v32, %v6289_v49  ;;  %v6291_v59 = vpop.f32.mrb[69].mxu0 }
 0x55a   : > { %v6292_v25 = vpop.f32.mrb[70].mxu0 }
 0x55b   : > { %v6404_v53 = vadd.f32 %v15035_v0, %v6367_v5  ;;  %v6368_v15 = vmul.f32 %v15026_v32, %v6292_v25  ;;  %v6294_v30 = vpop.f32.mrb[71].mxu0  ;;  %v6624_v1 = vld [vmem:[#allocation5 + $0xd8] ss:$2 sm:$0xff]  ;;  %v6640_v39 = vld [vmem:[#allocation5 + $0xd9] ss:$2 sm:$0xff] }
 0x55c   : > { %v16198_v5 = vld [vmem:[#allocation32_spill] sm:$0xff] }
 0x55d   : > { %v6436_v26 = vadd.f32 %v6404_v53, %v16189_v9  ;;  %v6405_v16 = vadd.f32 %v15035_v0, %v6368_v15  ;;  %v16199_v59 = vmax.f32 %v16198_v5, 0.0  ;;  %v6656_v53 = vld [vmem:[#allocation5 + $0xda] ss:$2 sm:$0xff] }
 0x55f   : > { %v6468_v19 = vmax.f32 %v6436_v26, 0.0  ;;  %v6437_v21 = vadd.f32 %v6405_v16, %v16191_v29 }
 0x561   : > { %6555 = vst.msk [vmem:[#allocation5 + $0xf1] sm:$0xff] %vm2013_vm2, %v6468_v19  ;;  %v6469_v35 = vmax.f32 %v6437_v21, 0.0 }
 0x563   : > { %6556 = vst.msk [vmem:[#allocation5 + $0xf9] sm:$0xff] %vm2013_vm2, %v6469_v35 }
 0x564   : > { %v11475_v27 = vpop.permute.xlu0 %11474  ;;  %v11480_v48 = vpop.permute.xlu1 %11479 }
 0x565   : > { %v6297_v42 = vpop.f32.mrb[72].mxu0  ;;  %v11476_v43 = vunpack.i.l.bf16 %v11475_v27  ;;  %v11477_v36 = vunpack.i.h.bf16 %v11475_v27  ;;  %v11481_v15 = vunpack.i.l.bf16 %v11480_v48  ;;  %v11482_v26 = vunpack.i.h.bf16 %v11480_v48  ;;  %v16202_v48 = vld [vmem:[#allocation37_spill] sm:$0xff] }
 0x566   : > { %v6369_v24 = vmul.f32 %v15026_v32, %v6297_v42  ;;  %v6299_v28 = vpop.f32.mrb[73].mxu0 }
 0x567   : > { %v6300_v3 = vpop.f32.mrb[74].mxu0  ;;  %v6935_v9 = vsel %vm2013_vm2, %v6569_v61, %v11476_v43  ;;  %v6936_v23 = vsel %vm2013_vm2, %v6571_v52, %v11477_v36  ;;  %v6700_v36 = vld [vmem:[#allocation5 + $0x92] ss:$2 sm:$0xff] }
 0x568   : > { %v6406_v12 = vadd.f32 %v15035_v0, %v6369_v24  ;;  %v6370_v41 = vmul.f32 %v15026_v32, %v6300_v3  ;;  %v6302_v57 = vpop.f32.mrb[75].mxu0  ;;  %v6943_v42 = vsel %vm2079_vm3, %v6935_v9, %v11481_v15  ;;  %v6944_v24 = vsel %vm2079_vm3, %v6936_v23, %v11482_v26  ;;  %v16204_v26 = vld [vmem:[#allocation34_spill] sm:$0xff] }
 0x56a   : > { %v6595_v50 = vld [vmem:[#allocation5 + $0xf1] ss:$2 sm:$0xff]  ;;  %v6611_v13 = vld [vmem:[#allocation5 + $0xf2] ss:$2 sm:$0xff]  ;;  %v6438_v56 = vadd.f32 %v6406_v12, %v16193_v6  ;;  %v6407_v55 = vadd.f32 %v15035_v0, %v6370_v41 }
 0x56b   : > { %v11543_v4 = vpack.i.bf16 %v6595_v50, %v6593_v18  ;;  %v11548_v20 = vpack.i.bf16 %v6611_v13, %v6609_v47 }
 0x56c   : > { %v6470_v11 = vmax.f32 %v6438_v56, 0.0  ;;  %v6439_v38 = vadd.f32 %v6407_v55, %v16195_v2 }
 0x56d   : > { %11544 = vrot.lane.b32.xlu0 %v11543_v4, %s16108_s29  ;;  %11549 = vrot.lane.b32.xlu1 %v11548_v20, %s16110_s23 }
 0x56e   : > { %6557 = vst.msk [vmem:[#allocation5 + $0x109] sm:$0xff] %vm2013_vm2, %v6470_v11  ;;  %v6471_v60 = vmax.f32 %v6439_v38, 0.0 }
 0x570   : > { %6558 = vst.msk [vmem:[#allocation5 + $0x111] sm:$0xff] %vm2013_vm2, %v6471_v60 }
 0x574   : > { %v6305_v40 = vpop.f32.mrb[76].mxu0  ;;  %v11485_v62 = vpop.permute.xlu0 %11484 }
 0x575   : > { %v6371_v8 = vmul.f32 %v15026_v32, %v6305_v40  ;;  %v6307_v63 = vpop.f32.mrb[77].mxu0  ;;  %v11486_v16 = vunpack.i.l.bf16 %v11485_v62  ;;  %v11487_v29 = vunpack.i.h.bf16 %v11485_v62  ;;  %v11490_v21 = vpop.permute.xlu1 %11489  ;;  %v16203_v62 = vmax.f32 %v16202_v48, 0.0 }
 0x576   : > { %v6308_v14 = vpop.f32.mrb[78].mxu0  ;;  %v11492_v3 = vunpack.i.h.bf16 %v11490_v21  ;;  %v11491_v12 = vunpack.i.l.bf16 %v11490_v21  ;;  %v16206_v21 = vld [vmem:[#allocation36_spill] sm:$0xff] }
 0x577   : > { %v6408_v34 = vadd.f32 %v15035_v0, %v6371_v8  ;;  %v6372_v45 = vmul.f32 %v15026_v32, %v6308_v14  ;;  %v6310_v58 = vpop.f32.mrb[79].mxu0  ;;  %v6626_v22 = vld [vmem:[#allocation5 + $0x108] ss:$2 sm:$0xff]  ;;  %v6642_v17 = vld [vmem:[#allocation5 + $0x109] ss:$2 sm:$0xff]  ;;  %v6951_v28 = vsel %vm2145_vm7, %v6943_v42, %v11486_v16  ;;  %v6952_v57 = vsel %vm2145_vm7, %v6944_v24, %v11487_v29 }
 0x578   : > { %v11553_v51 = vpack.i.bf16 %v6626_v22, %v6624_v1  ;;  %v11558_v7 = vpack.i.bf16 %v6642_v17, %v6640_v39  ;;  %v6658_v46 = vld [vmem:[#allocation5 + $0x10a] ss:$2 sm:$0xff]  ;;  %v11495_v35 = vpop.permute.xlu0 %11494  ;;  %v6959_v2 = vsel %vm2211_vm9, %v6951_v28, %v11491_v12  ;;  %v6960_v38 = vsel %vm2211_vm9, %v6952_v57, %v11492_v3  ;;  %v6688_v8 = vld [vmem:[#allocation5 + $0xf1] ss:$2 sm:$0xff] }
 0x579   : > { %v6440_v33 = vadd.f32 %v6408_v34, %v16197_v54  ;;  %v6409_v37 = vadd.f32 %v15035_v0, %v6372_v45  ;;  %v11563_v30 = vpack.i.bf16 %v6658_v46, %v6656_v53  ;;  %v11497_v18 = vunpack.i.h.bf16 %v11495_v35  ;;  %v16200_v34 = vld [vmem:[#allocation35_spill] sm:$0xff]  ;;  %v6702_v39 = vld [vmem:[#allocation5 + $0xc2] ss:$2 sm:$0xff] }
 0x57a   : > { %11554 = vrot.lane.b32.xlu0 %v11553_v51, %s16112_s26  ;;  %11559 = vrot.lane.b32.xlu1 %v11558_v7, %s16114_s0  ;;  %v11496_v50 = vunpack.i.l.bf16 %v11495_v35  ;;  %v16201_v14 = vmax.f32 %v16200_v34, 0.0  ;;  %v6672_v22 = vld [vmem:[#allocation5 + $0xf0] ss:$2 sm:$0xff]  ;;  %v6994_v5 = vpack.c.bf16 %v6702_v39, %v6700_v36  ;;  %v16205_v16 = vmax.f32 %v16204_v26, 0.0 }
 0x57b   : > { %v6472_v49 = vmax.f32 %v6440_v33, 0.0  ;;  %v6441_v25 = vadd.f32 %v6409_v37, %v16199_v59  ;;  %v6968_v63 = vsel %vm4017_vm12, %v6960_v38, %v11497_v18  ;;  %v16207_v35 = vmax.f32 %v16206_v21, 0.0  ;;  %v16210_v38 = vld [vmem:[#allocation41_spill] sm:$0xff]  ;;  %v6575_v26 = vld [vmem:[#allocation5 + $0x90] ss:$2 sm:$0xff] }
 0x57c   : > { %v6967_v27 = vsel %vm4017_vm12, %v6959_v2, %v11496_v50 }
 0x57d   : > { %6559 = vst.msk [vmem:[#allocation5 + $0x121] sm:$0xff] %vm2013_vm2, %v6472_v49  ;;  %v6473_v19 = vmax.f32 %v6441_v25, 0.0 }
 0x57e   : > { %11564 = vrot.lane.b32.xlu0 %v11563_v30, %s16167_s21 }
 0x57f   : > { %6560 = vst.msk [vmem:[#allocation5 + $0x129] sm:$0xff] %vm2013_vm2, %v6473_v19 }
 0x581   : > { %v6313_v41 = vpop.f32.mrb[80].mxu0 }
 0x582   : > { %v6373_v47 = vmul.f32 %v15026_v32, %v6313_v41  ;;  %v6315_v13 = vpop.f32.mrb[81].mxu0 }
 0x583   : > { %v6316_v44 = vpop.f32.mrb[82].mxu0  ;;  %v11505_v6 = vpop.permute.xlu0 %11504 }
 0x584   : > { %v6410_v56 = vadd.f32 %v15035_v0, %v6373_v47  ;;  %v6374_v55 = vmul.f32 %v15026_v32, %v6316_v44  ;;  %v11507_v4 = vunpack.i.h.bf16 %v11505_v6  ;;  %v11506_v20 = vunpack.i.l.bf16 %v11505_v6  ;;  %v11500_v11 = vpop.permute.xlu1 %11499  ;;  %v6318_v10 = vpop.f32.mrb[83].mxu0 }
 0x585   : > { %v11502_v60 = vunpack.i.h.bf16 %v11500_v11  ;;  %v11501_v40 = vunpack.i.l.bf16 %v11500_v11 }
 0x586   : > { %v6442_v1 = vadd.f32 %v6410_v56, %v16201_v14  ;;  %v6411_v45 = vadd.f32 %v15035_v0, %v6374_v55  ;;  %v6690_v58 = vld [vmem:[#allocation5 + $0x121] ss:$2 sm:$0xff]  ;;  %v6674_v17 = vld [vmem:[#allocation5 + $0x120] ss:$2 sm:$0xff]  ;;  %v16208_v56 = vld [vmem:[#allocation39_spill] sm:$0xff] }
 0x587   : > { %v6975_v31 = vsel %vm4050_vm13, %v6967_v27, %v11501_v40  ;;  %v6976_v54 = vsel %vm4050_vm13, %v6968_v63, %v11502_v60  ;;  %v11573_v33 = vpack.i.bf16 %v6690_v58, %v6688_v8  ;;  %v11568_v51 = vpack.i.bf16 %v6674_v17, %v6672_v22  ;;  %v6613_v47 = vld [vmem:[#allocation5 + $0x122] ss:$2 sm:$0xff]  ;;  %v6597_v44 = vld [vmem:[#allocation5 + $0x121] ss:$2 sm:$0xff] }
 0x588   : > { %v6474_v43 = vmax.f32 %v6442_v1, 0.0  ;;  %v6443_v37 = vadd.f32 %v6411_v45, %v16203_v62  ;;  %v6983_v7 = vsel %vm4083_vm14, %v6975_v31, %v11506_v20  ;;  %v6984_v46 = vsel %vm4083_vm14, %v6976_v54, %v11507_v4  ;;  %v16212_v22 = vld [vmem:[#allocation38_spill] sm:$0xff] }
 0x589   : > { %v6991_v61 = vpack.c.bf16 %v6984_v46, %v6983_v7  ;;  %11574 = vrot.lane.b32.xlu0 %v11573_v33, %s16157_s22  ;;  %11569 = vrot.lane.b32.xlu1 %v11568_v51, %s16118_s24  ;;  %v16209_v55 = vmax.f32 %v16208_v56, 0.0  ;;  %v16211_v60 = vmax.f32 %v16210_v38, 0.0  ;;  %v16213_v17 = vmax.f32 %v16212_v22, 0.0 }
 0x58a   : > { %6561 = vst.msk [vmem:[#allocation5 + $0x139] sm:$0xff] %vm2013_vm2, %v6474_v43  ;;  %v6475_v49 = vmax.f32 %v6443_v37, 0.0  ;;  %v16214_v43 = vld [vmem:[#allocation40_spill] sm:$0xff] }
 0x58b   : > { %7116 = vmatmul.mubr.bf16.vlgmr.msra.gmra.mrb[64].mxu1 %v6991_v61  ;;  %v16215_v48 = vmax.f32 %v16214_v43, 0.0  ;;  %v6577_v43 = vld [vmem:[#allocation5 + $0xc0] ss:$2 sm:$0xff] }
 0x58c   : > { %6562 = vst.msk [vmem:[#allocation5 + $0x141] sm:$0xff] %vm2013_vm2, %v6475_v49  ;;  %9309 = vmatprep.mubr.msk.bf16.mxu1 %vm2013_vm2, %v6994_v5 }
 0x590   : > { %v6321_v59 = vpop.f32.mrb[84].mxu0 }
 0x591   : > { %v6375_v25 = vmul.f32 %v15026_v32, %v6321_v59  ;;  %v6323_v53 = vpop.f32.mrb[85].mxu0 }
 0x592   : > { %v6324_v15 = vpop.f32.mrb[86].mxu0 }
 0x593   : > { %v6412_v30 = vadd.f32 %v15035_v0, %v6375_v25  ;;  %v6376_v52 = vmul.f32 %v15026_v32, %v6324_v15  ;;  %v6326_v9 = vpop.f32.mrb[87].mxu0  ;;  %v6644_v33 = vld [vmem:[#allocation5 + $0x139] ss:$2 sm:$0xff]  ;;  %v6628_v51 = vld [vmem:[#allocation5 + $0x138] ss:$2 sm:$0xff] }
 0x594   : > { %v6573_v9 = vld [vmem:[#allocation5 + $0x60] ss:$2 sm:$0xff] }
 0x595   : > { %v6444_v19 = vadd.f32 %v6412_v30, %v16205_v16  ;;  %v6413_v23 = vadd.f32 %v15035_v0, %v6376_v52 }
 0x597   : > { %v6476_v29 = vmax.f32 %v6444_v19, 0.0  ;;  %v6445_v42 = vadd.f32 %v6413_v23, %v16207_v35 }
 0x599   : > { %6563 = vst.msk [vmem:[#allocation5 + $0x151] sm:$0xff] %vm2013_vm2, %v6476_v29  ;;  %v6477_v24 = vmax.f32 %v6445_v42, 0.0 }
 0x59b   : > { %6564 = vst.msk [vmem:[#allocation5 + $0x159] sm:$0xff] %vm2013_vm2, %v6477_v24 }
 0x59d   : > { %v6329_v28 = vpop.f32.mrb[88].mxu0 }
 0x59e   : > { %v6377_v3 = vmul.f32 %v15026_v32, %v6329_v28  ;;  %v6331_v12 = vpop.f32.mrb[89].mxu0 }
 0x59f   : > { %v6332_v41 = vpop.f32.mrb[90].mxu0 }
 0x5a0   : > { %v6414_v57 = vadd.f32 %v15035_v0, %v6377_v3  ;;  %v6378_v18 = vmul.f32 %v15026_v32, %v6332_v41  ;;  %v6334_v50 = vpop.f32.mrb[91].mxu0 }
 0x5a2   : > { %v6615_v13 = vld [vmem:[#allocation5 + $0x152] ss:$2 sm:$0xff]  ;;  %v6599_v6 = vld [vmem:[#allocation5 + $0x151] ss:$2 sm:$0xff]  ;;  %v6446_v4 = vadd.f32 %v6414_v57, %v16209_v55  ;;  %v6415_v20 = vadd.f32 %v15035_v0, %v6378_v18 }
 0x5a3   : > { %v11583_v11 = vpack.i.bf16 %v6615_v13, %v6613_v47  ;;  %v11578_v10 = vpack.i.bf16 %v6599_v6, %v6597_v44  ;;  %v11510_v49 = vpop.permute.xlu1 %11509  ;;  %v11515_v59 = vpop.permute.xlu0 %11514  ;;  %v6692_v16 = vld [vmem:[#allocation5 + $0x151] ss:$2 sm:$0xff]  ;;  %v6676_v24 = vld [vmem:[#allocation5 + $0x150] ss:$2 sm:$0xff] }
 0x5a4   : > { %v6478_v2 = vmax.f32 %v6446_v4, 0.0  ;;  %v6447_v40 = vadd.f32 %v6415_v20, %v16211_v60  ;;  %v11512_v25 = vunpack.i.h.bf16 %v11510_v49  ;;  %v11511_v53 = vunpack.i.l.bf16 %v11510_v49 }
 0x5a5   : > { %11584 = vrot.lane.b32.xlu0 %v11583_v11, %s16110_s23  ;;  %11579 = vrot.lane.b32.xlu1 %v11578_v10, %s16108_s29  ;;  %v11517_v30 = vunpack.i.h.bf16 %v11515_v59  ;;  %v11516_v52 = vunpack.i.l.bf16 %v11515_v59 }
 0x5a6   : > { %6565 = vst.msk [vmem:[#allocation5 + $0x169] sm:$0xff] %vm2013_vm2, %v6478_v2  ;;  %v6479_v8 = vmax.f32 %v6447_v40, 0.0  ;;  %v6938_v19 = vsel %vm2013_vm2, %v6575_v26, %v11512_v25  ;;  %v6937_v23 = vsel %vm2013_vm2, %v6573_v9, %v11511_v53 }
 0x5a7   : > { %v6945_v50 = vsel %vm2079_vm3, %v6937_v23, %v11516_v52  ;;  %v6946_v47 = vsel %vm2079_vm3, %v6938_v19, %v11517_v30 }
 0x5a8   : > { %6566 = vst.msk [vmem:[#allocation5 + $0x171] sm:$0xff] %vm2013_vm2, %v6479_v8  ;;  %v6337_v27 = vpop.f32.mrb[92].mxu0 }
 0x5a9   : > { %v6379_v63 = vmul.f32 %v15026_v32, %v6337_v27  ;;  %v6339_v34 = vpop.f32.mrb[93].mxu0 }
 0x5aa   : > { %v6340_v14 = vpop.f32.mrb[94].mxu0  ;;  %v6706_v34 = vld [vmem:[#allocation5 + $0x122] ss:$2 sm:$0xff] }
 0x5ab   : > { %v6416_v1 = vadd.f32 %v15035_v0, %v6379_v63  ;;  %v6380_v45 = vmul.f32 %v15026_v32, %v6340_v14  ;;  %v6342_v58 = vpop.f32.mrb[95].mxu0 }
 0x5ac   : > { %v6704_v58 = vld [vmem:[#allocation5 + $0xf2] ss:$2 sm:$0xff] }
 0x5ad   : > { %v6448_v31 = vadd.f32 %v6416_v1, %v16213_v17  ;;  %v6417_v54 = vadd.f32 %v15035_v0, %v6380_v45  ;;  %v6660_v0 = vld [vmem:[#allocation5 + $0x13a] ss:$2 sm:$0xff]  ;;  %v6996_v22 = vpack.c.bf16 %v6706_v34, %v6704_v58  ;;  %v16216_v17 = vmov 0.0  }
 0x5ae   : > { %7186 = vst.msk [vmem:[#allocation6 + $0x18] sm:$0x3] %vm7183_vm15, %v16216_v17  ;;  %7184 = vst.msk [vmem:[#allocation6 + $0x8] sm:$0x3] %vm7183_vm15, %v16216_v17 }
 0x5af   : > { %v6480_v39 = vmax.f32 %v6448_v31, 0.0  ;;  %v6449_v62 = vadd.f32 %v6417_v54, %v16215_v48  ;;  %v6646_v37 = vld [vmem:[#allocation5 + $0x169] ss:$2 sm:$0xff]  ;;  %v6630_v7 = vld [vmem:[#allocation5 + $0x168] ss:$2 sm:$0xff] }
 0x5b0   : > { %v11593_v46 = vpack.i.bf16 %v6646_v37, %v6644_v33  ;;  %v11588_v61 = vpack.i.bf16 %v6630_v7, %v6628_v51  ;;  %v6662_v32 = vld [vmem:[#allocation5 + $0x16a] ss:$2 sm:$0xff]  ;;  %7188 = vst.msk [vmem:[#allocation6 + $0x28] sm:$0x3] %vm7183_vm15, %v16216_v17  ;;  %7190 = vst.msk [vmem:[#allocation6 + $0x38] sm:$0x3] %vm7183_vm15, %v16216_v17 }
 0x5b1   : > { %6567 = vst.msk [vmem:[#allocation5 + $0x181] sm:$0xff] %vm2013_vm2, %v6480_v39  ;;  %v6481_v36 = vmax.f32 %v6449_v62, 0.0  ;;  %v11598_v5 = vpack.i.bf16 %v6662_v32, %v6660_v0  ;;  %v6579_v48 = vld [vmem:[#allocation5 + $0xf0] ss:$2 sm:$0xff] }
 0x5b2   : > { %11594 = vrot.lane.b32.xlu0 %v11593_v46, %s16114_s0  ;;  %11589 = vrot.lane.b32.xlu1 %v11588_v61, %s16112_s26  ;;  %7192 = vst.msk [vmem:[#allocation6 + $0x48] sm:$0x3] %vm7183_vm15, %v16216_v17  ;;  %7194 = vst.msk [vmem:[#allocation6 + $0x58] sm:$0x3] %vm7183_vm15, %v16216_v17 }
 0x5b3   : > { %6568 = vst.msk [vmem:[#allocation5 + $0x189] sm:$0xff] %vm2013_vm2, %v6481_v36 }
 0x5b4   : > { %v11520_v15 = vpop.permute.xlu1 %11519  ;;  %v11525_v29 = vpop.permute.xlu0 %11524  ;;  %7196 = vst.msk [vmem:[#allocation6 + $0x68] sm:$0x3] %vm7183_vm15, %v16216_v17  ;;  %7198 = vst.msk [vmem:[#allocation6 + $0x78] sm:$0x3] %vm7183_vm15, %v16216_v17 }
 0x5b5   : > { %v11522_v21 = vunpack.i.h.bf16 %v11520_v15  ;;  %v11521_v35 = vunpack.i.l.bf16 %v11520_v15  ;;  %v11527_v57 = vunpack.i.h.bf16 %v11525_v29  ;;  %v11526_v18 = vunpack.i.l.bf16 %v11525_v29  ;;  %7200 = vst.msk [vmem:[#allocation6 + $0x88] sm:$0x3] %vm7183_vm15, %v16216_v17  ;;  %7202 = vst.msk [vmem:[#allocation6 + $0x98] sm:$0x3] %vm7183_vm15, %v16216_v17 }
 0x5b6   : > { %11599 = vrot.lane.b32.xlu1 %v11598_v5, %s16167_s21  ;;  %7922 = vst.msk [vmem:[#allocation7 + $0x8] sm:$0x3] %vm7183_vm15, %v16216_v17  ;;  %7924 = vst.msk [vmem:[#allocation7 + $0x18] sm:$0x3] %vm7183_vm15, %v16216_v17 }
 0x5b7   : > { %v6953_v13 = vsel %vm2145_vm7, %v6945_v50, %v11521_v35  ;;  %v6954_v44 = vsel %vm2145_vm7, %v6946_v47, %v11522_v21  ;;  %7926 = vst.msk [vmem:[#allocation7 + $0x28] sm:$0x3] %vm7183_vm15, %v16216_v17  ;;  %7928 = vst.msk [vmem:[#allocation7 + $0x38] sm:$0x3] %vm7183_vm15, %v16216_v17  ;;  %v6708_v50 = vld [vmem:[#allocation5 + $0x152] ss:$2 sm:$0xff] }
 0x5b8   : > { %v11530_v41 = vpop.permute.xlu1 %11529  ;;  %v6961_v55 = vsel %vm2211_vm9, %v6953_v13, %v11526_v18  ;;  %v6962_v4 = vsel %vm2211_vm9, %v6954_v44, %v11527_v57  ;;  %7930 = vst.msk [vmem:[#allocation7 + $0x48] sm:$0x3] %vm7183_vm15, %v16216_v17  ;;  %7932 = vst.msk [vmem:[#allocation7 + $0x58] sm:$0x3] %vm7183_vm15, %v16216_v17 }
 0x5b9   : > { %v11532_v6 = vunpack.i.h.bf16 %v11530_v41  ;;  %v11531_v56 = vunpack.i.l.bf16 %v11530_v41  ;;  %7934 = vst.msk [vmem:[#allocation7 + $0x68] sm:$0x3] %vm7183_vm15, %v16216_v17  ;;  %7936 = vst.msk [vmem:[#allocation7 + $0x78] sm:$0x3] %vm7183_vm15, %v16216_v17 }
 0x5ba   : > { %v6694_v42 = vld [vmem:[#allocation5 + $0x181] ss:$2 sm:$0xff]  ;;  %v6678_v28 = vld [vmem:[#allocation5 + $0x180] ss:$2 sm:$0xff]  ;;  %7938 = vst.msk [vmem:[#allocation7 + $0x88] sm:$0x3] %vm7183_vm15, %v16216_v17 }
 0x5bb   : > { %v11608_v3 = vpack.i.bf16 %v6694_v42, %v6692_v16  ;;  %v11603_v12 = vpack.i.bf16 %v6678_v28, %v6676_v24  ;;  %v6969_v40 = vsel %vm4017_vm12, %v6961_v55, %v11531_v56  ;;  %v6970_v8 = vsel %vm4017_vm12, %v6962_v4, %v11532_v6 }
 0x5bd   : > { %11609 = vrot.lane.b32.xlu1 %v11608_v3, %s16157_s22  ;;  %11604 = vrot.lane.b32.xlu0 %v11603_v12, %s16118_s24  ;;  %v6710_v12 = vld [vmem:[#allocation5 + $0x182] ss:$2 sm:$0xff] }
 0x5be   : > { %v6998_v47 = vpack.c.bf16 %v6710_v12, %v6708_v50  ;;  %v7228_v12 = vld [vmem:[#allocation6 + $0x2] sm:$0xff] }
 0x5c3   : > { %v11535_v20 = vpop.permute.xlu0 %11534  ;;  %v11540_v11 = vpop.permute.xlu1 %11539 }
 0x5c4   : > { %v11537_v10 = vunpack.i.h.bf16 %v11535_v20  ;;  %v11536_v2 = vunpack.i.l.bf16 %v11535_v20  ;;  %v11542_v38 = vunpack.i.h.bf16 %v11540_v11  ;;  %v11541_v60 = vunpack.i.l.bf16 %v11540_v11  ;;  %v6581_v11 = vld [vmem:[#allocation5 + $0x120] ss:$2 sm:$0xff] }
 0x5c6   : > { %v6977_v27 = vsel %vm4050_vm13, %v6969_v40, %v11536_v2  ;;  %v6978_v63 = vsel %vm4050_vm13, %v6970_v8, %v11537_v10  ;;  %v6583_v10 = vld [vmem:[#allocation5 + $0x150] ss:$2 sm:$0xff] }
 0x5c7   : > { %v6985_v14 = vsel %vm4083_vm14, %v6977_v27, %v11541_v60  ;;  %v6986_v1 = vsel %vm4083_vm14, %v6978_v63, %v11542_v38 }
 0x5c8   : > { %v6993_v45 = vpack.c.bf16 %v6986_v1, %v6985_v14 }
 0x5ca   : > { %7124 = vmatmul.mubr.bf16.gmra.mrb[68].mxu1 %v6993_v45 }
 0x5cb   : > { %9310 = vmatprep.mubr.msk.bf16.mxu1 %vm2013_vm2, %v6996_v22 }
 0x5df   : > { %v11545_v31 = vpop.permute.xlu0 %11544  ;;  %v11550_v51 = vpop.permute.xlu1 %11549 }
 0x5e0   : > { %v11547_v54 = vunpack.i.h.bf16 %v11545_v31  ;;  %v11546_v33 = vunpack.i.l.bf16 %v11545_v31  ;;  %v11552_v62 = vunpack.i.h.bf16 %v11550_v51  ;;  %v11551_v37 = vunpack.i.l.bf16 %v11550_v51 }
 0x5e2   : > { %v6940_v7 = vsel %vm2013_vm2, %v6579_v48, %v11547_v54  ;;  %v6939_v46 = vsel %vm2013_vm2, %v6577_v43, %v11546_v33 }
 0x5e3   : > { %v6948_v0 = vsel %vm2079_vm3, %v6940_v7, %v11552_v62  ;;  %v6947_v5 = vsel %vm2079_vm3, %v6939_v46, %v11551_v37 }
 0x5ec   : > { %v11555_v39 = vpop.permute.xlu0 %11554  ;;  %v11560_v32 = vpop.permute.xlu1 %11559 }
 0x5ed   : > { %v11557_v61 = vunpack.i.h.bf16 %v11555_v39  ;;  %v11556_v36 = vunpack.i.l.bf16 %v11555_v39  ;;  %v11562_v59 = vunpack.i.h.bf16 %v11560_v32  ;;  %v11561_v25 = vunpack.i.l.bf16 %v11560_v32 }
 0x5ef   : > { %v6955_v53 = vsel %vm2145_vm7, %v6947_v5, %v11556_v36  ;;  %v6956_v15 = vsel %vm2145_vm7, %v6948_v0, %v11557_v61  ;;  %v15366_v5 = vld [vmem:[%s15992_s8] ss:$0 sm:$0xff] }
 0x5f0   : > { %v11565_v49 = vpop.permute.xlu0 %11564  ;;  %v6963_v9 = vsel %vm2211_vm9, %v6955_v53, %v11561_v25  ;;  %v6964_v26 = vsel %vm2211_vm9, %v6956_v15, %v11562_v59  ;;  %v15371_v25 = vld [vmem:[%s15992_s8 + $0x1] ss:$0 sm:$0xff] }
 0x5f1   : > { %v11567_v30 = vunpack.i.h.bf16 %v11565_v49  ;;  %v11566_v52 = vunpack.i.l.bf16 %v11565_v49  ;;  %v11815_v53 = vld [vmem:[%s15993_s9 + $0x80] sm:$0xff]  }
 0x5f2   : > { %9595 = vmatprep.subr.bf16.mxu0 %v11815_v53 }
 0x5f3   : > { %v6971_v42 = vsel %vm4017_vm12, %v6963_v9, %v11566_v52  ;;  %v6972_v24 = vsel %vm4017_vm12, %v6964_v26, %v11567_v30  ;;  %9596 = vmatpush3.bf16.msra.mxu0 %v11815_v53 }
 0x5fb   : > { %v11575_v16 = vpop.permute.xlu0 %11574  ;;  %v11570_v19 = vpop.permute.xlu1 %11569 }
 0x5fc   : > { %v11577_v23 = vunpack.i.h.bf16 %v11575_v16  ;;  %v11576_v29 = vunpack.i.l.bf16 %v11575_v16  ;;  %v11572_v21 = vunpack.i.h.bf16 %v11570_v19  ;;  %v11571_v35 = vunpack.i.l.bf16 %v11570_v19 }
 0x5fe   : > { %v6979_v28 = vsel %vm4050_vm13, %v6971_v42, %v11571_v35  ;;  %v6980_v3 = vsel %vm4050_vm13, %v6972_v24, %v11572_v21  ;;  %v7220_v35 = vld [vmem:[#allocation6 + $0x1] sm:$0xff] }
 0x5ff   : > { %v6987_v41 = vsel %vm4083_vm14, %v6979_v28, %v11576_v29  ;;  %v6988_v57 = vsel %vm4083_vm14, %v6980_v3, %v11577_v23  ;;  %v11816_v29 = vld [vmem:[%s15993_s9 + $0x88] sm:$0xff]  }
 0x600   : > { %v6995_v18 = vpack.c.bf16 %v6988_v57, %v6987_v41  ;;  %9597 = vmatprep.subr.bf16.mxu0 %v11816_v29 }
 0x601   : > { %9598 = vmatpush3.bf16.msra.mxu0 %v11816_v29 }
 0x602   : > { %7132 = vmatmul.mubr.bf16.gmra.mrb[72].mxu1 %v6995_v18  ;;  %9607 = vmatprep.subr.bf16.mxu0 %v16216_v17 }
 0x603   : > { %9311 = vmatprep.mubr.msk.bf16.mxu1 %vm2013_vm2, %v6998_v47 }
 0x617   : > { %v11580_v13 = vpop.permute.xlu1 %11579  ;;  %v11585_v44 = vpop.permute.xlu0 %11584 }
 0x618   : > { %v11582_v6 = vunpack.i.h.bf16 %v11580_v13  ;;  %v11581_v56 = vunpack.i.l.bf16 %v11580_v13  ;;  %v11587_v4 = vunpack.i.h.bf16 %v11585_v44  ;;  %v11586_v20 = vunpack.i.l.bf16 %v11585_v44  ;;  %v11817_v13 = vld [vmem:[%s15993_s9 + $0x40] sm:$0xff]  }
 0x619   : > { %v11818_v44 = vld [vmem:[%s15993_s9] sm:$0xff]   ;;  %9424 = vmatprep.subr.bf16.mxu1 %v11817_v13 }
 0x61a   : > { %v6942_v2 = vsel %vm2013_vm2, %v6583_v10, %v11582_v6  ;;  %v6941_v38 = vsel %vm2013_vm2, %v6581_v11, %v11581_v56  ;;  %9425 = vmatpush3.bf16.msra.mxu1 %v11818_v44  ;;  %v11819_v6 = vld [vmem:[%s15993_s9 + $0x48] sm:$0xff]   ;;  %v11824_v11 = vld [vmem:[%s15993_s9 + $0x18] sm:$0xff]  }
 0x61b   : > { %v6949_v14 = vsel %vm2079_vm3, %v6941_v38, %v11586_v20  ;;  %v6950_v1 = vsel %vm2079_vm3, %v6942_v2, %v11587_v4  ;;  %v11820_v56 = vld [vmem:[%s15993_s9 + $0x8] sm:$0xff]   ;;  %9426 = vmatprep.subr.bf16.mxu1 %v11819_v6  ;;  %v11822_v4 = vld [vmem:[%s15993_s9 + $0x10] sm:$0xff]   ;;  %v11823_v20 = vld [vmem:[%s15993_s9 + $0x58] sm:$0xff]  }
 0x61c   : > { %v11825_v2 = vld [vmem:[%s15993_s9 + $0x60] sm:$0xff]  }
 0x61d   : > { %v11826_v38 = vld [vmem:[%s15993_s9 + $0x20] sm:$0xff]  }
 0x61e   : > { %9427 = vmatpush3.bf16.msra.mxu1 %v11820_v56 }
 0x624   : > { %v11590_v55 = vpop.permute.xlu1 %11589  ;;  %v11595_v60 = vpop.permute.xlu0 %11594 }
 0x625   : > { %v11592_v40 = vunpack.i.h.bf16 %v11590_v55  ;;  %v11591_v8 = vunpack.i.l.bf16 %v11590_v55  ;;  %v11597_v63 = vunpack.i.h.bf16 %v11595_v60  ;;  %v11596_v34 = vunpack.i.l.bf16 %v11595_v60  ;;  %v11821_v55 = vld [vmem:[%s15993_s9 + $0x50] sm:$0xff]  }
 0x626   : > { %9428 = vmatprep.subr.bf16.mxu1 %v11821_v55 }
 0x627   : > { %v6957_v45 = vsel %vm2145_vm7, %v6949_v14, %v11591_v8  ;;  %v6958_v58 = vsel %vm2145_vm7, %v6950_v1, %v11592_v40  ;;  %9429 = vmatpush3.bf16.msra.mxu1 %v11822_v4  ;;  %v11827_v14 = vld [vmem:[%s15993_s9 + $0x68] sm:$0xff]  }
 0x628   : > { %v11600_v27 = vpop.permute.xlu1 %11599  ;;  %v6965_v54 = vsel %vm2211_vm9, %v6957_v45, %v11596_v34  ;;  %v6966_v33 = vsel %vm2211_vm9, %v6958_v58, %v11597_v63  ;;  %9430 = vmatprep.subr.bf16.mxu1 %v11823_v20  ;;  %v11828_v1 = vld [vmem:[%s15993_s9 + $0x28] sm:$0xff]  }
 0x629   : > { %v11602_v22 = vunpack.i.h.bf16 %v11600_v27  ;;  %v11601_v31 = vunpack.i.l.bf16 %v11600_v27 }
 0x62b   : > { %v6973_v7 = vsel %vm4017_vm12, %v6965_v54, %v11601_v31  ;;  %v6974_v46 = vsel %vm4017_vm12, %v6966_v33, %v11602_v22  ;;  %9431 = vmatpush3.bf16.msra.mxu1 %v11824_v11  ;;  %v11829_v31 = vld [vmem:[%s15993_s9 + $0x70] sm:$0xff]   ;;  %v11831_v33 = vld [vmem:[%s15993_s9 + $0x78] sm:$0xff]  }
 0x62c   : > { %9432 = vmatprep.subr.bf16.mxu1 %v11825_v2  ;;  %v11830_v54 = vld [vmem:[%s15993_s9 + $0x30] sm:$0xff]  }
 0x62f   : > { %v11610_v51 = vpop.permute.xlu1 %11609  ;;  %v11605_v39 = vpop.permute.xlu0 %11604  ;;  %9433 = vmatpush3.bf16.msra.mxu1 %v11826_v38 }
 0x630   : > { %v11612_v43 = vunpack.i.h.bf16 %v11610_v51  ;;  %v11611_v48 = vunpack.i.l.bf16 %v11610_v51  ;;  %v11607_v62 = vunpack.i.h.bf16 %v11605_v39  ;;  %v11606_v37 = vunpack.i.l.bf16 %v11605_v39  ;;  %9434 = vmatprep.subr.bf16.mxu1 %v11827_v14  ;;  %v11832_v51 = vld [vmem:[%s15993_s9 + $0x38] sm:$0xff]  }
 0x632   : > { %v6982_v61 = vsel %vm4050_vm13, %v6974_v46, %v11607_v62  ;;  %v6981_v36 = vsel %vm4050_vm13, %v6973_v7, %v11606_v37 }
 0x633   : > { %v6989_v32 = vsel %vm4083_vm14, %v6981_v36, %v11611_v48  ;;  %v6990_v49 = vsel %vm4083_vm14, %v6982_v61, %v11612_v43  ;;  %9435 = vmatpush3.bf16.msra.mxu1 %v11828_v1 }
 0x634   : > { %v6997_v0 = vpack.c.bf16 %v6990_v49, %v6989_v32  ;;  %9436 = vmatprep.subr.bf16.mxu1 %v11829_v31 }
 0x636   : > { %7140 = vmatmul.mubr.bf16.gmra.mrb[76].mxu1 %v6997_v0 }
 0x637   : > { %9437 = vmatpush3.bf16.msra.mxu1 %v11830_v54 }
 0x638   : > { %9438 = vmatprep.subr.bf16.mxu1 %v11831_v33 }
 0x63b   : > { %9439 = vmatpush3.bf16.msra.mxu1 %v11832_v51 }
 0x65e   : > { %v7117_v59 = vpop.f32.mrb[64].mxu1 }
 0x65f   : > { %v7153_v15 = vmul.f32 %v15366_v5, %v7117_v59  ;;  %v7119_v30 = vpop.f32.mrb[65].mxu1 }
 0x660   : > { %v7120_v52 = vpop.f32.mrb[66].mxu1 }
 0x661   : > { %v7166_v9 = vadd.f32 %v15371_v25, %v7153_v15  ;;  %v7154_v26 = vmul.f32 %v15366_v5, %v7120_v52  ;;  %v7122_v16 = vpop.f32.mrb[67].mxu1 }
 0x663   : > { %v7174_v19 = vmax.f32 %v7166_v9, 0.0  ;;  %v7167_v23 = vadd.f32 %v15371_v25, %v7154_v26 }
 0x665   : > { %7204 = vst.msk [vmem:[#allocation6 + $0x11] sm:$0xff] %vm2079_vm3, %v7174_v19  ;;  %v7175_v21 = vmax.f32 %v7167_v23, 0.0 }
 0x667   : > { %7205 = vst.msk [vmem:[#allocation6 + $0x21] sm:$0xff] %vm2079_vm3, %v7175_v21 }
 0x66c   : > { %v15386_v42 = vld [vmem:[#allocation6 + $0x11] sm:$0xff] }
 0x66d   : > { %v11613_v24 = vpack.i.bf16 %v15386_v42, %v7220_v35  ;;  %v7252_v28 = vld [vmem:[#allocation6 + $0x12] sm:$0xff] }
 0x66e   : > { %v15389_v3 = vld [vmem:[#allocation6 + $0x22] sm:$0xff]  ;;  %v11618_v57 = vpack.i.bf16 %v7252_v28, %v7228_v12  ;;  %v15397_v50 = vld [vmem:[#allocation6 + $0x10] sm:$0xff] }
 0x66f   : > { %11614 = vrot.lane.b32.xlu1 %v11613_v24, %s16110_s23  ;;  %v11623_v41 = vpack.i.bf16 %v15389_v3, %v7252_v28  ;;  %v15394_v18 = vld [vmem:[#allocation6 + $0x20] sm:$0xff] }
 0x670   : > { %v11628_v47 = vpack.i.bf16 %v15394_v18, %v15397_v50  ;;  %v15456_v39 = vld [vmem:[#allocation6 + $0x21] sm:$0xff] }
 0x671   : > { %11624 = vrot.lane.b32.xlu0 %v11623_v41, %s16110_s23 }
 0x673   : > { %11619 = vrot.lane.b32.xlu1 %v11618_v57, %s16114_s0 }
 0x677   : > { %11629 = vrot.lane.b32.xlu1 %v11628_v47, %s16118_s24 }
 0x69d   : > { %v7125_v10 = vpop.f32.mrb[68].mxu1 }
 0x69e   : > { %v7155_v60 = vmul.f32 %v15366_v5, %v7125_v10  ;;  %v7127_v40 = vpop.f32.mrb[69].mxu1 }
 0x69f   : > { %v7128_v8 = vpop.f32.mrb[70].mxu1 }
 0x6a0   : > { %v7168_v27 = vadd.f32 %v15371_v25, %v7155_v60  ;;  %v7156_v63 = vmul.f32 %v15366_v5, %v7128_v8  ;;  %v7130_v34 = vpop.f32.mrb[71].mxu1 }
 0x6a2   : > { %v7176_v45 = vmax.f32 %v7168_v27, 0.0  ;;  %v7169_v58 = vadd.f32 %v15371_v25, %v7156_v63  ;;  %v7284_v63 = vld [vmem:[#allocation6 + $0x92] sm:$0xff] }
 0x6a4   : > { %7206 = vst.msk [vmem:[#allocation6 + $0x31] sm:$0xff] %vm2079_vm3, %v7176_v45  ;;  %v7177_v22 = vmax.f32 %v7169_v58, 0.0 }
 0x6a6   : > { %7207 = vst.msk [vmem:[#allocation6 + $0x41] sm:$0xff] %vm2079_vm3, %v7177_v22 }
 0x6ab   : > { %v7278_v43 = vld [vmem:[#allocation6 + $0x32] sm:$0xff] }
 0x6ac   : > { %v15458_v48 = vld [vmem:[#allocation6 + $0x30] sm:$0xff]  ;;  %v7527_v37 = vpack.c.bf16 %v7278_v43, %v15389_v3  ;;  %v11648_v61 = vpack.i.bf16 %v7278_v43, %v15389_v3 }
 0x6ad   : > { %v15460_v62 = vld [vmem:[#allocation6 + $0x31] sm:$0xff]  ;;  %v11633_v7 = vpack.i.bf16 %v15458_v48, %v15394_v18  ;;  %v7255_v36 = vld [vmem:[#allocation6 + $0x42] sm:$0xff] }
 0x6ae   : > { %v11643_v46 = vpack.i.bf16 %v15460_v62, %v15456_v39  ;;  %9599 = vmatprep.mubr.msk.bf16.mxu0 %vm2079_vm3, %v7527_v37  ;;  %v15472_v32 = vld [vmem:[#allocation6 + $0x40] sm:$0xff]  ;;  %v11653_v49 = vpack.i.bf16 %v7255_v36, %v7278_v43 }
 0x6af   : > { %11634 = vrot.lane.b32.xlu0 %v11633_v7, %s16114_s0  ;;  %v11658_v0 = vpack.i.bf16 %v15472_v32, %v15458_v48  ;;  %v15489_v24 = vld [vmem:[#allocation6 + $0x41] sm:$0xff] }
 0x6b0   : > { %11644 = vrot.lane.b32.xlu1 %v11643_v46, %s16110_s23 }
 0x6b3   : > { %11639 = vrot.lane.b32.xlu0 %v11643_v46, %s16118_s24 }
 0x6b4   : > { %11649 = vrot.lane.b32.xlu1 %v11648_v61, %s16114_s0 }
 0x6b7   : > { %11654 = vrot.lane.b32.xlu0 %v11653_v49, %s16110_s23  ;;  %v7212_v49 = vld [vmem:[#allocation6] sm:$0xff] }
 0x6b8   : > { %11659 = vrot.lane.b32.xlu1 %v11658_v0, %s16118_s24 }
 0x6d5   : > { %v7133_v59 = vpop.f32.mrb[72].mxu1 }
 0x6d6   : > { %v7157_v53 = vmul.f32 %v15366_v5, %v7133_v59  ;;  %v7135_v15 = vpop.f32.mrb[73].mxu1 }
 0x6d7   : > { %v7136_v30 = vpop.f32.mrb[74].mxu1 }
 0x6d8   : > { %v7170_v52 = vadd.f32 %v15371_v25, %v7157_v53  ;;  %v7158_v9 = vmul.f32 %v15366_v5, %v7136_v30  ;;  %v7138_v26 = vpop.f32.mrb[75].mxu1 }
 0x6da   : > { %v7178_v16 = vmax.f32 %v7170_v52, 0.0  ;;  %v7171_v19 = vadd.f32 %v15371_v25, %v7158_v9 }
 0x6dc   : > { %7208 = vst.msk [vmem:[#allocation6 + $0x51] sm:$0xff] %vm2079_vm3, %v7178_v16  ;;  %v7179_v23 = vmax.f32 %v7171_v19, 0.0  ;;  %v7268_v16 = vld [vmem:[#allocation6 + $0x90] sm:$0xff] }
 0x6de   : > { %7209 = vst.msk [vmem:[#allocation6 + $0x61] sm:$0xff] %vm2079_vm3, %v7179_v23 }
 0x6e1   : > { %v11615_v60 = vpop.permute.xlu1 %11614 }
 0x6e2   : > { %v11617_v33 = vunpack.i.h.bf16 %v11615_v60  ;;  %v11616_v43 = vunpack.i.l.bf16 %v11615_v60  ;;  %v7849_v60 = vld [vmem:[#allocation5 + $0x19] ss:$2 sm:$0xff] }
 0x6e3   : > { %v7280_v29 = vld [vmem:[#allocation6 + $0x52] sm:$0xff]  ;;  %v11625_v22 = vpop.permute.xlu0 %11624 }
 0x6e4   : > { %v15485_v21 = vld [vmem:[#allocation6 + $0x50] sm:$0xff]  ;;  %v7530_v28 = vpack.c.bf16 %v7280_v29, %v7255_v36  ;;  %v11678_v41 = vpack.i.bf16 %v7280_v29, %v7255_v36  ;;  %v11627_v37 = vunpack.i.h.bf16 %v11625_v22  ;;  %v11626_v7 = vunpack.i.l.bf16 %v11625_v22 }
 0x6e5   : > { %v15487_v35 = vld [vmem:[#allocation6 + $0x51] sm:$0xff]  ;;  %v11663_v3 = vpack.i.bf16 %v15485_v21, %v15472_v32  ;;  %v7257_v57 = vld [vmem:[#allocation6 + $0x62] sm:$0xff]  ;;  %v11620_v8 = vpop.permute.xlu1 %11619  ;;  %v7478_v9 = vsel %vm2079_vm3, %v15397_v50, %v11617_v33  ;;  %v7477_v19 = vsel %vm2079_vm3, %v7212_v49, %v11616_v43 }
 0x6e6   : > { %v11673_v12 = vpack.i.bf16 %v15487_v35, %v15489_v24  ;;  %9600 = vmatmul.mubr.msk.bf16.vlgmr.msra.gmra.mrb[96].mxu0 %vm2079_vm3, %v7530_v28  ;;  %v15499_v47 = vld [vmem:[#allocation6 + $0x60] sm:$0xff]  ;;  %v11683_v13 = vpack.i.bf16 %v7257_v57, %v7280_v29  ;;  %v11622_v46 = vunpack.i.h.bf16 %v11620_v8  ;;  %v11621_v0 = vunpack.i.l.bf16 %v11620_v8  ;;  %v7853_v8 = vld [vmem:[#allocation5 + $0xd9] ss:$2 sm:$0xff] }
 0x6e7   : > { %11664 = vrot.lane.b32.xlu0 %v11663_v3, %s16114_s0  ;;  %v11688_v44 = vpack.i.bf16 %v15499_v47, %v15485_v21  ;;  %v15512_v27 = vld [vmem:[#allocation6 + $0x61] sm:$0xff]  ;;  %v7501_v23 = vsel %vm2079_vm3, %v15386_v42, %v11626_v7  ;;  %v7502_v29 = vsel %vm2079_vm3, %v15456_v39, %v11627_v37 }
 0x6e8   : > { %11674 = vrot.lane.b32.xlu1 %v11673_v12, %s16110_s23  ;;  %v7486_v28 = vsel %vm2211_vm9, %v7478_v9, %v11622_v46 }
 0x6e9   : > { %v11630_v54 = vpop.permute.xlu1 %11629 }
 0x6ea   : > { %v11632_v59 = vunpack.i.h.bf16 %v11630_v54  ;;  %v11631_v53 = vunpack.i.l.bf16 %v11630_v54 }
 0x6eb   : > { %11669 = vrot.lane.b32.xlu0 %v11673_v12, %s16118_s24  ;;  %v7485_v12 = vsel %vm2211_vm9, %v7477_v19, %v11621_v0 }
 0x6ec   : > { %11679 = vrot.lane.b32.xlu1 %v11678_v41, %s16114_s0  ;;  %v7494_v50 = vsel %vm4050_vm13, %v7486_v28, %v11632_v59 }
 0x6ef   : > { %11684 = vrot.lane.b32.xlu0 %v11683_v13, %s16110_s23  ;;  %v7493_v13 = vsel %vm4050_vm13, %v7485_v12, %v11631_v53 }
 0x6f0   : > { %11689 = vrot.lane.b32.xlu1 %v11688_v44, %s16118_s24 }
 0x709   : > { %v7141_v6 = vpop.f32.mrb[76].mxu1 }
 0x70a   : > { %v7159_v56 = vmul.f32 %v15366_v5, %v7141_v6  ;;  %v7143_v55 = vpop.f32.mrb[77].mxu1 }
 0x70b   : > { %v7144_v4 = vpop.f32.mrb[78].mxu1 }
 0x70c   : > { %v7172_v20 = vadd.f32 %v15371_v25, %v7159_v56  ;;  %v7160_v11 = vmul.f32 %v15366_v5, %v7144_v4  ;;  %v7146_v10 = vpop.f32.mrb[79].mxu1  ;;  %v7276_v4 = vld [vmem:[#allocation6 + $0x91] sm:$0xff] }
 0x70d   : > { %v7525_v10 = vpack.c.bf16 %v7494_v50, %v7493_v13 }
 0x70e   : > { %v7180_v2 = vmax.f32 %v7172_v20, 0.0  ;;  %v7173_v38 = vadd.f32 %v15371_v25, %v7160_v11  ;;  %v7851_v20 = vld [vmem:[#allocation5 + $0x79] ss:$2 sm:$0xff] }
 0x710   : > { %7210 = vst.msk [vmem:[#allocation6 + $0x71] sm:$0xff] %vm2079_vm3, %v7180_v2  ;;  %v7181_v40 = vmax.f32 %v7173_v38, 0.0  ;;  %v7855_v38 = vld [vmem:[#allocation5 + $0x139] ss:$2 sm:$0xff] }
 0x712   : > { %7211 = vst.msk [vmem:[#allocation6 + $0x81] sm:$0xff] %vm2079_vm3, %v7181_v40  ;;  %v7852_v40 = vld [vmem:[#allocation5 + $0xa9] ss:$2 sm:$0xff] }
 0x717   : > { %v7282_v34 = vld [vmem:[#allocation6 + $0x72] sm:$0xff] }
 0x718   : > { %v15514_v14 = vld [vmem:[#allocation6 + $0x70] sm:$0xff]  ;;  %v7533_v5 = vpack.c.bf16 %v7282_v34, %v7257_v57  ;;  %v11708_v51 = vpack.i.bf16 %v7282_v34, %v7257_v57 }
 0x719   : > { %v15516_v1 = vld [vmem:[#allocation6 + $0x71] sm:$0xff]  ;;  %v11693_v45 = vpack.i.bf16 %v15514_v14, %v15499_v47  ;;  %v7283_v58 = vld [vmem:[#allocation6 + $0x82] sm:$0xff] }
 0x71a   : > { %v11703_v25 = vpack.i.bf16 %v15516_v1, %v15512_v27  ;;  %9603 = vmatprep.mubr.msk.bf16.mxu0 %vm2079_vm3, %v7533_v5  ;;  %v7536_v31 = vpack.c.bf16 %v7284_v63, %v7283_v58  ;;  %v7243_v36 = vld [vmem:[#allocation6 + $0x80] sm:$0xff]  ;;  %v11713_v52 = vpack.i.bf16 %v7283_v58, %v7282_v34 }
 0x71b   : > { %11694 = vrot.lane.b32.xlu0 %v11693_v45, %s16114_s0  ;;  %v11728_v26 = vpack.i.bf16 %v7243_v36, %v15514_v14  ;;  %v11718_v39 = vpack.i.bf16 %v7268_v16, %v7243_v36  ;;  %v15546_v55 = vld [vmem:[#allocation6 + $0x81] sm:$0xff] }
 0x71c   : > { %11704 = vrot.lane.b32.xlu1 %v11703_v25, %s16110_s23  ;;  %9604 = vmatmul.mubr.msk.bf16.gmra.mrb[100].mxu0 %vm2079_vm3, %v7536_v31  ;;  %v11723_v2 = vpack.i.bf16 %v7276_v4, %v15546_v55  ;;  %v7856_v63 = vld [vmem:[#allocation5 + $0x169] ss:$2 sm:$0xff] }
 0x71d   : > { %v7850_v34 = vld [vmem:[#allocation5 + $0x49] ss:$2 sm:$0xff]  ;;  %9611 = vmatprep.mubr.msk.bf16.mxu0 %vm11992_vm1, %v16216_v17 }
 0x71e   : > { %v7854_v5 = vld [vmem:[#allocation5 + $0x109] ss:$2 sm:$0xff] }
 0x71f   : > { %11699 = vrot.lane.b32.xlu0 %v11703_v25, %s16118_s24 }
 0x720   : > { %11709 = vrot.lane.b32.xlu1 %v11708_v51, %s16114_s0 }
 0x721   : > { %v11635_v61 = vpop.permute.xlu0 %11634 }
 0x722   : > { %v11637_v15 = vunpack.i.h.bf16 %v11635_v61  ;;  %v11636_v30 = vunpack.i.l.bf16 %v11635_v61  ;;  %v11645_v45 = vpop.permute.xlu1 %11644 }
 0x723   : > { %11714 = vrot.lane.b32.xlu0 %v11713_v52, %s16110_s23  ;;  %v11647_v22 = vunpack.i.h.bf16 %v11645_v45  ;;  %v11646_v31 = vunpack.i.l.bf16 %v11645_v45 }
 0x724   : > { %11729 = vrot.lane.b32.xlu1 %v11728_v26, %s16118_s24  ;;  %v7510_v42 = vsel %vm2211_vm9, %v7502_v29, %v11637_v15  ;;  %v7509_v44 = vsel %vm2211_vm9, %v7501_v23, %v11636_v30 }
 0x725   : > { %v11640_v3 = vpop.permute.xlu0 %11639  ;;  %v7479_v0 = vsel %vm2079_vm3, %v15394_v18, %v11646_v31  ;;  %v7480_v59 = vsel %vm2079_vm3, %v15458_v48, %v11647_v22 }
 0x726   : > { %v11642_v41 = vunpack.i.h.bf16 %v11640_v3  ;;  %v11641_v57 = vunpack.i.l.bf16 %v11640_v3  ;;  %v11650_v25 = vpop.permute.xlu1 %11649 }
 0x727   : > { %11719 = vrot.lane.b32.xlu0 %v11718_v39, %s16114_s0  ;;  %v11652_v33 = vunpack.i.h.bf16 %v11650_v25  ;;  %v11651_v51 = vunpack.i.l.bf16 %v11650_v25 }
 0x728   : > { %v7517_v6 = vsel %vm4050_vm13, %v7509_v44, %v11641_v57  ;;  %v7518_v56 = vsel %vm4050_vm13, %v7510_v42, %v11642_v41  ;;  %7869 = vrot.lane.b32.xlu1 %v7851_v20, %s16107_s19 }
 0x729   : > { %v7526_v11 = vpack.c.bf16 %v7518_v56, %v7517_v6  ;;  %v11655_v58 = vpop.permute.xlu0 %11654  ;;  %v7487_v53 = vsel %vm2211_vm9, %v7479_v0, %v11651_v51  ;;  %v7488_v15 = vsel %vm2211_vm9, %v7480_v59, %v11652_v33 }
 0x72a   : > { %v11660_v54 = vpop.permute.xlu1 %11659  ;;  %v11657_v37 = vunpack.i.h.bf16 %v11655_v58  ;;  %v11656_v7 = vunpack.i.l.bf16 %v11655_v58 }
 0x72b   : > { %7725 = vmatprep.mubr.bf16.mxu1 %v7526_v11  ;;  %11724 = vrot.lane.b32.xlu0 %v11723_v2, %s16118_s24  ;;  %v11662_v46 = vunpack.i.h.bf16 %v11660_v54  ;;  %v11661_v61 = vunpack.i.l.bf16 %v11660_v54 }
 0x72c   : > { %7726 = vmatmul.mubr.bf16.vlgmr.msra.gmra.mrb[80].mxu1 %v7525_v10  ;;  %7877 = vrot.lane.b32.xlu1 %v7855_v38, %s16107_s19  ;;  %v7503_v52 = vsel %vm2079_vm3, %v15460_v62, %v11656_v7  ;;  %v7504_v9 = vsel %vm2079_vm3, %v15489_v24, %v11657_v37 }
 0x72d   : > { %v7495_v23 = vsel %vm4050_vm13, %v7487_v53, %v11661_v61  ;;  %v7496_v48 = vsel %vm4050_vm13, %v7488_v15, %v11662_v46 }
 0x72e   : > { %v7528_v12 = vpack.c.bf16 %v7496_v48, %v7495_v23 }
 0x72f   : > { %7865 = vrot.lane.b32.xlu0 %v7849_v60, %s16107_s19 }
 0x730   : > { %7871 = vrot.lane.b32.xlu1 %v7852_v40, %s16107_s19 }
 0x733   : > { %7873 = vrot.lane.b32.xlu0 %v7853_v8, %s16107_s19 }
 0x734   : > { %7879 = vrot.lane.b32.xlu1 %v7856_v63, %s16107_s19 }
 0x737   : > { %7867 = vrot.lane.b32.xlu0 %v7850_v34, %s16107_s19 }
 0x73b   : > { %7875 = vrot.lane.b32.xlu0 %v7854_v5, %s16107_s19 }
 0x759   : > { %v11665_v43 = vpop.permute.xlu0 %11664 }
 0x75a   : > { %v11667_v36 = vunpack.i.h.bf16 %v11665_v43  ;;  %v11666_v49 = vunpack.i.l.bf16 %v11665_v43  ;;  %v11675_v62 = vpop.permute.xlu1 %11674 }
 0x75b   : > { %v11677_v57 = vunpack.i.h.bf16 %v11675_v62  ;;  %v11676_v13 = vunpack.i.l.bf16 %v11675_v62 }
 0x75c   : > { %v7512_v19 = vsel %vm2211_vm9, %v7504_v9, %v11667_v36  ;;  %v7511_v18 = vsel %vm2211_vm9, %v7503_v52, %v11666_v49 }
 0x75d   : > { %v11670_v30 = vpop.permute.xlu0 %11669  ;;  %v7481_v38 = vsel %vm2079_vm3, %v15472_v32, %v11676_v13  ;;  %v7482_v60 = vsel %vm2079_vm3, %v15485_v21, %v11677_v57 }
 0x75e   : > { %v11672_v26 = vunpack.i.h.bf16 %v11670_v30  ;;  %v11671_v16 = vunpack.i.l.bf16 %v11670_v30  ;;  %v11680_v24 = vpop.permute.xlu1 %11679 }
 0x75f   : > { %v11682_v42 = vunpack.i.h.bf16 %v11680_v24  ;;  %v11681_v44 = vunpack.i.l.bf16 %v11680_v24 }
 0x760   : > { %v7519_v29 = vsel %vm4050_vm13, %v7511_v18, %v11671_v16  ;;  %v7520_v28 = vsel %vm4050_vm13, %v7512_v19, %v11672_v26 }
 0x761   : > { %v7529_v3 = vpack.c.bf16 %v7520_v28, %v7519_v29  ;;  %v11685_v50 = vpop.permute.xlu0 %11684  ;;  %v7489_v40 = vsel %vm2211_vm9, %v7481_v38, %v11681_v44  ;;  %v7490_v8 = vsel %vm2211_vm9, %v7482_v60, %v11682_v42 }
 0x762   : > { %v11690_v41 = vpop.permute.xlu1 %11689  ;;  %v11687_v6 = vunpack.i.h.bf16 %v11685_v50  ;;  %v11686_v56 = vunpack.i.l.bf16 %v11685_v50 }
 0x763   : > { %7733 = vmatprep.mubr.bf16.mxu1 %v7529_v3  ;;  %v11692_v20 = vunpack.i.h.bf16 %v11690_v41  ;;  %v11691_v11 = vunpack.i.l.bf16 %v11690_v41 }
 0x764   : > { %7734 = vmatmul.mubr.bf16.gmra.mrb[84].mxu1 %v7528_v12  ;;  %v7505_v34 = vsel %vm2079_vm3, %v15487_v35, %v11686_v56  ;;  %v7506_v5 = vsel %vm2079_vm3, %v15512_v27, %v11687_v6 }
 0x765   : > { %v7497_v21 = vsel %vm4050_vm13, %v7489_v40, %v11691_v11  ;;  %v7498_v31 = vsel %vm4050_vm13, %v7490_v8, %v11692_v20 }
 0x766   : > { %v7531_v43 = vpack.c.bf16 %v7498_v31, %v7497_v21 }
 0x78d   : > { %v11695_v39 = vpop.permute.xlu0 %11694 }
 0x78e   : > { %v11705_v4 = vpop.permute.xlu1 %11704  ;;  %v11697_v10 = vunpack.i.h.bf16 %v11695_v39  ;;  %v11696_v2 = vunpack.i.l.bf16 %v11695_v39 }
 0x78f   : > { %v11707_v27 = vunpack.i.h.bf16 %v11705_v4  ;;  %v11706_v37 = vunpack.i.l.bf16 %v11705_v4 }
 0x790   : > { %v7514_v22 = vsel %vm2211_vm9, %v7506_v5, %v11697_v10  ;;  %v7513_v32 = vsel %vm2211_vm9, %v7505_v34, %v11696_v2  ;;  %v15620_v2 = vld [vmem:[%s15994_s10] ss:$0 sm:$0xff] }
 0x791   : > { %v11700_v63 = vpop.permute.xlu0 %11699  ;;  %v7483_v52 = vsel %vm2079_vm3, %v15499_v47, %v11706_v37  ;;  %v7484_v9 = vsel %vm2079_vm3, %v15514_v14, %v11707_v27  ;;  %v11834_v27 = vld [vmem:[%s15995_s11 + $0x88] sm:$0xff]   ;;  %v11835_v37 = vld [vmem:[%s15995_s11 + $0x40] sm:$0xff]  }
 0x792   : > { %v11702_v45 = vunpack.i.h.bf16 %v11700_v63  ;;  %v11701_v25 = vunpack.i.l.bf16 %v11700_v63  ;;  %v11710_v58 = vpop.permute.xlu1 %11709  ;;  %v15625_v63 = vld [vmem:[%s15994_s10 + $0x1] ss:$0 sm:$0xff]  ;;  %9470 = vmatprep.subr.bf16.mxu1 %v11835_v37 }
 0x793   : > { %v11712_v46 = vunpack.i.h.bf16 %v11710_v58  ;;  %v11711_v61 = vunpack.i.l.bf16 %v11710_v58 }
 0x794   : > { %v7521_v54 = vsel %vm4050_vm13, %v7513_v32, %v11701_v25  ;;  %v7522_v33 = vsel %vm4050_vm13, %v7514_v22, %v11702_v45 }
 0x795   : > { %v11715_v51 = vpop.permute.xlu0 %11714  ;;  %v7532_v35 = vpack.c.bf16 %v7522_v33, %v7521_v54  ;;  %v7491_v26 = vsel %vm2211_vm9, %v7483_v52, %v11711_v61  ;;  %v7492_v16 = vsel %vm2211_vm9, %v7484_v9, %v11712_v46  ;;  %v11837_v46 = vld [vmem:[%s15995_s11 + $0x48] sm:$0xff]  }
 0x796   : > { %v11730_v7 = vpop.permute.xlu1 %11729  ;;  %v11717_v49 = vunpack.i.h.bf16 %v11715_v51  ;;  %v11716_v0 = vunpack.i.l.bf16 %v11715_v51  ;;  %v11838_v61 = vld [vmem:[%s15995_s11 + $0x8] sm:$0xff]  }
 0x797   : > { %7741 = vmatprep.mubr.bf16.mxu1 %v7532_v35  ;;  %v11732_v59 = vunpack.i.h.bf16 %v11730_v7  ;;  %v11731_v53 = vunpack.i.l.bf16 %v11730_v7  ;;  %v11836_v7 = vld [vmem:[%s15995_s11] sm:$0xff]  }
 0x798   : > { %7742 = vmatmul.mubr.bf16.gmra.mrb[88].mxu1 %v7531_v43  ;;  %v7507_v18 = vsel %vm2079_vm3, %v15516_v1, %v11716_v0  ;;  %v7508_v23 = vsel %vm2079_vm3, %v15546_v55, %v11717_v49  ;;  %v11833_v43 = vld [vmem:[%s15995_s11 + $0x80] sm:$0xff]  }
 0x799   : > { %v11720_v36 = vpop.permute.xlu0 %11719  ;;  %v7499_v3 = vsel %vm4050_vm13, %v7491_v26, %v11731_v53  ;;  %v7500_v14 = vsel %vm4050_vm13, %v7492_v16, %v11732_v59  ;;  %9608 = vmatpush3.bf16.msra.mxu0 %v11833_v43  ;;  %9471 = vmatpush3.bf16.msra.mxu1 %v11836_v7  ;;  %v11840_v43 = vld [vmem:[%s15995_s11 + $0x10] sm:$0xff]  }
 0x79a   : > { %v11722_v15 = vunpack.i.h.bf16 %v11720_v36  ;;  %v11721_v30 = vunpack.i.l.bf16 %v11720_v36  ;;  %v7534_v50 = vpack.c.bf16 %v7500_v14, %v7499_v3  ;;  %9609 = vmatprep.subr.bf16.mxu0 %v16216_v17  ;;  %9472 = vmatprep.subr.bf16.mxu1 %v11837_v46  ;;  %v11839_v36 = vld [vmem:[%s15995_s11 + $0x50] sm:$0xff]   ;;  %v7870_v49 = vpop.permute.xlu1 %7869 }
 0x79c   : > { %v7515_v28 = vsel %vm2211_vm9, %v7507_v18, %v11721_v30  ;;  %v7516_v47 = vsel %vm2211_vm9, %v7508_v23, %v11722_v15 }
 0x79d   : > { %v11725_v19 = vpop.permute.xlu0 %11724  ;;  %9610 = vmatpush3.bf16.msra.mxu0 %v11834_v27  ;;  %9473 = vmatpush3.bf16.msra.mxu1 %v11838_v61  ;;  %v11841_v27 = vld [vmem:[%s15995_s11 + $0x58] sm:$0xff]  }
 0x79e   : > { %v11727_v48 = vunpack.i.h.bf16 %v11725_v19  ;;  %v11726_v29 = vunpack.i.l.bf16 %v11725_v19  ;;  %9474 = vmatprep.subr.bf16.mxu1 %v11839_v36  ;;  %v7878_v0 = vpop.permute.xlu1 %7877  ;;  %v7891_v19 = vsel %vm579_vm0, 0.0, %v7870_v49  ;;  %v7958_v49 = vld [vmem:[#allocation7 + $0x1] ss:$2 sm:$0xf] }
 0x79f   : > { %v7895_v37 = vsel %vm579_vm0, 0.0, %v7878_v0 }
 0x7a0   : > { %v7523_v12 = vsel %vm4050_vm13, %v7515_v28, %v11726_v29  ;;  %v7524_v62 = vsel %vm4050_vm13, %v7516_v47, %v11727_v48  ;;  %v7899_v47 = vsel %vm2046_vm5, %v7891_v19, 0.0 }
 0x7a1   : > { %v7535_v24 = vpack.c.bf16 %v7524_v62, %v7523_v12  ;;  %v7866_v6 = vpop.permute.xlu0 %7865  ;;  %9475 = vmatpush3.bf16.msra.mxu1 %v11840_v43 }
 0x7a2   : > { %v7889_v34 = vsel %vm579_vm0, 0.0, %v7866_v6  ;;  %v7872_v16 = vpop.permute.xlu1 %7871  ;;  %9476 = vmatprep.subr.bf16.mxu1 %v11841_v27 }
 0x7a3   : > { %7749 = vmatprep.mubr.bf16.mxu1 %v7535_v24  ;;  %v7897_v32 = vsel %vm2046_vm5, %v7889_v34, 0.0  ;;  %v7892_v48 = vsel %vm579_vm0, 0.0, %v7872_v16 }
 0x7a4   : > { %7750 = vmatmul.mubr.bf16.gmra.mrb[92].mxu1 %v7534_v50  ;;  %v7900_v12 = vsel %vm2046_vm5, %v7892_v48, 0.0  ;;  %v7966_v48 = vld [vmem:[#allocation7 + $0x2] ss:$2 sm:$0xf] }
 0x7a5   : > { %v15615_v56 = vpop.permute.xlu0 %7873 }
 0x7a9   : > { %v7868_v8 = vpop.permute.xlu0 %7867 }
 0x7aa   : > { %v7890_v25 = vsel %vm579_vm0, 0.0, %v7868_v8 }
 0x7ab   : > { %v7898_v54 = vsel %vm2046_vm5, %v7890_v25, 0.0 }
 0x7b9   : > { %v9601_v1 = vpop.f32.mrb[96].mxu0 }
 0x7ba   : > { %v7792_v55 = vpop.f32.mrb[97].mxu0 }
 0x7bb   : > { %v9602_v41 = vpop.f32.mrb[98].mxu0 }
 0x7bc   : > { %v7795_v57 = vpop.f32.mrb[99].mxu0 }
 0x7ef   : > { %v15607_v13 = vpop.f32.mrb[100].mxu0 }
 0x7f0   : > { %v15609_v42 = vpop.f32.mrb[101].mxu0 }
 0x7f1   : > { %v15611_v44 = vpop.f32.mrb[102].mxu0 }
 0x7f2   : > { %v15613_v39 = vpop.f32.mrb[103].mxu0 }
 0x7ff   : > { %v9440_v4 = vpop.f32.mrb[80].mxu1 }
 0x800   : > { %v9441_v20 = vpop.f32.mrb[81].mxu1 }
 0x801   : > { %v9442_v11 = vadd.f32 %v9441_v20, %v9440_v4  ;;  %v9443_v10 = vpop.f32.mrb[82].mxu1 }
 0x802   : > { %v9444_v38 = vpop.f32.mrb[83].mxu1 }
 0x803   : > { %v7793_v60 = vadd.f32 %v9442_v11, %v7792_v55  ;;  %v9445_v40 = vadd.f32 %v9444_v38, %v9443_v10  ;;  %v7876_v11 = vpop.permute.xlu0 %7875  ;;  %v7893_v10 = vsel %vm579_vm0, 0.0, %v15615_v56 }
 0x805   : > { %v7828_v5 = vmul.f32 %v15620_v2, %v7793_v60  ;;  %v7796_v45 = vadd.f32 %v9445_v40, %v7795_v57  ;;  %v7894_v40 = vsel %vm579_vm0, 0.0, %v7876_v11 }
 0x806   : > { %v7902_v25 = vsel %vm2046_vm5, %v7894_v40, 0.0 }
 0x807   : > { %v7841_v58 = vadd.f32 %v15625_v63, %v7828_v5  ;;  %v7829_v22 = vmul.f32 %v15620_v2, %v7796_v45  ;;  %v7901_v5 = vsel %vm2046_vm5, %v7893_v10, 0.0 }
 0x809   : > { %v7905_v21 = vadd.f32 %v7897_v32, %v7841_v58  ;;  %v7842_v31 = vadd.f32 %v15625_v63, %v7829_v22 }
 0x80b   : > { %v7913_v33 = vmax.f32 %v7905_v21, 0.0  ;;  %v7906_v51 = vadd.f32 %v7898_v54, %v7842_v31 }
 0x80d   : > { %7942 = vst.msk [vmem:[#allocation7 + $0x11] sm:$0xff] %vm2079_vm3, %v7913_v33  ;;  %v7914_v35 = vmax.f32 %v7906_v51, 0.0  ;;  %v7880_v33 = vpop.permute.xlu1 %7879 }
 0x80e   : > { %v7896_v61 = vsel %vm579_vm0, 0.0, %v7880_v33  ;;  %vm8376_vm0 = vcmask 521216  }
 0x80f   : > { %7943 = vst.msk [vmem:[#allocation7 + $0x21] sm:$0xff] %vm2079_vm3, %v7914_v35 }
 0x810   : > { %8377 = vst.msk [vmem:[#allocation8] sm:$0x3f] %vm8376_vm0, %v16216_v17  ;;  %8378 = vst.msk [vmem:[#allocation8 + $0x8] sm:$0x3f] %vm8376_vm0, %v16216_v17 }
 0x811   : > { %8379 = vst.msk [vmem:[#allocation8 + $0x10] sm:$0x3f] %vm8376_vm0, %v16216_v17  ;;  %8382 = vst.msk [vmem:[#allocation8 + $0x28] sm:$0x3f] %vm8376_vm0, %v16216_v17 }
 0x812   : > { %8380 = vst.msk [vmem:[#allocation8 + $0x18] sm:$0x3f] %vm8376_vm0, %v16216_v17  ;;  %8381 = vst.msk [vmem:[#allocation8 + $0x20] sm:$0x3f] %vm8376_vm0, %v16216_v17 }
 0x816   : > { %v8013_v10 = vld [vmem:[#allocation7 + $0x22] ss:$2 sm:$0xf] }
 0x837   : > { %v9446_v59 = vpop.f32.mrb[84].mxu1 }
 0x838   : > { %v9447_v53 = vpop.f32.mrb[85].mxu1 }
 0x839   : > { %v9448_v15 = vadd.f32 %v9447_v53, %v9446_v59  ;;  %v9449_v30 = vpop.f32.mrb[86].mxu1  ;;  %v7903_v59 = vsel %vm2046_vm5, %v7895_v37, 0.0  ;;  %v7960_v53 = vld [vmem:[#allocation7 + $0x21] ss:$2 sm:$0xf] }
 0x83a   : > { %v9450_v52 = vpop.f32.mrb[87].mxu1 }
 0x83b   : > { %v7801_v9 = vadd.f32 %v9601_v1, %v9448_v15  ;;  %v9451_v26 = vadd.f32 %v9450_v52, %v9449_v30  ;;  %v7904_v15 = vsel %vm2046_vm5, %v7896_v61, 0.0 }
 0x83d   : > { %v7830_v18 = vmul.f32 %v15620_v2, %v7801_v9  ;;  %v7804_v23 = vadd.f32 %v9602_v41, %v9451_v26  ;;  %v11843_v9 = vld [vmem:[%s15995_s11 + $0x60] sm:$0xff]  }
 0x83f   : > { %v7843_v29 = vadd.f32 %v15625_v63, %v7830_v18  ;;  %v7831_v28 = vmul.f32 %v15620_v2, %v7804_v23  ;;  %v8032_v18 = vcombine.low %v7958_v49, %v7960_v53 }
 0x841   : > { %v7907_v3 = vadd.f32 %v7899_v47, %v7843_v29  ;;  %v7844_v14 = vadd.f32 %v15625_v63, %v7831_v28  ;;  %v7968_v29 = vld [vmem:[#allocation7 + $0x22] ss:$2 sm:$0xf] }
 0x843   : > { %v7915_v62 = vmax.f32 %v7907_v3, 0.0  ;;  %v7908_v24 = vadd.f32 %v7900_v12, %v7844_v14  ;;  %v8044_v12 = vcombine.low %v7966_v48, %v7968_v29 }
 0x845   : > { %7944 = vst.msk [vmem:[#allocation7 + $0x31] sm:$0xff] %vm2079_vm3, %v7915_v62  ;;  %v7916_v50 = vmax.f32 %v7908_v24, 0.0  ;;  %v11845_v62 = vld [vmem:[%s15995_s11 + $0x68] sm:$0xff]  }
 0x846   : > { %v11846_v24 = vld [vmem:[%s15995_s11 + $0x28] sm:$0xff]  }
 0x847   : > { %7945 = vst.msk [vmem:[#allocation7 + $0x41] sm:$0xff] %vm2079_vm3, %v7916_v50 }
 0x84c   : > { %v7991_v50 = vld [vmem:[#allocation7 + $0x32] ss:$2 sm:$0xf] }
 0x84e   : > { %v7962_v52 = vld [vmem:[#allocation7 + $0x41] ss:$2 sm:$0xf]  ;;  %v7970_v28 = vld [vmem:[#allocation7 + $0x42] ss:$2 sm:$0xf] }
 0x86b   : > { %v9452_v1 = vpop.f32.mrb[88].mxu1 }
 0x86c   : > { %v9453_v55 = vpop.f32.mrb[89].mxu1 }
 0x86d   : > { %v9454_v41 = vadd.f32 %v9453_v55, %v9452_v1  ;;  %v9455_v57 = vpop.f32.mrb[90].mxu1  ;;  %v7975_v55 = vld [vmem:[#allocation7 + $0x30] ss:$2 sm:$0xf] }
 0x86e   : > { %v9456_v6 = vpop.f32.mrb[91].mxu1 }
 0x86f   : > { %v7809_v4 = vadd.f32 %v9454_v41, %v15609_v42  ;;  %v9457_v20 = vadd.f32 %v9456_v6, %v9455_v57  ;;  %v8015_v41 = vld [vmem:[#allocation7 + $0x42] ss:$2 sm:$0xf]  ;;  %v7989_v57 = vld [vmem:[#allocation7 + $0x12] ss:$2 sm:$0xf] }
 0x871   : > { %v7832_v38 = vmul.f32 %v15620_v2, %v7809_v4  ;;  %v7812_v60 = vadd.f32 %v9457_v20, %v15613_v39  ;;  %v7973_v4 = vld [vmem:[#allocation7 + $0x10] ss:$2 sm:$0xf] }
 0x872   : > { %v11847_v20 = vld [vmem:[%s15995_s11 + $0x70] sm:$0xff]  }
 0x873   : > { %v7845_v8 = vadd.f32 %v15625_v63, %v7832_v38  ;;  %v7833_v34 = vmul.f32 %v15620_v2, %v7812_v60  ;;  %v11848_v38 = vld [vmem:[%s15995_s11 + $0x30] sm:$0xff]  }
 0x875   : > { %v7909_v45 = vadd.f32 %v7901_v5, %v7845_v8  ;;  %v7846_v42 = vadd.f32 %v15625_v63, %v7833_v34  ;;  %v7999_v34 = vld [vmem:[#allocation7 + $0x40] ss:$2 sm:$0xf]  ;;  %v8076_v5 = vcombine.low %v7989_v57, %v7991_v50 }
 0x877   : > { %v7917_v58 = vmax.f32 %v7909_v45, 0.0  ;;  %v7910_v22 = vadd.f32 %v7902_v25, %v7846_v42  ;;  %v9458_v56 = vpop.f32.mrb[92].mxu1  ;;  %v8056_v42 = vcombine.low %v7973_v4, %v7975_v55 }
 0x878   : > { %v9459_v32 = vpop.f32.mrb[93].mxu1 }
 0x879   : > { %7946 = vst.msk [vmem:[#allocation7 + $0x51] sm:$0xff] %vm2079_vm3, %v7917_v58  ;;  %v7918_v39 = vmax.f32 %v7910_v22, 0.0  ;;  %v9460_v21 = vadd.f32 %v9459_v32, %v9458_v56  ;;  %v9461_v31 = vpop.f32.mrb[94].mxu1  ;;  %v11849_v22 = vld [vmem:[%s15995_s11 + $0x78] sm:$0xff]   ;;  %v8112_v32 = vcombine.low %v8013_v10, %v8015_v41 }
 0x87a   : > { %v9462_v54 = vpop.f32.mrb[95].mxu1 }
 0x87b   : > { %7947 = vst.msk [vmem:[#allocation7 + $0x61] sm:$0xff] %vm2079_vm3, %v7918_v39  ;;  %v7817_v51 = vadd.f32 %v15607_v13, %v9460_v21  ;;  %v9463_v35 = vadd.f32 %v9462_v54, %v9461_v31 }
 0x87d   : > { %v7834_v7 = vmul.f32 %v15620_v2, %v7817_v51  ;;  %v7820_v46 = vadd.f32 %v15611_v44, %v9463_v35  ;;  %v11842_v44 = vld [vmem:[%s15995_s11 + $0x18] sm:$0xff]   ;;  %v7997_v35 = vld [vmem:[#allocation7 + $0x20] ss:$2 sm:$0xf] }
 0x87e   : > { %9477 = vmatpush3.bf16.msra.mxu1 %v11842_v44  ;;  %v11850_v51 = vld [vmem:[%s15995_s11 + $0x38] sm:$0xff]   ;;  %v8088_v37 = vcombine.low %v7997_v35, %v7999_v34  ;;  %v7952_v44 = vld [vmem:[#allocation7 + $0x20] ss:$2 sm:$0xf] }
 0x87f   : > { %v7847_v13 = vadd.f32 %v15625_v63, %v7834_v7  ;;  %v7835_v36 = vmul.f32 %v15620_v2, %v7820_v46  ;;  %9478 = vmatprep.subr.bf16.mxu1 %v11843_v9  ;;  %v8007_v7 = vld [vmem:[#allocation7 + $0x41] ss:$2 sm:$0xf] }
 0x880   : > { %v7993_v6 = vld [vmem:[#allocation7 + $0x52] ss:$2 sm:$0xf]  ;;  %v11864_v35 = vld [vmem:[%s15997_s13 + $0x80] sm:$0xff]  }
 0x881   : > { %v7911_v30 = vadd.f32 %v7903_v59, %v7847_v13  ;;  %v7848_v0 = vadd.f32 %v15625_v63, %v7835_v36  ;;  %v11844_v63 = vld [vmem:[%s15995_s11 + $0x20] sm:$0xff]   ;;  %v7977_v11 = vld [vmem:[#allocation7 + $0x50] ss:$2 sm:$0xf] }
 0x882   : > { %v7964_v2 = vld [vmem:[#allocation7 + $0x61] ss:$2 sm:$0xf]  ;;  %v7972_v26 = vld [vmem:[#allocation7 + $0x62] ss:$2 sm:$0xf]  ;;  %9479 = vmatpush3.bf16.msra.mxu1 %v11844_v63 }
 0x883   : > { %v7919_v16 = vmax.f32 %v7911_v30, 0.0  ;;  %v7912_v19 = vadd.f32 %v7904_v15, %v7848_v0  ;;  %v8033_v23 = vcombine.low %v7962_v52, %v7964_v2  ;;  %v8045_v14 = vcombine.low %v7970_v28, %v7972_v26  ;;  %9480 = vmatprep.subr.bf16.mxu1 %v11845_v62  ;;  %v8017_v8 = vld [vmem:[#allocation7 + $0x62] ss:$2 sm:$0xf] }
 0x884   : > { %v8001_v58 = vld [vmem:[#allocation7 + $0x60] ss:$2 sm:$0xf]  ;;  %v8009_v46 = vld [vmem:[#allocation7 + $0x61] ss:$2 sm:$0xf] }
 0x885   : > { %7948 = vst.msk [vmem:[#allocation7 + $0x71] sm:$0xff] %vm2079_vm3, %v7919_v16  ;;  %v7920_v47 = vmax.f32 %v7912_v19, 0.0  ;;  %v11733_v3 = vpack.i.bf16 %v8033_v23, %v8032_v18  ;;  %v11738_v1 = vpack.i.bf16 %v8045_v14, %v8044_v12  ;;  %v8005_v36 = vld [vmem:[#allocation7 + $0x21] ss:$2 sm:$0xf] }
 0x886   : > { %9481 = vmatpush3.bf16.msra.mxu1 %v11846_v24  ;;  %v8100_v49 = vcombine.low %v8005_v36, %v8007_v7  ;;  %v7950_v0 = vld [vmem:[#allocation7] ss:$2 sm:$0xf]  ;;  %v7983_v26 = vld [vmem:[#allocation7 + $0x31] ss:$2 sm:$0xf] }
 0x887   : > { %7949 = vst.msk [vmem:[#allocation7 + $0x81] sm:$0xff] %vm2079_vm3, %v7920_v47  ;;  %11734 = vrot.lane.b32.xlu1 %v11733_v3, %s16110_s23  ;;  %9482 = vmatprep.subr.bf16.mxu1 %v11847_v20  ;;  %v7956_v52 = vld [vmem:[#allocation7 + $0x60] ss:$2 sm:$0xf]  ;;  %v8024_v28 = vcombine.low %v7950_v0, %v7952_v44  ;;  %v11868_v7 = vld [vmem:[%s15997_s13 + $0x88] sm:$0xff]   ;;  %v11872_v36 = vld [vmem:[%s15997_s13 + $0x90] sm:$0xff]  }
 0x888   : > { %v7954_v19 = vld [vmem:[#allocation7 + $0x40] ss:$2 sm:$0xf]  ;;  %v7985_v14 = vld [vmem:[#allocation7 + $0x51] ss:$2 sm:$0xf] }
 0x889   : > { %v8025_v29 = vcombine.low %v7954_v19, %v7956_v52  ;;  %v7981_v12 = vld [vmem:[#allocation7 + $0x11] ss:$2 sm:$0xf]  ;;  %v11874_v0 = vld [vmem:[%s15997_s13 + $0x20] sm:$0xff]   ;;  %v11877_v52 = vld [vmem:[%s15997_s13 + $0x68] sm:$0xff]  }
 0x88a   : > { %9483 = vmatpush3.bf16.msra.mxu1 %v11848_v38  ;;  %v11880_v44 = vld [vmem:[%s15997_s13 + $0xa0] sm:$0xff]  }
 0x88b   : > { %11739 = vrot.lane.b32.xlu1 %v11738_v1, %s16114_s0  ;;  %9484 = vmatprep.subr.bf16.mxu1 %v11849_v22 }
 0x88c   : > { %v7995_v60 = vld [vmem:[#allocation7 + $0x72] ss:$2 sm:$0xf]  ;;  %v7987_v48 = vld [vmem:[#allocation7 + $0x71] ss:$2 sm:$0xf] }
 0x88d   : > { %v7979_v40 = vld [vmem:[#allocation7 + $0x70] ss:$2 sm:$0xf]  ;;  %v8077_v45 = vcombine.low %v7993_v6, %v7995_v60  ;;  %v8069_v57 = vcombine.low %v7985_v14, %v7987_v48  ;;  %v8068_v6 = vcombine.low %v7981_v12, %v7983_v26 }
 0x88e   : > { %v8057_v25 = vcombine.low %v7977_v11, %v7979_v40  ;;  %v8019_v56 = vld [vmem:[#allocation7 + $0x82] ss:$2 sm:$0xf]  ;;  %v8011_v43 = vld [vmem:[#allocation7 + $0x81] ss:$2 sm:$0xf]  ;;  %9485 = vmatpush3.bf16.msra.mxu1 %v11850_v51 }
 0x88f   : > { %v8003_v39 = vld [vmem:[#allocation7 + $0x80] ss:$2 sm:$0xf]  ;;  %v11743_v21 = vpack.i.bf16 %v8077_v45, %v8076_v5  ;;  %v8113_v54 = vcombine.low %v8017_v8, %v8019_v56  ;;  %v8101_v13 = vcombine.low %v8009_v46, %v8011_v43  ;;  %v11867_v43 = vld [vmem:[%s15997_s13 + $0xc8] sm:$0xff]   ;;  %v11871_v46 = vld [vmem:[%s15997_s13 + $0xd0] sm:$0xff]  }
 0x890   : > { %v11758_v31 = vpack.i.bf16 %v8057_v25, %v8056_v42  ;;  %v8089_v33 = vcombine.low %v8001_v58, %v8003_v39  ;;  %v11863_v51 = vld [vmem:[%s15997_s13 + $0xc0] sm:$0xff]  }
 0x891   : > { %11744 = vrot.lane.b32.xlu0 %v11743_v21, %s16110_s23  ;;  %v8130_v27 = vpack.c.bf16 %v8113_v54, %v8112_v32  ;;  %v11753_v59 = vpack.i.bf16 %v8101_v13, %v8100_v49  ;;  %v11860_v54 = vld [vmem:[%s15997_s13] sm:$0xff]   ;;  %9517 = vmatprep.subr.bf16.mxu1 %v11863_v51  ;;  %v11869_v13 = vld [vmem:[%s15997_s13 + $0x58] sm:$0xff]  }
 0x892   : > { %11759 = vrot.lane.b32.xlu1 %v11758_v31, %s16118_s24  ;;  %v11748_v61 = vpack.i.bf16 %v8089_v33, %v8088_v37  ;;  %v11859_v31 = vld [vmem:[%s15997_s13 + $0x40] sm:$0xff]   ;;  %v11861_v33 = vld [vmem:[%s15997_s13 + $0x48] sm:$0xff]   ;;  %v11865_v37 = vld [vmem:[%s15997_s13 + $0x50] sm:$0xff]  }
 0x893   : > { %9612 = vmatmul.mubr.msk.bf16.vlgmr.msra.gmra.mrb[104].mxu0 %vm2079_vm3, %v8130_v27  ;;  %9495 = vmatprep.subr.bf16.mxu0 %v11859_v31  ;;  %v11862_v27 = vld [vmem:[%s15997_s13 + $0x8] sm:$0xff]   ;;  %v11875_v49 = vld [vmem:[%s15997_s13 + $0xd8] sm:$0xff]  }
 0x894   : > { %9496 = vmatpush3.bf16.msra.mxu0 %v11860_v54  ;;  %v8961_v54 = vld [vmem:[#allocation7 + $0x11] ss:$2 sm:$0xf] }
 0x895   : > { %11749 = vrot.lane.b32.xlu0 %v11748_v61, %s16114_s0  ;;  %9497 = vmatprep.subr.bf16.mxu0 %v11861_v33  ;;  %v11866_v61 = vld [vmem:[%s15997_s13 + $0x10] sm:$0xff]   ;;  %v11895_v33 = vld [vmem:[%s15997_s13 + $0xf8] sm:$0xff]  }
 0x898   : > { %9498 = vmatpush3.bf16.msra.mxu0 %v11862_v27 }
 0x899   : > { %11754 = vrot.lane.b32.xlu0 %v11753_v59, %s16118_s24  ;;  %9499 = vmatprep.subr.bf16.mxu0 %v11865_v37  ;;  %v11870_v59 = vld [vmem:[%s15997_s13 + $0x18] sm:$0xff]   ;;  %s539_s24 = sand.u32 1, %s11969_s25  }
 0x89a   : > { %s540_s2 = scalar_lea.vmem [#allocation9], %s539_s24  ;;  %s9081_s20 = scalar_lea.sflag [#allocation10], %s539_s24 }
 0x89b   : > { %s9093_s26 = sshll.u32 %s540_s2, 4  ;;  %s15944_s26 = int_to_ptr.vmem [resolvable:$true] %s9093_s26 }
 0x89c   : > { %9500 = vmatpush3.bf16.msra.mxu0 %v11866_v61  ;;  %s11915_s21 = scalar_lea.vmem %s15944_s26, 16 }
 0x89d   : > { %9501 = vmatprep.subr.bf16.mxu0 %v11869_v13  ;;  %p11916_p11 = scmp.ne.s32.totalorder %s15944_s26, %s11915_s21 }
 0x89f   : > { %p11917_p12 = pnand %p11916_p11, %p12123_p5 }
 0x8a0   : > { %9502 = vmatpush3.bf16.msra.mxu0 %v11870_v59 }
 0x8a1   : > { %p11918_p13 = pneg %p11917_p12 }
 0x8f9   : > { %v11735_v53 = vpop.permute.xlu1 %11734 }
 0x8fa   : > { %v11737_v9 = vunpack.i.h.bf16 %v11735_v53  ;;  %v11736_v2 = vunpack.i.l.bf16 %v11735_v53  ;;  %v11873_v53 = vld [vmem:[%s15997_s13 + $0x60] sm:$0xff]  }
 0x8fb   : > { %9503 = vmatprep.subr.bf16.mxu0 %v11873_v53 }
 0x8fc   : > { %v8117_v55 = vsel %vm2079_vm3, %v8025_v29, %v11737_v9  ;;  %v8116_v41 = vsel %vm2079_vm3, %v8024_v28, %v11736_v2  ;;  %9504 = vmatpush3.bf16.msra.mxu0 %v11874_v0  ;;  %v11878_v9 = vld [vmem:[%s15997_s13 + $0x28] sm:$0xff]   ;;  %v11881_v2 = vld [vmem:[%s15997_s13 + $0x70] sm:$0xff]   ;;  %v9358_v28 = vld [vmem:[%s15996_s12 + $0x1] ss:$0 sm:$0xff] }
 0x8fd   : > { %v11740_v15 = vpop.permute.xlu1 %11739  ;;  %9505 = vmatprep.subr.bf16.mxu0 %v11877_v52 }
 0x8fe   : > { %v11742_v18 = vunpack.i.h.bf16 %v11740_v15  ;;  %v11741_v23 = vunpack.i.l.bf16 %v11740_v15  ;;  %v11876_v15 = vld [vmem:[%s15997_s13 + $0x98] sm:$0xff]  }
 0x900   : > { %v8118_v4 = vsel %vm2211_vm9, %v8116_v41, %v11741_v23  ;;  %v8119_v20 = vsel %vm2211_vm9, %v8117_v55, %v11742_v18  ;;  %9506 = vmatpush3.bf16.msra.mxu0 %v11878_v9  ;;  %v9357_v23 = vld [vmem:[%s15996_s12] ss:$0 sm:$0xff]  ;;  %v11884_v41 = vld [vmem:[%s15997_s13 + $0x30] sm:$0xff]  }
 0x901   : > { %9507 = vmatprep.subr.bf16.mxu0 %v11881_v2 }
 0x903   : > { %v11745_v30 = vpop.permute.xlu0 %11744 }
 0x904   : > { %v11760_v16 = vpop.permute.xlu1 %11759  ;;  %v11747_v47 = vunpack.i.h.bf16 %v11745_v30  ;;  %v11746_v3 = vunpack.i.l.bf16 %v11745_v30  ;;  %v11879_v30 = vld [vmem:[%s15997_s13 + $0xe0] sm:$0xff]   ;;  %9508 = vmatpush3.bf16.msra.mxu0 %v11884_v41 }
 0x905   : > { %v11762_v62 = vunpack.i.h.bf16 %v11760_v16  ;;  %v11761_v24 = vunpack.i.l.bf16 %v11760_v16 }
 0x906   : > { %v8123_v10 = vsel %vm2079_vm3, %v8069_v57, %v11747_v47  ;;  %v8122_v38 = vsel %vm2079_vm3, %v8068_v6, %v11746_v3  ;;  %vm8390_vm3 = vcmask 519168   ;;  %v11885_v57 = vld [vmem:[%s15997_s13 + $0xe8] sm:$0xff]  }
 0x907   : > { %v11750_v63 = vpop.permute.xlu0 %11749  ;;  %v8121_v8 = vsel %vm4050_vm13, %v8119_v20, %v11762_v62  ;;  %v8120_v34 = vsel %vm4050_vm13, %v8118_v4, %v11761_v24  ;;  %v11886_v6 = vld [vmem:[%s15997_s13 + $0xa8] sm:$0xff]   ;;  %v11887_v4 = vld [vmem:[%s15997_s13 + $0x78] sm:$0xff]  }
 0x908   : > { %v11752_v50 = vunpack.i.h.bf16 %v11750_v63  ;;  %v11751_v1 = vunpack.i.l.bf16 %v11750_v63  ;;  %v8128_v22 = vpack.c.bf16 %v8121_v8, %v8120_v34  ;;  %9509 = vmatprep.subr.bf16.mxu0 %v11887_v4  ;;  %v8996_v4 = vld [vmem:[%s15999_s15] sm:$0xff] }
 0x90a   : > { %v8124_v5 = vsel %vm2211_vm9, %v8122_v38, %v11751_v1  ;;  %v8125_v45 = vsel %vm2211_vm9, %v8123_v10, %v11752_v50 }
 0x90b   : > { %v11755_v11 = vpop.permute.xlu0 %11754 }
 0x90c   : > { %v11757_v60 = vunpack.i.h.bf16 %v11755_v11  ;;  %v11756_v40 = vunpack.i.l.bf16 %v11755_v11 }
 0x90e   : > { %v8126_v42 = vsel %vm4050_vm13, %v8124_v5, %v11756_v40  ;;  %v8127_v25 = vsel %vm4050_vm13, %v8125_v45, %v11757_v60  ;;  %v8964_v45 = vld [vmem:[#allocation7 + $0x71] ss:$2 sm:$0xf] }
 0x90f   : > { %v8129_v58 = vpack.c.bf16 %v8127_v25, %v8126_v42 }
 0x911   : > { %8310 = vmatprep.mubr.bf16.mxu1 %v8129_v58  ;;  %v8962_v58 = vld [vmem:[#allocation7 + $0x31] ss:$2 sm:$0xf] }
 0x912   : > { %8311 = vmatmul.mubr.bf16.vlgmr.msra.gmra.mrb[96].mxu1 %v8128_v22  ;;  %v8969_v51 = vcombine.low %v8961_v54, %v8962_v58 }
 0x913   : > { %9518 = vmatpush3.bf16.msra.mxu1 %v11864_v35  ;;  %v11897_v35 = vld [vmem:[%s15997_s13 + $0xb8] sm:$0xff]  }
 0x914   : > { %9519 = vmatprep.subr.bf16.mxu1 %v11867_v43 }
 0x917   : > { %9520 = vmatpush3.bf16.msra.mxu1 %v11868_v7 }
 0x918   : > { %9521 = vmatprep.subr.bf16.mxu1 %v11871_v46 }
 0x91b   : > { %9522 = vmatpush3.bf16.msra.mxu1 %v11872_v36 }
 0x91c   : > { %9523 = vmatprep.subr.bf16.mxu1 %v11875_v49 }
 0x91f   : > { %9524 = vmatpush3.bf16.msra.mxu1 %v11876_v15 }
 0x920   : > { %9525 = vmatprep.subr.bf16.mxu1 %v11879_v30 }
 0x923   : > { %9526 = vmatpush3.bf16.msra.mxu1 %v11880_v44 }
 0x924   : > { %9527 = vmatprep.subr.bf16.mxu1 %v11885_v57 }
 0x927   : > { %9528 = vmatpush3.bf16.msra.mxu1 %v11886_v6 }
 0x966   : > { %v15748_v56 = vpop.f32.mrb[104].mxu0 }
 0x967   : > { %v9613_v32 = vpop.f32.mrb[105].mxu0 }
 0x968   : > { %v15750_v39 = vpop.f32.mrb[106].mxu0  ;;  %v11890_v32 = vld [vmem:[%s15997_s13 + $0x38] sm:$0xff]  }
 0x969   : > { %v9614_v21 = vpop.f32.mrb[107].mxu0  ;;  %9510 = vmatpush3.bf16.msra.mxu0 %v11890_v32 }
 0x96a   : > { %v11892_v21 = vld [vmem:[%s15997_s13 + $0xb0] sm:$0xff]   ;;  %9615 = vmatprep.subr.bf16.mxu0 %v16216_v17 }
 0x9e5   : > { %v9486_v26 = vpop.f32.mrb[96].mxu1 }
 0x9e6   : > { %v9487_v16 = vpop.f32.mrb[97].mxu1 }
 0x9e7   : > { %v9488_v19 = vadd.f32 %v9487_v16, %v9486_v26  ;;  %v9489_v18 = vpop.f32.mrb[98].mxu1 }
 0x9e8   : > { %v9490_v48 = vpop.f32.mrb[99].mxu1 }
 0x9e9   : > { %v8354_v63 = vadd.f32 %v9488_v19, %v15748_v56  ;;  %v9491_v29 = vadd.f32 %v9490_v48, %v9489_v18  ;;  %v8963_v56 = vld [vmem:[#allocation7 + $0x51] ss:$2 sm:$0xf]  ;;  %v11896_v18 = vld [vmem:[%s15997_s13 + $0x100] sm:$0xff]  }
 0x9ea   : > { %v8970_v31 = vcombine.low %v8963_v56, %v8964_v45  ;;  %v9003_v45 = vld [vmem:[%s15999_s15 + $0x38] sm:$0xff] }
 0x9eb   : > { %v8365_v47 = vmul.f32 %v9357_v23, %v8354_v63  ;;  %v8357_v3 = vadd.f32 %v9491_v29, %v15750_v39  ;;  %v11891_v39 = vld [vmem:[%s15997_s13 + $0xf0] sm:$0xff]  }
 0x9ec   : > { %9529 = vmatprep.subr.bf16.mxu1 %v11891_v39 }
 0x9ed   : > { %v8372_v14 = vadd.f32 %v9358_v28, %v8365_v47  ;;  %v8366_v12 = vmul.f32 %v9357_v23, %v8357_v3  ;;  %9530 = vmatpush3.bf16.msra.mxu1 %v11892_v21 }
 0x9ee   : > { %9531 = vmatprep.subr.bf16.mxu1 %v11895_v33 }
 0x9ef   : > { %v8374_v62 = vmax.f32 %v8372_v14, 0.0  ;;  %v8373_v24 = vadd.f32 %v9358_v28, %v8366_v12 }
 0x9f1   : > { %v8385_v50 = vcombine.high %v8374_v62, %v8374_v62  ;;  %8391 = vst.msk [vmem:[#allocation8 + $0x9] sm:$0xf] %vm8390_vm3, %v8374_v62  ;;  %v8375_v1 = vmax.f32 %v8373_v24, 0.0  ;;  %9532 = vmatpush3.bf16.msra.mxu1 %v11897_v35  ;;  %v11900_v24 = vld [vmem:[%s15997_s13 + $0x108] sm:$0xff]  }
 0x9f3   : > { %8392 = vst.msk [vmem:[#allocation8 + $0x11] sm:$0xf] %vm8390_vm3, %v8385_v50  ;;  %v8386_v55 = vcombine.high %v8375_v1, %v8375_v1  ;;  %8393 = vst.msk [vmem:[#allocation8 + $0x19] sm:$0xf] %vm8390_vm3, %v8375_v1  ;;  %v11901_v1 = vld [vmem:[%s15997_s13 + $0x110] sm:$0xff]  }
 0x9f5   : > { %8394 = vst.msk [vmem:[#allocation8 + $0x21] sm:$0xf] %vm8390_vm3, %v8386_v55  ;;  %v11902_v55 = vld [vmem:[%s15997_s13 + $0x118] sm:$0xff]  }
 0x9f8   : > { %v11851_v20 = vld [vmem:[#allocation8 + $0x1] ss:$8 sps:$4 sm:$0xff]  }
 0x9f9   : > { %v11882_v7 = vld [vmem:[#allocation8] ss:$8 sps:$4 sm:$0xff]  }
 0x9fa   : > { %v11852_v11 = vld [vmem:[#allocation8 + $0x11] ss:$8 sps:$4 sm:$0xff]   ;;  %v11893_v49 = vld [vmem:[#allocation8 + $0x2] ss:$8 sps:$4 sm:$0xff]  }
 0x9fb   : > { %v11853_v10 = vld [vmem:[#allocation8 + $0x8] ss:$8 sps:$4 sm:$0xff]   ;;  %v11768_v38 = vpack.i.bf16 %v11852_v11, %v11851_v20 }
 0x9fc   : > { %v11854_v60 = vld [vmem:[#allocation8 + $0x18] ss:$8 sps:$4 sm:$0xff]   ;;  %v11855_v40 = vld [vmem:[#allocation8 + $0xa] ss:$8 sps:$4 sm:$0xff]  }
 0x9fd   : > { %11769 = vrot.lane.b32.xlu1 %v11768_v38, %s16114_s0  ;;  %v11763_v8 = vpack.i.bf16 %v11854_v60, %v11853_v10  ;;  %v11856_v34 = vld [vmem:[#allocation8 + $0x1a] ss:$8 sps:$4 sm:$0xff]   ;;  %v11888_v2 = vld [vmem:[#allocation8 + $0x9] ss:$8 sps:$4 sm:$0xff]   ;;  %v11993_v10 = vmov 0.0|0.0  }
 0x9fe   : > { %v11858_v5 = vld [vmem:[#allocation8 + $0x21] ss:$8 sps:$4 sm:$0xff]   ;;  %v11778_v42 = vpack.i.bf16 %v11856_v34, %v11855_v40  ;;  %v11857_v25 = vld [vmem:[#allocation8 + $0x11] ss:$8 sps:$4 sm:$0xff]   ;;  %9646 = vmatprep.subr.bf16.mxu1 %v11993_v10 }
 0x9ff   : > { %11764 = vrot.lane.b32.xlu0 %v11763_v8, %s16114_s0  ;;  %v11773_v22 = vpack.i.bf16 %v11858_v5, %v11857_v25  ;;  %v11883_v46 = vld [vmem:[#allocation8 + $0x10] ss:$8 sps:$4 sm:$0xff]   ;;  %v11899_v28 = vld [vmem:[#allocation8 + $0x20] ss:$8 sps:$4 sm:$0xff]  }
 0xa00   : > { %v11894_v59 = vld [vmem:[#allocation8 + $0x12] ss:$8 sps:$4 sm:$0xff]   ;;  %v11904_v41 = vld [vmem:[#allocation8 + $0x22] ss:$8 sps:$4 sm:$0xff]  }
 0xa01   : > { %11779 = vrot.lane.b32.xlu1 %v11778_v42, %s16114_s0  ;;  %v11889_v26 = vld [vmem:[#allocation8 + $0x19] ss:$8 sps:$4 sm:$0xff]   ;;  %v8997_v20 = vld [vmem:[%s15999_s15 + $0x8] sm:$0xff]  ;;  %v8998_v11 = vld [vmem:[%s15999_s15 + $0x10] sm:$0xff] }
 0xa02   : > { %v11898_v29 = vld [vmem:[#allocation8 + $0x10] ss:$8 sps:$4 sm:$0xff]   ;;  %v9000_v40 = vld [vmem:[%s15999_s15 + $0x20] sm:$0xff]  ;;  %v9001_v8 = vld [vmem:[%s15999_s15 + $0x28] sm:$0xff] }
 0xa03   : > { %11774 = vrot.lane.b32.xlu0 %v11773_v22, %s16114_s0  ;;  %v11903_v57 = vld [vmem:[#allocation8 + $0x12] ss:$8 sps:$4 sm:$0xff]   ;;  %v9653_v34 = vpack.c.bf16 %v9001_v8, %v9000_v40 }
 0xa04   : > { %v8532_v6 = vpack.c.bf16 %v11904_v41, %v11903_v57  ;;  %v8999_v38 = vld [vmem:[%s15999_s15 + $0x18] sm:$0xff]  ;;  %v9002_v5 = vld [vmem:[%s15999_s15 + $0x30] sm:$0xff] }
 0xa05   : > { %8973 = vrot.lane.b32.xlu1 %v8970_v31, %s16108_s29  ;;  %v9650_v60 = vpack.c.bf16 %v8999_v38, %v8998_v11  ;;  %v9656_v42 = vpack.c.bf16 %v9003_v45, %v9002_v5 }
 0xa07   : > { %8971 = vrot.lane.b32.xlu0 %v8969_v51, %s16108_s29  ;;  %s9399_s29 = sshll.u32 %s12106_s28, 4  ;;  %s11994_s28 = smov [#allocation9]  }
 0xa08   : > { %s15942_s18 = scalar_lea.hbm %s16001_s17, %s9399_s29  ;;  %s11919_s30 = sshll.u32 %s11994_s28, 4  ;;  %s11920_s30 = int_to_ptr.vmem [resolvable:$false] %s11919_s30 }
 0xa09   : > { %s11921_s3 = scalar_lea.vmem %s11920_s30, 32  ;;  %p11922_p0 = scmp.lt.s32.totalorder %s15944_s26, %s11920_s30 }
 0xa0a   : > { %p11923_p1 = scmp.lt.s32.totalorder %s11921_s3, %s11915_s21 }
 0xa0c   : > { %p11924_p2 = por %p11923_p1, %p11922_p0 }
 0xa0e   : > { %p11925_p3 = pnand %p11924_p2, %p11918_p13 }
 0xa6f   : > { %v11770_v43 = vpop.permute.xlu1 %11769 }
 0xa70   : > { %v11772_v27 = vunpack.i.h.bf16 %v11770_v43  ;;  %v11771_v37 = vunpack.i.l.bf16 %v11770_v43 }
 0xa71   : > { %v11765_v61 = vpop.permute.xlu0 %11764 }
 0xa72   : > { %v11767_v13 = vunpack.i.h.bf16 %v11765_v61  ;;  %v11766_v36 = vunpack.i.l.bf16 %v11765_v61  ;;  %v8520_v53 = vsel %vm2211_vm9, %v11882_v7, %v11771_v37  ;;  %v8521_v15 = vsel %vm2211_vm9, %v11883_v46, %v11772_v27  ;;  %v9396_v46 = vld [vmem:[%s15998_s14] ss:$0 sm:$0xff] }
 0xa73   : > { %v11780_v30 = vpop.permute.xlu1 %11779  ;;  %v8528_v23 = vpack.c.bf16 %v8521_v15, %v8520_v53 }
 0xa74   : > { %v11782_v0 = vunpack.i.h.bf16 %v11780_v30  ;;  %v11781_v52 = vunpack.i.l.bf16 %v11780_v30  ;;  %v8522_v44 = vsel %vm2211_vm9, %v11893_v49, %v11766_v36  ;;  %v8523_v9 = vsel %vm2211_vm9, %v11894_v59, %v11767_v13  ;;  %v9397_v49 = vld [vmem:[%s15998_s14 + $0x1] ss:$0 sm:$0xff] }
 0xa75   : > { %v11775_v16 = vpop.permute.xlu0 %11774  ;;  %v8529_v19 = vpack.c.bf16 %v8523_v9, %v8522_v44 }
 0xa76   : > { %v11777_v48 = vunpack.i.h.bf16 %v11775_v16  ;;  %v11776_v63 = vunpack.i.l.bf16 %v11775_v16  ;;  %v8525_v47 = vsel %vm2211_vm9, %v11889_v26, %v11782_v0  ;;  %v8524_v3 = vsel %vm2211_vm9, %v11888_v2, %v11781_v52 }
 0xa77   : > { %8856 = vmatprep.mubr.bf16.mxu0 %v8529_v19  ;;  %v8530_v50 = vpack.c.bf16 %v8525_v47, %v8524_v3  ;;  %v8974_v36 = vpop.permute.xlu1 %8973 }
 0xa78   : > { %8857 = vmatmul.mubr.bf16.vlgmr.msra.gmra.mrb[108].mxu0 %v8528_v23  ;;  %v8526_v14 = vsel %vm2211_vm9, %v11898_v29, %v11776_v63  ;;  %v8527_v12 = vsel %vm2211_vm9, %v11899_v28, %v11777_v48  ;;  %v8978_v52 = vsel %vm2013_vm2, 0.0, %v8974_v36 }
 0xa79   : > { %9616 = vmatpush3.bf16.msra.mxu0 %v11896_v18  ;;  %v8531_v62 = vpack.c.bf16 %v8527_v12, %v8526_v14  ;;  %9623 = vmatprep.mubr.msk.bf16.mxu0 %vm11992_vm1, %v16216_v17  ;;  %v8972_v37 = vpop.permute.xlu0 %8971  ;;  %v8980_v19 = vsel %vm2145_vm7, %v8978_v52, 0.0 }
 0xa7a   : > { %9617 = vmatprep.subr.bf16.mxu0 %v16216_v17  ;;  %v8977_v53 = vsel %vm2013_vm2, 0.0, %v8972_v37  ;;  %vm9078_vm2 = vcmask 73728  }
 0xa7b   : > { %8897 = vmatprep.mubr.bf16.mxu1 %v8531_v62  ;;  %v8979_v2 = vsel %vm2145_vm7, %v8977_v53, 0.0 }
 0xa7c   : > { %8898 = vmatmul.mubr.bf16.vlgmr.msra.gmra.mrb[100].mxu1 %v8530_v50 }
 0xa7d   : > { %9618 = vmatpush3.bf16.msra.mxu0 %v11900_v24  ;;  %9643 = vmatprep.mubr.msk.f32.mxu1 %vm11992_vm1, %v16216_v17 }
 0xa7e   : > { %9619 = vmatprep.subr.bf16.mxu0 %v16216_v17 }
 0xa81   : > { %9620 = vmatpush3.bf16.msra.mxu0 %v11901_v1  ;;  %v9004_v1 = vld [vmem:[%s16000_s16] sm:$0x1] }
 0xa82   : > { %9621 = vmatprep.subr.bf16.mxu0 %v16216_v17  ;;  %v9647_v17 = vpack.c.bf16 %v8997_v20, %v8996_v4 }
 0xa84   : > { %9648 = vmatpush3.bf16.msra.mxu1 %v9647_v17 }
 0xa85   : > { %9622 = vmatpush3.bf16.msra.mxu0 %v11902_v55  ;;  %9649 = vmatprep.subr.bf16.mxu1 %v11993_v10 }
 0xa88   : > { %9624 = vmatmul.mubr.msk.bf16.vlgmr.msra.gmra.mrb[112].mxu0 %vm2211_vm9, %v8532_v6  ;;  %9651 = vmatpush3.bf16.msra.mxu1 %v9650_v60 }
 0xa89   : > { %9652 = vmatprep.subr.bf16.mxu1 %v11993_v10 }
 0xa8c   : > { %9654 = vmatpush3.bf16.msra.mxu1 %v9653_v34 }
 0xa8d   : > { %9655 = vmatprep.subr.bf16.mxu1 %v11993_v10 }
 0xa90   : > { %9657 = vmatpush3.bf16.msra.mxu1 %v9656_v42 }
 0xb4b   : > { %v9511_v25 = vpop.f32.mrb[108].mxu0 }
 0xb4c   : > { %v9512_v58 = vpop.f32.mrb[109].mxu0 }
 0xb4d   : > { %v9513_v22 = vadd.f32 %v9512_v58, %v9511_v25  ;;  %v9514_v56 = vpop.f32.mrb[110].mxu0 }
 0xb4e   : > { %v9515_v32 = vpop.f32.mrb[111].mxu0 }
 0xb4f   : > { %v9516_v39 = vadd.f32 %v9515_v32, %v9514_v56  ;;  %v9533_v21 = vpop.f32.mrb[100].mxu1 }
 0xb50   : > { %v9534_v31 = vpop.f32.mrb[101].mxu1 }
 0xb51   : > { %v9535_v54 = vadd.f32 %v9534_v31, %v9533_v21  ;;  %v9536_v33 = vpop.f32.mrb[102].mxu1 }
 0xb52   : > { %v9537_v51 = vpop.f32.mrb[103].mxu1 }
 0xb53   : > { %v9538_v35 = vadd.f32 %v9537_v51, %v9536_v33  ;;  %v8900_v43 = vadd.f32 %v9535_v54, %v9513_v22 }
 0xb55   : > { %v8903_v27 = vadd.f32 %v9538_v35, %v9516_v39 }
 0xb5b   : > { %v8940_v7 = vpop.f32.mrb[112].mxu0 }
 0xb5c   : > { %v8941_v61 = vadd.f32 %v8940_v7, %v8900_v43  ;;  %v9625_v13 = vpop.f32.mrb[113].mxu0 }
 0xb5d   : > { %v8943_v59 = vpop.f32.mrb[114].mxu0 }
 0xb5e   : > { %v8952_v15 = vmul.f32 %v9396_v46, %v8941_v61  ;;  %v8944_v30 = vadd.f32 %v8943_v59, %v8903_v27  ;;  %v9626_v0 = vpop.f32.mrb[115].mxu0 }
 0xb60   : > { %v8959_v44 = vadd.f32 %v9397_v49, %v8952_v15  ;;  %v8953_v9 = vmul.f32 %v9396_v46, %v8944_v30 }
 0xb62   : > { %v8981_v26 = vadd.f32 %v8979_v2, %v8959_v44  ;;  %v8960_v16 = vadd.f32 %v9397_v49, %v8953_v9 }
 0xb64   : > { %v8983_v18 = vmax.f32 %v8981_v26, 0.0  ;;  %v8982_v23 = vadd.f32 %v8980_v19, %v8960_v16 }
 0xb66   : > { %v8984_v48 = vmax.f32 %v8982_v23, 0.0  ;;  %v8985_v63 = vsel %vm2211_vm9, %v8983_v18, 0.0 }
 0xb68   : > { %v8986_v29 = vsel %vm2211_vm9, %v8984_v48, 0.0 }
 0xb69   : > { %v8987_v28 = vadd.f32 %v8986_v29, %v8985_v63 }
 0xb6b   : > { %v8988_v47 = vrot.slane %v8987_v28, 4 }
 0xb6d   : > { %v8989_v3 = vadd.f32 %v8988_v47, %v8987_v28 }
 0xb6f   : > { %v8990_v14 = vrot.slane %v8989_v3, 2 }
 0xb71   : > { %v8991_v12 = vadd.f32 %v8990_v14, %v8989_v3 }
 0xb73   : > { %v8992_v62 = vrot.slane %v8991_v12, 1 }
 0xb75   : > { %v8993_v24 = vadd.f32 %v8992_v62, %v8991_v12 }
 0xb77   : > { %v8995_v50 = vmul.f32 0.0625, %v8993_v24 }
 0xb79   : > { %9644 = vmatmul.mubr.msk.f32.vlgmr.msra.gmra.mrb[104].mxu1 %vm2211_vm9, %v8995_v50 }
 0xc4c   : > { %v9074_v55 = vpop.f32.mrb[104].mxu1 }
 0xc4d   : > { %v9075_v41 = vadd.f32 %v9074_v55, %v9004_v1  ;;  %v9645_v57 = vpop.f32.mrb[105].mxu1 }
 0xc4f   : > { %9079 = vst.msk [vmem:[%s540_s2] sm:$0x1] %vm9078_vm2, %v9075_v41 }
 0xc50   : > { %11928 = shalt.err (!%p11925_p3)
}
 0xc51   : > { %s11929_s4 = scalar_lea.hbm %s15942_s18, 16  ;;  %s11933_s5 = scalar_lea.hbm %s16001_s17, 32 }
 0xc52   : > { %p11930_p4 = scmp.ne.s32.totalorder %s15942_s18, %s11929_s4  ;;  %p11934_p9 = scmp.lt.u32.totalorder %s15942_s18, %s16001_s17 }
 0xc53   : > { %p11935_p10 = scmp.lt.u32.totalorder %s11933_s5, %s11929_s4  ;;  %p11937_p12 = scmp.lt.u32.totalorder %s11929_s4, %s15942_s18 }
 0xc54   : > { %p11931_p7 = pnand %p11930_p4, %p12123_p5 }
 0xc55   : > { %p11936_p11 = por %p11935_p10, %p11934_p9 }
 0xc56   : > { %p11932_p8 = pneg %p11931_p7 }
 0xc57   : > { %p11938_p13 = por %p11937_p12, %p11936_p11 }
 0xc59   : > { %p11939_p0 = pnand %p11938_p13, %p11932_p8 }
 0xc5b   : > { %11942 = shalt.err (!%p11939_p0)
}
 0xc5c   : > { %9659 = dma.vmem_to_hbm [thread:$0]  (%p12123_p5), %s15944_s26, 16, %s15942_s18, %s9081_s20  }
 0xc5d PF: > { %s16217_s2 = sld [smem:[#allocation12_spill]]  ;;  %p9665_p1 = scmp.ge.s32.totalorder %s11977_s27, 2 }
 0xc5f   : > { %p9662_p2 = pnand %p9665_p1, %p12127_p6 }
 0xc63   : > { %s9105_s19 = sand.u32 1, %s16217_s2  }
 0xc64   : > { %s9106_s21 = scalar_lea.sflag [#allocation10], %s9105_s19 }
 0xc65   : > { %11960 = dma.done.wait (!%p9662_p2), %s9106_s21, 16  }
 0xc66   : > { %11962 = vsyncadd (!%p9662_p2), %s9106_s21, 4294967280  ;;  %s16219_s27 = sld [smem:[#allocation14_spill]]  ;;  %s16220_s28 = sld [smem:[#allocation13_spill]] }
 0xc67   : > { %s16221_s26 = sld [smem:[#allocation15_spill]]  ;;  %s16222_s24 = smov %s11969_s25 }
 0xc6c   : > { %p27_p3 = scmp.ge.s32.totalorder %s16219_s27, 4   ;;  %s16223_s25 = smov %s16220_s28 }
 0xc6e   :  { %29 = sbr.rel (!%p27_p3) target bundleno = 10 (0xa), region = 239 }
 0xc75   :  { %9110 = vsyncpa [#allocation10], 1 }
 0xc76   :  { %9112 = vsyncpa [#allocation10 + $0x1], 1 }

</bundles_post_ra>
